<compile_context>
chip_gen: v7x
topology: tpu7x:2x2x1
jax: 0.10.0
libtpu: 0.0.40
codegen_flags: <defaults>
</compile_context>

<pallas_src>
import jax
import jax.numpy as jnp
from jax import lax
from jax.experimental import pallas as pl
from jax.experimental.pallas import tpu as pltpu

# ---- module hyperparameters (globals of the PyTorch script) ----
N_EMBD = 32
N_HEADS = 4
HEAD_SIZE = 8
BLOCK_SIZE = 8   # max sequence length; we run T == BLOCK_SIZE
DROPOUT = 0.0    # eval-mode dropout is identity

# ---- kernel tiling ----
TB = 32          # batch elements per grid step -> M = TB*T = 256 MXU rows
                 # (256 rows matches v6e/v7x MXU height, 2x128 rows on v5e)


def _mha_kernel(x_ref, wq_ref, wk_ref, wv_ref, wp_ref, bp_ref, o_ref):
    T, H, hs, C = BLOCK_SIZE, N_HEADS, HEAD_SIZE, N_EMBD

    xm = x_ref[...]                       # (TB*T, C) token rows of this tile
    M = xm.shape[0]
    nb = M // T                           # batch elements in this tile (== TB)

    # C**-0.5 with C = n_embd, exactly as the PyTorch reference.
    scale = jnp.float32(C) ** jnp.float32(-0.5)

    # QKV for all heads & all 256 rows in three big MXU calls; scale folded into q.
    q = jnp.dot(xm, wq_ref[...], preferred_element_type=jnp.float32) * scale
    k = jnp.dot(xm, wk_ref[...], preferred_element_type=jnp.float32)
    v = jnp.dot(xm, wv_ref[...], preferred_element_type=jnp.float32)

    wp = wp_ref[...]                      # (H*hs, C) loaded once, resident in vregs

    # Causal mask built once (hoisted out of the head loop).
    row = lax.broadcasted_iota(jnp.int32, (T, T), 0)
    col = lax.broadcasted_iota(jnp.int32, (T, T), 1)
    causal = (row >= col)[None, :, :]     # (1, T, T) broadcasts over the batch dim
    neg_inf = jnp.float32(-jnp.inf)

    # Per-head attention, batched over all nb batch elements with 3-D einsums.
    # The (M, hs) <-> (nb, T, hs) reshapes only regroup whole (8, lanes) sublane
    # tiles (layout no-ops); head extraction is a static 8-lane slice; the head
    # concat is eliminated by accumulating att_h @ Wp[h*hs:(h+1)*hs, :].
    acc = None
    for h in range(H):
        sl = slice(h * hs, (h + 1) * hs)
        qh = q[:, sl].reshape(nb, T, hs)
        kh = k[:, sl].reshape(nb, T, hs)
        vh = v[:, sl].reshape(nb, T, hs)

        s = jnp.einsum("bqd,bkd->bqk", qh, kh,
                       preferred_element_type=jnp.float32)       # (nb, T, T)
        s = jnp.where(causal, s, neg_inf)

        # numerically-stable softmax; reciprocal goes to the (otherwise idle) EUP
        s = s - jnp.max(s, axis=-1, keepdims=True)
        e = jnp.exp(s)
        p = e * pl.reciprocal(jnp.sum(e, axis=-1, keepdims=True), approx=True)

        ah = jnp.einsum("bqk,bkd->bqd", p, vh,
                        preferred_element_type=jnp.float32)      # (nb, T, hs)
        term = jnp.dot(ah.reshape(M, hs), wp[sl, :],
                       preferred_element_type=jnp.float32)       # (M, C)
        acc = term if acc is None else acc + term

    out_rows = acc + bp_ref[...]          # bias broadcast applied once per tile

    # TODO(synk): dropout (p=0.0 / eval mode) is identity; no stochastic masking.

    # Lane-dense output: the out block is (TB, T*C) with a 256-wide (2x128) lane
    # dim, so the output VMEM buffer and the VMEM->HBM writeback are dense.
    # Fill it with T static lane-offset stores (tile-aligned reshape + sublane
    # selects only, to keep Mosaic lowering on well-supported paths).
    out3 = out_rows.reshape(nb, T, C)     # sublane-tile regroup, layout no-op
    for t in range(T):
        o_ref[:, t * C:(t + 1) * C] = out3[:, t, :].astype(o_ref.dtype)


@jax.jit
def multi_head_attention(x, wq, wk, wv, wp, bp):
    """x: (B, T, C); wq/wk/wv: (C, H*hs); wp: (H*hs, C); bp: (1, C)."""
    B, T, C = x.shape
    Hhs = wq.shape[1]
    assert T == BLOCK_SIZE and C == N_EMBD and Hhs == N_HEADS * HEAD_SIZE

    # Pad the batch up to a multiple of TB; padded rows are sliced off below.
    n_tiles = pl.cdiv(B, TB)
    B_pad = n_tiles * TB
    if B_pad != B:
        x = jnp.pad(x, ((0, B_pad - B), (0, 0), (0, 0)))

    # Token-major rows: (B_pad*T, C).  Contiguous, so this reshape is free.
    x_rows = x.reshape(B_pad * T, C)

    grid_spec = pltpu.PrefetchScalarGridSpec(
        num_scalar_prefetch=0,
        grid=(n_tiles,),
        in_specs=[
            # 256 token rows (TB batch elements) per grid step
            pl.BlockSpec((TB * T, C), lambda i: (i, 0)),
            pl.BlockSpec((C, Hhs), lambda i: (0, 0)),   # Wq   (VMEM-resident)
            pl.BlockSpec((C, Hhs), lambda i: (0, 0)),   # Wk
            pl.BlockSpec((C, Hhs), lambda i: (0, 0)),   # Wv
            pl.BlockSpec((Hhs, C), lambda i: (0, 0)),   # Wproj
            pl.BlockSpec((1, C), lambda i: (0, 0)),     # bproj
        ],
        # Lane-dense output slab: last dim T*C = 256 (multiple of 128).
        out_specs=pl.BlockSpec((TB, T * C), lambda i: (i, 0)),
    )

    out = pl.pallas_call(
        _mha_kernel,
        out_shape=jax.ShapeDtypeStruct((B_pad, T * C), x.dtype),
        grid_spec=grid_spec,
        compiler_params=pltpu.CompilerParams(
            # batch-tile axis is embarrassingly parallel -> shards across the
            # two TensorCores on v7x (grid has >= 2 steps for realistic B).
            dimension_semantics=("parallel",)),
    )(x_rows, wq, wk, wv, wp, bp)

    return out[:B].reshape(B, T, C)


def _reference(x, wq, wk, wv, wp, bp):
    """Pure-JAX reference reproducing the PyTorch forward semantics."""
    B, T, C = x.shape
    q = x @ wq
    k = x @ wk
    v = x @ wv
    scale = C ** (-0.5)
    tril = jnp.tril(jnp.ones((T, T), dtype=bool))
    outs = []
    for h in range(N_HEADS):
        lo, hi = h * HEAD_SIZE, (h + 1) * HEAD_SIZE
        wei = jnp.einsum("btd,bsd->bts", q[..., lo:hi], k[..., lo:hi]) * scale
        wei = jnp.where(tril, wei, -jnp.inf)
        wei = jax.nn.softmax(wei, axis=-1)
        outs.append(jnp.einsum("bts,bsd->btd", wei, v[..., lo:hi]))
    cat = jnp.concatenate(outs, axis=-1)
    return cat @ wp + bp


if __name__ == "__main__":
    key = jax.random.PRNGKey(0)
    kx, kq, kk, kv, kp, kb = jax.random.split(key, 6)

    T, C = BLOCK_SIZE, N_EMBD
    Hhs = N_HEADS * HEAD_SIZE

    # deterministic synthetic parameters (PyTorch nn.Linear weights, pre-transposed
    # to (in, out) and stacked over heads)
    wq = jax.random.normal(kq, (C, Hhs), dtype=jnp.float32) * 0.1
    wk = jax.random.normal(kk, (C, Hhs), dtype=jnp.float32) * 0.1
    wv = jax.random.normal(kv, (C, Hhs), dtype=jnp.float32) * 0.1
    wp = jax.random.normal(kp, (Hhs, C), dtype=jnp.float32) * 0.1
    bp = jax.random.normal(kb, (1, C), dtype=jnp.float32) * 0.1

    # B=64: two full 32-batch tiles (exercises the parallel grid);
    # B=5 : ragged batch (exercises the padding path).
    for B in (64, 5):
        x = jax.random.normal(kx, (B, T, C), dtype=jnp.float32)

        out = jax.block_until_ready(multi_head_attention(x, wq, wk, wv, wp, bp))
        ref = _reference(x, wq, wk, wv, wp, bp)

        assert out.shape == (B, T, C)
        # tolerance loosened (vs 1e-5) because the softmax denominator uses the
        # EUP approximate reciprocal (pl.reciprocal(..., approx=True)).
        assert jnp.allclose(out, ref, atol=2e-3, rtol=2e-3), (
            f"mismatch vs reference at B={B}: "
            f"max abs err {float(jnp.max(jnp.abs(out - ref)))}")

    print("KERNEL_OK")
</pallas_src>

<mosaic_0001>
module attributes {stable_mosaic.version = 11 : i64} {
  func.func @_mha_kernel(%arg0: i32, %arg1: memref<256x32xf32, #tpu.memory_space<vmem>>, %arg2: memref<32x32xf32, #tpu.memory_space<vmem>>, %arg3: memref<32x32xf32, #tpu.memory_space<vmem>>, %arg4: memref<32x32xf32, #tpu.memory_space<vmem>>, %arg5: memref<32x32xf32, #tpu.memory_space<vmem>>, %arg6: memref<1x32xf32, #tpu.memory_space<vmem>>, %arg7: memref<32x256xf32, #tpu.memory_space<vmem>>) attributes {dimension_semantics = [#tpu.dimension_semantics<parallel>], iteration_bounds = array<i64: 2>, scalar_prefetch = 0 : i64, scratch_operands = 0 : i64, tpu.core_type = #tpu.core_type<tc>, window_params = [{transform_indices = @transform_0, window_bounds = array<i64: 256, 32>}, {pipeline_mode = #tpu.pipeline_mode<synchronous>, transform_indices = @transform_1, window_bounds = array<i64: 32, 32>}, {pipeline_mode = #tpu.pipeline_mode<synchronous>, transform_indices = @transform_2, window_bounds = array<i64: 32, 32>}, {pipeline_mode = #tpu.pipeline_mode<synchronous>, transform_indices = @transform_3, window_bounds = array<i64: 32, 32>}, {pipeline_mode = #tpu.pipeline_mode<synchronous>, transform_indices = @transform_4, window_bounds = array<i64: 32, 32>}, {pipeline_mode = #tpu.pipeline_mode<synchronous>, transform_indices = @transform_5, window_bounds = array<i64: 1, 32>}, {transform_indices = @transform_6, window_bounds = array<i64: 32, 256>}]} {
    %c0 = arith.constant 0 : index
    %c0_0 = arith.constant 0 : index
    %0 = vector.load %arg1[%c0, %c0_0] : memref<256x32xf32, #tpu.memory_space<vmem>>, vector<256x32xf32>
    %cst = arith.constant 3.200000e+01 : f32
    %cst_1 = arith.constant -5.000000e-01 : f32
    %1 = math.powf %cst, %cst_1 : f32
    %c0_2 = arith.constant 0 : index
    %c0_3 = arith.constant 0 : index
    %2 = vector.load %arg2[%c0_2, %c0_3] : memref<32x32xf32, #tpu.memory_space<vmem>>, vector<32x32xf32>
    %cst_4 = arith.constant dense<0.000000e+00> : vector<256x32xf32>
    %3 = tpu.matmul %0, %2, %cst_4 {dimension_numbers = #tpu.dot_dimension_numbers<[1], [0], [0], [1], [0, 0, 1, 1], [], []>} : vector<256x32xf32>, vector<32x32xf32>, vector<256x32xf32> -> vector<256x32xf32>
    %4 = vector.broadcast %1 : f32 to vector<256x32xf32>
    %5 = arith.mulf %3, %4 : vector<256x32xf32>
    %c0_5 = arith.constant 0 : index
    %c0_6 = arith.constant 0 : index
    %6 = vector.load %arg3[%c0_5, %c0_6] : memref<32x32xf32, #tpu.memory_space<vmem>>, vector<32x32xf32>
    %cst_7 = arith.constant dense<0.000000e+00> : vector<256x32xf32>
    %7 = tpu.matmul %0, %6, %cst_7 {dimension_numbers = #tpu.dot_dimension_numbers<[1], [0], [0], [1], [0, 0, 1, 1], [], []>} : vector<256x32xf32>, vector<32x32xf32>, vector<256x32xf32> -> vector<256x32xf32>
    %c0_8 = arith.constant 0 : index
    %c0_9 = arith.constant 0 : index
    %8 = vector.load %arg4[%c0_8, %c0_9] : memref<32x32xf32, #tpu.memory_space<vmem>>, vector<32x32xf32>
    %cst_10 = arith.constant dense<0.000000e+00> : vector<256x32xf32>
    %9 = tpu.matmul %0, %8, %cst_10 {dimension_numbers = #tpu.dot_dimension_numbers<[1], [0], [0], [1], [0, 0, 1, 1], [], []>} : vector<256x32xf32>, vector<32x32xf32>, vector<256x32xf32> -> vector<256x32xf32>
    %c0_11 = arith.constant 0 : index
    %c0_12 = arith.constant 0 : index
    %10 = vector.load %arg5[%c0_11, %c0_12] : memref<32x32xf32, #tpu.memory_space<vmem>>, vector<32x32xf32>
    %11 = tpu.iota {dimensions = array<i32: 0>} : vector<8x8xi32>
    %12 = tpu.iota {dimensions = array<i32: 1>} : vector<8x8xi32>
    %13 = arith.cmpi sge, %11, %12 : vector<8x8xi32>
    %14 = vector.shape_cast %13 : vector<8x8xi1> to vector<1x8x8xi1>
    %15 = vector.extract_strided_slice %5 {offsets = [0, 0], sizes = [256, 8], strides = [1, 1]} : vector<256x32xf32> to vector<256x8xf32>
    %16 = vector.shape_cast %15 : vector<256x8xf32> to vector<32x8x8xf32>
    %17 = vector.extract_strided_slice %7 {offsets = [0, 0], sizes = [256, 8], strides = [1, 1]} : vector<256x32xf32> to vector<256x8xf32>
    %18 = vector.shape_cast %17 : vector<256x8xf32> to vector<32x8x8xf32>
    %19 = vector.extract_strided_slice %9 {offsets = [0, 0], sizes = [256, 8], strides = [1, 1]} : vector<256x32xf32> to vector<256x8xf32>
    %20 = vector.shape_cast %19 : vector<256x8xf32> to vector<32x8x8xf32>
    "tpu.trace_start"() <{level = 10 : i32, message = "bqd,bkd->bqk"}> : () -> ()
    %cst_13 = arith.constant dense<0.000000e+00> : vector<32x8x8xf32>
    %21 = tpu.matmul %16, %18, %cst_13 {dimension_numbers = #tpu.dot_dimension_numbers<[2], [2], [1], [1], [0, 0, 0, 1, 1, 1], [0], [0]>} : vector<32x8x8xf32>, vector<32x8x8xf32>, vector<32x8x8xf32> -> vector<32x8x8xf32>
    %cst_14 = arith.constant 0xFF800000 : f32
    "tpu.trace_stop"() : () -> ()
    %22 = vector.shape_cast %14 : vector<1x8x8xi1> to vector<1x8x8xi1>
    %23 = vector.broadcast %22 : vector<1x8x8xi1> to vector<32x8x8xi1>
    %24 = vector.broadcast %cst_14 : f32 to vector<32x8x8xf32>
    %25 = arith.select %23, %21, %24 : vector<32x8x8xi1>, vector<32x8x8xf32>
    %cst_15 = arith.constant dense<0xFF800000> : vector<32x8xf32>
    %26 = vector.multi_reduction <maximumf>, %25, %cst_15 [2] : vector<32x8x8xf32> to vector<32x8xf32>
    %27 = vector.shape_cast %26 : vector<32x8xf32> to vector<32x8x1xf32>
    %28 = vector.broadcast %27 : vector<32x8x1xf32> to vector<32x8x8xf32>
    %29 = arith.subf %25, %28 : vector<32x8x8xf32>
    %30 = math.exp %29 : vector<32x8x8xf32>
    %cst_16 = arith.constant dense<0.000000e+00> : vector<32x8xf32>
    %31 = vector.multi_reduction <add>, %30, %cst_16 [2] : vector<32x8x8xf32> to vector<32x8xf32>
    %32 = vector.shape_cast %31 : vector<32x8xf32> to vector<32x8x1xf32>
    %33 = tpu.reciprocal %32 {approx = true} : vector<32x8x1xf32> -> vector<32x8x1xf32>
    %34 = vector.broadcast %33 : vector<32x8x1xf32> to vector<32x8x8xf32>
    %35 = arith.mulf %30, %34 : vector<32x8x8xf32>
    "tpu.trace_start"() <{level = 10 : i32, message = "bqk,bkd->bqd"}> : () -> ()
    %cst_17 = arith.constant dense<0.000000e+00> : vector<32x8x8xf32>
    %36 = tpu.matmul %35, %20, %cst_17 {dimension_numbers = #tpu.dot_dimension_numbers<[2], [1], [1], [2], [0, 0, 0, 1, 1, 2], [0], [0]>} : vector<32x8x8xf32>, vector<32x8x8xf32>, vector<32x8x8xf32> -> vector<32x8x8xf32>
    "tpu.trace_stop"() : () -> ()
    %37 = vector.shape_cast %36 : vector<32x8x8xf32> to vector<256x8xf32>
    %38 = vector.extract_strided_slice %10 {offsets = [0, 0], sizes = [8, 32], strides = [1, 1]} : vector<32x32xf32> to vector<8x32xf32>
    %cst_18 = arith.constant dense<0.000000e+00> : vector<256x32xf32>
    %39 = tpu.matmul %37, %38, %cst_18 {dimension_numbers = #tpu.dot_dimension_numbers<[1], [0], [0], [1], [0, 0, 1, 1], [], []>} : vector<256x8xf32>, vector<8x32xf32>, vector<256x32xf32> -> vector<256x32xf32>
    %40 = vector.extract_strided_slice %5 {offsets = [0, 8], sizes = [256, 8], strides = [1, 1]} : vector<256x32xf32> to vector<256x8xf32>
    %41 = vector.shape_cast %40 : vector<256x8xf32> to vector<32x8x8xf32>
    %42 = vector.extract_strided_slice %7 {offsets = [0, 8], sizes = [256, 8], strides = [1, 1]} : vector<256x32xf32> to vector<256x8xf32>
    %43 = vector.shape_cast %42 : vector<256x8xf32> to vector<32x8x8xf32>
    %44 = vector.extract_strided_slice %9 {offsets = [0, 8], sizes = [256, 8], strides = [1, 1]} : vector<256x32xf32> to vector<256x8xf32>
    %45 = vector.shape_cast %44 : vector<256x8xf32> to vector<32x8x8xf32>
    "tpu.trace_start"() <{level = 10 : i32, message = "bqd,bkd->bqk"}> : () -> ()
    %cst_19 = arith.constant dense<0.000000e+00> : vector<32x8x8xf32>
    %46 = tpu.matmul %41, %43, %cst_19 {dimension_numbers = #tpu.dot_dimension_numbers<[2], [2], [1], [1], [0, 0, 0, 1, 1, 1], [0], [0]>} : vector<32x8x8xf32>, vector<32x8x8xf32>, vector<32x8x8xf32> -> vector<32x8x8xf32>
    %cst_20 = arith.constant 0xFF800000 : f32
    "tpu.trace_stop"() : () -> ()
    %47 = vector.shape_cast %14 : vector<1x8x8xi1> to vector<1x8x8xi1>
    %48 = vector.broadcast %47 : vector<1x8x8xi1> to vector<32x8x8xi1>
    %49 = vector.broadcast %cst_20 : f32 to vector<32x8x8xf32>
    %50 = arith.select %48, %46, %49 : vector<32x8x8xi1>, vector<32x8x8xf32>
    %cst_21 = arith.constant dense<0xFF800000> : vector<32x8xf32>
    %51 = vector.multi_reduction <maximumf>, %50, %cst_21 [2] : vector<32x8x8xf32> to vector<32x8xf32>
    %52 = vector.shape_cast %51 : vector<32x8xf32> to vector<32x8x1xf32>
    %53 = vector.broadcast %52 : vector<32x8x1xf32> to vector<32x8x8xf32>
    %54 = arith.subf %50, %53 : vector<32x8x8xf32>
    %55 = math.exp %54 : vector<32x8x8xf32>
    %cst_22 = arith.constant dense<0.000000e+00> : vector<32x8xf32>
    %56 = vector.multi_reduction <add>, %55, %cst_22 [2] : vector<32x8x8xf32> to vector<32x8xf32>
    %57 = vector.shape_cast %56 : vector<32x8xf32> to vector<32x8x1xf32>
    %58 = tpu.reciprocal %57 {approx = true} : vector<32x8x1xf32> -> vector<32x8x1xf32>
    %59 = vector.broadcast %58 : vector<32x8x1xf32> to vector<32x8x8xf32>
    %60 = arith.mulf %55, %59 : vector<32x8x8xf32>
    "tpu.trace_start"() <{level = 10 : i32, message = "bqk,bkd->bqd"}> : () -> ()
    %cst_23 = arith.constant dense<0.000000e+00> : vector<32x8x8xf32>
    %61 = tpu.matmul %60, %45, %cst_23 {dimension_numbers = #tpu.dot_dimension_numbers<[2], [1], [1], [2], [0, 0, 0, 1, 1, 2], [0], [0]>} : vector<32x8x8xf32>, vector<32x8x8xf32>, vector<32x8x8xf32> -> vector<32x8x8xf32>
    "tpu.trace_stop"() : () -> ()
    %62 = vector.shape_cast %61 : vector<32x8x8xf32> to vector<256x8xf32>
    %63 = vector.extract_strided_slice %10 {offsets = [8, 0], sizes = [8, 32], strides = [1, 1]} : vector<32x32xf32> to vector<8x32xf32>
    %cst_24 = arith.constant dense<0.000000e+00> : vector<256x32xf32>
    %64 = tpu.matmul %62, %63, %cst_24 {dimension_numbers = #tpu.dot_dimension_numbers<[1], [0], [0], [1], [0, 0, 1, 1], [], []>} : vector<256x8xf32>, vector<8x32xf32>, vector<256x32xf32> -> vector<256x32xf32>
    %65 = arith.addf %39, %64 : vector<256x32xf32>
    %66 = vector.extract_strided_slice %5 {offsets = [0, 16], sizes = [256, 8], strides = [1, 1]} : vector<256x32xf32> to vector<256x8xf32>
    %67 = vector.shape_cast %66 : vector<256x8xf32> to vector<32x8x8xf32>
    %68 = vector.extract_strided_slice %7 {offsets = [0, 16], sizes = [256, 8], strides = [1, 1]} : vector<256x32xf32> to vector<256x8xf32>
    %69 = vector.shape_cast %68 : vector<256x8xf32> to vector<32x8x8xf32>
    %70 = vector.extract_strided_slice %9 {offsets = [0, 16], sizes = [256, 8], strides = [1, 1]} : vector<256x32xf32> to vector<256x8xf32>
    %71 = vector.shape_cast %70 : vector<256x8xf32> to vector<32x8x8xf32>
    "tpu.trace_start"() <{level = 10 : i32, message = "bqd,bkd->bqk"}> : () -> ()
    %cst_25 = arith.constant dense<0.000000e+00> : vector<32x8x8xf32>
    %72 = tpu.matmul %67, %69, %cst_25 {dimension_numbers = #tpu.dot_dimension_numbers<[2], [2], [1], [1], [0, 0, 0, 1, 1, 1], [0], [0]>} : vector<32x8x8xf32>, vector<32x8x8xf32>, vector<32x8x8xf32> -> vector<32x8x8xf32>
    %cst_26 = arith.constant 0xFF800000 : f32
    "tpu.trace_stop"() : () -> ()
    %73 = vector.shape_cast %14 : vector<1x8x8xi1> to vector<1x8x8xi1>
    %74 = vector.broadcast %73 : vector<1x8x8xi1> to vector<32x8x8xi1>
    %75 = vector.broadcast %cst_26 : f32 to vector<32x8x8xf32>
    %76 = arith.select %74, %72, %75 : vector<32x8x8xi1>, vector<32x8x8xf32>
    %cst_27 = arith.constant dense<0xFF800000> : vector<32x8xf32>
    %77 = vector.multi_reduction <maximumf>, %76, %cst_27 [2] : vector<32x8x8xf32> to vector<32x8xf32>
    %78 = vector.shape_cast %77 : vector<32x8xf32> to vector<32x8x1xf32>
    %79 = vector.broadcast %78 : vector<32x8x1xf32> to vector<32x8x8xf32>
    %80 = arith.subf %76, %79 : vector<32x8x8xf32>
    %81 = math.exp %80 : vector<32x8x8xf32>
    %cst_28 = arith.constant dense<0.000000e+00> : vector<32x8xf32>
    %82 = vector.multi_reduction <add>, %81, %cst_28 [2] : vector<32x8x8xf32> to vector<32x8xf32>
    %83 = vector.shape_cast %82 : vector<32x8xf32> to vector<32x8x1xf32>
    %84 = tpu.reciprocal %83 {approx = true} : vector<32x8x1xf32> -> vector<32x8x1xf32>
    %85 = vector.broadcast %84 : vector<32x8x1xf32> to vector<32x8x8xf32>
    %86 = arith.mulf %81, %85 : vector<32x8x8xf32>
    "tpu.trace_start"() <{level = 10 : i32, message = "bqk,bkd->bqd"}> : () -> ()
    %cst_29 = arith.constant dense<0.000000e+00> : vector<32x8x8xf32>
    %87 = tpu.matmul %86, %71, %cst_29 {dimension_numbers = #tpu.dot_dimension_numbers<[2], [1], [1], [2], [0, 0, 0, 1, 1, 2], [0], [0]>} : vector<32x8x8xf32>, vector<32x8x8xf32>, vector<32x8x8xf32> -> vector<32x8x8xf32>
    "tpu.trace_stop"() : () -> ()
    %88 = vector.shape_cast %87 : vector<32x8x8xf32> to vector<256x8xf32>
    %89 = vector.extract_strided_slice %10 {offsets = [16, 0], sizes = [8, 32], strides = [1, 1]} : vector<32x32xf32> to vector<8x32xf32>
    %cst_30 = arith.constant dense<0.000000e+00> : vector<256x32xf32>
    %90 = tpu.matmul %88, %89, %cst_30 {dimension_numbers = #tpu.dot_dimension_numbers<[1], [0], [0], [1], [0, 0, 1, 1], [], []>} : vector<256x8xf32>, vector<8x32xf32>, vector<256x32xf32> -> vector<256x32xf32>
    %91 = arith.addf %65, %90 : vector<256x32xf32>
    %92 = vector.extract_strided_slice %5 {offsets = [0, 24], sizes = [256, 8], strides = [1, 1]} : vector<256x32xf32> to vector<256x8xf32>
    %93 = vector.shape_cast %92 : vector<256x8xf32> to vector<32x8x8xf32>
    %94 = vector.extract_strided_slice %7 {offsets = [0, 24], sizes = [256, 8], strides = [1, 1]} : vector<256x32xf32> to vector<256x8xf32>
    %95 = vector.shape_cast %94 : vector<256x8xf32> to vector<32x8x8xf32>
    %96 = vector.extract_strided_slice %9 {offsets = [0, 24], sizes = [256, 8], strides = [1, 1]} : vector<256x32xf32> to vector<256x8xf32>
    %97 = vector.shape_cast %96 : vector<256x8xf32> to vector<32x8x8xf32>
    "tpu.trace_start"() <{level = 10 : i32, message = "bqd,bkd->bqk"}> : () -> ()
    %cst_31 = arith.constant dense<0.000000e+00> : vector<32x8x8xf32>
    %98 = tpu.matmul %93, %95, %cst_31 {dimension_numbers = #tpu.dot_dimension_numbers<[2], [2], [1], [1], [0, 0, 0, 1, 1, 1], [0], [0]>} : vector<32x8x8xf32>, vector<32x8x8xf32>, vector<32x8x8xf32> -> vector<32x8x8xf32>
    %cst_32 = arith.constant 0xFF800000 : f32
    "tpu.trace_stop"() : () -> ()
    %99 = vector.shape_cast %14 : vector<1x8x8xi1> to vector<1x8x8xi1>
    %100 = vector.broadcast %99 : vector<1x8x8xi1> to vector<32x8x8xi1>
    %101 = vector.broadcast %cst_32 : f32 to vector<32x8x8xf32>
    %102 = arith.select %100, %98, %101 : vector<32x8x8xi1>, vector<32x8x8xf32>
    %cst_33 = arith.constant dense<0xFF800000> : vector<32x8xf32>
    %103 = vector.multi_reduction <maximumf>, %102, %cst_33 [2] : vector<32x8x8xf32> to vector<32x8xf32>
    %104 = vector.shape_cast %103 : vector<32x8xf32> to vector<32x8x1xf32>
    %105 = vector.broadcast %104 : vector<32x8x1xf32> to vector<32x8x8xf32>
    %106 = arith.subf %102, %105 : vector<32x8x8xf32>
    %107 = math.exp %106 : vector<32x8x8xf32>
    %cst_34 = arith.constant dense<0.000000e+00> : vector<32x8xf32>
    %108 = vector.multi_reduction <add>, %107, %cst_34 [2] : vector<32x8x8xf32> to vector<32x8xf32>
    %109 = vector.shape_cast %108 : vector<32x8xf32> to vector<32x8x1xf32>
    %110 = tpu.reciprocal %109 {approx = true} : vector<32x8x1xf32> -> vector<32x8x1xf32>
    %111 = vector.broadcast %110 : vector<32x8x1xf32> to vector<32x8x8xf32>
    %112 = arith.mulf %107, %111 : vector<32x8x8xf32>
    "tpu.trace_start"() <{level = 10 : i32, message = "bqk,bkd->bqd"}> : () -> ()
    %cst_35 = arith.constant dense<0.000000e+00> : vector<32x8x8xf32>
    %113 = tpu.matmul %112, %97, %cst_35 {dimension_numbers = #tpu.dot_dimension_numbers<[2], [1], [1], [2], [0, 0, 0, 1, 1, 2], [0], [0]>} : vector<32x8x8xf32>, vector<32x8x8xf32>, vector<32x8x8xf32> -> vector<32x8x8xf32>
    "tpu.trace_stop"() : () -> ()
    %114 = vector.shape_cast %113 : vector<32x8x8xf32> to vector<256x8xf32>
    %115 = vector.extract_strided_slice %10 {offsets = [24, 0], sizes = [8, 32], strides = [1, 1]} : vector<32x32xf32> to vector<8x32xf32>
    %cst_36 = arith.constant dense<0.000000e+00> : vector<256x32xf32>
    %116 = tpu.matmul %114, %115, %cst_36 {dimension_numbers = #tpu.dot_dimension_numbers<[1], [0], [0], [1], [0, 0, 1, 1], [], []>} : vector<256x8xf32>, vector<8x32xf32>, vector<256x32xf32> -> vector<256x32xf32>
    %117 = arith.addf %91, %116 : vector<256x32xf32>
    %c0_37 = arith.constant 0 : index
    %c0_38 = arith.constant 0 : index
    %118 = vector.load %arg6[%c0_37, %c0_38] : memref<1x32xf32, #tpu.memory_space<vmem>>, vector<1x32xf32>
    %119 = vector.broadcast %118 : vector<1x32xf32> to vector<256x32xf32>
    %120 = arith.addf %117, %119 : vector<256x32xf32>
    %121 = vector.shape_cast %120 : vector<256x32xf32> to vector<32x8x32xf32>
    %122 = vector.extract_strided_slice %121 {offsets = [0, 0, 0], sizes = [32, 1, 32], strides = [1, 1, 1]} : vector<32x8x32xf32> to vector<32x1x32xf32>
    %123 = vector.shape_cast %122 : vector<32x1x32xf32> to vector<32x32xf32>
    %c0_39 = arith.constant 0 : index
    %c0_40 = arith.constant 0 : index
    %124 = vector.load %arg7[%c0_39, %c0_40] : memref<32x256xf32, #tpu.memory_space<vmem>>, vector<32x32xf32>
    tpu.vector_store %arg7[%c0_39, %c0_40], %123 {strides = array<i32>} : memref<32x256xf32, #tpu.memory_space<vmem>>, vector<32x32xf32>,
    %125 = vector.extract_strided_slice %121 {offsets = [0, 1, 0], sizes = [32, 1, 32], strides = [1, 1, 1]} : vector<32x8x32xf32> to vector<32x1x32xf32>
    %126 = vector.shape_cast %125 : vector<32x1x32xf32> to vector<32x32xf32>
    %c0_41 = arith.constant 0 : index
    %c32 = arith.constant 32 : index
    %127 = vector.load %arg7[%c0_41, %c32] : memref<32x256xf32, #tpu.memory_space<vmem>>, vector<32x32xf32>
    tpu.vector_store %arg7[%c0_41, %c32], %126 {strides = array<i32>} : memref<32x256xf32, #tpu.memory_space<vmem>>, vector<32x32xf32>,
    %128 = vector.extract_strided_slice %121 {offsets = [0, 2, 0], sizes = [32, 1, 32], strides = [1, 1, 1]} : vector<32x8x32xf32> to vector<32x1x32xf32>
    %129 = vector.shape_cast %128 : vector<32x1x32xf32> to vector<32x32xf32>
    %c0_42 = arith.constant 0 : index
    %c64 = arith.constant 64 : index
    %130 = vector.load %arg7[%c0_42, %c64] : memref<32x256xf32, #tpu.memory_space<vmem>>, vector<32x32xf32>
    tpu.vector_store %arg7[%c0_42, %c64], %129 {strides = array<i32>} : memref<32x256xf32, #tpu.memory_space<vmem>>, vector<32x32xf32>,
    %131 = vector.extract_strided_slice %121 {offsets = [0, 3, 0], sizes = [32, 1, 32], strides = [1, 1, 1]} : vector<32x8x32xf32> to vector<32x1x32xf32>
    %132 = vector.shape_cast %131 : vector<32x1x32xf32> to vector<32x32xf32>
    %c0_43 = arith.constant 0 : index
    %c96 = arith.constant 96 : index
    %133 = vector.load %arg7[%c0_43, %c96] : memref<32x256xf32, #tpu.memory_space<vmem>>, vector<32x32xf32>
    tpu.vector_store %arg7[%c0_43, %c96], %132 {strides = array<i32>} : memref<32x256xf32, #tpu.memory_space<vmem>>, vector<32x32xf32>,
    %134 = vector.extract_strided_slice %121 {offsets = [0, 4, 0], sizes = [32, 1, 32], strides = [1, 1, 1]} : vector<32x8x32xf32> to vector<32x1x32xf32>
    %135 = vector.shape_cast %134 : vector<32x1x32xf32> to vector<32x32xf32>
    %c0_44 = arith.constant 0 : index
    %c128 = arith.constant 128 : index
    %136 = vector.load %arg7[%c0_44, %c128] : memref<32x256xf32, #tpu.memory_space<vmem>>, vector<32x32xf32>
    tpu.vector_store %arg7[%c0_44, %c128], %135 {strides = array<i32>} : memref<32x256xf32, #tpu.memory_space<vmem>>, vector<32x32xf32>,
    %137 = vector.extract_strided_slice %121 {offsets = [0, 5, 0], sizes = [32, 1, 32], strides = [1, 1, 1]} : vector<32x8x32xf32> to vector<32x1x32xf32>
    %138 = vector.shape_cast %137 : vector<32x1x32xf32> to vector<32x32xf32>
    %c0_45 = arith.constant 0 : index
    %c160 = arith.constant 160 : index
    %139 = vector.load %arg7[%c0_45, %c160] : memref<32x256xf32, #tpu.memory_space<vmem>>, vector<32x32xf32>
    tpu.vector_store %arg7[%c0_45, %c160], %138 {strides = array<i32>} : memref<32x256xf32, #tpu.memory_space<vmem>>, vector<32x32xf32>,
    %140 = vector.extract_strided_slice %121 {offsets = [0, 6, 0], sizes = [32, 1, 32], strides = [1, 1, 1]} : vector<32x8x32xf32> to vector<32x1x32xf32>
    %141 = vector.shape_cast %140 : vector<32x1x32xf32> to vector<32x32xf32>
    %c0_46 = arith.constant 0 : index
    %c192 = arith.constant 192 : index
    %142 = vector.load %arg7[%c0_46, %c192] : memref<32x256xf32, #tpu.memory_space<vmem>>, vector<32x32xf32>
    tpu.vector_store %arg7[%c0_46, %c192], %141 {strides = array<i32>} : memref<32x256xf32, #tpu.memory_space<vmem>>, vector<32x32xf32>,
    %143 = vector.extract_strided_slice %121 {offsets = [0, 7, 0], sizes = [32, 1, 32], strides = [1, 1, 1]} : vector<32x8x32xf32> to vector<32x1x32xf32>
    %144 = vector.shape_cast %143 : vector<32x1x32xf32> to vector<32x32xf32>
    %c0_47 = arith.constant 0 : index
    %c224 = arith.constant 224 : index
    %145 = vector.load %arg7[%c0_47, %c224] : memref<32x256xf32, #tpu.memory_space<vmem>>, vector<32x32xf32>
    tpu.vector_store %arg7[%c0_47, %c224], %144 {strides = array<i32>} : memref<32x256xf32, #tpu.memory_space<vmem>>, vector<32x32xf32>,
    return
  }
  func.func @transform_0(%arg0: i32) -> (i32, i32) {
    %c0_i32 = arith.constant 0 : i32
    %c0_i32_0 = arith.constant 0 : i32
    return %arg0, %c0_i32 : i32, i32
  }
  func.func @transform_1(%arg0: i32) -> (i32, i32) {
    %c0_i32 = arith.constant 0 : i32
    %c0_i32_0 = arith.constant 0 : i32
    %c0_i32_1 = arith.constant 0 : i32
    return %c0_i32, %c0_i32_0 : i32, i32
  }
  func.func @transform_2(%arg0: i32) -> (i32, i32) {
    %c0_i32 = arith.constant 0 : i32
    %c0_i32_0 = arith.constant 0 : i32
    %c0_i32_1 = arith.constant 0 : i32
    return %c0_i32, %c0_i32_0 : i32, i32
  }
  func.func @transform_3(%arg0: i32) -> (i32, i32) {
    %c0_i32 = arith.constant 0 : i32
    %c0_i32_0 = arith.constant 0 : i32
    %c0_i32_1 = arith.constant 0 : i32
    return %c0_i32, %c0_i32_0 : i32, i32
  }
  func.func @transform_4(%arg0: i32) -> (i32, i32) {
    %c0_i32 = arith.constant 0 : i32
    %c0_i32_0 = arith.constant 0 : i32
    %c0_i32_1 = arith.constant 0 : i32
    return %c0_i32, %c0_i32_0 : i32, i32
  }
  func.func @transform_5(%arg0: i32) -> (i32, i32) {
    %c0_i32 = arith.constant 0 : i32
    %c0_i32_0 = arith.constant 0 : i32
    %c0_i32_1 = arith.constant 0 : i32
    return %c0_i32, %c0_i32_0 : i32, i32
  }
  func.func @transform_6(%arg0: i32) -> (i32, i32) {
    %c0_i32 = arith.constant 0 : i32
    %c0_i32_0 = arith.constant 0 : i32
    return %arg0, %c0_i32 : i32, i32
  }
}

</mosaic_0001>

<bundles_post_ra>
// kernel: multi_head_attention.1
= control target key start
LH: loop header
LB: loop body
LE: loop exit
PB: predicated region body
PF: predicated region fallthrough
CT: control target
= control target key end

     0   :  { %s28009_s21 = smov 0   ;;  %s33745_s0 = inlined_call_operand.vmem [shape: f32[512,32], index: 0, kind: input, shape index: {}]   ;;  %s33746_s1 = inlined_call_operand.vmem [shape: f32[32,32], index: 1, kind: input, shape index: {}]   ;;  %s33747_s2 = inlined_call_operand.vmem [shape: f32[32,32], index: 2, kind: input, shape index: {}]   ;;  %s33748_s3 = inlined_call_operand.vmem [shape: f32[32,32], index: 3, kind: input, shape index: {}]   ;;  %s33749_s4 = inlined_call_operand.vmem [shape: f32[32,32], index: 4, kind: input, shape index: {}]   ;;  %s33750_s5 = inlined_call_operand.vmem [shape: f32[1,32], index: 5, kind: input, shape index: {}]   ;;  %s33751_s6 = inlined_call_operand.vmem [shape: f32[64,256], index: 6, kind: output, shape index: {}]  }
   0x1 LB: > { %s24284_s22 = sadd.s32 4294967295, %s27964_s21   ;;  %p24288_p0 = scmp.ge.s32.totalorder %s27964_s21, 1  ;;  %s27964_s21 = sphi %s28009_s21, %s16_s21  }
   0x2   : > { %p213_p1 = scmp.lt.s32.totalorder %s27964_s21, 3 }
   0x4   : > { %p214_p2 = pnand %p24288_p0, %p213_p1 }
   0x6   : > { %217 = sbr.rel (%p214_p2) target bundleno = 4618 (0x120a), region = 44 }
   0xd   : > { %v289_v0 = vld [vmem:[%s33746_s1] sm:$0xff]  ;;  %v290_v1 = vld [vmem:[%s33746_s1 + $0x8] sm:$0xff]  ;;  %v291_v2 = vld [vmem:[%s33746_s1 + $0x10] sm:$0xff]  ;;  %s24289_s29 = sshll.u32 %s24284_s22, 5  ;;  %vm293_vm0 = vcmask 261120   ;;  %v33808_v50 = vmov 0.0  }
   0xe   : > { %v27306_v3 = vpack.c.bf16 %v290_v1, %v289_v0  ;;  %v292_v4 = vld [vmem:[%s33746_s1 + $0x18] sm:$0xff]  ;;  %p245_p3 = scmp.lt.s32.totalorder %s24289_s29, 63  ;;  %v647_v6 = vld [vmem:[%s33747_s2] sm:$0xff]  ;;  %v648_v7 = vld [vmem:[%s33747_s2 + $0x8] sm:$0xff]  ;;  %vm27967_vm1 = vmmov 0   ;;  %s27968_s30 = smov 120  }
   0xf   : > { %v27310_v5 = vpack.c.bf16 %v292_v4, %v291_v2  ;;  %v876_v8 = vld [vmem:[%s33748_s3] sm:$0xff]  ;;  %v877_v9 = vld [vmem:[%s33748_s3 + $0x8] sm:$0xff]  ;;  %v27314_v10 = vpack.c.bf16 %v648_v7, %v647_v6  ;;  %v649_v11 = vld [vmem:[%s33747_s2 + $0x10] sm:$0xff]  ;;  %vm1114_vm2 = vcmask 64512   ;;  %s27969_s7 = smov 112   ;;  %s27970_s12 = smov 104  }
  0x10   : > { %27307 = vmatprep.subr.bf16.mxu0 %v27306_v3  ;;  %27330 = vmatprep.subr.bf16.mxu1 %v27306_v3  ;;  %s34581_s29 = smov (!%p245_p3, %s24289_s29), 63  ;;  %v650_v12 = vld [vmem:[%s33747_s2 + $0x18] sm:$0xff]  ;;  %v27322_v13 = vpack.c.bf16 %v877_v9, %v876_v8  ;;  %v878_v14 = vld [vmem:[%s33748_s3 + $0x10] sm:$0xff]  ;;  %vm23657_vm4 = vcmask 1041409   ;;  %vm23660_vm5 = vcmask 1042434   ;;  %vm23663_vm6 = vcmask 1043459  }
  0x11   : > { %27309 = vmatpush3.bf16.msra.mxu0 %v27306_v3  ;;  %27332 = vmatpush3.bf16.msra.mxu1 %v27306_v3  ;;  %s24290_s16 = sshll.u32 %s34581_s29, 3  ;;  %v879_v17 = vld [vmem:[%s33748_s3 + $0x18] sm:$0xff]  ;;  %v27318_v22 = vpack.c.bf16 %v650_v12, %v649_v11  ;;  %vm23666_vm7 = vcmask 1044484   ;;  %vm23669_vm8 = vcmask 1045509   ;;  %vm23672_vm9 = vcmask 1046534   ;;  %s33228_s20 = sshll.u32 %s24284_s22, 2 }
  0x12   : > { %27311 = vmatprep.subr.bf16.mxu0 %v27310_v5  ;;  %27331 = vmatprep.subr.bf16.mxu1 %v27310_v5  ;;  %s28046_s19 = scalar_lea.vmem %s33745_s0, %s24290_s16  ;;  %v27326_v23 = vpack.c.bf16 %v879_v17, %v878_v14  ;;  %vm23675_vm10 = vcmask 1047559   ;;  %p251_p4 = scmp.lt.s32.totalorder %s33228_s20, 7  ;;  %vm23795_vm11 = vcmask 523520   ;;  %vm23868_vm12 = vcmask 785920  }
  0x13   : > { %v28058_v15 = vld [vmem:[%s28046_s19] sm:$0xff]  ;;  %v28067_v18 = vld [vmem:[%s28046_s19 + $0x8] sm:$0xff]  ;;  %v28077_v20 = vld [vmem:[%s28046_s19 + $0x10] sm:$0xff]  ;;  %s27972_s26 = smov 64   ;;  %s27973_s27 = smov 96   ;;  %vm23941_vm13 = vcmask 1048320  }
  0x14   : > { %v28061_v16 = vld [vmem:[%s28046_s19 + $0x80] sm:$0xff]  ;;  %v28070_v19 = vld [vmem:[%s28046_s19 + $0x88] sm:$0xff]  ;;  %25666 = vmatprep.mubr.msk.f32.mxu0 %vm293_vm0, %v28058_v15  ;;  %v28080_v21 = vld [vmem:[%s28046_s19 + $0x90] sm:$0xff]  ;;  %s34583_s20 = smov (!%p251_p4, %s33228_s20), 7 }
  0x15   : > { %27313 = vmatpush3.bf16.msra.mxu0 %v27310_v5  ;;  %27333 = vmatpush3.bf16.msra.mxu1 %v27310_v5  ;;  %v28091_v24 = vld [vmem:[%s28046_s19 + $0x18] sm:$0xff]  ;;  %v28097_v26 = vld [vmem:[%s28046_s19 + $0x20] sm:$0xff]  ;;  %v262_v28 = vld [vmem:[%s28046_s19 + $0x28] sm:$0xff]  ;;  %s24905_s22 = sshll.u32 %s34583_s20, 4 }
  0x16   : > { %25690 = vmatprep.mubr.msk.f32.mxu1 %vm293_vm0, %v28061_v16  ;;  %27315 = vmatprep.subr.bf16.mxu1 %v27314_v10  ;;  %v28094_v25 = vld [vmem:[%s28046_s19 + $0x98] sm:$0xff]  ;;  %v28100_v27 = vld [vmem:[%s28046_s19 + $0xa0] sm:$0xff]  ;;  %v28112_v29 = vld [vmem:[%s28046_s19 + $0xa8] sm:$0xff]  ;;  %s33307_s25 = scalar_lea.vmem %s33751_s6, %s24905_s22 }
  0x17   : > { %27323 = vmatprep.subr.bf16.mxu0 %v27322_v13  ;;  %v263_v30 = vld [vmem:[%s28046_s19 + $0x30] sm:$0xff]  ;;  %v264_v32 = vld [vmem:[%s28046_s19 + $0x38] sm:$0xff]  ;;  %v265_v34 = vld [vmem:[%s28046_s19 + $0x40] sm:$0xff] }
  0x18   : > { %25667 = vmatmul.mubr.msk.f32.vlgmr.msra.gmra.mrb[0].mxu0 %vm293_vm0, %v28067_v18  ;;  %25691 = vmatmul.mubr.msk.f32.vlgmr.msra.gmra.mrb[0].mxu1 %vm293_vm0, %v28070_v19  ;;  %v28116_v31 = vld [vmem:[%s28046_s19 + $0xb0] sm:$0xff]  ;;  %v28126_v33 = vld [vmem:[%s28046_s19 + $0xb8] sm:$0xff]  ;;  %v28130_v35 = vld [vmem:[%s28046_s19 + $0xc0] sm:$0xff] }
  0x19   : > { %25669 = vmatprep.mubr.msk.f32.mxu0 %vm293_vm0, %v28077_v20  ;;  %25693 = vmatprep.mubr.msk.f32.mxu1 %vm293_vm0, %v28080_v21  ;;  %v266_v36 = vld [vmem:[%s28046_s19 + $0x48] sm:$0xff]  ;;  %v267_v38 = vld [vmem:[%s28046_s19 + $0x50] sm:$0xff]  ;;  %v268_v40 = vld [vmem:[%s28046_s19 + $0x58] sm:$0xff] }
  0x1a   : > { %27317 = vmatpush3.bf16.msra.mxu1 %v27314_v10  ;;  %27325 = vmatpush3.bf16.msra.mxu0 %v27322_v13  ;;  %v28140_v37 = vld [vmem:[%s28046_s19 + $0xc8] sm:$0xff]  ;;  %v28144_v39 = vld [vmem:[%s28046_s19 + $0xd0] sm:$0xff]  ;;  %v28154_v41 = vld [vmem:[%s28046_s19 + $0xd8] sm:$0xff] }
  0x1b   : > { %27319 = vmatprep.subr.bf16.mxu1 %v27318_v22  ;;  %27327 = vmatprep.subr.bf16.mxu0 %v27326_v23  ;;  %v269_v42 = vld [vmem:[%s28046_s19 + $0x60] sm:$0xff]  ;;  %v270_v44 = vld [vmem:[%s28046_s19 + $0x68] sm:$0xff]  ;;  %v28171_v46 = vld [vmem:[%s28046_s19 + $0xf0] sm:$0xff] }
  0x1c   : > { %25670 = vmatmul.mubr.msk.f32.gmra.mrb[2].mxu0 %vm293_vm0, %v28091_v24  ;;  %25694 = vmatmul.mubr.msk.f32.gmra.mrb[2].mxu1 %vm293_vm0, %v28094_v25  ;;  %v28158_v43 = vld [vmem:[%s28046_s19 + $0xe0] sm:$0xff]  ;;  %v28168_v45 = vld [vmem:[%s28046_s19 + $0xe8] sm:$0xff]  ;;  %v271_v47 = vld [vmem:[%s28046_s19 + $0x70] sm:$0xff] }
  0x1d   : > { %25672 = vmatprep.mubr.msk.f32.mxu0 %vm293_vm0, %v28097_v26  ;;  %25696 = vmatprep.mubr.msk.f32.mxu1 %vm293_vm0, %v28100_v27  ;;  %v28180_v48 = vld [vmem:[%s28046_s19 + $0xf8] sm:$0xff] }
  0x1e   : > { %27321 = vmatpush3.bf16.msra.mxu1 %v27318_v22  ;;  %27329 = vmatpush3.bf16.msra.mxu0 %v27326_v23  ;;  %v272_v49 = vld [vmem:[%s28046_s19 + $0x78] sm:$0xff]  ;;  %s27971_s19 = smov 32  }
  0x1f   : > { %25826 = vmatprep.subr.mxu1 %v33808_v50  ;;  %25906 = vmatprep.subr.mxu0 %v33808_v50 }
  0x20   : > { %25673 = vmatmul.mubr.msk.f32.gmra.mrb[4].mxu0 %vm293_vm0, %v262_v28  ;;  %25697 = vmatmul.mubr.msk.f32.gmra.mrb[4].mxu1 %vm293_vm0, %v28112_v29 }
  0x21   : > { %25675 = vmatprep.mubr.msk.f32.mxu0 %vm293_vm0, %v263_v30  ;;  %25699 = vmatprep.mubr.msk.f32.mxu1 %vm293_vm0, %v28116_v31 }
  0x24   : > { %25676 = vmatmul.mubr.msk.f32.gmra.mrb[6].mxu0 %vm293_vm0, %v264_v32  ;;  %25700 = vmatmul.mubr.msk.f32.gmra.mrb[6].mxu1 %vm293_vm0, %v28126_v33 }
  0x25   : > { %25678 = vmatprep.mubr.msk.f32.mxu0 %vm293_vm0, %v265_v34  ;;  %25702 = vmatprep.mubr.msk.f32.mxu1 %vm293_vm0, %v28130_v35 }
  0x28   : > { %25679 = vmatmul.mubr.msk.f32.gmra.mrb[8].mxu0 %vm293_vm0, %v266_v36  ;;  %25703 = vmatmul.mubr.msk.f32.gmra.mrb[8].mxu1 %vm293_vm0, %v28140_v37 }
  0x29   : > { %25681 = vmatprep.mubr.msk.f32.mxu0 %vm293_vm0, %v267_v38  ;;  %25705 = vmatprep.mubr.msk.f32.mxu1 %vm293_vm0, %v28144_v39 }
  0x2c   : > { %25682 = vmatmul.mubr.msk.f32.gmra.mrb[10].mxu0 %vm293_vm0, %v268_v40  ;;  %25706 = vmatmul.mubr.msk.f32.gmra.mrb[10].mxu1 %vm293_vm0, %v28154_v41 }
  0x2d   : > { %25684 = vmatprep.mubr.msk.f32.mxu0 %vm293_vm0, %v269_v42  ;;  %25708 = vmatprep.mubr.msk.f32.mxu1 %vm293_vm0, %v28158_v43 }
  0x30   : > { %25685 = vmatmul.mubr.msk.f32.gmra.mrb[12].mxu0 %vm293_vm0, %v270_v44  ;;  %25709 = vmatmul.mubr.msk.f32.gmra.mrb[12].mxu1 %vm293_vm0, %v28168_v45 }
  0x31   : > { %25711 = vmatprep.mubr.msk.f32.mxu1 %vm293_vm0, %v28171_v46  ;;  %25687 = vmatprep.mubr.msk.f32.mxu0 %vm293_vm0, %v271_v47 }
  0x34   : > { %25712 = vmatmul.mubr.msk.f32.gmra.mrb[14].mxu1 %vm293_vm0, %v28180_v48  ;;  %25688 = vmatmul.mubr.msk.f32.gmra.mrb[14].mxu0 %vm293_vm0, %v272_v49 }
  0x35   : > { %25722 = vmatprep.mubr.msk.f32.mxu1 %vm293_vm0, %v28058_v15  ;;  %25778 = vmatprep.mubr.msk.f32.mxu0 %vm293_vm0, %v28058_v15 }
  0x38   : > { %25723 = vmatmul.mubr.msk.f32.vlgmr.msra.gmra.mrb[16].mxu1 %vm293_vm0, %v28067_v18  ;;  %25779 = vmatmul.mubr.msk.f32.vlgmr.msra.gmra.mrb[16].mxu0 %vm293_vm0, %v28067_v18 }
  0x39   : > { %25725 = vmatprep.mubr.msk.f32.mxu1 %vm293_vm0, %v28077_v20  ;;  %25781 = vmatprep.mubr.msk.f32.mxu0 %vm293_vm0, %v28077_v20 }
  0x3c   : > { %25726 = vmatmul.mubr.msk.f32.gmra.mrb[18].mxu1 %vm293_vm0, %v28091_v24  ;;  %25782 = vmatmul.mubr.msk.f32.gmra.mrb[18].mxu0 %vm293_vm0, %v28091_v24 }
  0x3d   : > { %25728 = vmatprep.mubr.msk.f32.mxu1 %vm293_vm0, %v28097_v26  ;;  %25784 = vmatprep.mubr.msk.f32.mxu0 %vm293_vm0, %v28097_v26 }
  0x40   : > { %25729 = vmatmul.mubr.msk.f32.gmra.mrb[20].mxu1 %vm293_vm0, %v262_v28  ;;  %25785 = vmatmul.mubr.msk.f32.gmra.mrb[20].mxu0 %vm293_vm0, %v262_v28 }
  0x41   : > { %25731 = vmatprep.mubr.msk.f32.mxu1 %vm293_vm0, %v263_v30  ;;  %25787 = vmatprep.mubr.msk.f32.mxu0 %vm293_vm0, %v263_v30 }
  0x44   : > { %25732 = vmatmul.mubr.msk.f32.gmra.mrb[22].mxu1 %vm293_vm0, %v264_v32  ;;  %25788 = vmatmul.mubr.msk.f32.gmra.mrb[22].mxu0 %vm293_vm0, %v264_v32 }
  0x45   : > { %25734 = vmatprep.mubr.msk.f32.mxu1 %vm293_vm0, %v265_v34  ;;  %25790 = vmatprep.mubr.msk.f32.mxu0 %vm293_vm0, %v265_v34 }
  0x48   : > { %25735 = vmatmul.mubr.msk.f32.gmra.mrb[24].mxu1 %vm293_vm0, %v266_v36  ;;  %25791 = vmatmul.mubr.msk.f32.gmra.mrb[24].mxu0 %vm293_vm0, %v266_v36 }
  0x49   : > { %25737 = vmatprep.mubr.msk.f32.mxu1 %vm293_vm0, %v267_v38  ;;  %25793 = vmatprep.mubr.msk.f32.mxu0 %vm293_vm0, %v267_v38 }
  0x4c   : > { %25738 = vmatmul.mubr.msk.f32.gmra.mrb[26].mxu1 %vm293_vm0, %v268_v40  ;;  %25794 = vmatmul.mubr.msk.f32.gmra.mrb[26].mxu0 %vm293_vm0, %v268_v40 }
  0x4d   : > { %25740 = vmatprep.mubr.msk.f32.mxu1 %vm293_vm0, %v269_v42  ;;  %25796 = vmatprep.mubr.msk.f32.mxu0 %vm293_vm0, %v269_v42 }
  0x50   : > { %25741 = vmatmul.mubr.msk.f32.gmra.mrb[28].mxu1 %vm293_vm0, %v270_v44  ;;  %25797 = vmatmul.mubr.msk.f32.gmra.mrb[28].mxu0 %vm293_vm0, %v270_v44 }
  0x51   : > { %25743 = vmatprep.mubr.msk.f32.mxu1 %vm293_vm0, %v271_v47  ;;  %25799 = vmatprep.mubr.msk.f32.mxu0 %vm293_vm0, %v271_v47 }
  0x54   : > { %25744 = vmatmul.mubr.msk.f32.gmra.mrb[30].mxu1 %vm293_vm0, %v272_v49  ;;  %25800 = vmatmul.mubr.msk.f32.gmra.mrb[30].mxu0 %vm293_vm0, %v272_v49 }
  0x55   : > { %25746 = vmatprep.mubr.msk.f32.mxu1 %vm293_vm0, %v28061_v16  ;;  %25802 = vmatprep.mubr.msk.f32.mxu0 %vm293_vm0, %v28061_v16 }
  0x58   : > { %25747 = vmatmul.mubr.msk.f32.gmra.mrb[32].mxu1 %vm293_vm0, %v28070_v19  ;;  %25803 = vmatmul.mubr.msk.f32.gmra.mrb[32].mxu0 %vm293_vm0, %v28070_v19 }
  0x59   : > { %25749 = vmatprep.mubr.msk.f32.mxu1 %vm293_vm0, %v28080_v21  ;;  %25805 = vmatprep.mubr.msk.f32.mxu0 %vm293_vm0, %v28080_v21 }
  0x5c   : > { %25750 = vmatmul.mubr.msk.f32.gmra.mrb[34].mxu1 %vm293_vm0, %v28094_v25  ;;  %25806 = vmatmul.mubr.msk.f32.gmra.mrb[34].mxu0 %vm293_vm0, %v28094_v25 }
  0x5d   : > { %25752 = vmatprep.mubr.msk.f32.mxu1 %vm293_vm0, %v28100_v27  ;;  %25808 = vmatprep.mubr.msk.f32.mxu0 %vm293_vm0, %v28100_v27 }
  0x60   : > { %25753 = vmatmul.mubr.msk.f32.gmra.mrb[36].mxu1 %vm293_vm0, %v28112_v29  ;;  %25809 = vmatmul.mubr.msk.f32.gmra.mrb[36].mxu0 %vm293_vm0, %v28112_v29 }
  0x61   : > { %25755 = vmatprep.mubr.msk.f32.mxu1 %vm293_vm0, %v28116_v31  ;;  %25811 = vmatprep.mubr.msk.f32.mxu0 %vm293_vm0, %v28116_v31 }
  0x64   : > { %25756 = vmatmul.mubr.msk.f32.gmra.mrb[38].mxu1 %vm293_vm0, %v28126_v33  ;;  %25812 = vmatmul.mubr.msk.f32.gmra.mrb[38].mxu0 %vm293_vm0, %v28126_v33 }
  0x65   : > { %25758 = vmatprep.mubr.msk.f32.mxu1 %vm293_vm0, %v28130_v35  ;;  %25814 = vmatprep.mubr.msk.f32.mxu0 %vm293_vm0, %v28130_v35 }
  0x68   : > { %25759 = vmatmul.mubr.msk.f32.gmra.mrb[40].mxu1 %vm293_vm0, %v28140_v37  ;;  %25815 = vmatmul.mubr.msk.f32.gmra.mrb[40].mxu0 %vm293_vm0, %v28140_v37 }
  0x69   : > { %25761 = vmatprep.mubr.msk.f32.mxu1 %vm293_vm0, %v28144_v39  ;;  %25817 = vmatprep.mubr.msk.f32.mxu0 %vm293_vm0, %v28144_v39 }
  0x6c   : > { %25762 = vmatmul.mubr.msk.f32.gmra.mrb[42].mxu1 %vm293_vm0, %v28154_v41  ;;  %25818 = vmatmul.mubr.msk.f32.gmra.mrb[42].mxu0 %vm293_vm0, %v28154_v41 }
  0x6d   : > { %25764 = vmatprep.mubr.msk.f32.mxu1 %vm293_vm0, %v28158_v43  ;;  %25820 = vmatprep.mubr.msk.f32.mxu0 %vm293_vm0, %v28158_v43 }
  0x70   : > { %25765 = vmatmul.mubr.msk.f32.gmra.mrb[44].mxu1 %vm293_vm0, %v28168_v45  ;;  %25821 = vmatmul.mubr.msk.f32.gmra.mrb[44].mxu0 %vm293_vm0, %v28168_v45 }
  0x71   : > { %25767 = vmatprep.mubr.msk.f32.mxu1 %vm293_vm0, %v28171_v46  ;;  %25823 = vmatprep.mubr.msk.f32.mxu0 %vm293_vm0, %v28171_v46 }
  0x74   : > { %25768 = vmatmul.mubr.msk.f32.gmra.mrb[46].mxu1 %vm293_vm0, %v28180_v48  ;;  %25824 = vmatmul.mubr.msk.f32.gmra.mrb[46].mxu0 %vm293_vm0, %v28180_v48 }
  0x75   : > { %25828 = vmatprep.mubr.msk.f32.mxu1 %vm27967_vm1, %v33808_v50  ;;  %25908 = vmatprep.mubr.msk.f32.mxu0 %vm27967_vm1, %v33808_v50 }
  0xeb   : > { %v25668_v51 = vpop.f32.mrb[0].mxu0  ;;  %v25692_v52 = vpop.f32.mrb[0].mxu1 }
  0xec   : > { %v28299_v53 = vmul.f32 0.17677669, %v25668_v51  ;;  %v456_v54 = vpop.f32.mrb[1].mxu0  ;;  %v536_v55 = vpop.f32.mrb[1].mxu1  ;;  %v28307_v59 = vmul.f32 0.17677669, %v25692_v52 }
  0xed   : > { %v28301_v56 = vmul.f32 0.17677669, %v456_v54  ;;  %v28309_v62 = vmul.f32 0.17677669, %v536_v55 }
  0xee   : > { %33952 = vst [vmem:[#allocation2_spill] sm:$0xff] %v28299_v53  ;;  %6347 = vrot.lane.b32.xlu0 %v28299_v53, %s27968_s30  ;;  %33954 = vst [vmem:[#allocation4_spill] sm:$0xff] %v28307_v59 }
  0xef   : > { %33953 = vst [vmem:[#allocation3_spill] sm:$0xff] %v28301_v56  ;;  %v25695_v57 = vpop.f32.mrb[2].mxu1  ;;  %6269 = vrot.lane.b32.xlu1 %v28301_v56, %s27968_s30  ;;  %v25671_v58 = vpop.f32.mrb[2].mxu0  ;;  %33955 = vst [vmem:[#allocation5_spill] sm:$0xff] %v28309_v62 }
  0xf0   : > { %v546_v60 = vpop.f32.mrb[3].mxu1  ;;  %v466_v61 = vpop.f32.mrb[3].mxu0  ;;  %v28313_v63 = vmul.f32 0.17677669, %v25671_v58  ;;  %v28317_v4 = vmul.f32 0.17677669, %v25695_v57 }
  0xf1   : > { %v28323_v6 = vmul.f32 0.17677669, %v466_v61  ;;  %v28337_v16 = vmul.f32 0.17677669, %v546_v60 }
  0xf2   : > { %7595 = vrot.lane.b32.xlu0 %v28307_v59, %s27968_s30  ;;  %33956 = vst [vmem:[#allocation6_spill] sm:$0xff] %v28313_v63  ;;  %33957 = vst [vmem:[#allocation7_spill] sm:$0xff] %v28317_v4 }
  0xf3   : > { %v25698_v0 = vpop.f32.mrb[4].mxu1  ;;  %7517 = vrot.lane.b32.xlu1 %v28309_v62, %s27968_s30  ;;  %v25674_v1 = vpop.f32.mrb[4].mxu0  ;;  %33958 = vst [vmem:[#allocation8_spill] sm:$0xff] %v28323_v6  ;;  %33961 = vst [vmem:[#allocation11_spill] sm:$0xff] %v28337_v16 }
  0xf4   : > { %v556_v2 = vpop.f32.mrb[5].mxu1  ;;  %v476_v3 = vpop.f32.mrb[5].mxu0  ;;  %v28325_v8 = vmul.f32 0.17677669, %v25698_v0  ;;  %v28341_v17 = vmul.f32 0.17677669, %v25674_v1 }
  0xf5   : > { %v28357_v23 = vmul.f32 0.17677669, %v476_v3  ;;  %v28379_v34 = vmul.f32 0.17677669, %v556_v2 }
  0xf6   : > { %6503 = vrot.lane.b32.xlu0 %v28313_v63, %s27968_s30  ;;  %33959 = vst [vmem:[#allocation9_spill] sm:$0xff] %v28325_v8  ;;  %33962 = vst [vmem:[#allocation12_spill] sm:$0xff] %v28341_v17 }
  0xf7   : > { %v25701_v5 = vpop.f32.mrb[6].mxu1  ;;  %7751 = vrot.lane.b32.xlu1 %v28317_v4, %s27968_s30  ;;  %v25677_v7 = vpop.f32.mrb[6].mxu0  ;;  %33964 = vst [vmem:[#allocation14_spill] sm:$0xff] %v28357_v23  ;;  %33967 = vst [vmem:[#allocation17_spill] sm:$0xff] %v28379_v34 }
  0xf8   : > { %v566_v9 = vpop.f32.mrb[7].mxu1  ;;  %v486_v10 = vpop.f32.mrb[7].mxu0  ;;  %v28329_v11 = vmul.f32 0.17677669, %v25677_v7  ;;  %v28395_v40 = vmul.f32 0.17677669, %v25701_v5 }
  0xf9   : > { %v28402_v41 = vmul.f32 0.17677669, %v486_v10  ;;  %v28435_v51 = vmul.f32 0.17677669, %v566_v9 }
  0xfa   : > { %7907 = vrot.lane.b32.xlu0 %v28325_v8, %s27968_s30  ;;  %33960 = vst [vmem:[#allocation10_spill] sm:$0xff] %v28329_v11  ;;  %33973 = vst [vmem:[#allocation23_spill] sm:$0xff] %v28395_v40 }
  0xfb   : > { %v25704_v12 = vpop.f32.mrb[8].mxu1  ;;  %6425 = vrot.lane.b32.xlu1 %v28323_v6, %s27968_s30  ;;  %v25680_v13 = vpop.f32.mrb[8].mxu0  ;;  %33974 = vst [vmem:[#allocation24_spill] sm:$0xff] %v28402_v41  ;;  %33983 = vst [vmem:[#allocation33_spill] sm:$0xff] %v28435_v51 }
  0xfc   : > { %v28333_v14 = vpop.f32.mrb[9].mxu1  ;;  %v28335_v15 = vpop.f32.mrb[9].mxu0  ;;  %v28349_v20 = vmul.f32 0.17677669, %v25704_v12  ;;  %v28444_v52 = vmul.f32 0.17677669, %v25680_v13 }
  0xfd   : > { %v28464_v58 = vmul.f32 0.17677669, %v28335_v15  ;;  %v28490_v2 = vmul.f32 0.17677669, %v28333_v14 }
  0xfe   : > { %6815 = vrot.lane.b32.xlu0 %v28329_v11, %s27968_s30  ;;  %33963 = vst [vmem:[#allocation13_spill] sm:$0xff] %v28349_v20  ;;  %33984 = vst [vmem:[#allocation34_spill] sm:$0xff] %v28444_v52 }
  0xff   : > { %v28343_v18 = vpop.f32.mrb[10].mxu1  ;;  %7673 = vrot.lane.b32.xlu1 %v28337_v16, %s27968_s30  ;;  %v28347_v19 = vpop.f32.mrb[10].mxu0  ;;  %33988 = vst [vmem:[#allocation38_spill] sm:$0xff] %v28464_v58  ;;  %33993 = vst [vmem:[#allocation43_spill] sm:$0xff] %v28490_v2 }
 0x100   : > { %v28351_v21 = vpop.f32.mrb[11].mxu1  ;;  %v28353_v22 = vpop.f32.mrb[11].mxu0  ;;  %v28500_v3 = vmul.f32 0.17677669, %v28347_v19  ;;  %v28526_v12 = vmul.f32 0.17677669, %v28343_v18 }
 0x101   : > { %v28536_v13 = vmul.f32 0.17677669, %v28353_v22  ;;  %v28569_v22 = vmul.f32 0.17677669, %v28351_v21 }
 0x102   : > { %8219 = vrot.lane.b32.xlu0 %v28349_v20, %s27968_s30  ;;  %33994 = vst [vmem:[#allocation44_spill] sm:$0xff] %v28500_v3  ;;  %33999 = vst [vmem:[#allocation49_spill] sm:$0xff] %v28526_v12 }
 0x103   : > { %v25710_v24 = vpop.f32.mrb[12].mxu1  ;;  %6659 = vrot.lane.b32.xlu1 %v28341_v17, %s27968_s30  ;;  %v25686_v25 = vpop.f32.mrb[12].mxu0  ;;  %34000 = vst [vmem:[#allocation50_spill] sm:$0xff] %v28536_v13  ;;  %34005 = vst [vmem:[#allocation55_spill] sm:$0xff] %v28569_v22 }
 0x104   : > { %v28361_v26 = vmul.f32 0.17677669, %v25686_v25  ;;  %v28363_v27 = vpop.f32.mrb[13].mxu1  ;;  %v28365_v28 = vpop.f32.mrb[13].mxu0  ;;  %v28373_v31 = vmul.f32 0.17677669, %v25710_v24 }
 0x105   : > { %v28588_v21 = vmul.f32 0.17677669, %v28365_v28 }
 0x106   : > { %33965 = vst [vmem:[#allocation15_spill] sm:$0xff] %v28361_v26  ;;  %7283 = vrot.lane.b32.xlu0 %v28361_v26, %s27968_s30  ;;  %33966 = vst [vmem:[#allocation16_spill] sm:$0xff] %v28373_v31 }
 0x107   : > { %v25713_v29 = vpop.f32.mrb[14].mxu1  ;;  %6581 = vrot.lane.b32.xlu1 %v28357_v23, %s27968_s30  ;;  %v28371_v30 = vpop.f32.mrb[14].mxu0  ;;  %34008 = vst [vmem:[#allocation58_spill] sm:$0xff] %v28588_v21 }
 0x108   : > { %v28375_v32 = vpop.f32.mrb[15].mxu1  ;;  %v28377_v33 = vpop.f32.mrb[15].mxu0  ;;  %v28389_v37 = vmul.f32 0.17677669, %v25713_v29 }
 0x10a   : > { %8531 = vrot.lane.b32.xlu0 %v28373_v31, %s27968_s30  ;;  %33970 = vst [vmem:[#allocation20_spill] sm:$0xff] %v28389_v37 }
 0x10b   : > { %v28383_v35 = vpop.f32.mrb[16].mxu1  ;;  %7829 = vrot.lane.b32.xlu1 %v28379_v34, %s27968_s30  ;;  %v28387_v36 = vpop.f32.mrb[16].mxu0 }
 0x10c   : > { %33968 = vst [vmem:[#allocation18_spill] sm:$0xff] %v28383_v35  ;;  %33969 = vst [vmem:[#allocation19_spill] sm:$0xff] %v28387_v36  ;;  %v28391_v38 = vpop.f32.mrb[17].mxu1  ;;  %v28393_v39 = vpop.f32.mrb[17].mxu0 }
 0x10d   : > { %33971 = vst [vmem:[#allocation21_spill] sm:$0xff] %v28391_v38  ;;  %33972 = vst [vmem:[#allocation22_spill] sm:$0xff] %v28393_v39  ;;  %25827 = vmatpush3.xpose.msk.msra.mxu1 %vm1114_vm2, %v28391_v38 }
 0x10e   : > { %8687 = vrot.lane.b32.xlu0 %v28389_v37, %s27968_s30  ;;  %25831 = vmatprep.subr.mxu1 %v33808_v50 }
 0x10f   : > { %v28404_v42 = vpop.f32.mrb[18].mxu1  ;;  %8063 = vrot.lane.b32.xlu1 %v28395_v40, %s27968_s30  ;;  %v28408_v43 = vpop.f32.mrb[18].mxu0 }
 0x110   : > { %33975 = vst [vmem:[#allocation25_spill] sm:$0xff] %v28404_v42  ;;  %33976 = vst [vmem:[#allocation26_spill] sm:$0xff] %v28408_v43  ;;  %v28410_v44 = vpop.f32.mrb[19].mxu1  ;;  %25829 = vmatmul.mubr.msk.f32.vlgmr.msra.gmra.mrb[48].mxu1 %vm1114_vm2, %v28301_v56  ;;  %v28414_v45 = vpop.f32.mrb[19].mxu0 }
 0x111   : > { %33977 = vst [vmem:[#allocation27_spill] sm:$0xff] %v28410_v44  ;;  %33978 = vst [vmem:[#allocation28_spill] sm:$0xff] %v28414_v45  ;;  %25832 = vmatpush3.xpose.msk.msra.mxu1 %vm1114_vm2, %v28383_v35  ;;  %25833 = vmatprep.mubr.msk.f32.mxu1 %vm27967_vm1, %v33808_v50 }
 0x112   : > { %6271 = vrot.lane.b32.xlu0 %v28391_v38, %s27968_s30  ;;  %25836 = vmatprep.subr.mxu1 %v33808_v50 }
 0x113   : > { %v28423_v46 = vpop.f32.mrb[20].mxu1  ;;  %6737 = vrot.lane.b32.xlu1 %v28402_v41, %s27968_s30  ;;  %v28427_v47 = vpop.f32.mrb[20].mxu0 }
 0x114   : > { %33979 = vst [vmem:[#allocation29_spill] sm:$0xff] %v28423_v46  ;;  %33980 = vst [vmem:[#allocation30_spill] sm:$0xff] %v28427_v47  ;;  %v28429_v48 = vpop.f32.mrb[21].mxu1  ;;  %25834 = vmatmul.mubr.msk.f32.vlgmr.msra.gmra.mrb[50].mxu1 %vm1114_vm2, %v28299_v53  ;;  %v28433_v49 = vpop.f32.mrb[21].mxu0 }
 0x115   : > { %33981 = vst [vmem:[#allocation31_spill] sm:$0xff] %v28429_v48  ;;  %33982 = vst [vmem:[#allocation32_spill] sm:$0xff] %v28433_v49  ;;  %25837 = vmatpush3.xpose.msk.msra.mxu1 %vm1114_vm2, %v28410_v44  ;;  %25838 = vmatprep.mubr.msk.f32.mxu1 %vm27967_vm1, %v33808_v50 }
 0x116   : > { %9381 = vrot.lane.b32.xlu0 %v28408_v43, %s27968_s30  ;;  %25841 = vmatprep.subr.mxu1 %v33808_v50 }
 0x117   : > { %v28446_v54 = vpop.f32.mrb[22].mxu1  ;;  %7985 = vrot.lane.b32.xlu1 %v28435_v51, %s27968_s30  ;;  %v28450_v55 = vpop.f32.mrb[22].mxu0 }
 0x118   : > { %33985 = vst [vmem:[#allocation35_spill] sm:$0xff] %v28446_v54  ;;  %33986 = vst [vmem:[#allocation36_spill] sm:$0xff] %v28450_v55  ;;  %v28452_v57 = vpop.f32.mrb[23].mxu1  ;;  %25839 = vmatmul.mubr.msk.f32.vlgmr.msra.gmra.mrb[52].mxu1 %vm1114_vm2, %v28323_v6 }
 0x119   : > { %33987 = vst [vmem:[#allocation37_spill] sm:$0xff] %v28452_v57  ;;  %25842 = vmatpush3.xpose.msk.msra.mxu1 %vm1114_vm2, %v28404_v42  ;;  %25843 = vmatprep.mubr.msk.f32.mxu1 %vm27967_vm1, %v33808_v50 }
 0x11a   : > { %6661 = vrot.lane.b32.xlu0 %v28423_v46, %s27968_s30  ;;  %25846 = vmatprep.subr.mxu1 %v33808_v50 }
 0x11b   : > { %v28466_v60 = vpop.f32.mrb[24].mxu1  ;;  %6971 = vrot.lane.b32.xlu1 %v28444_v52, %s27968_s30 }
 0x11c   : > { %33989 = vst [vmem:[#allocation39_spill] sm:$0xff] %v28466_v60  ;;  %v28470_v61 = vpop.f32.mrb[25].mxu1  ;;  %25844 = vmatmul.mubr.msk.f32.vlgmr.msra.gmra.mrb[54].mxu1 %vm1114_vm2, %v28313_v63 }
 0x11d   : > { %33990 = vst [vmem:[#allocation40_spill] sm:$0xff] %v28470_v61  ;;  %25847 = vmatpush3.xpose.msk.msra.mxu1 %vm1114_vm2, %v28429_v48  ;;  %25848 = vmatprep.mubr.msk.f32.mxu1 %vm27967_vm1, %v33808_v50 }
 0x11e   : > { %9535 = vrot.lane.b32.xlu0 %v28427_v47, %s27968_s30  ;;  %25851 = vmatprep.subr.mxu1 %v33808_v50 }
 0x11f   : > { %v28481_v0 = vpop.f32.mrb[26].mxu1  ;;  %6893 = vrot.lane.b32.xlu1 %v28464_v58, %s27968_s30 }
 0x120   : > { %33991 = vst [vmem:[#allocation41_spill] sm:$0xff] %v28481_v0  ;;  %v28485_v1 = vpop.f32.mrb[27].mxu1  ;;  %25849 = vmatmul.mubr.msk.f32.vlgmr.msra.gmra.mrb[56].mxu1 %vm1114_vm2, %v28357_v23 }
 0x121   : > { %33992 = vst [vmem:[#allocation42_spill] sm:$0xff] %v28485_v1  ;;  %25852 = vmatpush3.xpose.msk.msra.mxu1 %vm1114_vm2, %v28423_v46  ;;  %25853 = vmatprep.mubr.msk.f32.mxu1 %vm27967_vm1, %v33808_v50 }
 0x122   : > { %6583 = vrot.lane.b32.xlu0 %v28429_v48, %s27968_s30  ;;  %25856 = vmatprep.subr.mxu1 %v33808_v50 }
 0x123   : > { %v28502_v5 = vpop.f32.mrb[28].mxu1  ;;  %8141 = vrot.lane.b32.xlu1 %v28490_v2, %s27968_s30 }
 0x124   : > { %33995 = vst [vmem:[#allocation45_spill] sm:$0xff] %v28502_v5  ;;  %v28506_v7 = vpop.f32.mrb[29].mxu1  ;;  %25854 = vmatmul.mubr.msk.f32.vlgmr.msra.gmra.mrb[58].mxu1 %vm1114_vm2, %v28341_v17 }
 0x125   : > { %33996 = vst [vmem:[#allocation46_spill] sm:$0xff] %v28506_v7  ;;  %25857 = vmatpush3.xpose.msk.msra.mxu1 %vm1114_vm2, %v28452_v57  ;;  %25858 = vmatprep.mubr.msk.f32.mxu1 %vm27967_vm1, %v33808_v50 }
 0x126   : > { %6817 = vrot.lane.b32.xlu0 %v28446_v54, %s27968_s30  ;;  %25861 = vmatprep.subr.mxu1 %v33808_v50 }
 0x127   : > { %v28517_v9 = vpop.f32.mrb[30].mxu1  ;;  %7127 = vrot.lane.b32.xlu1 %v28500_v3, %s27968_s30 }
 0x128   : > { %33997 = vst [vmem:[#allocation47_spill] sm:$0xff] %v28517_v9  ;;  %v28521_v10 = vpop.f32.mrb[31].mxu1  ;;  %25859 = vmatmul.mubr.msk.f32.vlgmr.msra.gmra.mrb[60].mxu1 %vm1114_vm2, %v28402_v41 }
 0x129   : > { %33998 = vst [vmem:[#allocation48_spill] sm:$0xff] %v28521_v10  ;;  %25862 = vmatpush3.xpose.msk.msra.mxu1 %vm1114_vm2, %v28446_v54  ;;  %25863 = vmatprep.mubr.msk.f32.mxu1 %vm27967_vm1, %v33808_v50 }
 0x12a   : > { %6739 = vrot.lane.b32.xlu0 %v28452_v57, %s27968_s30  ;;  %25866 = vmatprep.subr.mxu1 %v33808_v50 }
 0x12b   : > { %v28538_v14 = vpop.f32.mrb[32].mxu1  ;;  %8375 = vrot.lane.b32.xlu1 %v28526_v12, %s27968_s30 }
 0x12c   : > { %34001 = vst [vmem:[#allocation51_spill] sm:$0xff] %v28538_v14  ;;  %v28542_v15 = vpop.f32.mrb[33].mxu1  ;;  %25864 = vmatmul.mubr.msk.f32.vlgmr.msra.gmra.mrb[62].mxu1 %vm1114_vm2, %v28329_v11 }
 0x12d   : > { %34002 = vst [vmem:[#allocation52_spill] sm:$0xff] %v28542_v15  ;;  %25867 = vmatpush3.xpose.msk.msra.mxu1 %vm1114_vm2, %v28470_v61  ;;  %25907 = vmatpush3.xpose.msk.msra.mxu0 %vm1114_vm2, %v28542_v15 }
 0x12e   : > { %6973 = vrot.lane.b32.xlu0 %v28466_v60, %s27968_s30  ;;  %25868 = vmatprep.mubr.msk.f32.mxu1 %vm27967_vm1, %v33808_v50 }
 0x12f   : > { %v28554_v18 = vpop.f32.mrb[34].mxu1  ;;  %7049 = vrot.lane.b32.xlu1 %v28536_v13, %s27968_s30  ;;  %25871 = vmatprep.subr.mxu1 %v33808_v50 }
 0x130   : > { %34003 = vst [vmem:[#allocation53_spill] sm:$0xff] %v28554_v18  ;;  %v28559_v19 = vpop.f32.mrb[35].mxu1  ;;  %25869 = vmatmul.mubr.msk.f32.vlgmr.msra.gmra.mrb[64].mxu1 %vm1114_vm2, %v28464_v58  ;;  %25909 = vmatmul.mubr.msk.f32.vlgmr.msra.gmra.mrb[48].mxu0 %vm1114_vm2, %v28309_v62  ;;  %v28621_v62 = vmul.f32 0.17677669, %v28363_v27  ;;  %v28638_v27 = vmul.f32 0.17677669, %v28371_v30 }
 0x131   : > { %34004 = vst [vmem:[#allocation54_spill] sm:$0xff] %v28559_v19  ;;  %25916 = vmatprep.subr.mxu0 %v33808_v50  ;;  %25872 = vmatpush3.xpose.msk.msra.mxu1 %vm1114_vm2, %v28466_v60 }
 0x132   : > { %25917 = vmatpush3.xpose.msk.msra.mxu0 %vm1114_vm2, %v28559_v19  ;;  %6895 = vrot.lane.b32.xlu0 %v28470_v61, %s27968_s30  ;;  %34012 = vst [vmem:[#allocation62_spill] sm:$0xff] %v28621_v62  ;;  %34014 = vst [vmem:[#allocation64_spill] sm:$0xff] %v28638_v27 }
 0x133   : > { %v28575_v24 = vpop.f32.mrb[36].mxu1  ;;  %25873 = vmatprep.mubr.msk.f32.mxu1 %vm27967_vm1, %v33808_v50  ;;  %25918 = vmatprep.mubr.msk.f32.mxu0 %vm27967_vm1, %v33808_v50 }
 0x134   : > { %34006 = vst [vmem:[#allocation56_spill] sm:$0xff] %v28575_v24  ;;  %8297 = vrot.lane.b32.xlu1 %v28569_v22, %s27968_s30  ;;  %v28583_v25 = vpop.f32.mrb[37].mxu1  ;;  %25874 = vmatmul.mubr.msk.f32.vlgmr.msra.gmra.mrb[66].mxu1 %vm1114_vm2, %v28444_v52 }
 0x135   : > { %34007 = vst [vmem:[#allocation57_spill] sm:$0xff] %v28583_v25  ;;  %25876 = vmatprep.subr.mxu1 %v33808_v50  ;;  %25919 = vmatmul.mubr.msk.f32.vlgmr.msra.gmra.mrb[50].mxu0 %vm1114_vm2, %v28337_v16 }
 0x136   : > { %25926 = vmatprep.subr.mxu0 %v33808_v50  ;;  %25877 = vmatpush3.xpose.msk.msra.mxu1 %vm1114_vm2, %v28485_v1 }
 0x137   : > { %25927 = vmatpush3.xpose.msk.msra.mxu0 %vm1114_vm2, %v28583_v25  ;;  %7051 = vrot.lane.b32.xlu0 %v28485_v1, %s27968_s30  ;;  %v28600_v29 = vpop.f32.mrb[38].mxu1 }
 0x138   : > { %34009 = vst [vmem:[#allocation59_spill] sm:$0xff] %v28600_v29  ;;  %25878 = vmatprep.mubr.msk.f32.mxu1 %vm27967_vm1, %v33808_v50  ;;  %25928 = vmatprep.mubr.msk.f32.mxu0 %vm27967_vm1, %v33808_v50  ;;  %v28606_v28 = vpop.f32.mrb[39].mxu1 }
 0x139   : > { %34010 = vst [vmem:[#allocation60_spill] sm:$0xff] %v28606_v28  ;;  %7205 = vrot.lane.b32.xlu1 %v28588_v21, %s27968_s30  ;;  %25879 = vmatmul.mubr.msk.f32.vlgmr.msra.gmra.mrb[68].mxu1 %vm1114_vm2, %v28536_v13 }
 0x13a   : > { %25881 = vmatprep.subr.mxu1 %v33808_v50  ;;  %25929 = vmatmul.mubr.msk.f32.vlgmr.msra.gmra.mrb[52].mxu0 %vm1114_vm2, %v28379_v34 }
 0x13b   : > { %25936 = vmatprep.subr.mxu0 %v33808_v50  ;;  %25882 = vmatpush3.xpose.msk.msra.mxu1 %vm1114_vm2, %v28481_v0  ;;  %v28618_v16 = vpop.f32.mrb[40].mxu1 }
 0x13c   : > { %34011 = vst [vmem:[#allocation61_spill] sm:$0xff] %v28618_v16  ;;  %25937 = vmatpush3.xpose.msk.msra.mxu0 %vm1114_vm2, %v28606_v28  ;;  %7285 = vrot.lane.b32.xlu0 %v28502_v5, %s27968_s30  ;;  %v28627_v1 = vpop.f32.mrb[41].mxu1 }
 0x13d   : > { %34013 = vst [vmem:[#allocation63_spill] sm:$0xff] %v28627_v1  ;;  %25883 = vmatprep.mubr.msk.f32.mxu1 %vm27967_vm1, %v33808_v50  ;;  %25938 = vmatprep.mubr.msk.f32.mxu0 %vm27967_vm1, %v33808_v50 }
 0x13e   : > { %8453 = vrot.lane.b32.xlu1 %v28621_v62, %s27968_s30  ;;  %25884 = vmatmul.mubr.msk.f32.vlgmr.msra.gmra.mrb[70].mxu1 %vm1114_vm2, %v28500_v3  ;;  %v28698_v3 = vmul.f32 0.17677669, %v28375_v32  ;;  %v28746_v32 = vpop.f32.mrb[23].mxu0 }
 0x13f   : > { %25886 = vmatprep.subr.mxu1 %v33808_v50  ;;  %25939 = vmatmul.mubr.msk.f32.vlgmr.msra.gmra.mrb[54].mxu0 %vm1114_vm2, %v28435_v51  ;;  %v28643_v34 = vpop.f32.mrb[42].mxu1  ;;  %v28665_v51 = vmul.f32 0.17677669, %v28377_v33  ;;  %34023 = vst [vmem:[#allocation73_spill] sm:$0xff] %v28746_v32 }
 0x140   : > { %34015 = vst [vmem:[#allocation65_spill] sm:$0xff] %v28643_v34  ;;  %25946 = vmatprep.subr.mxu0 %v33808_v50  ;;  %25887 = vmatpush3.xpose.msk.msra.mxu1 %vm1114_vm2, %v28506_v7  ;;  %v28648_v52 = vpop.f32.mrb[43].mxu1  ;;  %34022 = vst [vmem:[#allocation72_spill] sm:$0xff] %v28698_v3 }
 0x141   : > { %34016 = vst [vmem:[#allocation66_spill] sm:$0xff] %v28648_v52  ;;  %25947 = vmatpush3.xpose.msk.msra.mxu0 %vm1114_vm2, %v28627_v1  ;;  %7207 = vrot.lane.b32.xlu0 %v28506_v7, %s27968_s30  ;;  %34018 = vst [vmem:[#allocation68_spill] sm:$0xff] %v28665_v51 }
 0x142   : > { %25888 = vmatprep.mubr.msk.f32.mxu1 %vm27967_vm1, %v33808_v50  ;;  %25948 = vmatprep.mubr.msk.f32.mxu0 %vm27967_vm1, %v33808_v50 }
 0x143   : > { %7439 = vrot.lane.b32.xlu1 %v28638_v27, %s27968_s30  ;;  %25889 = vmatmul.mubr.msk.f32.vlgmr.msra.gmra.mrb[72].mxu1 %vm1114_vm2, %v28588_v21  ;;  %v28662_v30 = vpop.f32.mrb[44].mxu1 }
 0x144   : > { %34017 = vst [vmem:[#allocation67_spill] sm:$0xff] %v28662_v30  ;;  %25891 = vmatprep.subr.mxu1 %v33808_v50  ;;  %25949 = vmatmul.mubr.msk.f32.vlgmr.msra.gmra.mrb[56].mxu0 %vm1114_vm2, %v28490_v2  ;;  %v28670_v7 = vpop.f32.mrb[45].mxu1 }
 0x145   : > { %34019 = vst [vmem:[#allocation69_spill] sm:$0xff] %v28670_v7  ;;  %25956 = vmatprep.subr.mxu0 %v33808_v50  ;;  %25892 = vmatpush3.xpose.msk.msra.mxu1 %vm1114_vm2, %v28502_v5 }
 0x146   : > { %25957 = vmatpush3.xpose.msk.msra.mxu0 %vm1114_vm2, %v28648_v52  ;;  %7441 = vrot.lane.b32.xlu0 %v28517_v9, %s27968_s30 }
 0x147   : > { %25893 = vmatprep.mubr.msk.f32.mxu1 %vm27967_vm1, %v33808_v50  ;;  %25958 = vmatprep.mubr.msk.f32.mxu0 %vm27967_vm1, %v33808_v50  ;;  %v28683_v33 = vpop.f32.mrb[46].mxu1 }
 0x148   : > { %34020 = vst [vmem:[#allocation70_spill] sm:$0xff] %v28683_v33  ;;  %7361 = vrot.lane.b32.xlu1 %v28665_v51, %s27968_s30  ;;  %25894 = vmatmul.mubr.msk.f32.vlgmr.msra.gmra.mrb[74].mxu1 %vm1114_vm2, %v28361_v26  ;;  %v28689_v2 = vpop.f32.mrb[47].mxu1  ;;  %v1109_v26 = vlaneseq }
 0x149   : > { %34021 = vst [vmem:[#allocation71_spill] sm:$0xff] %v28689_v2  ;;  %25896 = vmatprep.subr.mxu1 %v33808_v50  ;;  %25959 = vmatmul.mubr.msk.f32.vlgmr.msra.gmra.mrb[58].mxu0 %vm1114_vm2, %v28569_v22 }
 0x14a   : > { %25966 = vmatprep.subr.mxu0 %v33808_v50  ;;  %25897 = vmatpush3.xpose.msk.msra.mxu1 %vm1114_vm2, %v28521_v10 }
 0x14b   : > { %25967 = vmatpush3.xpose.msk.msra.mxu0 %vm1114_vm2, %v28670_v7  ;;  %7363 = vrot.lane.b32.xlu0 %v28521_v10, %s27968_s30 }
 0x14c   : > { %25898 = vmatprep.mubr.msk.f32.mxu1 %vm27967_vm1, %v33808_v50  ;;  %25968 = vmatprep.mubr.msk.f32.mxu0 %vm27967_vm1, %v33808_v50 }
 0x14d   : > { %8609 = vrot.lane.b32.xlu1 %v28698_v3, %s27968_s30  ;;  %25899 = vmatmul.mubr.msk.f32.vlgmr.msra.gmra.mrb[76].mxu1 %vm1114_vm2, %v28665_v51 }
 0x14e   : > { %25901 = vmatprep.subr.mxu1 %v33808_v50  ;;  %25969 = vmatmul.mubr.msk.f32.vlgmr.msra.gmra.mrb[60].mxu0 %vm1114_vm2, %v28621_v62 }
 0x14f   : > { %25976 = vmatprep.subr.mxu0 %v33808_v50  ;;  %25902 = vmatpush3.xpose.msk.msra.mxu1 %vm1114_vm2, %v28517_v9 }
 0x150   : > { %25977 = vmatpush3.xpose.msk.msra.mxu0 %vm1114_vm2, %v28689_v2  ;;  %7519 = vrot.lane.b32.xlu0 %v28542_v15, %s27968_s30 }
 0x151   : > { %25978 = vmatprep.mubr.msk.f32.mxu0 %vm27967_vm1, %v33808_v50  ;;  %6349 = vrot.lane.b32.xlu1 %v28383_v35, %s27968_s30 }
 0x152   : > { %25903 = vmatprep.mubr.msk.f32.mxu1 %vm27967_vm1, %v33808_v50  ;;  %25911 = vmatprep.subr.mxu1 %v33808_v50 }
 0x153   : > { %25904 = vmatmul.mubr.msk.f32.vlgmr.msra.gmra.mrb[78].mxu1 %vm1114_vm2, %v28638_v27  ;;  %25979 = vmatmul.mubr.msk.f32.vlgmr.msra.gmra.mrb[62].mxu0 %vm1114_vm2, %v28698_v3  ;;  %v28757_v3 = vpop.f32.mrb[24].mxu0 }
 0x154   : > { %25912 = vmatpush3.xpose.msk.msra.mxu1 %vm1114_vm2, %v28538_v14  ;;  %25913 = vmatprep.mubr.msk.f32.mxu1 %vm27967_vm1, %v33808_v50  ;;  %34024 = vst [vmem:[#allocation74_spill] sm:$0xff] %v28757_v3 }
 0x155   : > { %9227 = vrot.lane.b32.xlu1 %v28387_v36, %s27968_s30  ;;  %25921 = vmatprep.subr.mxu1 %v33808_v50 }
 0x156   : > { %7753 = vrot.lane.b32.xlu0 %v28554_v18, %s27968_s30  ;;  %25986 = vmatprep.subr.mxu0 %v33808_v50 }
 0x157   : > { %25914 = vmatmul.mubr.msk.f32.vlgmr.msra.gmra.mrb[80].mxu1 %vm1114_vm2, %v28307_v59  ;;  %25987 = vmatpush3.msra.mxu0 %v28393_v39  ;;  %v28763_v39 = vpop.f32.mrb[25].mxu0 }
 0x158   : > { %25922 = vmatpush3.xpose.msk.msra.mxu1 %vm1114_vm2, %v28554_v18  ;;  %25923 = vmatprep.mubr.msk.f32.mxu1 %vm27967_vm1, %v33808_v50  ;;  %34025 = vst [vmem:[#allocation75_spill] sm:$0xff] %v28763_v39  ;;  %v28775_v22 = vpop.f32.mrb[26].mxu0 }
 0x159   : > { %6505 = vrot.lane.b32.xlu1 %v28404_v42, %s27968_s30  ;;  %25931 = vmatprep.subr.mxu1 %v33808_v50  ;;  %34026 = vst [vmem:[#allocation76_spill] sm:$0xff] %v28775_v22  ;;  %v28779_v62 = vpop.f32.mrb[27].mxu0 }
 0x15a   : > { %7675 = vrot.lane.b32.xlu0 %v28559_v19, %s27968_s30  ;;  %25988 = vmatprep.mubr.msk.f32.mxu0 %vm27967_vm1, %v33808_v50  ;;  %34027 = vst [vmem:[#allocation77_spill] sm:$0xff] %v28779_v62 }
 0x15b   : > { %25924 = vmatmul.mubr.msk.f32.vlgmr.msra.gmra.mrb[82].mxu1 %vm1114_vm2, %v28317_v4  ;;  %25996 = vmatprep.subr.mxu0 %v33808_v50  ;;  %v28790_v4 = vpop.f32.mrb[28].mxu0 }
 0x15c   : > { %25932 = vmatpush3.xpose.msk.msra.mxu1 %vm1114_vm2, %v28575_v24  ;;  %25933 = vmatprep.mubr.msk.f32.mxu1 %vm27967_vm1, %v33808_v50  ;;  %34028 = vst [vmem:[#allocation78_spill] sm:$0xff] %v28790_v4  ;;  %v28794_v18 = vpop.f32.mrb[29].mxu0 }
 0x15d   : > { %6427 = vrot.lane.b32.xlu1 %v28410_v44, %s27968_s30  ;;  %25941 = vmatprep.subr.mxu1 %v33808_v50  ;;  %34029 = vst [vmem:[#allocation79_spill] sm:$0xff] %v28794_v18 }
 0x15e   : > { %7831 = vrot.lane.b32.xlu0 %v28583_v25, %s27968_s30 }
 0x15f   : > { %25934 = vmatmul.mubr.msk.f32.vlgmr.msra.gmra.mrb[84].mxu1 %vm1114_vm2, %v28325_v8 }
 0x160   : > { %25942 = vmatpush3.xpose.msk.msra.mxu1 %vm1114_vm2, %v28600_v29  ;;  %25943 = vmatprep.mubr.msk.f32.mxu1 %vm27967_vm1, %v33808_v50 }
 0x161   : > { %9689 = vrot.lane.b32.xlu1 %v28450_v55, %s27968_s30  ;;  %25951 = vmatprep.subr.mxu1 %v33808_v50  ;;  %v28900_v10 = vpop.permute.xlu1 %6269 }
 0x162   : > { %8065 = vrot.lane.b32.xlu0 %v28600_v29, %s27968_s30  ;;  %v28805_v29 = vpop.f32.mrb[30].mxu0  ;;  %34054 = vst [vmem:[#allocation104_spill] sm:$0xff] %v28900_v10 }
 0x163   : > { %25944 = vmatmul.mubr.msk.f32.vlgmr.msra.gmra.mrb[86].mxu1 %vm1114_vm2, %v28395_v40  ;;  %34030 = vst [vmem:[#allocation80_spill] sm:$0xff] %v28805_v29  ;;  %v28809_v40 = vpop.f32.mrb[31].mxu0 }
 0x164   : > { %25952 = vmatpush3.xpose.msk.msra.mxu1 %vm1114_vm2, %v28618_v16  ;;  %25953 = vmatprep.mubr.msk.f32.mxu1 %vm27967_vm1, %v33808_v50  ;;  %34031 = vst [vmem:[#allocation81_spill] sm:$0xff] %v28809_v40  ;;  %v28820_v19 = vpop.f32.mrb[32].mxu0 }
 0x165   : > { %7129 = vrot.lane.b32.xlu1 %v28481_v0, %s27968_s30  ;;  %25961 = vmatprep.subr.mxu1 %v33808_v50  ;;  %34032 = vst [vmem:[#allocation82_spill] sm:$0xff] %v28820_v19  ;;  %v28904_v9 = vpop.permute.xlu1 %7517 }
 0x166   : > { %7987 = vrot.lane.b32.xlu0 %v28606_v28, %s27968_s30  ;;  %34056 = vst [vmem:[#allocation106_spill] sm:$0xff] %v28904_v9 }
 0x167   : > { %25954 = vmatmul.mubr.msk.f32.vlgmr.msra.gmra.mrb[88].mxu1 %vm1114_vm2, %v28349_v20  ;;  %v28824_v20 = vpop.f32.mrb[33].mxu0 }
 0x168   : > { %25962 = vmatpush3.xpose.msk.msra.mxu1 %vm1114_vm2, %v28643_v34  ;;  %25963 = vmatprep.mubr.msk.f32.mxu1 %vm27967_vm1, %v33808_v50  ;;  %34033 = vst [vmem:[#allocation83_spill] sm:$0xff] %v28824_v20 }
 0x169   : > { %7597 = vrot.lane.b32.xlu1 %v28538_v14, %s27968_s30  ;;  %25971 = vmatprep.subr.mxu1 %v33808_v50 }
 0x16a   : > { %8143 = vrot.lane.b32.xlu0 %v28627_v1, %s27968_s30  ;;  %v28835_v1 = vpop.f32.mrb[34].mxu0 }
 0x16b   : > { %25964 = vmatmul.mubr.msk.f32.vlgmr.msra.gmra.mrb[90].mxu1 %vm1114_vm2, %v28526_v12  ;;  %34034 = vst [vmem:[#allocation84_spill] sm:$0xff] %v28835_v1  ;;  %v28839_v12 = vpop.f32.mrb[35].mxu0 }
 0x16c   : > { %25972 = vmatpush3.xpose.msk.msra.mxu1 %vm1114_vm2, %v28662_v30  ;;  %25973 = vmatprep.mubr.msk.f32.mxu1 %vm27967_vm1, %v33808_v50  ;;  %34035 = vst [vmem:[#allocation85_spill] sm:$0xff] %v28839_v12 }
 0x16d   : > { %25981 = vmatprep.subr.mxu1 %v33808_v50  ;;  %7909 = vrot.lane.b32.xlu1 %v28575_v24, %s27968_s30 }
 0x16e   : > { %8377 = vrot.lane.b32.xlu0 %v28643_v34, %s27968_s30  ;;  %v28850_v34 = vpop.f32.mrb[36].mxu0 }
 0x16f   : > { %25974 = vmatmul.mubr.msk.f32.vlgmr.msra.gmra.mrb[92].mxu1 %vm1114_vm2, %v28373_v31  ;;  %34036 = vst [vmem:[#allocation86_spill] sm:$0xff] %v28850_v34  ;;  %v28854_v31 = vpop.f32.mrb[37].mxu0 }
 0x170   : > { %25982 = vmatpush3.xpose.msk.msra.mxu1 %vm1114_vm2, %v28683_v33  ;;  %25983 = vmatprep.mubr.msk.f32.mxu1 %vm27967_vm1, %v33808_v50  ;;  %34037 = vst [vmem:[#allocation87_spill] sm:$0xff] %v28854_v31 }
 0x171   : > { %8221 = vrot.lane.b32.xlu1 %v28618_v16, %s27968_s30  ;;  %25991 = vmatprep.subr.mxu1 %v33808_v50 }
 0x172   : > { %8299 = vrot.lane.b32.xlu0 %v28648_v52, %s27968_s30  ;;  %v28864_v52 = vpop.f32.mrb[38].mxu0 }
 0x173   : > { %25984 = vmatmul.mubr.msk.f32.vlgmr.msra.gmra.mrb[94].mxu1 %vm1114_vm2, %v28389_v37  ;;  %34038 = vst [vmem:[#allocation88_spill] sm:$0xff] %v28864_v52  ;;  %v28866_v16 = vpop.f32.mrb[39].mxu0 }
 0x174   : > { %25992 = vmatpush3.msra.mxu1 %v28387_v36  ;;  %25993 = vmatprep.mubr.msk.f32.mxu1 %vm27967_vm1, %v33808_v50  ;;  %34039 = vst [vmem:[#allocation89_spill] sm:$0xff] %v28866_v16  ;;  %v28870_v37 = vpop.f32.mrb[40].mxu0 }
 0x175   : > { %8533 = vrot.lane.b32.xlu1 %v28662_v30, %s27968_s30  ;;  %26001 = vmatprep.subr.mxu1 %v33808_v50  ;;  %34040 = vst [vmem:[#allocation90_spill] sm:$0xff] %v28870_v37  ;;  %v28872_v36 = vpop.f32.mrb[41].mxu0 }
 0x176   : > { %8455 = vrot.lane.b32.xlu0 %v28670_v7, %s27968_s30  ;;  %34041 = vst [vmem:[#allocation91_spill] sm:$0xff] %v28872_v36  ;;  %v28874_v28 = vpop.f32.mrb[42].mxu0 }
 0x177   : > { %34042 = vst [vmem:[#allocation92_spill] sm:$0xff] %v28874_v28  ;;  %v28878_v50 = vpop.f32.mrb[43].mxu0 }
 0x178   : > { %34043 = vst [vmem:[#allocation93_spill] sm:$0xff] %v28878_v50  ;;  %v28880_v30 = vpop.f32.mrb[44].mxu0 }
 0x179   : > { %34044 = vst [vmem:[#allocation94_spill] sm:$0xff] %v28880_v30  ;;  %v28882_v7 = vpop.f32.mrb[45].mxu0 }
 0x17a   : > { %8689 = vrot.lane.b32.xlu0 %v28683_v33, %s27968_s30  ;;  %34045 = vst [vmem:[#allocation95_spill] sm:$0xff] %v28882_v7  ;;  %v28884_v8 = vpop.f32.mrb[46].mxu0  ;;  %v28888_v33 = vpop.permute.xlu0 %6347 }
 0x17b   : > { %34046 = vst [vmem:[#allocation96_spill] sm:$0xff] %v28884_v8  ;;  %v28886_v24 = vpop.f32.mrb[47].mxu0  ;;  %34048 = vst [vmem:[#allocation98_spill] sm:$0xff] %v28888_v33  ;;  %v1110_v33 = vshrl.u32 %v1109_v26, 7 }
 0x17c   : > { %34047 = vst [vmem:[#allocation97_spill] sm:$0xff] %v28886_v24  ;;  %v1112_v24 = vand.u32 127, %v1109_v26 }
 0x17e   : > { %8611 = vrot.lane.b32.xlu0 %v28689_v2, %s27968_s30  ;;  %v28890_v25 = vpop.permute.xlu0 %7595  ;;  %vm28910_vm3 = vcmp.ge.s32.totalorder %v1110_v33, %v1112_v24 }
 0x17f   : > { %34049 = vst [vmem:[#allocation99_spill] sm:$0xff] %v28890_v25  ;;  %v28908_v25 = vpop.permute.xlu1 %7751 }
 0x180   : > { %34058 = vst [vmem:[#allocation108_spill] sm:$0xff] %v28908_v25 }
 0x182   : > { %v28892_v59 = vpop.permute.xlu0 %6503 }
 0x183   : > { %34050 = vst [vmem:[#allocation100_spill] sm:$0xff] %v28892_v59  ;;  %v34059_v59 = vmov 0 }
 0x184   : > { %v34060_v59 = vsel %vm28910_vm3, 4294967295, %v34059_v59 }
 0x185   : > { %34061 = vst [vmem:[#allocation109_spill] sm:$0xff] %v34060_v59 }
 0x186   : > { %v28894_v14 = vpop.permute.xlu0 %7907 }
 0x187   : > { %34051 = vst [vmem:[#allocation101_spill] sm:$0xff] %v28894_v14 }
 0x18a   : > { %v28896_v15 = vpop.permute.xlu0 %6815 }
 0x18b   : > { %34052 = vst [vmem:[#allocation102_spill] sm:$0xff] %v28896_v15 }
 0x18e   : > { %v28898_v2 = vpop.permute.xlu0 %8219 }
 0x18f   : > { %34053 = vst [vmem:[#allocation103_spill] sm:$0xff] %v28898_v2 }
 0x192   : > { %v28902_v27 = vpop.permute.xlu0 %7283 }
 0x193   : > { %34055 = vst [vmem:[#allocation105_spill] sm:$0xff] %v28902_v27 }
 0x196   : > { %v28906_v51 = vpop.permute.xlu0 %8531 }
 0x197   : > { %34057 = vst [vmem:[#allocation107_spill] sm:$0xff] %v28906_v51  ;;  %v28922_v51 = vpop.permute.xlu1 %6425 }
 0x198   : > { %34063 = vst [vmem:[#allocation111_spill] sm:$0xff] %v28922_v51 }
 0x19a   : > { %v28914_v14 = vpop.permute.xlu0 %8687 }
 0x19b   : > { %34062 = vst [vmem:[#allocation110_spill] sm:$0xff] %v28914_v14 }
 0x19e   : > { %v28924_v25 = vpop.permute.xlu0 %6271 }
 0x19f   : > { %34064 = vst [vmem:[#allocation112_spill] sm:$0xff] %v28924_v25 }
 0x1e3   : > { %v1187_v2 = vpop.f32.mrb[48].mxu1 }
 0x1e4   : > { %v25830_v15 = vpop.f32.mrb[49].mxu1  ;;  %v28918_v27 = vsel %vm28910_vm3, %v1187_v2, -inf }
 0x1e5   : > { %v3581_v9 = vsel %vm1114_vm2, %v28918_v27, -inf }
 0x1e6   : > { %3582 = vmax.xlane.f32.xlu0 %v3581_v9  ;;  %v28936_v9 = vpop.permute.xlu1 %7673 }
 0x1e7   : > { %v1263_v26 = vpop.f32.mrb[50].mxu1  ;;  %34065 = vst [vmem:[#allocation113_spill] sm:$0xff] %v28936_v9 }
 0x1e8   : > { %v25835_v24 = vpop.f32.mrb[51].mxu1  ;;  %v28928_v33 = vsel %vm28910_vm3, %v1263_v26, -inf }
 0x1e9   : > { %v3584_v15 = vsel %vm1114_vm2, %v28928_v33, -inf  ;;  %v28940_v24 = vpop.permute.xlu0 %9381 }
 0x1ea   : > { %3585 = vmax.xlane.f32.xlu0 %v3584_v15  ;;  %34066 = vst [vmem:[#allocation114_spill] sm:$0xff] %v28940_v24  ;;  %v28948_v15 = vpop.permute.xlu1 %6659 }
 0x1eb   : > { %v1339_v2 = vpop.f32.mrb[52].mxu1  ;;  %34067 = vst [vmem:[#allocation115_spill] sm:$0xff] %v28948_v15 }
 0x1ec   : > { %v25840_v14 = vpop.f32.mrb[53].mxu1  ;;  %v28934_v10 = vsel %vm28910_vm3, %v1339_v2, -inf }
 0x1ed   : > { %v3587_v51 = vsel %vm1114_vm2, %v28934_v10, -inf  ;;  %v28950_v9 = vpop.permute.xlu0 %6661 }
 0x1ee   : > { %3588 = vmax.xlane.f32.xlu0 %v3587_v51  ;;  %34068 = vst [vmem:[#allocation116_spill] sm:$0xff] %v28950_v9 }
 0x1ef   : > { %v1415_v26 = vpop.f32.mrb[54].mxu1 }
 0x1f0   : > { %v25845_v25 = vpop.f32.mrb[55].mxu1  ;;  %v28944_v7 = vsel %vm28910_vm3, %v1415_v26, -inf }
 0x1f1   : > { %v3590_v14 = vsel %vm1114_vm2, %v28944_v7, -inf }
 0x1f2   : > { %3591 = vmax.xlane.f32.xlu0 %v3590_v14  ;;  %v28962_v14 = vpop.permute.xlu1 %6581 }
 0x1f3   : > { %v1491_v2 = vpop.f32.mrb[56].mxu1  ;;  %34069 = vst [vmem:[#allocation117_spill] sm:$0xff] %v28962_v14 }
 0x1f4   : > { %v25850_v50 = vpop.f32.mrb[57].mxu1  ;;  %v28954_v24 = vsel %vm28910_vm3, %v1491_v2, -inf }
 0x1f5   : > { %v3593_v51 = vsel %vm1114_vm2, %v28954_v24, -inf  ;;  %v28966_v50 = vpop.permute.xlu0 %9535 }
 0x1f6   : > { %3594 = vmax.xlane.f32.xlu1 %v3593_v51  ;;  %34070 = vst [vmem:[#allocation118_spill] sm:$0xff] %v28966_v50 }
 0x1f7   : > { %v1567_v25 = vpop.f32.mrb[58].mxu1 }
 0x1f8   : > { %v25855_v26 = vpop.f32.mrb[59].mxu1  ;;  %v28960_v36 = vsel %vm28910_vm3, %v1567_v25, -inf  ;;  %v28974_v25 = vpop.permute.xlu1 %7829 }
 0x1f9   : > { %v3596_v15 = vsel %vm1114_vm2, %v28960_v36, -inf  ;;  %34071 = vst [vmem:[#allocation119_spill] sm:$0xff] %v28974_v25  ;;  %v28976_v14 = vpop.permute.xlu0 %6583 }
 0x1fa   : > { %3597 = vmax.xlane.f32.xlu1 %v3596_v15  ;;  %34072 = vst [vmem:[#allocation120_spill] sm:$0xff] %v28976_v14 }
 0x1fb   : > { %v1643_v2 = vpop.f32.mrb[60].mxu1 }
 0x1fc   : > { %v25860_v9 = vpop.f32.mrb[61].mxu1  ;;  %v28970_v16 = vsel %vm28910_vm3, %v1643_v2, -inf }
 0x1fd   : > { %v3599_v51 = vsel %vm1114_vm2, %v28970_v16, -inf  ;;  %v28998_v61 = vpop.permute.xlu0 %6817 }
 0x1fe   : > { %3600 = vmax.xlane.f32.xlu0 %v3599_v51  ;;  %34074 = vst [vmem:[#allocation122_spill] sm:$0xff] %v28998_v61 }
 0x1ff   : > { %v1719_v26 = vpop.f32.mrb[62].mxu1 }
 0x200   : > { %v25865_v31 = vpop.f32.mrb[63].mxu1  ;;  %v28980_v50 = vsel %vm28910_vm3, %v1719_v26, -inf }
 0x201   : > { %v3602_v9 = vsel %vm1114_vm2, %v28980_v50, -inf  ;;  %v28992_v31 = vpop.permute.xlu1 %8063 }
 0x202   : > { %3603 = vmax.xlane.f32.xlu1 %v3602_v9  ;;  %34073 = vst [vmem:[#allocation121_spill] sm:$0xff] %v28992_v31 }
 0x203   : > { %v1795_v15 = vpop.f32.mrb[64].mxu1  ;;  %v2403_v2 = vpop.f32.mrb[48].mxu0 }
 0x204   : > { %v28986_v12 = vsel %vm28910_vm3, %v2403_v2, -inf  ;;  %v25910_v51 = vpop.f32.mrb[49].mxu0  ;;  %v25870_v25 = vpop.f32.mrb[65].mxu1  ;;  %v28990_v14 = vsel %vm28910_vm3, %v1795_v15, -inf }
 0x205   : > { %v3629_v26 = vsel %vm1114_vm2, %v28986_v12, -inf  ;;  %v3605_v9 = vsel %vm1114_vm2, %v28990_v14, -inf }
 0x206   : > { %3630 = vmax.xlane.f32.xlu0 %v3629_v26  ;;  %3606 = vmax.xlane.f32.xlu1 %v3605_v9  ;;  %v29012_v9 = vpop.permute.xlu1 %6737 }
 0x207   : > { %v1871_v2 = vpop.f32.mrb[66].mxu1  ;;  %34075 = vst [vmem:[#allocation123_spill] sm:$0xff] %v29012_v9 }
 0x208   : > { %v2555_v11 = vpop.f32.mrb[50].mxu0  ;;  %v25875_v51 = vpop.f32.mrb[67].mxu1  ;;  %v29002_v25 = vsel %vm28910_vm3, %v1871_v2, -inf }
 0x209   : > { %v29006_v15 = vsel %vm28910_vm3, %v2555_v11, -inf  ;;  %v25920_v31 = vpop.f32.mrb[51].mxu0  ;;  %v3608_v57 = vsel %vm1114_vm2, %v29002_v25, -inf  ;;  %v29014_v51 = vpop.permute.xlu0 %6739 }
 0x20a   : > { %3609 = vmax.xlane.f32.xlu0 %v3608_v57  ;;  %v3635_v26 = vsel %vm1114_vm2, %v29006_v15, -inf  ;;  %34076 = vst [vmem:[#allocation124_spill] sm:$0xff] %v29014_v51  ;;  %v29026_v9 = vpop.permute.xlu1 %7985 }
 0x20b   : > { %3636 = vmax.xlane.f32.xlu1 %v3635_v26  ;;  %34077 = vst [vmem:[#allocation125_spill] sm:$0xff] %v29026_v9 }
 0x20c   : > { %v1947_v61 = vpop.f32.mrb[68].mxu1 }
 0x20d   : > { %v2707_v2 = vpop.f32.mrb[52].mxu0  ;;  %v25880_v17 = vpop.f32.mrb[69].mxu1  ;;  %v29018_v11 = vsel %vm28910_vm3, %v1947_v61, -inf }
 0x20e   : > { %v25930_v31 = vpop.f32.mrb[53].mxu0  ;;  %v3611_v5 = vsel %vm1114_vm2, %v29018_v11, -inf  ;;  %v29024_v57 = vsel %vm28910_vm3, %v2707_v2, -inf }
 0x20f   : > { %3612 = vmax.xlane.f32.xlu0 %v3611_v5  ;;  %v3641_v17 = vsel %vm1114_vm2, %v29024_v57, -inf  ;;  %v29034_v31 = vpop.permute.xlu0 %6973 }
 0x210   : > { %34078 = vst [vmem:[#allocation126_spill] sm:$0xff] %v29034_v31 }
 0x211   : > { %v2023_v26 = vpop.f32.mrb[70].mxu1 }
 0x212   : > { %v2859_v51 = vpop.f32.mrb[54].mxu0  ;;  %v25885_v63 = vpop.f32.mrb[71].mxu1  ;;  %v29032_v61 = vsel %vm28910_vm3, %v2023_v26, -inf }
 0x213   : > { %v25940_v21 = vpop.f32.mrb[55].mxu0  ;;  %3642 = vmax.xlane.f32.xlu0 %v3641_v17  ;;  %v3614_v2 = vsel %vm1114_vm2, %v29032_v61, -inf  ;;  %v29040_v5 = vsel %vm28910_vm3, %v2859_v51, -inf  ;;  %v29052_v51 = vpop.permute.xlu0 %6895 }
 0x214   : > { %3615 = vmax.xlane.f32.xlu1 %v3614_v2  ;;  %v3647_v26 = vsel %vm1114_vm2, %v29040_v5, -inf  ;;  %v29048_v21 = vpop.permute.xlu1 %6971  ;;  %34080 = vst [vmem:[#allocation128_spill] sm:$0xff] %v29052_v51 }
 0x215   : > { %34079 = vst [vmem:[#allocation127_spill] sm:$0xff] %v29048_v21 }
 0x216   : > { %v2099_v63 = vpop.f32.mrb[72].mxu1 }
 0x217   : > { %v3011_v9 = vpop.f32.mrb[56].mxu0  ;;  %v29044_v42 = vsel %vm28910_vm3, %v2099_v63, -inf  ;;  %v25890_v31 = vpop.f32.mrb[73].mxu1 }
 0x218   : > { %v25950_v17 = vpop.f32.mrb[57].mxu0  ;;  %v3617_v0 = vsel %vm1114_vm2, %v29044_v42, -inf  ;;  %3648 = vmax.xlane.f32.xlu1 %v3647_v26  ;;  %v29056_v2 = vsel %vm28910_vm3, %v3011_v9, -inf  ;;  %v29068_v51 = vpop.permute.xlu1 %6893 }
 0x219   : > { %3618 = vmax.xlane.f32.xlu0 %v3617_v0  ;;  %v3653_v31 = vsel %vm1114_vm2, %v29056_v2, -inf  ;;  %34081 = vst [vmem:[#allocation129_spill] sm:$0xff] %v29068_v51  ;;  %v29072_v9 = vpop.permute.xlu0 %7051 }
 0x21a   : > { %34082 = vst [vmem:[#allocation130_spill] sm:$0xff] %v29072_v9 }
 0x21b   : > { %v2175_v63 = vpop.f32.mrb[74].mxu1 }
 0x21c   : > { %v3163_v6 = vpop.f32.mrb[58].mxu0  ;;  %v25895_v13 = vpop.f32.mrb[75].mxu1  ;;  %v29066_v26 = vsel %vm28910_vm3, %v2175_v63, -inf }
 0x21d   : > { %v29062_v17 = vsel %vm28910_vm3, %v3163_v6, -inf  ;;  %v25960_v21 = vpop.f32.mrb[59].mxu0  ;;  %3654 = vmax.xlane.f32.xlu0 %v3653_v31  ;;  %v3620_v60 = vsel %vm1114_vm2, %v29066_v26, -inf }
 0x21e   : > { %v3659_v0 = vsel %vm1114_vm2, %v29062_v17, -inf }
 0x21f   : > { %3660 = vmax.xlane.f32.xlu1 %v3659_v0  ;;  %v29086_v0 = vpop.permute.xlu1 %8141 }
 0x220   : > { %v2251_v13 = vpop.f32.mrb[76].mxu1  ;;  %34083 = vst [vmem:[#allocation131_spill] sm:$0xff] %v29086_v0 }
 0x221   : > { %v3315_v6 = vpop.f32.mrb[60].mxu0  ;;  %3621 = vmax.xlane.f32.xlu0 %v3620_v60  ;;  %v29078_v21 = vsel %vm28910_vm3, %v2251_v13, -inf  ;;  %v25900_v63 = vpop.f32.mrb[77].mxu1 }
 0x222   : > { %v29082_v31 = vsel %vm28910_vm3, %v3315_v6, -inf  ;;  %v25970_v51 = vpop.f32.mrb[61].mxu0  ;;  %v3623_v9 = vsel %vm1114_vm2, %v29078_v21, -inf  ;;  %v29090_v60 = vpop.permute.xlu0 %7285 }
 0x223   : > { %3624 = vmax.xlane.f32.xlu1 %v3623_v9  ;;  %v3665_v55 = vsel %vm1114_vm2, %v29082_v31, -inf  ;;  %34084 = vst [vmem:[#allocation132_spill] sm:$0xff] %v29090_v60  ;;  %v29102_v0 = vpop.permute.xlu1 %7127 }
 0x224   : > { %34085 = vst [vmem:[#allocation133_spill] sm:$0xff] %v29102_v0 }
 0x225   : > { %3666 = vmax.xlane.f32.xlu0 %v3665_v55 }
 0x226   : > { %v2327_v13 = vpop.f32.mrb[78].mxu1  ;;  %v3467_v58 = vpop.f32.mrb[62].mxu0 }
 0x227   : > { %v25980_v63 = vpop.f32.mrb[63].mxu0  ;;  %v29094_v6 = vsel %vm28910_vm3, %v2327_v13, -inf  ;;  %v25905_v51 = vpop.f32.mrb[79].mxu1  ;;  %v29100_v9 = vsel %vm28910_vm3, %v3467_v58, -inf }
 0x228   : > { %v3626_v54 = vsel %vm1114_vm2, %v29094_v6, -inf  ;;  %v29108_v20 = vpop.permute.xlu0 %7207  ;;  %v3671_v13 = vsel %vm1114_vm2, %v29100_v9, -inf }
 0x229   : > { %3627 = vmax.xlane.f32.xlu1 %v3626_v54  ;;  %34086 = vst [vmem:[#allocation134_spill] sm:$0xff] %v29108_v20 }
 0x22a   : > { %v2479_v60 = vpop.f32.mrb[80].mxu1 }
 0x22b   : > { %v25915_v55 = vpop.f32.mrb[81].mxu1  ;;  %v29106_v63 = vsel %vm28910_vm3, %v2479_v60, -inf }
 0x22c   : > { %v3632_v51 = vsel %vm1114_vm2, %v29106_v63, -inf  ;;  %v29118_v55 = vpop.permute.xlu1 %8375  ;;  %v29122_v20 = vpop.permute.xlu0 %7441 }
 0x22d   : > { %3672 = vmax.xlane.f32.xlu1 %v3671_v13  ;;  %3633 = vmax.xlane.f32.xlu0 %v3632_v51  ;;  %34087 = vst [vmem:[#allocation135_spill] sm:$0xff] %v29118_v55  ;;  %34088 = vst [vmem:[#allocation136_spill] sm:$0xff] %v29122_v20 }
 0x22e   : > { %v2631_v58 = vpop.f32.mrb[82].mxu1 }
 0x22f   : > { %v25925_v54 = vpop.f32.mrb[83].mxu1  ;;  %v29116_v0 = vsel %vm28910_vm3, %v2631_v58, -inf }
 0x230   : > { %v3638_v60 = vsel %vm1114_vm2, %v29116_v0, -inf  ;;  %v29124_v18 = vpop.permute.xlu1 %7049  ;;  %v29130_v58 = vpop.permute.xlu0 %7363 }
 0x231   : > { %3639 = vmax.xlane.f32.xlu1 %v3638_v60  ;;  %34089 = vst [vmem:[#allocation137_spill] sm:$0xff] %v29124_v18  ;;  %34090 = vst [vmem:[#allocation138_spill] sm:$0xff] %v29130_v58 }
 0x232   : > { %v2783_v41 = vpop.f32.mrb[84].mxu1 }
 0x233   : > { %v25935_v40 = vpop.f32.mrb[85].mxu1 }
 0x234   : > { %v29134_v56 = vpop.permute.xlu1 %8297  ;;  %v29136_v20 = vpop.permute.xlu0 %7519 }
 0x235   : > { %34091 = vst [vmem:[#allocation139_spill] sm:$0xff] %v29134_v56  ;;  %34092 = vst [vmem:[#allocation140_spill] sm:$0xff] %v29136_v20 }
 0x236   : > { %v2935_v13 = vpop.f32.mrb[86].mxu1 }
 0x237   : > { %v25945_v51 = vpop.f32.mrb[87].mxu1  ;;  %v29128_v54 = vsel %vm28910_vm3, %v2935_v13, -inf }
 0x238   : > { %v3650_v55 = vsel %vm1114_vm2, %v29128_v54, -inf  ;;  %v29138_v39 = vpop.permute.xlu1 %7205  ;;  %v29142_v58 = vpop.permute.xlu0 %7753 }
 0x239   : > { %3651 = vmax.xlane.f32.xlu1 %v3650_v55  ;;  %34093 = vst [vmem:[#allocation141_spill] sm:$0xff] %v29138_v39  ;;  %34094 = vst [vmem:[#allocation142_spill] sm:$0xff] %v29142_v58 }
 0x23a   : > { %v3087_v62 = vpop.f32.mrb[88].mxu1 }
 0x23b   : > { %v25955_v60 = vpop.f32.mrb[89].mxu1 }
 0x23c   : > { %v29144_v55 = vpop.permute.xlu1 %8453  ;;  %v29146_v60 = vpop.permute.xlu0 %7675 }
 0x23d   : > { %34095 = vst [vmem:[#allocation143_spill] sm:$0xff] %v29144_v55  ;;  %34096 = vst [vmem:[#allocation144_spill] sm:$0xff] %v29146_v60 }
 0x23e   : > { %v3239_v40 = vpop.f32.mrb[90].mxu1 }
 0x23f   : > { %v25965_v18 = vpop.f32.mrb[91].mxu1 }
 0x240   : > { %v29150_v56 = vpop.permute.xlu1 %7439  ;;  %v29152_v18 = vpop.permute.xlu0 %7831 }
 0x241   : > { %34097 = vst [vmem:[#allocation145_spill] sm:$0xff] %v29150_v56  ;;  %34098 = vst [vmem:[#allocation146_spill] sm:$0xff] %v29152_v18 }
 0x242   : > { %v3391_v51 = vpop.f32.mrb[92].mxu1 }
 0x243   : > { %9843 = vrot.lane.b32.xlu0 %v28757_v3, %s27968_s30  ;;  %v25975_v13 = vpop.f32.mrb[93].mxu1 }
 0x244   : > { %v29154_v20 = vpop.permute.xlu1 %7361  ;;  %v29156_v39 = vpop.permute.xlu0 %8065 }
 0x245   : > { %34099 = vst [vmem:[#allocation147_spill] sm:$0xff] %v29154_v20  ;;  %34100 = vst [vmem:[#allocation148_spill] sm:$0xff] %v29156_v39  ;;  %v29178_v39 = vsel %vm28910_vm3, %v3239_v40, -inf }
 0x246   : > { %v3543_v32 = vpop.f32.mrb[94].mxu1 }
 0x247   : > { %v25985_v47 = vpop.f32.mrb[95].mxu1 }
 0x248   : > { %v29158_v13 = vpop.permute.xlu1 %8609  ;;  %v29160_v58 = vpop.permute.xlu0 %7987  ;;  %v29164_v47 = vsel %vm28910_vm3, %v2783_v41, -inf  ;;  %v3662_v41 = vsel %vm1114_vm2, %v29178_v39, -inf }
 0x249   : > { %34101 = vst [vmem:[#allocation149_spill] sm:$0xff] %v29158_v13  ;;  %34102 = vst [vmem:[#allocation150_spill] sm:$0xff] %v29160_v58  ;;  %v3644_v60 = vsel %vm1114_vm2, %v29164_v47, -inf }
 0x24a   : > { %10151 = vrot.lane.b32.xlu1 %v28790_v4, %s27968_s30 }
 0x24c   : > { %v29166_v55 = vpop.permute.xlu1 %6349  ;;  %v29170_v56 = vpop.permute.xlu0 %8143 }
 0x24d   : > { %34103 = vst [vmem:[#allocation151_spill] sm:$0xff] %v29166_v55  ;;  %34104 = vst [vmem:[#allocation152_spill] sm:$0xff] %v29170_v56  ;;  %v29188_v56 = vsel %vm28910_vm3, %v3543_v32, -inf }
 0x250   : > { %v29172_v18 = vpop.permute.xlu1 %9227  ;;  %v29174_v20 = vpop.permute.xlu0 %8377 }
 0x251   : > { %34105 = vst [vmem:[#allocation153_spill] sm:$0xff] %v29172_v18  ;;  %34106 = vst [vmem:[#allocation154_spill] sm:$0xff] %v29174_v20 }
 0x254   : > { %v29180_v13 = vpop.permute.xlu1 %6505  ;;  %v29184_v55 = vpop.permute.xlu0 %8299 }
 0x255   : > { %34107 = vst [vmem:[#allocation155_spill] sm:$0xff] %v29180_v13  ;;  %34108 = vst [vmem:[#allocation156_spill] sm:$0xff] %v29184_v55 }
 0x258   : > { %v29192_v18 = vpop.permute.xlu1 %6427  ;;  %v29194_v40 = vpop.permute.xlu0 %8455 }
 0x259   : > { %34109 = vst [vmem:[#allocation157_spill] sm:$0xff] %v29192_v18  ;;  %34110 = vst [vmem:[#allocation158_spill] sm:$0xff] %v29194_v40 }
 0x25c   : > { %v29196_v20 = vpop.permute.xlu1 %9689  ;;  %v29200_v13 = vpop.permute.xlu0 %8689 }
 0x25d   : > { %34111 = vst [vmem:[#allocation159_spill] sm:$0xff] %v29196_v20  ;;  %34112 = vst [vmem:[#allocation160_spill] sm:$0xff] %v29200_v13  ;;  %v29218_v13 = vsel %vm28910_vm3, %v3087_v62, -inf }
 0x260   : > { %v29204_v55 = vpop.permute.xlu0 %8611 }
 0x261   : > { %34114 = vst [vmem:[#allocation162_spill] sm:$0xff] %v29204_v55 }
 0x262   : > { %3645 = vmax.xlane.f32.xlu0 %v3644_v60  ;;  %v3674_v60 = vsel %vm1114_vm2, %v29188_v56, -inf }
 0x26e   : > { %3663 = vmax.xlane.f32.xlu1 %v3662_v41  ;;  %v29202_v41 = vpop.permute.xlu1 %7129 }
 0x26f   : > { %34113 = vst [vmem:[#allocation161_spill] sm:$0xff] %v29202_v41 }
 0x272   : > { %3675 = vmax.xlane.f32.xlu1 %v3674_v60  ;;  %v29208_v32 = vpop.permute.xlu1 %7597 }
 0x273   : > { %34115 = vst [vmem:[#allocation163_spill] sm:$0xff] %v29208_v32  ;;  %v3583_v58 = vpop.xlane.xlu0 %3582  ;;  %v3656_v32 = vsel %vm1114_vm2, %v29218_v13, -inf }
 0x276   : > { %v29212_v60 = vpop.permute.xlu1 %7909 }
 0x277   : > { %34116 = vst [vmem:[#allocation164_spill] sm:$0xff] %v29212_v60  ;;  %v3586_v20 = vpop.xlane.xlu0 %3585  ;;  %v29227_v60 = vsel %vm28910_vm3, %v3391_v51, -inf }
 0x278   : > { %9997 = vrot.lane.b32.xlu0 %v28775_v22, %s27968_s30  ;;  %v3668_v62 = vsel %vm1114_vm2, %v29227_v60, -inf }
 0x27a   : > { %v29214_v40 = vpop.permute.xlu1 %8221 }
 0x27b   : > { %34117 = vst [vmem:[#allocation165_spill] sm:$0xff] %v29214_v40  ;;  %v3589_v18 = vpop.xlane.xlu0 %3588 }
 0x27c   : > { %v3679_v41 = vsub.f32 %v28934_v10, %v3589_v18 }
 0x27e   : > { %v29221_v55 = vpop.permute.xlu1 %8533 }
 0x27f   : > { %34118 = vst [vmem:[#allocation166_spill] sm:$0xff] %v29221_v55 }
 0x283   : > { %10459 = vrot.lane.b32.xlu1 %v28820_v19, %s27968_s30  ;;  %v3592_v19 = vpop.xlane.xlu0 %3591  ;;  %v3595_v4 = vpop.xlane.xlu1 %3594 }
 0x284   : > { %v3680_v40 = vsub.f32 %v28944_v7, %v3592_v19  ;;  %v3681_v18 = vsub.f32 %v28954_v24, %v3595_v4 }
 0x286   : > { %v3715_v10 = vmul.f32 1.442695, %v3680_v40  ;;  %v3717_v55 = vmul.f32 1.442695, %v3681_v18 }
 0x287   : > { %11229 = vrot.lane.b32.xlu1 %v28874_v28, %s27968_s30  ;;  %v3713_v28 = vmul.f32 1.442695, %v3679_v41 }
 0x289   : > { %27446 = vpow2.f32 %v3713_v28  ;;  %v3677_v28 = vsub.f32 %v28918_v27, %v3583_v58 }
 0x28a   : > { %27448 = vpow2.f32 %v3715_v10 }
 0x28b   : > { %27450 = vpow2.f32 %v3717_v55  ;;  %v3709_v24 = vmul.f32 1.442695, %v3677_v28  ;;  %v3678_v55 = vsub.f32 %v28928_v33, %v3586_v20  ;;  %v3601_v18 = vpop.xlane.xlu0 %3600 }
 0x28d   : > { %27452 = vpow2.f32 %v3709_v24  ;;  %v3711_v40 = vmul.f32 1.442695, %v3678_v55 }
 0x28f   : > { %27454 = vpow2.f32 %v3711_v40 }
 0x293   : > { %v29258_v27 = vpop.xlane.xlu0 %3630 }
 0x297   : > { %3657 = vmax.xlane.f32.xlu0 %v3656_v32  ;;  %v29233_v32 = vpop.eup %27446  ;;  %v29267_v40 = vpop.xlane.xlu0 %3609 }
 0x298   : > { %v3779_v51 = vsel %vm1114_vm2, %v29233_v32, 0.0  ;;  %v29237_v41 = vpop.eup %27448 }
 0x299   : > { %v3782_v7 = vsel %vm1114_vm2, %v29237_v41, 0.0  ;;  %v29241_v19 = vpop.eup %27450 }
 0x29a   : > { %v3785_v4 = vsel %vm1114_vm2, %v29241_v19, 0.0 }
 0x29b   : > { %3669 = vmax.xlane.f32.xlu0 %v3668_v62  ;;  %v29253_v62 = vpop.xlane.xlu1 %3597 }
 0x29f   : > { %v3604_v10 = vpop.xlane.xlu1 %3603 }
 0x2a0   : > { %v3684_v28 = vsub.f32 %v28980_v50, %v3604_v10 }
 0x2ab   : > { %3780 = vadd.xlane.f32.xlu1 %v3779_v51  ;;  %v29255_v51 = vpop.eup %27452 }
 0x2ac   : > { %v3773_v20 = vsel %vm1114_vm2, %v29255_v51, 0.0  ;;  %v29262_v33 = vpop.eup %27454 }
 0x2ad   : > { %v3776_v55 = vsel %vm1114_vm2, %v29262_v33, 0.0 }
 0x2af   : > { %3783 = vadd.xlane.f32.xlu1 %v3782_v7  ;;  %v3607_v7 = vpop.xlane.xlu1 %3606 }
 0x2b1   : > { %10305 = vrot.lane.b32.xlu0 %v28805_v29, %s27968_s30 }
 0x2b3   : > { %3786 = vadd.xlane.f32.xlu1 %v3785_v4  ;;  %v3683_v4 = vsub.f32 %v28970_v16, %v3601_v18  ;;  %v3637_v24 = vpop.xlane.xlu1 %3636  ;;  %v3723_v16 = vmul.f32 1.442695, %v3684_v28  ;;  %v3685_v18 = vsub.f32 %v28990_v14, %v3607_v7 }
 0x2b5   : > { %10613 = vrot.lane.b32.xlu0 %v28835_v1, %s27968_s30  ;;  %v3721_v58 = vmul.f32 1.442695, %v3683_v4  ;;  %v3725_v59 = vmul.f32 1.442695, %v3685_v18  ;;  %v3695_v1 = vsub.f32 %v29006_v15, %v3637_v24 }
 0x2b7   : > { %27456 = vpow2.f32 %v3721_v58  ;;  %v3745_v50 = vmul.f32 1.442695, %v3695_v1 }
 0x2b8   : > { %27458 = vpow2.f32 %v3723_v16 }
 0x2b9   : > { %27460 = vpow2.f32 %v3725_v59 }
 0x2ba   : > { %27462 = vpow2.f32 %v3745_v50 }
 0x2c1   : > { %v29272_v29 = vpop.eup %27456 }
 0x2c2   : > { %v3791_v7 = vsel %vm1114_vm2, %v29272_v29, 0.0  ;;  %v29279_v16 = vpop.eup %27458 }
 0x2c3   : > { %v29284_v24 = vpop.eup %27460 }
 0x2c4   : > { %12257 = vrot.lane.b32.xlu1 %v28391_v38, %s27969_s7  ;;  %v3616_v38 = vpop.xlane.xlu1 %3615  ;;  %v29291_v50 = vpop.eup %27462 }
 0x2c5   : > { %v3688_v28 = vsub.f32 %v29032_v61, %v3616_v38 }
 0x2c7   : > { %v3731_v59 = vmul.f32 1.442695, %v3688_v28 }
 0x2c8   : > { %v3649_v4 = vpop.xlane.xlu1 %3648 }
 0x2c9   : > { %v3699_v1 = vsub.f32 %v29040_v5, %v3649_v4 }
 0x2cb   : > { %v3753_v61 = vmul.f32 1.442695, %v3699_v1 }
 0x2cc   : > { %v3661_v14 = vpop.xlane.xlu1 %3660 }
 0x2cd   : > { %v3703_v4 = vsub.f32 %v29062_v17, %v3661_v14 }
 0x2cf   : > { %v3761_v28 = vmul.f32 1.442695, %v3703_v4 }
 0x2d0   : > { %v3625_v18 = vpop.xlane.xlu1 %3624 }
 0x2d4   : > { %3774 = vadd.xlane.f32.xlu0 %v3773_v20  ;;  %v3613_v20 = vpop.xlane.xlu0 %3612 }
 0x2d5   : > { %v3687_v10 = vsub.f32 %v29018_v11, %v3613_v20  ;;  %v3794_v11 = vsel %vm1114_vm2, %v29279_v16, 0.0  ;;  %v3797_v20 = vsel %vm1114_vm2, %v29284_v24, 0.0 }
 0x2d7   : > { %v3729_v58 = vmul.f32 1.442695, %v3687_v10  ;;  %v3628_v10 = vpop.xlane.xlu1 %3627 }
 0x2d8   : > { %3777 = vadd.xlane.f32.xlu0 %v3776_v55  ;;  %v29274_v55 = vpop.xlane.xlu0 %3642 }
 0x2d9   : > { %27464 = vpow2.f32 %v3729_v58 }
 0x2da   : > { %27466 = vpow2.f32 %v3731_v59 }
 0x2db   : > { %27468 = vpow2.f32 %v3753_v61  ;;  %v3673_v59 = vpop.xlane.xlu1 %3672  ;;  %v3682_v61 = vsub.f32 %v28960_v36, %v29253_v62 }
 0x2dc   : > { %v3619_v15 = vpop.xlane.xlu0 %3618 }
 0x2dd   : > { %v3689_v38 = vsub.f32 %v29044_v42, %v3619_v15  ;;  %v3827_v42 = vsel %vm1114_vm2, %v29291_v50, 0.0  ;;  %v3692_v15 = vsub.f32 %v29094_v6, %v3628_v10 }
 0x2df   : > { %v3733_v5 = vmul.f32 1.442695, %v3689_v38 }
 0x2e1   : > { %27470 = vpow2.f32 %v3733_v5 }
 0x2e2   : > { %27472 = vpow2.f32 %v3761_v28 }
 0x2e3   : > { %v29298_v58 = vpop.eup %27464 }
 0x2e4   : > { %v3803_v17 = vsel %vm1114_vm2, %v29298_v58, 0.0  ;;  %v29305_v14 = vpop.eup %27466 }
 0x2e5   : > { %v29310_v38 = vpop.eup %27468 }
 0x2e6   : > { %v3839_v5 = vsel %vm1114_vm2, %v29310_v38, 0.0 }
 0x2e8   : > { %3792 = vadd.xlane.f32.xlu1 %v3791_v7  ;;  %v3691_v7 = vsub.f32 %v29078_v21, %v3625_v18  ;;  %v3739_v21 = vmul.f32 1.442695, %v3692_v15  ;;  %v3707_v18 = vsub.f32 %v29100_v9, %v3673_v59 }
 0x2ea   : > { %v3737_v1 = vmul.f32 1.442695, %v3691_v7  ;;  %v3769_v6 = vmul.f32 1.442695, %v3707_v18 }
 0x2eb   : > { %v29317_v4 = vpop.eup %27470 }
 0x2ec   : > { %3795 = vadd.xlane.f32.xlu1 %v3794_v11  ;;  %v3806_v11 = vsel %vm1114_vm2, %v29305_v14, 0.0  ;;  %27474 = vpow2.f32 %v3737_v1  ;;  %v3809_v7 = vsel %vm1114_vm2, %v29317_v4, 0.0  ;;  %v29322_v9 = vpop.eup %27472 }
 0x2ed   : > { %27476 = vpow2.f32 %v3739_v21 }
 0x2ee   : > { %10767 = vrot.lane.b32.xlu0 %v28850_v34, %s27968_s30  ;;  %27478 = vpow2.f32 %v3769_v6 }
 0x2f0   : > { %3798 = vadd.xlane.f32.xlu1 %v3797_v20  ;;  %v3640_v20 = vpop.xlane.xlu1 %3639 }
 0x2f1   : > { %v3696_v10 = vsub.f32 %v29116_v0, %v3640_v20 }
 0x2f2   : > { %10921 = vrot.lane.b32.xlu0 %v28864_v52, %s27968_s30 }
 0x2f3   : > { %v3747_v36 = vmul.f32 1.442695, %v3696_v10 }
 0x2f4   : > { %3828 = vadd.xlane.f32.xlu1 %v3827_v42  ;;  %v3719_v42 = vmul.f32 1.442695, %v3682_v61  ;;  %v3652_v28 = vpop.xlane.xlu1 %3651 }
 0x2f5   : > { %v3700_v62 = vsub.f32 %v29128_v54, %v3652_v28 }
 0x2f6   : > { %11075 = vrot.lane.b32.xlu0 %v28870_v37, %s27968_s30  ;;  %27480 = vpow2.f32 %v3719_v42  ;;  %v29327_v59 = vpop.eup %27474  ;;  %v3655_v42 = vpop.xlane.xlu0 %3654 }
 0x2f7   : > { %27482 = vpow2.f32 %v3747_v36  ;;  %v3755_v0 = vmul.f32 1.442695, %v3700_v62  ;;  %v3815_v1 = vsel %vm1114_vm2, %v29327_v59, 0.0  ;;  %v29331_v15 = vpop.eup %27476  ;;  %v3693_v62 = vsub.f32 %v28986_v12, %v29258_v27 }
 0x2f8   : > { %3804 = vadd.xlane.f32.xlu1 %v3803_v17  ;;  %v3851_v17 = vsel %vm1114_vm2, %v29322_v9, 0.0  ;;  %v29335_v54 = vpop.eup %27478  ;;  %v3701_v12 = vsub.f32 %v29056_v2, %v3655_v42 }
 0x2f9   : > { %27484 = vpow2.f32 %v3755_v0  ;;  %v3863_v18 = vsel %vm1114_vm2, %v29335_v54, 0.0  ;;  %v3686_v0 = vsub.f32 %v29002_v25, %v29267_v40 }
 0x2fa   : > { %v3622_v28 = vpop.xlane.xlu0 %3621  ;;  %v3757_v40 = vmul.f32 1.442695, %v3701_v12 }
 0x2fc   : > { %3807 = vadd.xlane.f32.xlu1 %v3806_v11  ;;  %v3818_v11 = vsel %vm1114_vm2, %v29331_v15, 0.0 }
 0x300   : > { %3840 = vadd.xlane.f32.xlu1 %v3839_v5  ;;  %v29337_v21 = vpop.eup %27480 }
 0x301   : > { %v29341_v61 = vpop.eup %27482  ;;  %v3788_v20 = vsel %vm1114_vm2, %v29337_v21, 0.0 }
 0x302   : > { %v3830_v5 = vsel %vm1114_vm2, %v29341_v61, 0.0 }
 0x303   : > { %v29347_v6 = vpop.eup %27484 }
 0x304   : > { %3810 = vadd.xlane.f32.xlu1 %v3809_v7  ;;  %v3842_v10 = vsel %vm1114_vm2, %v29347_v6, 0.0  ;;  %v3667_v7 = vpop.xlane.xlu0 %3666 }
 0x308   : > { %3852 = vadd.xlane.f32.xlu1 %v3851_v17  ;;  %v3634_v36 = vpop.xlane.xlu0 %3633  ;;  %v3741_v17 = vmul.f32 1.442695, %v3693_v62  ;;  %v3690_v62 = vsub.f32 %v29066_v26, %v3622_v28 }
 0x309   : > { %v3694_v26 = vsub.f32 %v29106_v63, %v3634_v36 }
 0x30a   : > { %27486 = vpow2.f32 %v3741_v17 }
 0x30c   : > { %3816 = vadd.xlane.f32.xlu1 %v3815_v1  ;;  %v29365_v1 = vpop.permute.xlu1 %10151 }
 0x310   : > { %3819 = vadd.xlane.f32.xlu1 %v3818_v11  ;;  %v29367_v11 = vpop.permute.xlu0 %9843 }
 0x314   : > { %3864 = vadd.xlane.f32.xlu1 %v3863_v18  ;;  %v3727_v18 = vmul.f32 1.442695, %v3686_v0  ;;  %v29378_v0 = vpop.eup %27486 }
 0x315   : > { %3789 = vadd.xlane.f32.xlu0 %v3788_v20  ;;  %v3697_v20 = vsub.f32 %v29024_v57, %v29274_v55  ;;  %v3735_v55 = vmul.f32 1.442695, %v3690_v62  ;;  %v3821_v2 = vsel %vm1114_vm2, %v29378_v0, 0.0 }
 0x316   : > { %27488 = vpow2.f32 %v3727_v18 }
 0x318   : > { %3831 = vadd.xlane.f32.xlu1 %v3830_v5  ;;  %v3664_v5 = vpop.xlane.xlu1 %3663 }
 0x31c   : > { %3843 = vadd.xlane.f32.xlu1 %v3842_v10  ;;  %v3646_v10 = vpop.xlane.xlu0 %3645  ;;  %v29376_v17 = vpop.xlane.xlu1 %3675 }
 0x320   : > { %v29373_v27 = vpop.permute.xlu0 %9997  ;;  %v29383_v42 = vpop.eup %27488 }
 0x321   : > { %v3800_v18 = vsel %vm1114_vm2, %v29383_v42, 0.0 }
 0x324   : > { %v3658_v57 = vpop.xlane.xlu0 %3657 }
 0x325   : > { %v3702_v62 = vsub.f32 %v29218_v13, %v3658_v57 }
 0x328   : > { %v29388_v28 = vpop.xlane.xlu0 %3669 }
 0x32b   : > { %11383 = vrot.lane.b32.xlu0 %v28880_v30, %s27968_s30 }
 0x32c   : > { %v29403_v36 = vpop.permute.xlu0 %10305 }
 0x32d   : > { %12335 = vrot.lane.b32.xlu1 %v28383_v35, %s27969_s7  ;;  %v34129_v35 = vld [vmem:[#allocation35_spill] sm:$0xff] }
 0x32f   : > { %11537 = vrot.lane.b32.xlu0 %v28884_v8, %s27968_s30 }
 0x331   : > { %12333 = vrot.lane.b32.xlu1 %v28299_v53, %s27969_s7  ;;  %v3749_v53 = vmul.f32 1.442695, %v3697_v20 }
 0x333   : > { %27490 = vpow2.f32 %v3749_v53  ;;  %v29385_v53 = vpop.permute.xlu1 %10459 }
 0x335   : > { %12413 = vrot.lane.b32.xlu1 %v28410_v44, %s27969_s7  ;;  %v3704_v44 = vsub.f32 %v29178_v39, %v3664_v5  ;;  %v3705_v39 = vsub.f32 %v29082_v31, %v3667_v7  ;;  %v3743_v31 = vmul.f32 1.442695, %v3694_v26  ;;  %v3698_v7 = vsub.f32 %v29164_v47, %v3646_v10 }
 0x337   : > { %v3763_v25 = vmul.f32 1.442695, %v3704_v44  ;;  %v3765_v44 = vmul.f32 1.442695, %v3705_v39  ;;  %v29397_v12 = vpop.permute.xlu1 %11229 }
 0x339   : > { %27492 = vpow2.f32 %v3763_v25 }
 0x33a   : > { %27494 = vpow2.f32 %v3757_v40  ;;  %v3751_v40 = vmul.f32 1.442695, %v3698_v7 }
 0x33b   : > { %27496 = vpow2.f32 %v3735_v55  ;;  %v3781_v47 = vpop.xlane.xlu1 %3780 }
 0x33c   : > { %27498 = vpow2.f32 %v3765_v44  ;;  %v29412_v44 = vpop.permute.xlu0 %10613 }
 0x33d   : > { %v29392_v20 = vpop.eup %27490  ;;  %27500 = vpow2.f32 %v3743_v31 }
 0x33e   : > { %v3833_v25 = vsel %vm1114_vm2, %v29392_v20, 0.0  ;;  %27502 = vpow2.f32 %v3751_v40 }
 0x33f   : > { %v3784_v13 = vpop.xlane.xlu1 %3783 }
 0x343   : > { %v29395_v5 = vpop.eup %27492 }
 0x344   : > { %v29401_v63 = vpop.eup %27494  ;;  %v3854_v55 = vsel %vm1114_vm2, %v29395_v5, 0.0 }
 0x345   : > { %v3845_v10 = vsel %vm1114_vm2, %v29401_v63, 0.0  ;;  %v29410_v39 = vpop.eup %27496 }
 0x346   : > { %v3812_v26 = vsel %vm1114_vm2, %v29410_v39, 0.0 }
 0x34e   : > { %3822 = vadd.xlane.f32.xlu0 %v3821_v2  ;;  %v3759_v2 = vmul.f32 1.442695, %v3702_v62 }
 0x350   : > { %27504 = vpow2.f32 %v3759_v2 }
 0x352   : > { %3801 = vadd.xlane.f32.xlu0 %v3800_v18  ;;  %v29416_v18 = vpop.eup %27498 }
 0x353   : > { %v3857_v31 = vsel %vm1114_vm2, %v29416_v18, 0.0  ;;  %v29420_v7 = vpop.eup %27500 }
 0x354   : > { %v3824_v62 = vsel %vm1114_vm2, %v29420_v7, 0.0 }
 0x356   : > { %3834 = vadd.xlane.f32.xlu0 %v3833_v25  ;;  %v3787_v25 = vpop.xlane.xlu1 %3786 }
 0x359   : > { %3855 = vadd.xlane.f32.xlu1 %v3854_v55  ;;  %v29424_v55 = vpop.eup %27502 }
 0x35a   : > { %3846 = vadd.xlane.f32.xlu0 %v3845_v10  ;;  %v3836_v10 = vsel %vm1114_vm2, %v29424_v55, 0.0  ;;  %v29428_v2 = vpop.eup %27504 }
 0x35e   : > { %3813 = vadd.xlane.f32.xlu0 %v3812_v26  ;;  %v3848_v26 = vsel %vm1114_vm2, %v29428_v2, 0.0 }
 0x361   : > { %v3775_v57 = vpop.xlane.xlu0 %3774 }
 0x362   : > { %27506 = vrcp.f32 %v3775_v57  ;;  %3858 = vadd.xlane.f32.xlu0 %v3857_v31 }
 0x363   : > { %27508 = vrcp.f32 %v3781_v47 }
 0x365   : > { %v3778_v40 = vpop.xlane.xlu0 %3777 }
 0x366   : > { %27510 = vrcp.f32 %v3778_v40  ;;  %3825 = vadd.xlane.f32.xlu0 %v3824_v62  ;;  %v29441_v62 = vpop.permute.xlu1 %12257 }
 0x367   : > { %27512 = vrcp.f32 %v3784_v13 }
 0x368   : > { %27514 = vrcp.f32 %v3787_v25  ;;  %v34119_v25 = vmov 0.0  }
 0x36a   : > { %3837 = vadd.xlane.f32.xlu0 %v3836_v10  ;;  %12569 = vrot.lane.b32.xlu1 %v28429_v48, %s27969_s7  ;;  %v34127_v48 = vld [vmem:[#allocation24_spill] sm:$0xff] }
 0x36c   : > { %v27507_v47 = vpop.eup %27506 }
 0x36d   : > { %v3901_v57 = vmul.f32 %v27507_v47, %v29255_v51  ;;  %v27509_v31 = vpop.eup %27508 }
 0x36e   : > { %3849 = vadd.xlane.f32.xlu0 %v3848_v26  ;;  %12567 = vrot.lane.b32.xlu1 %v28357_v23, %s27969_s7  ;;  %v3903_v10 = vmul.f32 %v27509_v31, %v29233_v32  ;;  %v34121_v31 = vld [vmem:[#allocation73_spill] sm:$0xff] }
 0x36f   : > { %25989 = vmatmul.mubr.msk.f32.vlgmr.msra.gmra.mrb[64].mxu0 %vm1114_vm2, %v3901_v57  ;;  %v34120_v57 = vld [vmem:[#allocation30_spill] sm:$0xff] }
 0x370   : > { %v27511_v13 = vpop.eup %27510  ;;  %25997 = vmatpush3.msra.mxu0 %v28414_v45  ;;  %25998 = vmatprep.mubr.msk.f32.mxu0 %vm27967_vm1, %v34119_v25 }
 0x371   : > { %v27513_v40 = vpop.eup %27512  ;;  %26006 = vmatprep.subr.mxu0 %v34119_v25  ;;  %v3902_v51 = vmul.f32 %v27511_v13, %v29262_v33 }
 0x372   : > { %v27515_v47 = vpop.eup %27514  ;;  %12647 = vrot.lane.b32.xlu1 %v28423_v46, %s27969_s7  ;;  %v3904_v32 = vmul.f32 %v27513_v40, %v29237_v41  ;;  %v3708_v40 = vsub.f32 %v29188_v56, %v29376_v17 }
 0x373   : > { %25994 = vmatmul.mubr.msk.f32.vlgmr.msra.gmra.mrb[96].mxu1 %vm1114_vm2, %v3902_v51  ;;  %25999 = vmatmul.mubr.msk.f32.vlgmr.msra.gmra.mrb[66].mxu0 %vm1114_vm2, %v3903_v10  ;;  %v3905_v33 = vmul.f32 %v27515_v47, %v29241_v19 }
 0x374   : > { %26002 = vmatpush3.msra.mxu1 %v28408_v43  ;;  %26007 = vmatpush3.msra.mxu0 %v28433_v49  ;;  %v3771_v47 = vmul.f32 1.442695, %v3708_v40 }
 0x375   : > { %v3793_v26 = vpop.xlane.xlu1 %3792  ;;  %26003 = vmatprep.mubr.msk.f32.mxu1 %vm27967_vm1, %v34119_v25  ;;  %26008 = vmatprep.mubr.msk.f32.mxu0 %vm27967_vm1, %v34119_v25 }
 0x376   : > { %27516 = vrcp.f32 %v3793_v26  ;;  %26011 = vmatprep.subr.mxu1 %v34119_v25  ;;  %26016 = vmatprep.subr.mxu0 %v34119_v25  ;;  %v34122_v26 = vld [vmem:[#allocation75_spill] sm:$0xff] }
 0x377   : > { %26004 = vmatmul.mubr.msk.f32.vlgmr.msra.gmra.mrb[98].mxu1 %vm1114_vm2, %v3904_v32  ;;  %26009 = vmatmul.mubr.msk.f32.vlgmr.msra.gmra.mrb[68].mxu0 %vm1114_vm2, %v3905_v33  ;;  %v34123_v32 = vld [vmem:[#allocation3_spill] sm:$0xff] }
 0x378   : > { %26012 = vmatpush3.msra.mxu1 %v34120_v57  ;;  %26017 = vmatpush3.msra.mxu0 %v34121_v31 }
 0x379   : > { %v3796_v13 = vpop.xlane.xlu1 %3795  ;;  %26018 = vmatprep.mubr.msk.f32.mxu0 %vm27967_vm1, %v34119_v25  ;;  %26026 = vmatprep.subr.mxu0 %v34119_v25 }
 0x37a   : > { %26013 = vmatprep.mubr.msk.f32.mxu1 %vm27967_vm1, %v34119_v25  ;;  %26021 = vmatprep.subr.mxu1 %v34119_v25 }
 0x37d   : > { %v3799_v41 = vpop.xlane.xlu1 %3798 }
 0x37e   : > { %27518 = vrcp.f32 %v3799_v41  ;;  %v34124_v41 = vld [vmem:[#allocation77_spill] sm:$0xff] }
 0x380   : > { %v27517_v19 = vpop.eup %27516 }
 0x381   : > { %v29472_v51 = vpop.xlane.xlu1 %3828  ;;  %v3907_v10 = vmul.f32 %v27517_v19, %v29272_v29  ;;  %v3706_v19 = vsub.f32 %v29227_v60, %v29388_v28 }
 0x383   : > { %26019 = vmatmul.mubr.msk.f32.vlgmr.msra.gmra.mrb[70].mxu0 %vm1114_vm2, %v3907_v10 }
 0x384   : > { %26027 = vmatpush3.msra.mxu0 %v34122_v26  ;;  %12255 = vrot.lane.b32.xlu0 %v34123_v32, %s27969_s7 }
 0x385   : > { %v3805_v33 = vpop.xlane.xlu1 %3804  ;;  %26028 = vmatprep.mubr.msk.f32.mxu0 %vm27967_vm1, %v34119_v25  ;;  %26036 = vmatprep.subr.mxu0 %v34119_v25 }
 0x386   : > { %27520 = vrcp.f32 %v3805_v33 }
 0x387   : > { %27522 = vpow2.f32 %v3771_v47  ;;  %v3767_v47 = vmul.f32 1.442695, %v3706_v19 }
 0x388   : > { %v27519_v56 = vpop.eup %27518 }
 0x389   : > { %v29482_v17 = vpop.xlane.xlu1 %3807  ;;  %v3909_v29 = vmul.f32 %v27519_v56, %v29284_v24  ;;  %v29497_v56 = vpop.permute.xlu0 %10767 }
 0x38b   : > { %26029 = vmatmul.mubr.msk.f32.vlgmr.msra.gmra.mrb[72].mxu0 %vm1114_vm2, %v3909_v29  ;;  %v34125_v29 = vld [vmem:[#allocation79_spill] sm:$0xff] }
 0x38c   : > { %26037 = vmatpush3.msra.mxu0 %v34124_v41  ;;  %26038 = vmatprep.mubr.msk.f32.mxu0 %vm27967_vm1, %v34119_v25 }
 0x38d   : > { %v29491_v40 = vpop.xlane.xlu1 %3840  ;;  %26046 = vmatprep.subr.mxu0 %v34119_v25 }
 0x390   : > { %v27521_v10 = vpop.eup %27520 }
 0x391   : > { %v3811_v33 = vpop.xlane.xlu1 %3810  ;;  %v3911_v46 = vmul.f32 %v27521_v10, %v29298_v58  ;;  %v29495_v24 = vpop.eup %27522 }
 0x392   : > { %27524 = vrcp.f32 %v3811_v33  ;;  %v3866_v28 = vsel %vm1114_vm2, %v29495_v24, 0.0  ;;  %v29508_v58 = vpop.permute.xlu0 %10921 }
 0x393   : > { %26039 = vmatmul.mubr.msk.f32.vlgmr.msra.gmra.mrb[74].mxu0 %vm1114_vm2, %v3911_v46  ;;  %27526 = vpow2.f32 %v3767_v47  ;;  %v34126_v47 = vld [vmem:[#allocation81_spill] sm:$0xff] }
 0x394   : > { %26047 = vmatpush3.msra.mxu0 %v34125_v29  ;;  %26048 = vmatprep.mubr.msk.f32.mxu0 %vm27967_vm1, %v34119_v25 }
 0x395   : > { %v29503_v60 = vpop.xlane.xlu1 %3852  ;;  %26056 = vmatprep.subr.mxu0 %v34119_v25 }
 0x396   : > { %3867 = vadd.xlane.f32.xlu1 %v3866_v28  ;;  %v29511_v33 = vpop.permute.xlu0 %11075 }
 0x399   : > { %v3817_v19 = vpop.xlane.xlu1 %3816 }
 0x39a   : > { %27528 = vrcp.f32 %v3817_v19 }
 0x39c   : > { %v27525_v10 = vpop.eup %27524 }
 0x39d   : > { %v3913_v46 = vmul.f32 %v27525_v10, %v29317_v4  ;;  %v29513_v23 = vpop.eup %27526 }
 0x39e   : > { %v3860_v19 = vsel %vm1114_vm2, %v29513_v23, 0.0 }
 0x39f   : > { %26049 = vmatmul.mubr.msk.f32.vlgmr.msra.gmra.mrb[76].mxu0 %vm1114_vm2, %v3913_v46  ;;  %v34128_v46 = vld [vmem:[#allocation83_spill] sm:$0xff] }
 0x3a0   : > { %26057 = vmatpush3.msra.mxu0 %v34126_v47  ;;  %26058 = vmatprep.mubr.msk.f32.mxu0 %vm27967_vm1, %v34119_v25 }
 0x3a1   : > { %26066 = vmatprep.subr.mxu0 %v34119_v25 }
 0x3a2   : > { %v3790_v28 = vpop.xlane.xlu0 %3789 }
 0x3a3   : > { %27530 = vrcp.f32 %v3790_v28  ;;  %3861 = vadd.xlane.f32.xlu0 %v3860_v19 }
 0x3a4   : > { %v27529_v4 = vpop.eup %27528  ;;  %27532 = vrcp.f32 %v3796_v13 }
 0x3a5   : > { %v3915_v10 = vmul.f32 %v27529_v4, %v29327_v59  ;;  %v34130_v59 = vld [vmem:[#allocation38_spill] sm:$0xff]  ;;  %v34131_v4 = vld [vmem:[#allocation36_spill] sm:$0xff] }
 0x3a7   : > { %12723 = vrot.lane.b32.xlu1 %v34127_v48, %s27969_s7  ;;  %26059 = vmatmul.mubr.msk.f32.vlgmr.msra.gmra.mrb[78].mxu0 %vm1114_vm2, %v3915_v10  ;;  %v29568_v48 = vpop.permute.xlu0 %11383 }
 0x3a8   : > { %26067 = vmatpush3.msra.mxu0 %v34128_v46  ;;  %26068 = vmatprep.mubr.msk.f32.mxu0 %vm27967_vm1, %v34119_v25 }
 0x3a9   : > { %26076 = vmatprep.subr.mxu0 %v34119_v25 }
 0x3ab   : > { %12803 = vrot.lane.b32.xlu1 %v34129_v35, %s27969_s7  ;;  %v34132_v35 = vld [vmem:[#allocation39_spill] sm:$0xff] }
 0x3ad   : > { %v27531_v28 = vpop.eup %27530 }
 0x3ae   : > { %v3906_v13 = vmul.f32 %v27531_v28, %v29337_v21  ;;  %v27533_v19 = vpop.eup %27532  ;;  %v34133_v21 = vld [vmem:[#allocation50_spill] sm:$0xff]  ;;  %v34134_v28 = vld [vmem:[#allocation8_spill] sm:$0xff] }
 0x3af   : > { %12879 = vrot.lane.b32.xlu1 %v34130_v59, %s27969_s7  ;;  %v3908_v10 = vmul.f32 %v27533_v19, %v29279_v16  ;;  %v34135_v16 = vld [vmem:[#allocation41_spill] sm:$0xff]  ;;  %v34137_v19 = vld [vmem:[#allocation58_spill] sm:$0xff] }
 0x3b0   : > { %26014 = vmatmul.mubr.msk.f32.vlgmr.msra.gmra.mrb[100].mxu1 %vm1114_vm2, %v3906_v13  ;;  %v34136_v13 = vld [vmem:[#allocation25_spill] sm:$0xff] }
 0x3b1   : > { %26022 = vmatpush3.msra.mxu1 %v34131_v4  ;;  %26023 = vmatprep.mubr.msk.f32.mxu1 %vm27967_vm1, %v34119_v25  ;;  %v34141_v59 = vld [vmem:[#allocation37_spill] sm:$0xff] }
 0x3b2   : > { %26031 = vmatprep.subr.mxu1 %v34119_v25 }
 0x3b3   : > { %12959 = vrot.lane.b32.xlu1 %v34132_v35, %s27969_s7  ;;  %v34139_v35 = vld [vmem:[#allocation45_spill] sm:$0xff] }
 0x3b4   : > { %26024 = vmatmul.mubr.msk.f32.vlgmr.msra.gmra.mrb[102].mxu1 %vm1114_vm2, %v3908_v10  ;;  %v34138_v10 = vld [vmem:[#allocation6_spill] sm:$0xff] }
 0x3b5   : > { %26032 = vmatpush3.msra.mxu1 %v28757_v3  ;;  %26033 = vmatprep.mubr.msk.f32.mxu1 %vm27967_vm1, %v34119_v25 }
 0x3b6   : > { %26041 = vmatprep.subr.mxu1 %v34119_v25 }
 0x3b7   : > { %13035 = vrot.lane.b32.xlu1 %v34133_v21, %s27969_s7  ;;  %v34140_v21 = vld [vmem:[#allocation12_spill] sm:$0xff] }
 0x3b9   : > { %12411 = vrot.lane.b32.xlu0 %v34134_v28, %s27969_s7 }
 0x3bb   : > { %13115 = vrot.lane.b32.xlu1 %v34135_v16, %s27969_s7  ;;  %v34142_v16 = vld [vmem:[#allocation10_spill] sm:$0xff] }
 0x3bd   : > { %12491 = vrot.lane.b32.xlu0 %v34136_v13, %s27969_s7  ;;  %v34143_v13 = vld [vmem:[#allocation40_spill] sm:$0xff] }
 0x3bf   : > { %13191 = vrot.lane.b32.xlu1 %v34137_v19, %s27969_s7  ;;  %v34144_v19 = vld [vmem:[#allocation34_spill] sm:$0xff] }
 0x3c1   : > { %12489 = vrot.lane.b32.xlu0 %v34138_v10, %s27969_s7  ;;  %v29574_v10 = vpop.permute.xlu0 %11537 }
 0x3c3   : > { %13271 = vrot.lane.b32.xlu1 %v34139_v35, %s27969_s7  ;;  %v34145_v35 = vld [vmem:[#allocation42_spill] sm:$0xff] }
 0x3c5   : > { %12645 = vrot.lane.b32.xlu0 %v34140_v21, %s27969_s7  ;;  %v3820_v21 = vpop.xlane.xlu1 %3819 }
 0x3c9   : > { %12725 = vrot.lane.b32.xlu0 %v34141_v59, %s27969_s7  ;;  %v34146_v59 = vld [vmem:[#allocation44_spill] sm:$0xff]  ;;  %v3865_v32 = vpop.xlane.xlu1 %3864 }
 0x3cd   : > { %12801 = vrot.lane.b32.xlu0 %v34142_v16, %s27969_s7 }
 0x3d1   : > { %12881 = vrot.lane.b32.xlu0 %v34143_v13, %s27969_s7  ;;  %v34147_v13 = vld [vmem:[#allocation46_spill] sm:$0xff] }
 0x3d5   : > { %12957 = vrot.lane.b32.xlu0 %v34144_v19, %s27969_s7 }
 0x3d9   : > { %13037 = vrot.lane.b32.xlu0 %v34145_v35, %s27969_s7  ;;  %v3832_v35 = vpop.xlane.xlu1 %3831 }
 0x3db   : > { %v3823_v28 = vpop.xlane.xlu0 %3822 }
 0x3dc   : > { %27534 = vrcp.f32 %v3823_v28 }
 0x3dd   : > { %13113 = vrot.lane.b32.xlu0 %v34146_v59, %s27969_s7  ;;  %27536 = vrcp.f32 %v29472_v51 }
 0x3df   : > { %v3802_v16 = vpop.xlane.xlu0 %3801 }
 0x3e0   : > { %27538 = vrcp.f32 %v3802_v16  ;;  %v34148_v16 = vld [vmem:[#allocation85_spill] sm:$0xff] }
 0x3e1   : > { %13193 = vrot.lane.b32.xlu0 %v34147_v13, %s27969_s7  ;;  %27540 = vrcp.f32 %v29482_v17 }
 0x3e3   : > { %v3835_v19 = vpop.xlane.xlu0 %3834 }
 0x3e4   : > { %27542 = vrcp.f32 %v3835_v19 }
 0x3e5   : > { %27544 = vrcp.f32 %v29491_v40 }
 0x3e6   : > { %v27535_v3 = vpop.eup %27534 }
 0x3e7   : > { %v3847_v28 = vpop.xlane.xlu0 %3846  ;;  %v3917_v4 = vmul.f32 %v27535_v3, %v29378_v0  ;;  %v27537_v59 = vpop.eup %27536 }
 0x3e8   : > { %27546 = vrcp.f32 %v3847_v28  ;;  %v3919_v40 = vmul.f32 %v27537_v59, %v29291_v50  ;;  %v3844_v3 = vpop.xlane.xlu1 %3843  ;;  %v34150_v59 = vld [vmem:[#allocation78_spill] sm:$0xff] }
 0x3e9   : > { %26069 = vmatmul.mubr.msk.f32.vlgmr.msra.gmra.mrb[80].mxu0 %vm1114_vm2, %v3917_v4  ;;  %v34149_v4 = vld [vmem:[#allocation87_spill] sm:$0xff] }
 0x3ea   : > { %v27539_v51 = vpop.eup %27538  ;;  %26077 = vmatpush3.msra.mxu0 %v34148_v16  ;;  %26078 = vmatprep.mubr.msk.f32.mxu0 %vm27967_vm1, %v34119_v25 }
 0x3eb   : > { %v3814_v17 = vpop.xlane.xlu0 %3813  ;;  %26086 = vmatprep.subr.mxu0 %v34119_v25  ;;  %v3910_v19 = vmul.f32 %v27539_v51, %v29383_v42  ;;  %v27541_v13 = vpop.eup %27540 }
 0x3ec   : > { %27548 = vrcp.f32 %v3814_v17  ;;  %v3912_v50 = vmul.f32 %v27541_v13, %v29305_v14  ;;  %v29610_v51 = vpop.permute.xlu1 %12335 }
 0x3ed   : > { %27550 = vrcp.f32 %v29503_v60  ;;  %26034 = vmatmul.mubr.msk.f32.vlgmr.msra.gmra.mrb[104].mxu1 %vm1114_vm2, %v3910_v19  ;;  %26079 = vmatmul.mubr.msk.f32.vlgmr.msra.gmra.mrb[82].mxu0 %vm1114_vm2, %v3919_v40  ;;  %v34152_v19 = vld [vmem:[#allocation91_spill] sm:$0xff] }
 0x3ee   : > { %v27543_v0 = vpop.eup %27542  ;;  %27552 = vrcp.f32 %v3820_v21  ;;  %26042 = vmatpush3.msra.mxu1 %v28775_v22  ;;  %26087 = vmatpush3.msra.mxu0 %v34149_v4  ;;  %v34151_v21 = vld [vmem:[#allocation89_spill] sm:$0xff] }
 0x3ef   : > { %v3859_v28 = vpop.xlane.xlu0 %3858  ;;  %26043 = vmatprep.mubr.msk.f32.mxu1 %vm27967_vm1, %v34119_v25  ;;  %26051 = vmatprep.subr.mxu1 %v34119_v25  ;;  %v3921_v42 = vmul.f32 %v27543_v0, %v29392_v20  ;;  %v27545_v60 = vpop.eup %27544 }
 0x3f0   : > { %26088 = vmatprep.mubr.msk.f32.mxu0 %vm27967_vm1, %v34119_v25  ;;  %26096 = vmatprep.subr.mxu0 %v34119_v25  ;;  %27554 = vrcp.f32 %v3859_v28  ;;  %v3923_v20 = vmul.f32 %v27545_v60, %v29310_v38 }
 0x3f1   : > { %26044 = vmatmul.mubr.msk.f32.vlgmr.msra.gmra.mrb[106].mxu1 %vm1114_vm2, %v3912_v50  ;;  %26089 = vmatmul.mubr.msk.f32.vlgmr.msra.gmra.mrb[84].mxu0 %vm1114_vm2, %v3921_v42  ;;  %v29626_v42 = vpop.permute.xlu1 %12333 }
 0x3f2   : > { %26052 = vmatpush3.msra.mxu1 %v34150_v59  ;;  %26097 = vmatpush3.msra.mxu0 %v34151_v21  ;;  %v27547_v13 = vpop.eup %27546 }
 0x3f3   : > { %v3826_v14 = vpop.xlane.xlu0 %3825  ;;  %26098 = vmatprep.mubr.msk.f32.mxu0 %vm27967_vm1, %v34119_v25  ;;  %26106 = vmatprep.subr.mxu0 %v34119_v25  ;;  %v3925_v28 = vmul.f32 %v27547_v13, %v29401_v63  ;;  %v34156_v13 = vld [vmem:[#allocation95_spill] sm:$0xff] }
 0x3f4   : > { %27556 = vrcp.f32 %v3826_v14  ;;  %26053 = vmatprep.mubr.msk.f32.mxu1 %vm27967_vm1, %v34119_v25  ;;  %26061 = vmatprep.subr.mxu1 %v34119_v25 }
 0x3f5   : > { %27558 = vrcp.f32 %v3865_v32  ;;  %26099 = vmatmul.mubr.msk.f32.vlgmr.msra.gmra.mrb[86].mxu0 %vm1114_vm2, %v3923_v20  ;;  %v34154_v32 = vld [vmem:[#allocation93_spill] sm:$0xff]  ;;  %v34155_v20 = vld [vmem:[#allocation82_spill] sm:$0xff] }
 0x3f6   : > { %v27549_v17 = vpop.eup %27548  ;;  %27560 = vrcp.f32 %v3832_v35  ;;  %26107 = vmatpush3.msra.mxu0 %v34152_v19  ;;  %26108 = vmatprep.mubr.msk.f32.mxu0 %vm27967_vm1, %v34119_v25  ;;  %v34153_v35 = vld [vmem:[#allocation80_spill] sm:$0xff] }
 0x3f7   : > { %v27551_v40 = vpop.eup %27550  ;;  %v3838_v0 = vpop.xlane.xlu0 %3837  ;;  %26116 = vmatprep.subr.mxu0 %v34119_v25  ;;  %v3914_v38 = vmul.f32 %v27549_v17, %v29410_v39 }
 0x3f8   : > { %v27553_v50 = vpop.eup %27552  ;;  %27562 = vrcp.f32 %v3838_v0  ;;  %v3927_v63 = vmul.f32 %v27551_v40, %v29322_v9 }
 0x3f9   : > { %26054 = vmatmul.mubr.msk.f32.vlgmr.msra.gmra.mrb[108].mxu1 %vm1114_vm2, %v3914_v38  ;;  %26109 = vmatmul.mubr.msk.f32.vlgmr.msra.gmra.mrb[88].mxu0 %vm1114_vm2, %v3925_v28  ;;  %v3916_v39 = vmul.f32 %v27553_v50, %v29331_v15  ;;  %27564 = vrcp.f32 %v3844_v3  ;;  %v29644_v15 = vpop.permute.xlu1 %12413  ;;  %v34157_v3 = vld [vmem:[#allocation84_spill] sm:$0xff]  ;;  %v34158_v28 = vld [vmem:[#allocation97_spill] sm:$0xff] }
 0x3fa   : > { %26062 = vmatpush3.msra.mxu1 %v34153_v35  ;;  %26117 = vmatpush3.msra.mxu0 %v34154_v32  ;;  %v27555_v60 = vpop.eup %27554 }
 0x3fb   : > { %26063 = vmatprep.mubr.msk.f32.mxu1 %vm27967_vm1, %v34119_v25  ;;  %26071 = vmatprep.subr.mxu1 %v34119_v25  ;;  %v3850_v9 = vpop.xlane.xlu0 %3849  ;;  %v3929_v0 = vmul.f32 %v27555_v60, %v29416_v18 }
 0x3fc   : > { %26118 = vmatprep.mubr.msk.f32.mxu0 %vm27967_vm1, %v34119_v25  ;;  %26126 = vmatprep.subr.mxu0 %v34119_v25  ;;  %27566 = vrcp.f32 %v3850_v9 }
 0x3fd   : > { %26064 = vmatmul.mubr.msk.f32.vlgmr.msra.gmra.mrb[110].mxu1 %vm1114_vm2, %v3916_v39  ;;  %26119 = vmatmul.mubr.msk.f32.vlgmr.msra.gmra.mrb[90].mxu0 %vm1114_vm2, %v3927_v63  ;;  %v3856_v50 = vpop.xlane.xlu1 %3855  ;;  %v34159_v63 = vld [vmem:[#allocation112_spill] sm:$0xff] }
 0x3fe   : > { %v27557_v14 = vpop.eup %27556  ;;  %26072 = vmatpush3.msra.mxu1 %v34155_v20  ;;  %26127 = vmatpush3.msra.mxu0 %v34156_v13  ;;  %27568 = vrcp.f32 %v3856_v50  ;;  %v34165_v50 = vld [vmem:[#allocation117_spill] sm:$0xff] }
 0x3ff   : > { %v27559_v17 = vpop.eup %27558  ;;  %26073 = vmatprep.mubr.msk.f32.mxu1 %vm27967_vm1, %v34119_v25  ;;  %26081 = vmatprep.subr.mxu1 %v34119_v25  ;;  %v3918_v40 = vmul.f32 %v27557_v14, %v29420_v7  ;;  %v34160_v14 = vld [vmem:[#allocation104_spill] sm:$0xff] }
 0x400   : > { %v27561_v38 = vpop.eup %27560  ;;  %26128 = vmatprep.mubr.msk.f32.mxu0 %vm27967_vm1, %v34119_v25  ;;  %26136 = vmatprep.subr.mxu0 %v34119_v25  ;;  %v3931_v7 = vmul.f32 %v27559_v17, %v29335_v54  ;;  %v34161_v17 = vld [vmem:[#allocation157_spill] sm:$0xff] }
 0x401   : > { %26074 = vmatmul.mubr.msk.f32.vlgmr.msra.gmra.mrb[112].mxu1 %vm1114_vm2, %v3918_v40  ;;  %26129 = vmatmul.mubr.msk.f32.vlgmr.msra.gmra.mrb[92].mxu0 %vm1114_vm2, %v3929_v0  ;;  %v3920_v18 = vmul.f32 %v27561_v38, %v29341_v61  ;;  %v34162_v40 = vld [vmem:[#allocation111_spill] sm:$0xff]  ;;  %v34163_v0 = vld [vmem:[#allocation120_spill] sm:$0xff] }
 0x402   : > { %26082 = vmatpush3.msra.mxu1 %v34157_v3  ;;  %26137 = vmatpush3.msra.mxu0 %v34158_v28  ;;  %v27563_v39 = vpop.eup %27562  ;;  %v34164_v38 = vld [vmem:[#allocation92_spill] sm:$0xff] }
 0x403   : > { %26083 = vmatprep.mubr.msk.f32.mxu1 %vm27967_vm1, %v34119_v25  ;;  %26091 = vmatprep.subr.mxu1 %v34119_v25  ;;  %v3922_v54 = vmul.f32 %v27563_v39, %v29424_v55  ;;  %v27565_v61 = vpop.eup %27564  ;;  %v34169_v39 = vld [vmem:[#allocation129_spill] sm:$0xff] }
 0x404   : > { %26138 = vmatprep.mubr.msk.f32.mxu0 %vm27967_vm1, %v34119_v25  ;;  %26146 = vmatprep.subr.mxu0 %v34119_v25  ;;  %v3924_v55 = vmul.f32 %v27565_v61, %v29347_v6  ;;  %v29736_v61 = vpop.permute.xlu1 %12569 }
 0x405   : > { %26084 = vmatmul.mubr.msk.f32.vlgmr.msra.gmra.mrb[114].mxu1 %vm1114_vm2, %v3920_v18  ;;  %26139 = vmatmul.mubr.msk.f32.vlgmr.msra.gmra.mrb[94].mxu0 %vm1114_vm2, %v3931_v7  ;;  %v34166_v18 = vld [vmem:[#allocation124_spill] sm:$0xff] }
 0x406   : > { %26092 = vmatpush3.msra.mxu1 %v28850_v34  ;;  %26093 = vmatprep.mubr.msk.f32.mxu1 %vm27967_vm1, %v34119_v25  ;;  %v27567_v60 = vpop.eup %27566  ;;  %v34168_v7 = vld [vmem:[#allocation128_spill] sm:$0xff] }
 0x407   : > { %26101 = vmatprep.subr.mxu1 %v34119_v25  ;;  %26148 = vmatprep.mubr.msk.f32.mxu0 %vm27967_vm1, %v34119_v25  ;;  %v3926_v6 = vmul.f32 %v27567_v60, %v29428_v2  ;;  %v34173_v60 = vld [vmem:[#allocation141_spill] sm:$0xff] }
 0x408   : > { %v27569_v9 = vpop.eup %27568 }
 0x409   : > { %26147 = vmatpush3.xpose.msk.msra.mxu0 %vm1114_vm2, %v34159_v63  ;;  %26094 = vmatmul.mubr.msk.f32.vlgmr.msra.gmra.mrb[116].mxu1 %vm1114_vm2, %v3922_v54  ;;  %v3928_v2 = vmul.f32 %v27569_v9, %v29395_v5  ;;  %v34167_v5 = vld [vmem:[#allocation123_spill] sm:$0xff]  ;;  %v34170_v54 = vld [vmem:[#allocation130_spill] sm:$0xff]  ;;  %v34171_v63 = vld [vmem:[#allocation137_spill] sm:$0xff] }
 0x40a   : > { %26102 = vmatpush3.msra.mxu1 %v28864_v52  ;;  %26156 = vmatprep.subr.mxu0 %v34119_v25  ;;  %v34177_v9 = vld [vmem:[#allocation140_spill] sm:$0xff] }
 0x40b   : > { %26103 = vmatprep.mubr.msk.f32.mxu1 %vm27967_vm1, %v34119_v25  ;;  %26111 = vmatprep.subr.mxu1 %v34119_v25 }
 0x40c   : > { %26149 = vmatmul.mubr.msk.f32.vlgmr.msra.gmra.mrb[96].mxu0 %vm1114_vm2, %v34160_v14  ;;  %v34174_v14 = vld [vmem:[#allocation138_spill] sm:$0xff] }
 0x40d   : > { %26157 = vmatpush3.xpose.msk.msra.mxu0 %vm1114_vm2, %v34161_v17  ;;  %26104 = vmatmul.mubr.msk.f32.vlgmr.msra.gmra.mrb[118].mxu1 %vm1114_vm2, %v3924_v55  ;;  %v34172_v55 = vld [vmem:[#allocation134_spill] sm:$0xff]  ;;  %v29751_v17 = vpop.permute.xlu1 %12567 }
 0x40e   : > { %26112 = vmatpush3.msra.mxu1 %v28870_v37  ;;  %26158 = vmatprep.mubr.msk.f32.mxu0 %vm27967_vm1, %v34119_v25  ;;  %34175 = vst [vmem:[#allocation112_spill] sm:$0xff] %v29751_v17 }
 0x40f   : > { %26166 = vmatprep.subr.mxu0 %v34119_v25  ;;  %26113 = vmatprep.mubr.msk.f32.mxu1 %vm27967_vm1, %v34119_v25 }
 0x410   : > { %26159 = vmatmul.mubr.msk.f32.vlgmr.msra.gmra.mrb[98].mxu0 %vm1114_vm2, %v34162_v40  ;;  %26121 = vmatprep.subr.mxu1 %v34119_v25 }
 0x411   : > { %26167 = vmatpush3.xpose.msk.msra.mxu0 %vm1114_vm2, %v34163_v0  ;;  %26114 = vmatmul.mubr.msk.f32.vlgmr.msra.gmra.mrb[120].mxu1 %vm1114_vm2, %v3926_v6  ;;  %v34176_v6 = vld [vmem:[#allocation147_spill] sm:$0xff]  ;;  %v29761_v40 = vpop.permute.xlu1 %12647  ;;  %v29763_v0 = vpop.permute.xlu0 %12255 }
 0x412   : > { %26122 = vmatpush3.msra.mxu1 %v34164_v38  ;;  %26168 = vmatprep.mubr.msk.f32.mxu0 %vm27967_vm1, %v34119_v25  ;;  %34178 = vst [vmem:[#allocation104_spill] sm:$0xff] %v29761_v40 }
 0x413   : > { %26176 = vmatprep.subr.mxu0 %v34119_v25  ;;  %26123 = vmatprep.mubr.msk.f32.mxu1 %vm27967_vm1, %v34119_v25 }
 0x414   : > { %26169 = vmatmul.mubr.msk.f32.vlgmr.msra.gmra.mrb[100].mxu0 %vm1114_vm2, %v34165_v50  ;;  %26131 = vmatprep.subr.mxu1 %v34119_v25  ;;  %v34180_v50 = vld [vmem:[#allocation144_spill] sm:$0xff] }
 0x415   : > { %26177 = vmatpush3.xpose.msk.msra.mxu0 %vm1114_vm2, %v34166_v18  ;;  %26124 = vmatmul.mubr.msk.f32.vlgmr.msra.gmra.mrb[122].mxu1 %vm1114_vm2, %v3928_v2  ;;  %v34179_v2 = vld [vmem:[#allocation106_spill] sm:$0xff] }
 0x416   : > { %26132 = vmatpush3.msra.mxu1 %v28880_v30  ;;  %26178 = vmatprep.mubr.msk.f32.mxu0 %vm27967_vm1, %v34119_v25 }
 0x417   : > { %26186 = vmatprep.subr.mxu0 %v34119_v25  ;;  %26133 = vmatprep.mubr.msk.f32.mxu1 %vm27967_vm1, %v34119_v25 }
 0x418   : > { %26179 = vmatmul.mubr.msk.f32.vlgmr.msra.gmra.mrb[102].mxu0 %vm1114_vm2, %v34167_v5  ;;  %26141 = vmatprep.subr.mxu1 %v34119_v25  ;;  %v34181_v5 = vld [vmem:[#allocation113_spill] sm:$0xff] }
 0x419   : > { %26187 = vmatpush3.xpose.msk.msra.mxu0 %vm1114_vm2, %v34168_v7  ;;  %26188 = vmatprep.mubr.msk.f32.mxu0 %vm27967_vm1, %v34119_v25 }
 0x41a   : > { %26196 = vmatprep.subr.mxu0 %v34119_v25 }
 0x41c   : > { %26189 = vmatmul.mubr.msk.f32.vlgmr.msra.gmra.mrb[104].mxu0 %vm1114_vm2, %v34169_v39  ;;  %v34182_v39 = vld [vmem:[#allocation146_spill] sm:$0xff] }
 0x41d   : > { %26197 = vmatpush3.xpose.msk.msra.mxu0 %vm1114_vm2, %v34170_v54  ;;  %26198 = vmatprep.mubr.msk.f32.mxu0 %vm27967_vm1, %v34119_v25  ;;  %v34183_v54 = vld [vmem:[#allocation119_spill] sm:$0xff] }
 0x41e   : > { %26206 = vmatprep.subr.mxu0 %v34119_v25 }
 0x420   : > { %26199 = vmatmul.mubr.msk.f32.vlgmr.msra.gmra.mrb[106].mxu0 %vm1114_vm2, %v34171_v63  ;;  %v34184_v63 = vld [vmem:[#allocation150_spill] sm:$0xff] }
 0x421   : > { %26207 = vmatpush3.xpose.msk.msra.mxu0 %vm1114_vm2, %v34172_v55  ;;  %26208 = vmatprep.mubr.msk.f32.mxu0 %vm27967_vm1, %v34119_v25  ;;  %v34185_v55 = vld [vmem:[#allocation125_spill] sm:$0xff] }
 0x422   : > { %26216 = vmatprep.subr.mxu0 %v34119_v25 }
 0x423   : > { %v3868_v18 = vpop.xlane.xlu1 %3867 }
 0x424   : > { %26209 = vmatmul.mubr.msk.f32.vlgmr.msra.gmra.mrb[108].mxu0 %vm1114_vm2, %v34173_v60  ;;  %v34186_v60 = vld [vmem:[#allocation152_spill] sm:$0xff] }
 0x425   : > { %26217 = vmatpush3.xpose.msk.msra.mxu0 %vm1114_vm2, %v34174_v14  ;;  %26218 = vmatprep.mubr.msk.f32.mxu0 %vm27967_vm1, %v34119_v25 }
 0x426   : > { %26226 = vmatprep.subr.mxu0 %v34119_v25 }
 0x427   : > { %v30235_v29 = vpop.permute.xlu1 %12723 }
 0x428   : > { %26219 = vmatmul.mubr.msk.f32.vlgmr.msra.gmra.mrb[110].mxu0 %vm1114_vm2, %v34176_v6  ;;  %v34187_v6 = vld [vmem:[#allocation131_spill] sm:$0xff] }
 0x429   : > { %26227 = vmatpush3.xpose.msk.msra.mxu0 %vm1114_vm2, %v34177_v9  ;;  %26228 = vmatprep.mubr.msk.f32.mxu0 %vm27967_vm1, %v34119_v25 }
 0x42a   : > { %26236 = vmatprep.subr.mxu0 %v34119_v25 }
 0x42c   : > { %26229 = vmatmul.mubr.msk.f32.vlgmr.msra.gmra.mrb[112].mxu0 %vm1114_vm2, %v34179_v2 }
 0x42d   : > { %26237 = vmatpush3.xpose.msk.msra.mxu0 %vm1114_vm2, %v34180_v50  ;;  %26238 = vmatprep.mubr.msk.f32.mxu0 %vm27967_vm1, %v34119_v25  ;;  %v34188_v50 = vld [vmem:[#allocation156_spill] sm:$0xff] }
 0x42e   : > { %26246 = vmatprep.subr.mxu0 %v34119_v25 }
 0x430   : > { %26239 = vmatmul.mubr.msk.f32.vlgmr.msra.gmra.mrb[114].mxu0 %vm1114_vm2, %v34181_v5  ;;  %v3862_v7 = vpop.xlane.xlu0 %3861  ;;  %v34190_v5 = vld [vmem:[#allocation158_spill] sm:$0xff] }
 0x431   : > { %27570 = vrcp.f32 %v3862_v7  ;;  %26247 = vmatpush3.xpose.msk.msra.mxu0 %vm1114_vm2, %v34182_v39  ;;  %26248 = vmatprep.mubr.msk.f32.mxu0 %vm27967_vm1, %v34119_v25 }
 0x432   : > { %26256 = vmatprep.subr.mxu0 %v34119_v25  ;;  %27572 = vrcp.f32 %v3868_v18  ;;  %v34189_v18 = vld [vmem:[#allocation139_spill] sm:$0xff] }
 0x434   : > { %26249 = vmatmul.mubr.msk.f32.vlgmr.msra.gmra.mrb[116].mxu0 %vm1114_vm2, %v34183_v54  ;;  %v34192_v54 = vld [vmem:[#allocation143_spill] sm:$0xff] }
 0x435   : > { %26257 = vmatpush3.xpose.msk.msra.mxu0 %vm1114_vm2, %v34184_v63  ;;  %26258 = vmatprep.mubr.msk.f32.mxu0 %vm27967_vm1, %v34119_v25  ;;  %v34194_v63 = vld [vmem:[#allocation151_spill] sm:$0xff] }
 0x436   : > { %26266 = vmatprep.subr.mxu0 %v34119_v25 }
 0x438   : > { %26259 = vmatmul.mubr.msk.f32.vlgmr.msra.gmra.mrb[118].mxu0 %vm1114_vm2, %v34185_v55 }
 0x439   : > { %26267 = vmatpush3.xpose.msk.msra.mxu0 %vm1114_vm2, %v34186_v60  ;;  %26268 = vmatprep.mubr.msk.f32.mxu0 %vm27967_vm1, %v34119_v25 }
 0x43a   : > { %26276 = vmatprep.subr.mxu0 %v34119_v25 }
 0x43b   : > { %v27571_v14 = vpop.eup %27570 }
 0x43c   : > { %26269 = vmatmul.mubr.msk.f32.vlgmr.msra.gmra.mrb[120].mxu0 %vm1114_vm2, %v34187_v6  ;;  %v3930_v9 = vmul.f32 %v27571_v14, %v29513_v23  ;;  %v27573_v2 = vpop.eup %27572 }
 0x43d   : > { %26277 = vmatpush3.xpose.msk.msra.mxu0 %vm1114_vm2, %v34188_v50  ;;  %26278 = vmatprep.mubr.msk.f32.mxu0 %vm27967_vm1, %v34119_v25  ;;  %v3932_v23 = vmul.f32 %v27573_v2, %v29495_v24  ;;  %v34193_v24 = vld [vmem:[#allocation162_spill] sm:$0xff]  ;;  %v34199_v50 = vld [vmem:[#allocation155_spill] sm:$0xff] }
 0x43e   : > { %26134 = vmatmul.mubr.msk.f32.vlgmr.msra.gmra.mrb[124].mxu1 %vm1114_vm2, %v3930_v9  ;;  %26286 = vmatprep.subr.mxu0 %v34119_v25  ;;  %v34197_v9 = vld [vmem:[#allocation149_spill] sm:$0xff]  ;;  %v34198_v2 = vld [vmem:[#allocation98_spill] sm:$0xff] }
 0x43f   : > { %26142 = vmatpush3.msra.mxu1 %v28884_v8  ;;  %26143 = vmatprep.mubr.msk.f32.mxu1 %vm27967_vm1, %v34119_v25  ;;  %v34237_v8 = vld [vmem:[#allocation153_spill] sm:$0xff] }
 0x440   : > { %26279 = vmatmul.mubr.msk.f32.vlgmr.msra.gmra.mrb[122].mxu0 %vm1114_vm2, %v34189_v18  ;;  %26151 = vmatprep.subr.mxu1 %v34119_v25 }
 0x441   : > { %26287 = vmatpush3.xpose.msk.msra.mxu0 %vm1114_vm2, %v34190_v5  ;;  %26288 = vmatprep.mubr.msk.f32.mxu0 %vm27967_vm1, %v34119_v25 }
 0x442   : > { %v29813_v7 = vpop.f32.mrb[64].mxu0  ;;  %26144 = vmatmul.mubr.msk.f32.vlgmr.msra.gmra.mrb[126].mxu1 %vm1114_vm2, %v3932_v23  ;;  %26296 = vmatprep.subr.mxu0 %v34119_v25 }
 0x443   : > { %34191 = vst [vmem:[#allocation157_spill] sm:$0xff] %v29813_v7  ;;  %v25990_v39 = vpop.f32.mrb[65].mxu0  ;;  %26153 = vmatprep.mubr.msk.f32.mxu1 %vm27967_vm1, %v34119_v25 }
 0x444   : > { %26289 = vmatmul.mubr.msk.f32.vlgmr.msra.gmra.mrb[124].mxu0 %vm1114_vm2, %v34192_v54  ;;  %v34202_v54 = vld [vmem:[#allocation100_spill] sm:$0xff] }
 0x445   : > { %26297 = vmatpush3.xpose.msk.msra.mxu0 %vm1114_vm2, %v34193_v24  ;;  %26298 = vmatprep.mubr.msk.f32.mxu0 %vm27967_vm1, %v34119_v25  ;;  %v34203_v24 = vld [vmem:[#allocation116_spill] sm:$0xff] }
 0x446   : > { %26152 = vmatpush3.xpose.msk.msra.mxu1 %vm1114_vm2, %v34194_v63  ;;  %v29827_v55 = vpop.f32.mrb[96].mxu1  ;;  %v29829_v60 = vpop.f32.mrb[66].mxu0  ;;  %26306 = vmatprep.subr.mxu0 %v34119_v25  ;;  %v34204_v63 = vld [vmem:[#allocation115_spill] sm:$0xff] }
 0x447   : > { %34195 = vst [vmem:[#allocation111_spill] sm:$0xff] %v29827_v55  ;;  %34196 = vst [vmem:[#allocation120_spill] sm:$0xff] %v29829_v60  ;;  %v25995_v14 = vpop.f32.mrb[97].mxu1  ;;  %v26000_v6 = vpop.f32.mrb[67].mxu0  ;;  %26161 = vmatprep.subr.mxu1 %v34119_v25 }
 0x448   : > { %26299 = vmatmul.mubr.msk.f32.vlgmr.msra.gmra.mrb[126].mxu0 %vm1114_vm2, %v34197_v9  ;;  %v34205_v14 = vld [vmem:[#allocation122_spill] sm:$0xff] }
 0x449   : > { %26154 = vmatmul.mubr.msk.f32.vlgmr.msra.gmra.mrb[128].mxu1 %vm1114_vm2, %v34198_v2  ;;  %26308 = vmatprep.mubr.msk.f32.mxu0 %vm27967_vm1, %v34119_v25  ;;  %v34206_v6 = vld [vmem:[#allocation102_spill] sm:$0xff] }
 0x44a   : > { %26162 = vmatpush3.xpose.msk.msra.mxu1 %vm1114_vm2, %v34199_v50  ;;  %v29841_v18 = vpop.f32.mrb[98].mxu1  ;;  %v29843_v23 = vpop.f32.mrb[68].mxu0  ;;  %26163 = vmatprep.mubr.msk.f32.mxu1 %vm27967_vm1, %v34119_v25  ;;  %v34207_v9 = vld [vmem:[#allocation126_spill] sm:$0xff] }
 0x44b   : > { %34200 = vst [vmem:[#allocation117_spill] sm:$0xff] %v29841_v18  ;;  %34201 = vst [vmem:[#allocation124_spill] sm:$0xff] %v29843_v23  ;;  %v26005_v5 = vpop.f32.mrb[99].mxu1  ;;  %v26010_v39 = vpop.f32.mrb[69].mxu0  ;;  %26171 = vmatprep.subr.mxu1 %v34119_v25 }
 0x44c   : > { %v34209_v5 = vld [vmem:[#allocation127_spill] sm:$0xff]  ;;  %v34210_v39 = vld [vmem:[#allocation161_spill] sm:$0xff] }
 0x44d   : > { %26164 = vmatmul.mubr.msk.f32.vlgmr.msra.gmra.mrb[130].mxu1 %vm1114_vm2, %v34202_v54  ;;  %v34211_v54 = vld [vmem:[#allocation133_spill] sm:$0xff] }
 0x44e   : > { %26172 = vmatpush3.xpose.msk.msra.mxu1 %vm1114_vm2, %v34203_v24  ;;  %26173 = vmatprep.mubr.msk.f32.mxu1 %vm27967_vm1, %v34119_v25  ;;  %v34212_v24 = vld [vmem:[#allocation132_spill] sm:$0xff]  ;;  %34275 = vst [vmem:[#allocation133_spill] sm:$0xff] %v30235_v29 }
 0x44f   : > { %26181 = vmatprep.subr.mxu1 %v34119_v25 }
 0x451   : > { %26174 = vmatmul.mubr.msk.f32.vlgmr.msra.gmra.mrb[132].mxu1 %vm1114_vm2, %v34204_v63 }
 0x452   : > { %26182 = vmatpush3.xpose.msk.msra.mxu1 %vm1114_vm2, %v34205_v14  ;;  %26183 = vmatprep.mubr.msk.f32.mxu1 %vm27967_vm1, %v34119_v25 }
 0x453   : > { %26191 = vmatprep.subr.mxu1 %v34119_v25 }
 0x455   : > { %26184 = vmatmul.mubr.msk.f32.vlgmr.msra.gmra.mrb[134].mxu1 %vm1114_vm2, %v34206_v6  ;;  %v34214_v6 = vld [vmem:[#allocation105_spill] sm:$0xff] }
 0x456   : > { %26192 = vmatpush3.xpose.msk.msra.mxu1 %vm1114_vm2, %v34207_v9  ;;  %v29866_v2 = vpop.f32.mrb[70].mxu0  ;;  %26193 = vmatprep.mubr.msk.f32.mxu1 %vm27967_vm1, %v34119_v25  ;;  %v34215_v9 = vld [vmem:[#allocation136_spill] sm:$0xff] }
 0x457   : > { %34208 = vst [vmem:[#allocation123_spill] sm:$0xff] %v29866_v2  ;;  %v26020_v50 = vpop.f32.mrb[71].mxu0  ;;  %26201 = vmatprep.subr.mxu1 %v34119_v25 }
 0x458   : > { %v34216_v50 = vld [vmem:[#allocation145_spill] sm:$0xff] }
 0x459   : > { %26194 = vmatmul.mubr.msk.f32.vlgmr.msra.gmra.mrb[136].mxu1 %vm1114_vm2, %v34209_v5  ;;  %v34217_v5 = vld [vmem:[#allocation163_spill] sm:$0xff] }
 0x45a   : > { %26202 = vmatpush3.xpose.msk.msra.mxu1 %vm1114_vm2, %v34210_v39  ;;  %26203 = vmatprep.mubr.msk.f32.mxu1 %vm27967_vm1, %v34119_v25 }
 0x45b   : > { %26211 = vmatprep.subr.mxu1 %v34119_v25 }
 0x45d   : > { %26204 = vmatmul.mubr.msk.f32.vlgmr.msra.gmra.mrb[138].mxu1 %vm1114_vm2, %v34211_v54 }
 0x45e   : > { %26212 = vmatpush3.xpose.msk.msra.mxu1 %vm1114_vm2, %v34212_v24  ;;  %v29882_v63 = vpop.f32.mrb[72].mxu0  ;;  %26213 = vmatprep.mubr.msk.f32.mxu1 %vm27967_vm1, %v34119_v25  ;;  %v34219_v24 = vld [vmem:[#allocation99_spill] sm:$0xff] }
 0x45f   : > { %34213 = vst [vmem:[#allocation128_spill] sm:$0xff] %v29882_v63  ;;  %v26030_v14 = vpop.f32.mrb[73].mxu0  ;;  %26221 = vmatprep.subr.mxu1 %v34119_v25 }
 0x460   : > { %v34220_v14 = vld [vmem:[#allocation142_spill] sm:$0xff] }
 0x461   : > { %26214 = vmatmul.mubr.msk.f32.vlgmr.msra.gmra.mrb[140].mxu1 %vm1114_vm2, %v34214_v6  ;;  %v34221_v6 = vld [vmem:[#allocation108_spill] sm:$0xff] }
 0x462   : > { %26222 = vmatpush3.xpose.msk.msra.mxu1 %vm1114_vm2, %v34215_v9  ;;  %26223 = vmatprep.mubr.msk.f32.mxu1 %vm27967_vm1, %v34119_v25  ;;  %v34222_v9 = vld [vmem:[#allocation164_spill] sm:$0xff] }
 0x463   : > { %26231 = vmatprep.subr.mxu1 %v34119_v25 }
 0x465   : > { %26224 = vmatmul.mubr.msk.f32.vlgmr.msra.gmra.mrb[142].mxu1 %vm1114_vm2, %v34216_v50  ;;  %v34223_v50 = vld [vmem:[#allocation101_spill] sm:$0xff] }
 0x466   : > { %26232 = vmatpush3.xpose.msk.msra.mxu1 %vm1114_vm2, %v34217_v5  ;;  %v29898_v39 = vpop.f32.mrb[74].mxu0  ;;  %26233 = vmatprep.mubr.msk.f32.mxu1 %vm27967_vm1, %v34119_v25  ;;  %v34224_v5 = vld [vmem:[#allocation148_spill] sm:$0xff] }
 0x467   : > { %34218 = vst [vmem:[#allocation129_spill] sm:$0xff] %v29898_v39  ;;  %v26040_v54 = vpop.f32.mrb[75].mxu0  ;;  %26241 = vmatprep.subr.mxu1 %v34119_v25 }
 0x469   : > { %26234 = vmatmul.mubr.msk.f32.vlgmr.msra.gmra.mrb[144].mxu1 %vm1114_vm2, %v34219_v24 }
 0x46a   : > { %26242 = vmatpush3.xpose.msk.msra.mxu1 %vm1114_vm2, %v34220_v14  ;;  %26243 = vmatprep.mubr.msk.f32.mxu1 %vm27967_vm1, %v34119_v25  ;;  %v34226_v14 = vld [vmem:[#allocation121_spill] sm:$0xff] }
 0x46b   : > { %26251 = vmatprep.subr.mxu1 %v34119_v25 }
 0x46d   : > { %26244 = vmatmul.mubr.msk.f32.vlgmr.msra.gmra.mrb[146].mxu1 %vm1114_vm2, %v34221_v6  ;;  %v34227_v6 = vld [vmem:[#allocation165_spill] sm:$0xff] }
 0x46e   : > { %26252 = vmatpush3.xpose.msk.msra.mxu1 %vm1114_vm2, %v34222_v9  ;;  %26253 = vmatprep.mubr.msk.f32.mxu1 %vm27967_vm1, %v34119_v25  ;;  %v34228_v9 = vld [vmem:[#allocation103_spill] sm:$0xff] }
 0x46f   : > { %26261 = vmatprep.subr.mxu1 %v34119_v25 }
 0x471   : > { %26254 = vmatmul.mubr.msk.f32.vlgmr.msra.gmra.mrb[148].mxu1 %vm1114_vm2, %v34223_v50  ;;  %v34229_v50 = vld [vmem:[#allocation154_spill] sm:$0xff] }
 0x472   : > { %26262 = vmatpush3.xpose.msk.msra.mxu1 %vm1114_vm2, %v34224_v5  ;;  %v29921_v54 = vpop.f32.mrb[76].mxu0  ;;  %26263 = vmatprep.mubr.msk.f32.mxu1 %vm27967_vm1, %v34119_v25 }
 0x473   : > { %34225 = vst [vmem:[#allocation130_spill] sm:$0xff] %v29921_v54  ;;  %v26050_v24 = vpop.f32.mrb[77].mxu0  ;;  %26271 = vmatprep.subr.mxu1 %v34119_v25 }
 0x475   : > { %26264 = vmatmul.mubr.msk.f32.vlgmr.msra.gmra.mrb[150].mxu1 %vm1114_vm2, %v34226_v14  ;;  %v34231_v14 = vld [vmem:[#allocation135_spill] sm:$0xff] }
 0x476   : > { %26272 = vmatpush3.xpose.msk.msra.mxu1 %vm1114_vm2, %v34227_v6  ;;  %26273 = vmatprep.mubr.msk.f32.mxu1 %vm27967_vm1, %v34119_v25  ;;  %v34232_v6 = vld [vmem:[#allocation166_spill] sm:$0xff] }
 0x477   : > { %26281 = vmatprep.subr.mxu1 %v34119_v25 }
 0x479   : > { %26274 = vmatmul.mubr.msk.f32.vlgmr.msra.gmra.mrb[152].mxu1 %vm1114_vm2, %v34228_v9  ;;  %v34233_v9 = vld [vmem:[#allocation107_spill] sm:$0xff] }
 0x47a   : > { %26282 = vmatpush3.xpose.msk.msra.mxu1 %vm1114_vm2, %v34229_v50  ;;  %v29937_v5 = vpop.f32.mrb[78].mxu0  ;;  %26283 = vmatprep.mubr.msk.f32.mxu1 %vm27967_vm1, %v34119_v25  ;;  %v34234_v50 = vld [vmem:[#allocation160_spill] sm:$0xff] }
 0x47b   : > { %34230 = vst [vmem:[#allocation137_spill] sm:$0xff] %v29937_v5  ;;  %v26060_v24 = vpop.f32.mrb[79].mxu0  ;;  %26291 = vmatprep.subr.mxu1 %v34119_v25 }
 0x47d   : > { %26284 = vmatmul.mubr.msk.f32.vlgmr.msra.gmra.mrb[154].mxu1 %vm1114_vm2, %v34231_v14 }
 0x47e   : > { %26292 = vmatpush3.xpose.msk.msra.mxu1 %vm1114_vm2, %v34232_v6  ;;  %26293 = vmatprep.mubr.msk.f32.mxu1 %vm27967_vm1, %v34119_v25  ;;  %v34236_v6 = vld [vmem:[#allocation110_spill] sm:$0xff] }
 0x47f   : > { %26301 = vmatprep.subr.mxu1 %v34119_v25 }
 0x481   : > { %26294 = vmatmul.mubr.msk.f32.vlgmr.msra.gmra.mrb[156].mxu1 %vm1114_vm2, %v34233_v9 }
 0x482   : > { %26302 = vmatpush3.xpose.msk.msra.mxu1 %vm1114_vm2, %v34234_v50  ;;  %26303 = vmatprep.mubr.msk.f32.mxu1 %vm27967_vm1, %v34119_v25 }
 0x483   : > { %v29955_v24 = vpop.f32.mrb[100].mxu1  ;;  %26311 = vmatprep.subr.mxu1 %v34119_v25 }
 0x484   : > { %34235 = vst [vmem:[#allocation134_spill] sm:$0xff] %v29955_v24  ;;  %v26015_v14 = vpop.f32.mrb[101].mxu1 }
 0x485   : > { %26304 = vmatmul.mubr.msk.f32.vlgmr.msra.gmra.mrb[158].mxu1 %vm1114_vm2, %v34236_v6 }
 0x486   : > { %26312 = vmatpush3.msra.mxu1 %v34237_v8  ;;  %26313 = vmatprep.mubr.msk.f32.mxu1 %vm27967_vm1, %v34119_v25 }
 0x487   : > { %v29963_v9 = vpop.f32.mrb[102].mxu1  ;;  %26321 = vmatprep.subr.mxu1 %v34119_v25 }
 0x488   : > { %34238 = vst [vmem:[#allocation141_spill] sm:$0xff] %v29963_v9  ;;  %v26025_v50 = vpop.f32.mrb[103].mxu1 }
 0x4bc   : > { %v29966_v30 = vpop.f32.mrb[80].mxu0 }
 0x4bd   : > { %34239 = vst [vmem:[#allocation138_spill] sm:$0xff] %v29966_v30  ;;  %v26070_v38 = vpop.f32.mrb[81].mxu0 }
 0x4c0   : > { %v29968_v37 = vpop.f32.mrb[104].mxu1  ;;  %v29970_v52 = vpop.f32.mrb[82].mxu0 }
 0x4c1   : > { %34240 = vst [vmem:[#allocation147_spill] sm:$0xff] %v29968_v37  ;;  %34241 = vst [vmem:[#allocation140_spill] sm:$0xff] %v29970_v52  ;;  %v26035_v14 = vpop.f32.mrb[105].mxu1  ;;  %v26080_v34 = vpop.f32.mrb[83].mxu0 }
 0x4c4   : > { %v29972_v6 = vpop.f32.mrb[106].mxu1  ;;  %v29974_v8 = vpop.f32.mrb[84].mxu0 }
 0x4c5   : > { %34242 = vst [vmem:[#allocation106_spill] sm:$0xff] %v29972_v6  ;;  %34243 = vst [vmem:[#allocation144_spill] sm:$0xff] %v29974_v8  ;;  %v26045_v3 = vpop.f32.mrb[107].mxu1  ;;  %v26090_v20 = vpop.f32.mrb[85].mxu0 }
 0x4c8   : > { %v29976_v35 = vpop.f32.mrb[86].mxu0 }
 0x4c9   : > { %34244 = vst [vmem:[#allocation113_spill] sm:$0xff] %v29976_v35  ;;  %v26100_v59 = vpop.f32.mrb[87].mxu0 }
 0x4cc   : > { %v29978_v22 = vpop.f32.mrb[108].mxu1  ;;  %v29980_v50 = vpop.f32.mrb[88].mxu0 }
 0x4cd   : > { %34245 = vst [vmem:[#allocation146_spill] sm:$0xff] %v29978_v22  ;;  %34246 = vst [vmem:[#allocation119_spill] sm:$0xff] %v29980_v50  ;;  %v26055_v38 = vpop.f32.mrb[109].mxu1  ;;  %v26110_v30 = vpop.f32.mrb[89].mxu0 }
 0x4d0   : > { %v29982_v5 = vpop.f32.mrb[110].mxu1  ;;  %v29984_v52 = vpop.f32.mrb[90].mxu0 }
 0x4d1   : > { %34247 = vst [vmem:[#allocation150_spill] sm:$0xff] %v29982_v5  ;;  %34248 = vst [vmem:[#allocation125_spill] sm:$0xff] %v29984_v52  ;;  %v26065_v34 = vpop.f32.mrb[111].mxu1  ;;  %v26120_v14 = vpop.f32.mrb[91].mxu0 }
 0x4d4   : > { %v29986_v54 = vpop.f32.mrb[112].mxu1  ;;  %v29988_v8 = vpop.f32.mrb[92].mxu0 }
 0x4d5   : > { %34249 = vst [vmem:[#allocation152_spill] sm:$0xff] %v29986_v54  ;;  %34250 = vst [vmem:[#allocation131_spill] sm:$0xff] %v29988_v8  ;;  %v26075_v20 = vpop.f32.mrb[113].mxu1  ;;  %v26130_v3 = vpop.f32.mrb[93].mxu0 }
 0x4d8   : > { %v29990_v35 = vpop.f32.mrb[114].mxu1  ;;  %v29992_v59 = vpop.f32.mrb[94].mxu0 }
 0x4d9   : > { %34251 = vst [vmem:[#allocation156_spill] sm:$0xff] %v29990_v35  ;;  %34252 = vst [vmem:[#allocation139_spill] sm:$0xff] %v29992_v59  ;;  %v26085_v22 = vpop.f32.mrb[115].mxu1  ;;  %v26140_v50 = vpop.f32.mrb[95].mxu0 }
 0x4dc   : > { %v29994_v38 = vpop.f32.mrb[116].mxu1 }
 0x4dd   : > { %34253 = vst [vmem:[#allocation158_spill] sm:$0xff] %v29994_v38  ;;  %v26095_v30 = vpop.f32.mrb[117].mxu1 }
 0x4df   : > { %v6343_v5 = vpop.f32.mrb[96].mxu0 }
 0x4e0   : > { %v29998_v34 = vsel %vm28910_vm3, %v6343_v5, -inf  ;;  %v26150_v14 = vpop.f32.mrb[97].mxu0  ;;  %v30000_v52 = vpop.f32.mrb[118].mxu1 }
 0x4e1   : > { %34255 = vst [vmem:[#allocation143_spill] sm:$0xff] %v30000_v52  ;;  %v8797_v20 = vsel %vm1114_vm2, %v29998_v34, -inf  ;;  %v26105_v3 = vpop.f32.mrb[119].mxu1 }
 0x4e2   : > { %8798 = vmax.xlane.f32.xlu0 %v8797_v20 }
 0x4e3   : > { %v6499_v8 = vpop.f32.mrb[98].mxu0 }
 0x4e4   : > { %v30006_v22 = vsel %vm28910_vm3, %v6499_v8, -inf  ;;  %v26160_v50 = vpop.f32.mrb[99].mxu0  ;;  %v30008_v30 = vpop.f32.mrb[120].mxu1 }
 0x4e5   : > { %34256 = vst [vmem:[#allocation162_spill] sm:$0xff] %v30008_v30  ;;  %v8803_v5 = vsel %vm1114_vm2, %v30006_v22, -inf  ;;  %v26115_v59 = vpop.f32.mrb[121].mxu1 }
 0x4e6   : > { %8804 = vmax.xlane.f32.xlu1 %v8803_v5 }
 0x4e7   : > { %v6655_v14 = vpop.f32.mrb[100].mxu0 }
 0x4e8   : > { %v26170_v52 = vpop.f32.mrb[101].mxu0  ;;  %v30012_v38 = vpop.f32.mrb[122].mxu1 }
 0x4e9   : > { %34257 = vst [vmem:[#allocation151_spill] sm:$0xff] %v30012_v38  ;;  %v26125_v35 = vpop.f32.mrb[123].mxu1 }
 0x4eb   : > { %v6811_v3 = vpop.f32.mrb[102].mxu0 }
 0x4ec   : > { %v26180_v20 = vpop.f32.mrb[103].mxu0 }
 0x4ef   : > { %v6967_v54 = vpop.f32.mrb[104].mxu0 }
 0x4f0   : > { %v26190_v39 = vpop.f32.mrb[105].mxu0  ;;  %v30070_v43 = vsel %vm28910_vm3, %v6967_v54, -inf }
 0x4f3   : > { %v7123_v37 = vpop.f32.mrb[106].mxu0 }
 0x4f4   : > { %v26200_v8 = vpop.f32.mrb[107].mxu0 }
 0x4f7   : > { %v30014_v63 = vpop.f32.mrb[108].mxu0 }
 0x4f8   : > { %v26210_v50 = vpop.f32.mrb[109].mxu0 }
 0x4fb   : > { %v30016_v30 = vpop.f32.mrb[110].mxu0 }
 0x4fc   : > { %v26220_v9 = vpop.f32.mrb[111].mxu0  ;;  %v30114_v19 = vsel %vm28910_vm3, %v30016_v30, -inf }
 0x4fd   : > { %34260 = vst [vmem:[#allocation155_spill] sm:$0xff] %v30114_v19 }
 0x4ff   : > { %v30018_v2 = vpop.f32.mrb[112].mxu0 }
 0x500   : > { %v26230_v59 = vpop.f32.mrb[113].mxu0  ;;  %v30127_v4 = vsel %vm28910_vm3, %v30018_v2, -inf }
 0x501   : > { %34261 = vst [vmem:[#allocation100_spill] sm:$0xff] %v30127_v4 }
 0x503   : > { %v30020_v5 = vpop.f32.mrb[114].mxu0 }
 0x504   : > { %v26240_v52 = vpop.f32.mrb[115].mxu0  ;;  %v30140_v16 = vsel %vm28910_vm3, %v30020_v5, -inf }
 0x505   : > { %34262 = vst [vmem:[#allocation116_spill] sm:$0xff] %v30140_v16 }
 0x507   : > { %v30022_v38 = vpop.f32.mrb[116].mxu0 }
 0x508   : > { %v26250_v35 = vpop.f32.mrb[117].mxu0  ;;  %v30153_v21 = vsel %vm28910_vm3, %v30022_v38, -inf }
 0x509   : > { %34263 = vst [vmem:[#allocation115_spill] sm:$0xff] %v30153_v21 }
 0x50b   : > { %v30024_v20 = vpop.f32.mrb[118].mxu0 }
 0x50c   : > { %v26260_v39 = vpop.f32.mrb[119].mxu0  ;;  %v30166_v47 = vsel %vm28910_vm3, %v30024_v20, -inf }
 0x50d   : > { %34264 = vst [vmem:[#allocation122_spill] sm:$0xff] %v30166_v47 }
 0x50f   : > { %v30026_v24 = vpop.f32.mrb[120].mxu0 }
 0x510   : > { %v26270_v8 = vpop.f32.mrb[121].mxu0  ;;  %v30179_v46 = vsel %vm28910_vm3, %v30026_v24, -inf }
 0x511   : > { %v30028_v23 = vpop.f32.mrb[124].mxu1  ;;  %34265 = vst [vmem:[#allocation102_spill] sm:$0xff] %v30179_v46 }
 0x512   : > { %34258 = vst [vmem:[#allocation149_spill] sm:$0xff] %v30028_v23  ;;  %v26135_v50 = vpop.f32.mrb[125].mxu1 }
 0x513   : > { %v30030_v18 = vpop.f32.mrb[122].mxu0 }
 0x514   : > { %v26280_v9 = vpop.f32.mrb[123].mxu0  ;;  %v30192_v41 = vsel %vm28910_vm3, %v30030_v18, -inf }
 0x515   : > { %v30032_v60 = vpop.f32.mrb[126].mxu1  ;;  %v30046_v9 = vsel %vm28910_vm3, %v6655_v14, -inf  ;;  %34266 = vst [vmem:[#allocation126_spill] sm:$0xff] %v30192_v41 }
 0x516   : > { %34259 = vst [vmem:[#allocation98_spill] sm:$0xff] %v30032_v60  ;;  %v26145_v59 = vpop.f32.mrb[127].mxu1 }
 0x517   : > { %v30034_v55 = vpop.f32.mrb[124].mxu0 }
 0x518   : > { %v26290_v52 = vpop.f32.mrb[125].mxu0 }
 0x51b   : > { %v30036_v7 = vpop.f32.mrb[126].mxu0 }
 0x51c   : > { %v6421_v35 = vpop.f32.mrb[128].mxu1  ;;  %v26300_v57 = vpop.f32.mrb[127].mxu0 }
 0x51d   : > { %v30040_v39 = vsel %vm28910_vm3, %v6421_v35, -inf  ;;  %v26155_v8 = vpop.f32.mrb[129].mxu1  ;;  %v8809_v57 = vsel %vm1114_vm2, %v30046_v9, -inf }
 0x51e   : > { %v8800_v50 = vsel %vm1114_vm2, %v30040_v39, -inf  ;;  %v30058_v8 = vsel %vm28910_vm3, %v6811_v3, -inf }
 0x51f   : > { %8801 = vmax.xlane.f32.xlu0 %v8800_v50 }
 0x520   : > { %v6577_v59 = vpop.f32.mrb[130].mxu1 }
 0x521   : > { %v30050_v52 = vsel %vm28910_vm3, %v6577_v59, -inf  ;;  %v26165_v60 = vpop.f32.mrb[131].mxu1 }
 0x522   : > { %v8806_v35 = vsel %vm1114_vm2, %v30050_v52, -inf  ;;  %v8815_v60 = vsel %vm1114_vm2, %v30058_v8, -inf }
 0x523   : > { %8810 = vmax.xlane.f32.xlu0 %v8809_v57  ;;  %8807 = vmax.xlane.f32.xlu1 %v8806_v35 }
 0x524   : > { %v6733_v14 = vpop.f32.mrb[132].mxu1 }
 0x525   : > { %v30062_v50 = vsel %vm28910_vm3, %v6733_v14, -inf  ;;  %v26175_v59 = vpop.f32.mrb[133].mxu1  ;;  %v8821_v14 = vsel %vm1114_vm2, %v30070_v43, -inf }
 0x526   : > { %v8812_v23 = vsel %vm1114_vm2, %v30062_v50, -inf }
 0x527   : > { %8816 = vmax.xlane.f32.xlu1 %v8815_v60  ;;  %8813 = vmax.xlane.f32.xlu0 %v8812_v23 }
 0x528   : > { %v6889_v3 = vpop.f32.mrb[134].mxu1 }
 0x529   : > { %v30074_v57 = vsel %vm28910_vm3, %v6889_v3, -inf  ;;  %v26185_v35 = vpop.f32.mrb[135].mxu1  ;;  %v30088_v3 = vsel %vm28910_vm3, %v7123_v37, -inf }
 0x52a   : > { %v8818_v59 = vsel %vm1114_vm2, %v30074_v57, -inf }
 0x52b   : > { %8822 = vmax.xlane.f32.xlu1 %v8821_v14  ;;  %8819 = vmax.xlane.f32.xlu0 %v8818_v59  ;;  %v8827_v59 = vsel %vm1114_vm2, %v30088_v3, -inf }
 0x52c   : > { %v7045_v28 = vpop.f32.mrb[136].mxu1 }
 0x52d   : > { %v30082_v54 = vsel %vm28910_vm3, %v7045_v28, -inf  ;;  %v26195_v23 = vpop.f32.mrb[137].mxu1 }
 0x52e   : > { %v8824_v60 = vsel %vm1114_vm2, %v30082_v54, -inf  ;;  %v30101_v23 = vsel %vm28910_vm3, %v30014_v63, -inf }
 0x52f   : > { %8825 = vmax.xlane.f32.xlu0 %v8824_v60 }
 0x530   : > { %v7201_v35 = vpop.f32.mrb[138].mxu1 }
 0x531   : > { %v30092_v13 = vsel %vm28910_vm3, %v7201_v35, -inf  ;;  %v26205_v14 = vpop.f32.mrb[139].mxu1 }
 0x532   : > { %v8830_v28 = vsel %vm1114_vm2, %v30092_v13, -inf  ;;  %v8833_v14 = vsel %vm1114_vm2, %v30101_v23, -inf }
 0x533   : > { %8828 = vmax.xlane.f32.xlu0 %v8827_v59  ;;  %8831 = vmax.xlane.f32.xlu1 %v8830_v28 }
 0x534   : > { %v7357_v37 = vpop.f32.mrb[140].mxu1 }
 0x535   : > { %v30105_v60 = vsel %vm28910_vm3, %v7357_v37, -inf  ;;  %v26215_v35 = vpop.f32.mrb[141].mxu1  ;;  %v8839_v37 = vsel %vm1114_vm2, %v30114_v19, -inf }
 0x536   : > { %v8836_v32 = vsel %vm1114_vm2, %v30105_v60, -inf }
 0x537   : > { %8834 = vmax.xlane.f32.xlu1 %v8833_v14  ;;  %8837 = vmax.xlane.f32.xlu0 %v8836_v32 }
 0x538   : > { %v7513_v63 = vpop.f32.mrb[142].mxu1 }
 0x539   : > { %v30118_v59 = vsel %vm28910_vm3, %v7513_v63, -inf  ;;  %v26225_v28 = vpop.f32.mrb[143].mxu1  ;;  %v8845_v63 = vsel %vm1114_vm2, %v30127_v4, -inf }
 0x53a   : > { %v8842_v35 = vsel %vm1114_vm2, %v30118_v59, -inf }
 0x53b   : > { %8840 = vmax.xlane.f32.xlu0 %v8839_v37  ;;  %8843 = vmax.xlane.f32.xlu1 %v8842_v35 }
 0x53c   : > { %v7669_v32 = vpop.f32.mrb[144].mxu1 }
 0x53d   : > { %v30131_v30 = vsel %vm28910_vm3, %v7669_v32, -inf  ;;  %v26235_v14 = vpop.f32.mrb[145].mxu1  ;;  %v8851_v32 = vsel %vm1114_vm2, %v30140_v16, -inf }
 0x53e   : > { %v8848_v28 = vsel %vm1114_vm2, %v30131_v30, -inf }
 0x53f   : > { %8846 = vmax.xlane.f32.xlu1 %v8845_v63  ;;  %8849 = vmax.xlane.f32.xlu0 %v8848_v28 }
 0x540   : > { %v7825_v2 = vpop.f32.mrb[146].mxu1 }
 0x541   : > { %v30144_v37 = vsel %vm28910_vm3, %v7825_v2, -inf  ;;  %v26245_v35 = vpop.f32.mrb[147].mxu1  ;;  %v8857_v2 = vsel %vm1114_vm2, %v30153_v21, -inf }
 0x542   : > { %v8854_v14 = vsel %vm1114_vm2, %v30144_v37, -inf }
 0x543   : > { %8852 = vmax.xlane.f32.xlu0 %v8851_v32  ;;  %8855 = vmax.xlane.f32.xlu1 %v8854_v14 }
 0x544   : > { %v7981_v5 = vpop.f32.mrb[148].mxu1 }
 0x545   : > { %v30157_v63 = vsel %vm28910_vm3, %v7981_v5, -inf  ;;  %v26255_v28 = vpop.f32.mrb[149].mxu1  ;;  %v8863_v5 = vsel %vm1114_vm2, %v30166_v47, -inf }
 0x546   : > { %v8860_v35 = vsel %vm1114_vm2, %v30157_v63, -inf }
 0x547   : > { %8858 = vmax.xlane.f32.xlu1 %v8857_v2  ;;  %8861 = vmax.xlane.f32.xlu0 %v8860_v35 }
 0x548   : > { %v8137_v38 = vpop.f32.mrb[150].mxu1 }
 0x549   : > { %v30170_v32 = vsel %vm28910_vm3, %v8137_v38, -inf  ;;  %v26265_v14 = vpop.f32.mrb[151].mxu1  ;;  %v8869_v38 = vsel %vm1114_vm2, %v30179_v46, -inf  ;;  %v30205_v46 = vsel %vm28910_vm3, %v30034_v55, -inf  ;;  %v30215_v55 = vpop.permute.xlu0 %12411 }
 0x54a   : > { %v8866_v28 = vsel %vm1114_vm2, %v30170_v32, -inf  ;;  %34267 = vst [vmem:[#allocation127_spill] sm:$0xff] %v30205_v46 }
 0x54b   : > { %8864 = vmax.xlane.f32.xlu0 %v8863_v5  ;;  %8867 = vmax.xlane.f32.xlu1 %v8866_v28 }
 0x54c   : > { %v8293_v20 = vpop.f32.mrb[152].mxu1 }
 0x54d   : > { %v30183_v2 = vsel %vm28910_vm3, %v8293_v20, -inf  ;;  %v26275_v35 = vpop.f32.mrb[153].mxu1  ;;  %v8875_v20 = vsel %vm1114_vm2, %v30192_v41, -inf }
 0x54e   : > { %v8872_v14 = vsel %vm1114_vm2, %v30183_v2, -inf }
 0x54f   : > { %8870 = vmax.xlane.f32.xlu1 %v8869_v38  ;;  %8873 = vmax.xlane.f32.xlu0 %v8872_v14 }
 0x550   : > { %v8449_v24 = vpop.f32.mrb[154].mxu1 }
 0x551   : > { %v30196_v5 = vsel %vm28910_vm3, %v8449_v24, -inf  ;;  %v26285_v28 = vpop.f32.mrb[155].mxu1  ;;  %v8881_v24 = vsel %vm1114_vm2, %v30205_v46, -inf  ;;  %v34271_v46 = vld [vmem:[#allocation64_spill] sm:$0xff] }
 0x552   : > { %v8878_v35 = vsel %vm1114_vm2, %v30196_v5, -inf }
 0x553   : > { %8876 = vmax.xlane.f32.xlu0 %v8875_v20  ;;  %8879 = vmax.xlane.f32.xlu1 %v8878_v35  ;;  %v34268_v20 = vld [vmem:[#allocation68_spill] sm:$0xff]  ;;  %v34269_v35 = vld [vmem:[#allocation47_spill] sm:$0xff] }
 0x554   : > { %v8605_v18 = vpop.f32.mrb[156].mxu1 }
 0x555   : > { %v30209_v38 = vsel %vm28910_vm3, %v8605_v18, -inf  ;;  %v26295_v14 = vpop.f32.mrb[157].mxu1  ;;  %v34270_v18 = vld [vmem:[#allocation15_spill] sm:$0xff] }
 0x556   : > { %v8884_v28 = vsel %vm1114_vm2, %v30209_v38, -inf  ;;  %v30223_v14 = vpop.permute.xlu0 %12491 }
 0x557   : > { %8882 = vmax.xlane.f32.xlu1 %v8881_v24  ;;  %8885 = vmax.xlane.f32.xlu0 %v8884_v28  ;;  %v34272_v24 = vld [vmem:[#allocation48_spill] sm:$0xff] }
 0x558   : > { %v8761_v41 = vpop.f32.mrb[158].mxu1  ;;  %v34273_v28 = vld [vmem:[#allocation52_spill] sm:$0xff] }
 0x559   : > { %v26305_v21 = vpop.f32.mrb[159].mxu1  ;;  %v30260_v19 = vsel %vm28910_vm3, %v8761_v41, -inf }
 0x55a   : > { %v30229_v21 = vpop.permute.xlu0 %12489 }
 0x568   : > { %13347 = vrot.lane.b32.xlu1 %v34268_v20, %s27969_s7  ;;  %v30233_v20 = vpop.permute.xlu0 %12645 }
 0x569   : > { %34274 = vst [vmem:[#allocation161_spill] sm:$0xff] %v30233_v20 }
 0x56c   : > { %13427 = vrot.lane.b32.xlu1 %v34269_v35, %s27969_s7  ;;  %v30237_v35 = vpop.permute.xlu0 %12725 }
 0x56d   : > { %13269 = vrot.lane.b32.xlu0 %v34270_v18, %s27969_s7  ;;  %34276 = vst [vmem:[#allocation132_spill] sm:$0xff] %v30237_v35  ;;  %v30239_v18 = vpop.permute.xlu1 %12803 }
 0x56e   : > { %34277 = vst [vmem:[#allocation105_spill] sm:$0xff] %v30239_v18 }
 0x570   : > { %13425 = vrot.lane.b32.xlu1 %v34271_v46, %s27969_s7  ;;  %v30241_v31 = vpop.permute.xlu0 %12801 }
 0x571   : > { %13349 = vrot.lane.b32.xlu0 %v34272_v24, %s27969_s7  ;;  %34278 = vst [vmem:[#allocation136_spill] sm:$0xff] %v30241_v31  ;;  %v30243_v49 = vpop.permute.xlu1 %12879  ;;  %v30250_v24 = vsel %vm28910_vm3, %v30036_v7, -inf }
 0x572   : > { %34279 = vst [vmem:[#allocation145_spill] sm:$0xff] %v30243_v49  ;;  %34281 = vst [vmem:[#allocation99_spill] sm:$0xff] %v30250_v24 }
 0x574   : > { %13505 = vrot.lane.b32.xlu1 %v34273_v28, %s27969_s7  ;;  %v30245_v46 = vpop.permute.xlu0 %12881  ;;  %v8887_v28 = vsel %vm1114_vm2, %v30250_v24, -inf }
 0x575   : > { %34280 = vst [vmem:[#allocation163_spill] sm:$0xff] %v30245_v46  ;;  %v30254_v47 = vpop.permute.xlu1 %12959  ;;  %v8890_v46 = vsel %vm1114_vm2, %v30260_v19, -inf }
 0x576   : > { %34282 = vst [vmem:[#allocation142_spill] sm:$0xff] %v30254_v47 }
 0x578   : > { %v30256_v26 = vpop.permute.xlu0 %12957 }
 0x579   : > { %34283 = vst [vmem:[#allocation108_spill] sm:$0xff] %v30256_v26  ;;  %v30262_v49 = vpop.permute.xlu1 %13035 }
 0x57a   : > { %34284 = vst [vmem:[#allocation164_spill] sm:$0xff] %v30262_v49 }
 0x57c   : > { %v30266_v31 = vpop.permute.xlu0 %13037 }
 0x57d   : > { %34285 = vst [vmem:[#allocation101_spill] sm:$0xff] %v30266_v31  ;;  %v30268_v7 = vpop.permute.xlu1 %13115 }
 0x57e   : > { %34286 = vst [vmem:[#allocation148_spill] sm:$0xff] %v30268_v7 }
 0x580   : > { %v30270_v24 = vpop.permute.xlu0 %13113 }
 0x581   : > { %34287 = vst [vmem:[#allocation121_spill] sm:$0xff] %v30270_v24  ;;  %v30272_v47 = vpop.permute.xlu1 %13191 }
 0x582   : > { %34288 = vst [vmem:[#allocation165_spill] sm:$0xff] %v30272_v47 }
 0x585   : > { %v30276_v26 = vpop.permute.xlu1 %13271 }
 0x586   : > { %34290 = vst [vmem:[#allocation154_spill] sm:$0xff] %v30276_v26 }
 0x589   : > { %v30280_v6 = vpop.xlane.xlu1 %8804 }
 0x590   : > { %8888 = vmax.xlane.f32.xlu0 %v8887_v28  ;;  %v30274_v28 = vpop.permute.xlu0 %13193 }
 0x591   : > { %34289 = vst [vmem:[#allocation103_spill] sm:$0xff] %v30274_v28 }
 0x594   : > { %v30278_v41 = vpop.xlane.xlu0 %8798 }
 0x598   : > { %8891 = vmax.xlane.f32.xlu1 %v8890_v46 }
 0x5ac   : > { %v8802_v49 = vpop.xlane.xlu0 %8801 }
 0x5ad   : > { %v8894_v18 = vsub.f32 %v30040_v39, %v8802_v49 }
 0x5af   : > { %v8927_v29 = vmul.f32 1.442695, %v8894_v18 }
 0x5b0   : > { %v30283_v31 = vpop.xlane.xlu0 %8810  ;;  %v8808_v46 = vpop.xlane.xlu1 %8807 }
 0x5b1   : > { %27574 = vpow2.f32 %v8927_v29  ;;  %v8896_v24 = vsub.f32 %v30050_v52, %v8808_v46 }
 0x5b3   : > { %v8931_v7 = vmul.f32 1.442695, %v8896_v24 }
 0x5b4   : > { %v8814_v47 = vpop.xlane.xlu0 %8813  ;;  %v30287_v26 = vpop.xlane.xlu1 %8816 }
 0x5b5   : > { %v8898_v28 = vsub.f32 %v30062_v50, %v8814_v47  ;;  %27576 = vpow2.f32 %v8931_v7 }
 0x5b7   : > { %v8935_v35 = vmul.f32 1.442695, %v8898_v28 }
 0x5b8   : > { %v8820_v20 = vpop.xlane.xlu0 %8819  ;;  %v30292_v18 = vpop.xlane.xlu1 %8822 }
 0x5b9   : > { %v8900_v16 = vsub.f32 %v30074_v57, %v8820_v20  ;;  %27578 = vpow2.f32 %v8935_v35 }
 0x5bb   : > { %v30290_v49 = vpop.eup %27574  ;;  %v8939_v39 = vmul.f32 1.442695, %v8900_v16 }
 0x5bc   : > { %v8826_v29 = vpop.xlane.xlu0 %8825  ;;  %v8992_v52 = vsel %vm1114_vm2, %v30290_v49, 0.0 }
 0x5bd   : > { %v8902_v24 = vsub.f32 %v30082_v54, %v8826_v29  ;;  %8993 = vadd.xlane.f32.xlu0 %v8992_v52  ;;  %27580 = vpow2.f32 %v8939_v39 }
 0x5bf   : > { %v8943_v47 = vmul.f32 1.442695, %v8902_v24  ;;  %v30297_v50 = vpop.eup %27576 }
 0x5c0   : > { %v30299_v7 = vpop.xlane.xlu0 %8828  ;;  %v8832_v57 = vpop.xlane.xlu1 %8831  ;;  %v8998_v16 = vsel %vm1114_vm2, %v30297_v50, 0.0 }
 0x5c1   : > { %27582 = vpow2.f32 %v8943_v47  ;;  %v8904_v20 = vsub.f32 %v30092_v13, %v8832_v57  ;;  %8999 = vadd.xlane.f32.xlu1 %v8998_v16 }
 0x5c3   : > { %v8947_v35 = vmul.f32 1.442695, %v8904_v20  ;;  %v30304_v28 = vpop.eup %27578 }
 0x5c4   : > { %v30306_v46 = vpop.xlane.xlu1 %8834  ;;  %v8838_v54 = vpop.xlane.xlu0 %8837  ;;  %v9004_v29 = vsel %vm1114_vm2, %v30304_v28, 0.0 }
 0x5c5   : > { %v8906_v39 = vsub.f32 %v30105_v60, %v8838_v54  ;;  %27584 = vpow2.f32 %v8947_v35  ;;  %9005 = vadd.xlane.f32.xlu0 %v9004_v29 }
 0x5c7   : > { %v8951_v52 = vmul.f32 1.442695, %v8906_v39  ;;  %v30311_v24 = vpop.eup %27580 }
 0x5c8   : > { %v30313_v13 = vpop.xlane.xlu0 %8840  ;;  %v8844_v47 = vpop.xlane.xlu1 %8843  ;;  %v9010_v20 = vsel %vm1114_vm2, %v30311_v24, 0.0 }
 0x5c9   : > { %34291 = vst [vmem:[#allocation135_spill] sm:$0xff] %v30313_v13  ;;  %v8908_v57 = vsub.f32 %v30118_v59, %v8844_v47  ;;  %27586 = vpow2.f32 %v8951_v52  ;;  %9011 = vadd.xlane.f32.xlu1 %v9010_v20 }
 0x5cb   : > { %v30318_v16 = vpop.eup %27582  ;;  %v8955_v60 = vmul.f32 1.442695, %v8908_v57 }
 0x5cc   : > { %v30320_v54 = vpop.xlane.xlu1 %8846  ;;  %v8850_v35 = vpop.xlane.xlu0 %8849  ;;  %v9016_v39 = vsel %vm1114_vm2, %v30318_v16, 0.0 }
 0x5cd   : > { %v8910_v29 = vsub.f32 %v30131_v30, %v8850_v35  ;;  %9017 = vadd.xlane.f32.xlu0 %v9016_v39  ;;  %27588 = vpow2.f32 %v8955_v60 }
 0x5cf   : > { %v8959_v13 = vmul.f32 1.442695, %v8910_v29  ;;  %v30325_v59 = vpop.eup %27584 }
 0x5d0   : > { %v30327_v47 = vpop.xlane.xlu0 %8852  ;;  %v8856_v52 = vpop.xlane.xlu1 %8855  ;;  %v9022_v57 = vsel %vm1114_vm2, %v30325_v59, 0.0 }
 0x5d1   : > { %34292 = vst [vmem:[#allocation166_spill] sm:$0xff] %v30327_v47  ;;  %v8912_v20 = vsub.f32 %v30144_v37, %v8856_v52  ;;  %27590 = vpow2.f32 %v8959_v13  ;;  %9023 = vadd.xlane.f32.xlu1 %v9022_v57 }
 0x5d3   : > { %v8963_v40 = vmul.f32 1.442695, %v8912_v20  ;;  %v30332_v17 = vpop.eup %27586 }
 0x5d4   : > { %v30334_v4 = vpop.xlane.xlu1 %8858  ;;  %v8862_v30 = vpop.xlane.xlu0 %8861  ;;  %v9028_v35 = vsel %vm1114_vm2, %v30332_v17, 0.0 }
 0x5d5   : > { %34293 = vst [vmem:[#allocation107_spill] sm:$0xff] %v30334_v4  ;;  %v8914_v60 = vsub.f32 %v30157_v63, %v8862_v30  ;;  %27592 = vpow2.f32 %v8963_v40  ;;  %9029 = vadd.xlane.f32.xlu0 %v9028_v35 }
 0x5d7   : > { %v8967_v39 = vmul.f32 1.442695, %v8914_v60  ;;  %v30339_v37 = vpop.eup %27588 }
 0x5d8   : > { %v30341_v29 = vpop.xlane.xlu0 %8864  ;;  %v8868_v13 = vpop.xlane.xlu1 %8867  ;;  %v9034_v20 = vsel %vm1114_vm2, %v30339_v37, 0.0 }
 0x5d9   : > { %34294 = vst [vmem:[#allocation160_spill] sm:$0xff] %v30341_v29  ;;  %v8916_v52 = vsub.f32 %v30170_v32, %v8868_v13  ;;  %27594 = vpow2.f32 %v8967_v39  ;;  %9035 = vadd.xlane.f32.xlu0 %v9034_v20 }
 0x5db   : > { %v8971_v57 = vmul.f32 1.442695, %v8916_v52  ;;  %v30346_v63 = vpop.eup %27590 }
 0x5dc   : > { %v30348_v30 = vpop.xlane.xlu1 %8870  ;;  %v8874_v40 = vpop.xlane.xlu0 %8873  ;;  %v9040_v35 = vsel %vm1114_vm2, %v30346_v63, 0.0 }
 0x5dd   : > { %34295 = vst [vmem:[#allocation110_spill] sm:$0xff] %v30348_v30  ;;  %v8918_v60 = vsub.f32 %v30183_v2, %v8874_v40  ;;  %27596 = vpow2.f32 %v8971_v57  ;;  %9041 = vadd.xlane.f32.xlu1 %v9040_v35 }
 0x5df   : > { %v8975_v4 = vmul.f32 1.442695, %v8918_v60  ;;  %v30353_v32 = vpop.eup %27592 }
 0x5e0   : > { %v30355_v13 = vpop.xlane.xlu0 %8876  ;;  %v8880_v39 = vpop.xlane.xlu1 %8879  ;;  %v9046_v20 = vsel %vm1114_vm2, %v30353_v32, 0.0 }
 0x5e1   : > { %34296 = vst [vmem:[#allocation153_spill] sm:$0xff] %v30355_v13  ;;  %v8920_v52 = vsub.f32 %v30196_v5, %v8880_v39  ;;  %27598 = vpow2.f32 %v8975_v4  ;;  %9047 = vadd.xlane.f32.xlu0 %v9046_v20 }
 0x5e3   : > { %v8979_v30 = vmul.f32 1.442695, %v8920_v52  ;;  %v30360_v2 = vpop.eup %27594 }
 0x5e4   : > { %v8886_v40 = vpop.xlane.xlu0 %8885  ;;  %v9052_v60 = vsel %vm1114_vm2, %v30360_v2, 0.0 }
 0x5e5   : > { %v8922_v57 = vsub.f32 %v30209_v38, %v8886_v40  ;;  %27600 = vpow2.f32 %v8979_v30  ;;  %9053 = vadd.xlane.f32.xlu0 %v9052_v60  ;;  %v34297_v40 = vld [vmem:[#allocation51_spill] sm:$0xff]  ;;  %v30385_v60 = vpop.xlane.xlu1 %8882 }
 0x5e6   : > { %34299 = vst [vmem:[#allocation167_spill] sm:$0xff] %v30385_v60 }
 0x5e7   : > { %v8983_v35 = vmul.f32 1.442695, %v8922_v57  ;;  %v30365_v13 = vpop.eup %27596  ;;  %v34298_v57 = vld [vmem:[#allocation4_spill] sm:$0xff] }
 0x5e8   : > { %v9058_v5 = vsel %vm1114_vm2, %v30365_v13, 0.0 }
 0x5e9   : > { %27602 = vpow2.f32 %v8983_v35  ;;  %9059 = vadd.xlane.f32.xlu1 %v9058_v5  ;;  %v34300_v35 = vld [vmem:[#allocation5_spill] sm:$0xff]  ;;  %v30389_v5 = vpop.permute.xlu1 %13347 }
 0x5ea   : > { %34301 = vst [vmem:[#allocation168_spill] sm:$0xff] %v30389_v5 }
 0x5eb   : > { %v30369_v4 = vpop.eup %27598 }
 0x5ec   : > { %v9064_v39 = vsel %vm1114_vm2, %v30369_v4, 0.0 }
 0x5ed   : > { %9065 = vadd.xlane.f32.xlu0 %v9064_v39  ;;  %v34302_v39 = vld [vmem:[#allocation57_spill] sm:$0xff] }
 0x5ef   : > { %v30373_v38 = vpop.eup %27600 }
 0x5f0   : > { %v9070_v30 = vsel %vm1114_vm2, %v30373_v38, 0.0 }
 0x5f1   : > { %9071 = vadd.xlane.f32.xlu1 %v9070_v30  ;;  %v34303_v30 = vld [vmem:[#allocation56_spill] sm:$0xff] }
 0x5f3   : > { %v30377_v52 = vpop.eup %27602 }
 0x5f4   : > { %v9076_v20 = vsel %vm1114_vm2, %v30377_v52, 0.0 }
 0x5f5   : > { %9077 = vadd.xlane.f32.xlu0 %v9076_v20  ;;  %v30395_v20 = vpop.permute.xlu1 %13427 }
 0x5f6   : > { %34304 = vst [vmem:[#allocation169_spill] sm:$0xff] %v30395_v20 }
 0x5f9   : > { %v30399_v29 = vpop.permute.xlu1 %13425 }
 0x5fa   : > { %34306 = vst [vmem:[#allocation170_spill] sm:$0xff] %v30399_v29 }
 0x5fd   : > { %v30403_v60 = vpop.permute.xlu1 %13505 }
 0x5fe   : > { %34308 = vst [vmem:[#allocation171_spill] sm:$0xff] %v30403_v60  ;;  %v34317_v60 = vld [vmem:[#allocation17_spill] sm:$0xff] }
 0x602   : > { %13583 = vrot.lane.b32.xlu1 %v34297_v40, %s27969_s7  ;;  %v34305_v40 = vld [vmem:[#allocation9_spill] sm:$0xff] }
 0x606   : > { %13581 = vrot.lane.b32.xlu1 %v34298_v57, %s27969_s7  ;;  %v34307_v57 = vld [vmem:[#allocation60_spill] sm:$0xff] }
 0x60b   : > { %13503 = vrot.lane.b32.xlu0 %v34300_v35, %s27969_s7  ;;  %v8895_v35 = vsub.f32 %v30006_v22, %v30280_v6  ;;  %v30416_v6 = vpop.permute.xlu0 %13269 }
 0x60f   : > { %13817 = vrot.lane.b32.xlu0 %v34302_v39, %s27969_s7  ;;  %v30418_v22 = vpop.permute.xlu0 %13349 }
 0x613   : > { %13895 = vrot.lane.b32.xlu0 %v34303_v30, %s27969_s7  ;;  %v8929_v30 = vmul.f32 1.442695, %v8895_v35 }
 0x617   : > { %13893 = vrot.lane.b32.xlu0 %v34305_v40, %s27969_s7 }
 0x61b   : > { %13973 = vrot.lane.b32.xlu0 %v34307_v57, %s27969_s7 }
 0x625   : > { %v8892_v5 = vpop.xlane.xlu1 %8891 }
 0x626   : > { %v8924_v39 = vsub.f32 %v30260_v19, %v8892_v5  ;;  %v30420_v19 = vpop.xlane.xlu0 %8888  ;;  %v34312_v5 = vld [vmem:[#allocation11_spill] sm:$0xff] }
 0x627   : > { %34310 = vst [vmem:[#allocation173_spill] sm:$0xff] %v30420_v19 }
 0x628   : > { %v8987_v47 = vmul.f32 1.442695, %v8924_v39  ;;  %v34313_v39 = vld [vmem:[#allocation53_spill] sm:$0xff] }
 0x62a   : > { %27604 = vpow2.f32 %v8987_v47  ;;  %v34311_v47 = vld [vmem:[#allocation54_spill] sm:$0xff] }
 0x62b   : > { %27606 = vpow2.f32 %v8929_v30 }
 0x634   : > { %v30408_v20 = vpop.eup %27604 }
 0x635   : > { %v9082_v40 = vsel %vm1114_vm2, %v30408_v20, 0.0  ;;  %v30412_v29 = vpop.eup %27606 }
 0x636   : > { %9083 = vadd.xlane.f32.xlu1 %v9082_v40  ;;  %34309 = vst [vmem:[#allocation172_spill] sm:$0xff] %v30412_v29  ;;  %v8995_v57 = vsel %vm1114_vm2, %v30412_v29, 0.0  ;;  %v34315_v29 = vld [vmem:[#allocation7_spill] sm:$0xff] }
 0x63a   : > { %8996 = vadd.xlane.f32.xlu0 %v8995_v57  ;;  %v34314_v57 = vld [vmem:[#allocation59_spill] sm:$0xff] }
 0x647   : > { %13661 = vrot.lane.b32.xlu1 %v34311_v47, %s27969_s7  ;;  %v34316_v47 = vld [vmem:[#allocation23_spill] sm:$0xff] }
 0x64a   : > { %v8994_v35 = vpop.xlane.xlu0 %8993 }
 0x64b   : > { %27608 = vrcp.f32 %v8994_v35  ;;  %13659 = vrot.lane.b32.xlu1 %v34312_v5, %s27969_s7 }
 0x64e   : > { %v9000_v40 = vpop.xlane.xlu1 %8999 }
 0x64f   : > { %13739 = vrot.lane.b32.xlu1 %v34313_v39, %s27969_s7  ;;  %27610 = vrcp.f32 %v9000_v40  ;;  %v34318_v40 = vld [vmem:[#allocation63_spill] sm:$0xff] }
 0x650   : > { %14051 = vrot.lane.b32.xlu0 %v34314_v57, %s27969_s7  ;;  %v34319_v57 = vld [vmem:[#allocation114_spill] sm:$0xff] }
 0x652   : > { %v9006_v30 = vpop.xlane.xlu0 %9005 }
 0x653   : > { %13737 = vrot.lane.b32.xlu1 %v34315_v29, %s27969_s7  ;;  %27612 = vrcp.f32 %v9006_v30 }
 0x654   : > { %14049 = vrot.lane.b32.xlu0 %v34316_v47, %s27969_s7 }
 0x655   : > { %v27609_v19 = vpop.eup %27608 }
 0x656   : > { %v9118_v35 = vmul.f32 %v27609_v19, %v30290_v49  ;;  %v9012_v5 = vpop.xlane.xlu1 %9011 }
 0x657   : > { %13815 = vrot.lane.b32.xlu1 %v34317_v60, %s27969_s7  ;;  %27614 = vrcp.f32 %v9012_v5  ;;  %v34320_v5 = vld [vmem:[#allocation118_spill] sm:$0xff] }
 0x658   : > { %26314 = vmatmul.mubr.msk.f32.vlgmr.msra.gmra.mrb[160].mxu1 %vm1114_vm2, %v9118_v35  ;;  %14129 = vrot.lane.b32.xlu0 %v34318_v40, %s27969_s7 }
 0x659   : > { %26322 = vmatpush3.msra.mxu1 %v34319_v57  ;;  %v27611_v29 = vpop.eup %27610  ;;  %26323 = vmatprep.mubr.msk.f32.mxu1 %vm27967_vm1, %v34119_v25 }
 0x65a   : > { %v9018_v30 = vpop.xlane.xlu0 %9017  ;;  %26331 = vmatprep.subr.mxu1 %v34119_v25  ;;  %v9120_v49 = vmul.f32 %v27611_v29, %v30297_v50  ;;  %v8899_v50 = vsub.f32 %v30058_v8, %v30287_v26  ;;  %v34321_v29 = vld [vmem:[#allocation159_spill] sm:$0xff] }
 0x65b   : > { %27616 = vrcp.f32 %v9018_v30 }
 0x65c   : > { %26324 = vmatmul.mubr.msk.f32.vlgmr.msra.gmra.mrb[162].mxu1 %vm1114_vm2, %v9120_v49 }
 0x65d   : > { %v27613_v19 = vpop.eup %27612  ;;  %26332 = vmatpush3.msra.mxu1 %v34320_v5  ;;  %26333 = vmatprep.mubr.msk.f32.mxu1 %vm27967_vm1, %v34119_v25 }
 0x65e   : > { %v9024_v35 = vpop.xlane.xlu1 %9023  ;;  %26341 = vmatprep.subr.mxu1 %v34119_v25  ;;  %v9122_v57 = vmul.f32 %v27613_v19, %v30304_v28  ;;  %v8893_v28 = vsub.f32 %v29998_v34, %v30278_v41  ;;  %v8937_v19 = vmul.f32 1.442695, %v8899_v50 }
 0x65f   : > { %27618 = vrcp.f32 %v9024_v35 }
 0x660   : > { %26334 = vmatmul.mubr.msk.f32.vlgmr.msra.gmra.mrb[164].mxu1 %vm1114_vm2, %v9122_v57 }
 0x661   : > { %v27615_v40 = vpop.eup %27614  ;;  %26342 = vmatpush3.msra.mxu1 %v34321_v29  ;;  %26343 = vmatprep.mubr.msk.f32.mxu1 %vm27967_vm1, %v34119_v25 }
 0x662   : > { %v9030_v30 = vpop.xlane.xlu0 %9029  ;;  %26351 = vmatprep.subr.mxu1 %v34119_v25  ;;  %v9124_v49 = vmul.f32 %v27615_v40, %v30311_v24  ;;  %v8925_v24 = vmul.f32 1.442695, %v8893_v28 }
 0x663   : > { %27620 = vrcp.f32 %v9030_v30 }
 0x664   : > { %26344 = vmatmul.mubr.msk.f32.vlgmr.msra.gmra.mrb[166].mxu1 %vm1114_vm2, %v9124_v49 }
 0x665   : > { %v27617_v5 = vpop.eup %27616  ;;  %26352 = vmatpush3.msra.mxu1 %v29367_v11  ;;  %26353 = vmatprep.mubr.msk.f32.mxu1 %vm27967_vm1, %v34119_v25 }
 0x666   : > { %v9126_v26 = vmul.f32 %v27617_v5, %v30318_v16  ;;  %v9036_v8 = vpop.xlane.xlu0 %9035  ;;  %26361 = vmatprep.subr.mxu1 %v34119_v25 }
 0x667   : > { %27622 = vrcp.f32 %v9036_v8 }
 0x668   : > { %26354 = vmatmul.mubr.msk.f32.vlgmr.msra.gmra.mrb[168].mxu1 %vm1114_vm2, %v9126_v26  ;;  %27624 = vpow2.f32 %v8937_v19 }
 0x669   : > { %v27619_v40 = vpop.eup %27618  ;;  %26362 = vmatpush3.msra.mxu1 %v29373_v27  ;;  %26363 = vmatprep.mubr.msk.f32.mxu1 %vm27967_vm1, %v34119_v25 }
 0x66a   : > { %v9042_v11 = vpop.xlane.xlu1 %9041  ;;  %26371 = vmatprep.subr.mxu1 %v34119_v25  ;;  %v9128_v34 = vmul.f32 %v27619_v40, %v30325_v59 }
 0x66b   : > { %27626 = vrcp.f32 %v9042_v11  ;;  %v8905_v11 = vsub.f32 %v30101_v23, %v30306_v46  ;;  %v34326_v46 = vld [vmem:[#allocation43_spill] sm:$0xff] }
 0x66c   : > { %27628 = vpow2.f32 %v8925_v24  ;;  %26364 = vmatmul.mubr.msk.f32.vlgmr.msra.gmra.mrb[170].mxu1 %vm1114_vm2, %v9128_v34  ;;  %v8897_v24 = vsub.f32 %v30046_v9, %v30283_v31 }
 0x66d   : > { %v27621_v41 = vpop.eup %27620  ;;  %26372 = vmatpush3.msra.mxu1 %v29365_v1  ;;  %26373 = vmatprep.mubr.msk.f32.mxu1 %vm27967_vm1, %v34119_v25  ;;  %v8949_v34 = vmul.f32 1.442695, %v8905_v11  ;;  %v34351_v11 = vld [vmem:[#allocation103_spill] sm:$0xff] }
 0x66e   : > { %v9048_v16 = vpop.xlane.xlu0 %9047  ;;  %26381 = vmatprep.subr.mxu1 %v34119_v25  ;;  %v9130_v27 = vmul.f32 %v27621_v41, %v30332_v17  ;;  %v8933_v40 = vmul.f32 1.442695, %v8897_v24  ;;  %v34348_v24 = vld [vmem:[#allocation148_spill] sm:$0xff] }
 0x66f   : > { %27630 = vrcp.f32 %v9048_v16 }
 0x670   : > { %26374 = vmatmul.mubr.msk.f32.vlgmr.msra.gmra.mrb[172].mxu1 %vm1114_vm2, %v9130_v27 }
 0x671   : > { %v27623_v35 = vpop.eup %27622  ;;  %26382 = vmatpush3.msra.mxu1 %v29403_v36  ;;  %26383 = vmatprep.mubr.msk.f32.mxu1 %vm27967_vm1, %v34119_v25 }
 0x672   : > { %v9054_v59 = vpop.xlane.xlu0 %9053  ;;  %26391 = vmatprep.subr.mxu1 %v34119_v25  ;;  %v9132_v1 = vmul.f32 %v27623_v35, %v30339_v37  ;;  %v30485_v57 = vpop.eup %27624 }
 0x673   : > { %27632 = vrcp.f32 %v9054_v59  ;;  %v9007_v29 = vsel %vm1114_vm2, %v30485_v57, 0.0 }
 0x674   : > { %26384 = vmatmul.mubr.msk.f32.vlgmr.msra.gmra.mrb[174].mxu1 %vm1114_vm2, %v9132_v1  ;;  %v8901_v1 = vsub.f32 %v30070_v43, %v30292_v18  ;;  %v34328_v43 = vld [vmem:[#allocation62_spill] sm:$0xff]  ;;  %v34334_v18 = vld [vmem:[#allocation116_spill] sm:$0xff] }
 0x675   : > { %v27627_v17 = vpop.eup %27626  ;;  %26392 = vmatpush3.msra.mxu1 %v29385_v53  ;;  %26393 = vmatprep.mubr.msk.f32.mxu1 %vm27967_vm1, %v34119_v25 }
 0x676   : > { %v30491_v36 = vpop.eup %27628  ;;  %v9060_v50 = vpop.xlane.xlu1 %9059  ;;  %26401 = vmatprep.subr.mxu1 %v34119_v25  ;;  %v9134_v37 = vmul.f32 %v27627_v17, %v30346_v63  ;;  %v34327_v17 = vld [vmem:[#allocation49_spill] sm:$0xff] }
 0x677   : > { %27634 = vrcp.f32 %v9060_v50  ;;  %9008 = vadd.xlane.f32.xlu0 %v9007_v29  ;;  %v8989_v53 = vsel %vm1114_vm2, %v30491_v36, 0.0  ;;  %v8941_v29 = vmul.f32 1.442695, %v8901_v1 }
 0x678   : > { %26394 = vmatmul.mubr.msk.f32.vlgmr.msra.gmra.mrb[176].mxu1 %vm1114_vm2, %v9134_v37  ;;  %v34336_v37 = vld [vmem:[#allocation132_spill] sm:$0xff] }
 0x679   : > { %v27631_v30 = vpop.eup %27630  ;;  %26402 = vmatpush3.msra.mxu1 %v29412_v44  ;;  %26403 = vmatprep.mubr.msk.f32.mxu1 %vm27967_vm1, %v34119_v25 }
 0x67a   : > { %v9066_v49 = vpop.xlane.xlu0 %9065  ;;  %26411 = vmatprep.subr.mxu1 %v34119_v25  ;;  %v9136_v5 = vmul.f32 %v27631_v30, %v30353_v32 }
 0x67b   : > { %8990 = vadd.xlane.f32.xlu1 %v8989_v53  ;;  %27636 = vrcp.f32 %v9066_v49  ;;  %v34337_v53 = vld [vmem:[#allocation133_spill] sm:$0xff] }
 0x67c   : > { %26404 = vmatmul.mubr.msk.f32.vlgmr.msra.gmra.mrb[178].mxu1 %vm1114_vm2, %v9136_v5  ;;  %v34338_v49 = vld [vmem:[#allocation105_spill] sm:$0xff]  ;;  %v34339_v5 = vld [vmem:[#allocation136_spill] sm:$0xff] }
 0x67d   : > { %v27633_v63 = vpop.eup %27632  ;;  %26412 = vmatpush3.msra.mxu1 %v29497_v56  ;;  %26413 = vmatprep.mubr.msk.f32.mxu1 %vm27967_vm1, %v34119_v25 }
 0x67e   : > { %v9072_v44 = vpop.xlane.xlu1 %9071  ;;  %26421 = vmatprep.subr.mxu1 %v34119_v25  ;;  %v9138_v28 = vmul.f32 %v27633_v63, %v30360_v2  ;;  %v34340_v63 = vld [vmem:[#allocation163_spill] sm:$0xff] }
 0x67f   : > { %27638 = vrcp.f32 %v9072_v44  ;;  %v34341_v44 = vld [vmem:[#allocation145_spill] sm:$0xff] }
 0x680   : > { %26414 = vmatmul.mubr.msk.f32.vlgmr.msra.gmra.mrb[180].mxu1 %vm1114_vm2, %v9138_v28 }
 0x681   : > { %v27635_v19 = vpop.eup %27634  ;;  %26422 = vmatpush3.msra.mxu1 %v29508_v58  ;;  %26423 = vmatprep.mubr.msk.f32.mxu1 %vm27967_vm1, %v34119_v25 }
 0x682   : > { %v9078_v32 = vpop.xlane.xlu0 %9077  ;;  %26431 = vmatprep.subr.mxu1 %v34119_v25  ;;  %v9140_v56 = vmul.f32 %v27635_v19, %v30365_v13  ;;  %v30566_v23 = vpop.permute.xlu1 %13583  ;;  %v34342_v19 = vld [vmem:[#allocation142_spill] sm:$0xff] }
 0x683   : > { %27640 = vrcp.f32 %v9078_v32  ;;  %v34343_v32 = vld [vmem:[#allocation55_spill] sm:$0xff] }
 0x684   : > { %26424 = vmatmul.mubr.msk.f32.vlgmr.msra.gmra.mrb[182].mxu1 %vm1114_vm2, %v9140_v56  ;;  %27642 = vpow2.f32 %v8933_v40  ;;  %v34349_v40 = vld [vmem:[#allocation22_spill] sm:$0xff] }
 0x685   : > { %v27637_v26 = vpop.eup %27636  ;;  %26432 = vmatpush3.msra.mxu1 %v29511_v33  ;;  %26433 = vmatprep.mubr.msk.f32.mxu1 %vm27967_vm1, %v34119_v25  ;;  %v34322_v33 = vld [vmem:[#allocation33_spill] sm:$0xff] }
 0x686   : > { %26441 = vmatprep.subr.mxu1 %v34119_v25  ;;  %v9142_v58 = vmul.f32 %v27637_v26, %v30369_v4  ;;  %v34323_v4 = vld [vmem:[#allocation61_spill] sm:$0xff]  ;;  %v34344_v26 = vld [vmem:[#allocation108_spill] sm:$0xff] }
 0x688   : > { %26434 = vmatmul.mubr.msk.f32.vlgmr.msra.gmra.mrb[184].mxu1 %vm1114_vm2, %v9142_v58 }
 0x689   : > { %v27639_v2 = vpop.eup %27638  ;;  %26442 = vmatpush3.msra.mxu1 %v29397_v12  ;;  %26443 = vmatprep.mubr.msk.f32.mxu1 %vm27967_vm1, %v34119_v25 }
 0x68a   : > { %26451 = vmatprep.subr.mxu1 %v34119_v25  ;;  %v9144_v13 = vmul.f32 %v27639_v2, %v30373_v38  ;;  %v34324_v38 = vld [vmem:[#allocation13_spill] sm:$0xff] }
 0x68b   : > { %v34345_v2 = vld [vmem:[#allocation101_spill] sm:$0xff] }
 0x68c   : > { %13971 = vrot.lane.b32.xlu1 %v34322_v33, %s27969_s7  ;;  %26444 = vmatmul.mubr.msk.f32.vlgmr.msra.gmra.mrb[186].mxu1 %vm1114_vm2, %v9144_v13  ;;  %v34346_v13 = vld [vmem:[#allocation65_spill] sm:$0xff] }
 0x68d   : > { %v27641_v8 = vpop.eup %27640  ;;  %26452 = vmatpush3.msra.mxu1 %v29568_v48  ;;  %14207 = vrot.lane.b32.xlu0 %v34323_v4, %s27969_s7  ;;  %v34325_v48 = vld [vmem:[#allocation66_spill] sm:$0xff] }
 0x68e   : > { %26453 = vmatprep.mubr.msk.f32.mxu1 %vm27967_vm1, %v34119_v25  ;;  %26461 = vmatprep.subr.mxu1 %v34119_v25  ;;  %v9146_v12 = vmul.f32 %v27641_v8, %v30377_v52  ;;  %v8903_v52 = vsub.f32 %v30088_v3, %v30299_v7  ;;  %v30554_v41 = vpop.eup %27642  ;;  %v30568_v7 = vpop.permute.xlu1 %13581 }
 0x68f   : > { %v9001_v16 = vsel %vm1114_vm2, %v30554_v41, 0.0 }
 0x690   : > { %26454 = vmatmul.mubr.msk.f32.vlgmr.msra.gmra.mrb[188].mxu1 %vm1114_vm2, %v9146_v12  ;;  %v34347_v12 = vld [vmem:[#allocation164_spill] sm:$0xff] }
 0x691   : > { %26462 = vmatpush3.msra.mxu1 %v29574_v10  ;;  %14205 = vrot.lane.b32.xlu0 %v34324_v38, %s27969_s7  ;;  %v8945_v10 = vmul.f32 1.442695, %v8903_v52  ;;  %v34350_v52 = vld [vmem:[#allocation121_spill] sm:$0xff] }
 0x692   : > { %26463 = vmatprep.mubr.msk.f32.mxu1 %vm27967_vm1, %v34119_v25  ;;  %26566 = vmatprep.subr.mxu1 %v34119_v25 }
 0x693   : > { %27644 = vpow2.f32 %v8945_v10  ;;  %v13504_v10 = vpop.permute.xlu0 %13503 }
 0x694   : > { %27646 = vpow2.f32 %v8949_v34  ;;  %v34352_v34 = vld [vmem:[#allocation69_spill] sm:$0xff] }
 0x695   : > { %14285 = vrot.lane.b32.xlu0 %v34325_v48, %s27969_s7  ;;  %v34387_v48 = vld [vmem:[#allocation89_spill] sm:$0xff] }
 0x69d   : > { %v30558_v27 = vpop.eup %27644 }
 0x69e   : > { %v9019_v31 = vsel %vm1114_vm2, %v30558_v27, 0.0  ;;  %v30562_v9 = vpop.eup %27646 }
 0x69f   : > { %v9025_v3 = vsel %vm1114_vm2, %v30562_v9, 0.0 }
 0x6b0   : > { %9002 = vadd.xlane.f32.xlu1 %v9001_v16  ;;  %v34353_v16 = vld [vmem:[#allocation165_spill] sm:$0xff] }
 0x6b4   : > { %9020 = vadd.xlane.f32.xlu0 %v9019_v31  ;;  %v34354_v31 = vld [vmem:[#allocation154_spill] sm:$0xff] }
 0x6b8   : > { %9026 = vadd.xlane.f32.xlu0 %v9025_v3  ;;  %v13818_v3 = vpop.permute.xlu0 %13817 }
 0x6bc   : > { %v13896_v1 = vpop.permute.xlu0 %13895 }
 0x6c1   : > { %14127 = vrot.lane.b32.xlu1 %v34326_v46, %s27969_s7 }
 0x6c3   : > { %v9084_v35 = vpop.xlane.xlu1 %9083 }
 0x6c4   : > { %27648 = vrcp.f32 %v9084_v35 }
 0x6c5   : > { %27650 = vpow2.f32 %v8941_v29  ;;  %v34357_v29 = vld [vmem:[#allocation135_spill] sm:$0xff] }
 0x6c7   : > { %v13662_v35 = vpop.permute.xlu1 %13661 }
 0x6ce   : > { %v27649_v59 = vpop.eup %27648  ;;  %14361 = vrot.lane.b32.xlu0 %v34327_v17, %s27969_s7 }
 0x6cf   : > { %v9148_v50 = vmul.f32 %v27649_v59, %v30408_v20  ;;  %v34355_v59 = vld [vmem:[#allocation168_spill] sm:$0xff] }
 0x6d1   : > { %26464 = vmatmul.mubr.msk.f32.vlgmr.msra.gmra.mrb[190].mxu1 %vm1114_vm2, %v9148_v50  ;;  %v34356_v50 = vld [vmem:[#allocation169_spill] sm:$0xff] }
 0x6d2   : > { %26567 = vmatpush3.xpose.msk.msra.mxu1 %vm1114_vm2, %v29441_v62  ;;  %26568 = vmatprep.mubr.msk.f32.mxu1 %vm27967_vm1, %v34119_v25  ;;  %v34329_v62 = vld [vmem:[#allocation67_spill] sm:$0xff] }
 0x6d3   : > { %9304 = vrot.lane.b32.xlu0 %v28414_v45, %s27968_s30  ;;  %26571 = vmatprep.subr.mxu1 %v34119_v25 }
 0x6d5   : > { %26569 = vmatmul.mubr.msk.f32.vlgmr.msra.gmra.mrb[192].mxu1 %vm1114_vm2, %v29763_v0 }
 0x6d6   : > { %26572 = vmatpush3.xpose.msk.msra.mxu1 %vm1114_vm2, %v29610_v51  ;;  %26573 = vmatprep.mubr.msk.f32.mxu1 %vm27967_vm1, %v34119_v25  ;;  %v30610_v51 = vpop.eup %27650 }
 0x6d7   : > { %14439 = vrot.lane.b32.xlu0 %v34328_v43, %s27969_s7  ;;  %26576 = vmatprep.subr.mxu1 %v34119_v25  ;;  %v9013_v0 = vsel %vm1114_vm2, %v30610_v51, 0.0 }
 0x6d9   : > { %26574 = vmatmul.mubr.msk.f32.vlgmr.msra.gmra.mrb[194].mxu1 %vm1114_vm2, %v29626_v42  ;;  %v34330_v42 = vld [vmem:[#allocation100_spill] sm:$0xff] }
 0x6da   : > { %26577 = vmatpush3.xpose.msk.msra.mxu1 %vm1114_vm2, %v29644_v15  ;;  %26578 = vmatprep.mubr.msk.f32.mxu1 %vm27967_vm1, %v34119_v25  ;;  %v8909_v15 = vsub.f32 %v34330_v42, %v30320_v54  ;;  %v34335_v54 = vld [vmem:[#allocation161_spill] sm:$0xff] }
 0x6db   : > { %14519 = vrot.lane.b32.xlu0 %v34329_v62, %s27969_s7  ;;  %26581 = vmatprep.subr.mxu1 %v34119_v25 }
 0x6dd   : > { %26579 = vmatmul.mubr.msk.f32.vlgmr.msra.gmra.mrb[196].mxu1 %vm1114_vm2, %v30215_v55  ;;  %v34331_v55 = vld [vmem:[#allocation112_spill] sm:$0xff] }
 0x6de   : > { %26582 = vmatpush3.xpose.msk.msra.mxu1 %vm1114_vm2, %v30223_v14  ;;  %26583 = vmatprep.mubr.msk.f32.mxu1 %vm27967_vm1, %v34119_v25  ;;  %v34332_v14 = vld [vmem:[#allocation104_spill] sm:$0xff] }
 0x6df   : > { %26586 = vmatprep.subr.mxu1 %v34119_v25 }
 0x6e1   : > { %26584 = vmatmul.mubr.msk.f32.vlgmr.msra.gmra.mrb[198].mxu1 %vm1114_vm2, %v30229_v21  ;;  %v34333_v21 = vld [vmem:[#allocation166_spill] sm:$0xff] }
 0x6e2   : > { %26587 = vmatpush3.xpose.msk.msra.mxu1 %vm1114_vm2, %v29736_v61  ;;  %26588 = vmatprep.mubr.msk.f32.mxu1 %vm27967_vm1, %v34119_v25  ;;  %v8957_v61 = vmul.f32 1.442695, %v8909_v15  ;;  %v8911_v20 = vsub.f32 %v34334_v18, %v34333_v21  ;;  %v34359_v15 = vld [vmem:[#allocation170_spill] sm:$0xff]  ;;  %v34362_v18 = vld [vmem:[#allocation75_spill] sm:$0xff] }
 0x6e3   : > { %26591 = vmatprep.subr.mxu1 %v34119_v25 }
 0x6e4   : > { %27652 = vpow2.f32 %v8957_v61  ;;  %v8961_v30 = vmul.f32 1.442695, %v8911_v20 }
 0x6e5   : > { %9014 = vadd.xlane.f32.xlu1 %v9013_v0  ;;  %26589 = vmatmul.mubr.msk.f32.vlgmr.msra.gmra.mrb[200].mxu1 %vm1114_vm2, %v34331_v55  ;;  %v34360_v0 = vld [vmem:[#allocation171_spill] sm:$0xff]  ;;  %v13894_v55 = vpop.permute.xlu0 %13893 }
 0x6e6   : > { %26592 = vmatpush3.xpose.msk.msra.mxu1 %vm1114_vm2, %v34332_v14  ;;  %26593 = vmatprep.mubr.msk.f32.mxu1 %vm27967_vm1, %v34119_v25  ;;  %27654 = vpow2.f32 %v8961_v30  ;;  %v34361_v14 = vld [vmem:[#allocation72_spill] sm:$0xff] }
 0x6e7   : > { %26596 = vmatprep.subr.mxu1 %v34119_v25 }
 0x6e9   : > { %26594 = vmatmul.mubr.msk.f32.vlgmr.msra.gmra.mrb[202].mxu1 %vm1114_vm2, %v34335_v54  ;;  %v13974_v20 = vpop.permute.xlu0 %13973  ;;  %v34363_v54 = vld [vmem:[#allocation20_spill] sm:$0xff] }
 0x6ea   : > { %26597 = vmatpush3.xpose.msk.msra.mxu1 %vm1114_vm2, %v34336_v37  ;;  %26598 = vmatprep.mubr.msk.f32.mxu1 %vm27967_vm1, %v34119_v25 }
 0x6eb   : > { %26601 = vmatprep.subr.mxu1 %v34119_v25 }
 0x6ed   : > { %26599 = vmatmul.mubr.msk.f32.vlgmr.msra.gmra.mrb[204].mxu1 %vm1114_vm2, %v34337_v53  ;;  %v30746_v37 = vpop.xlane.xlu0 %8996 }
 0x6ee   : > { %26602 = vmatpush3.xpose.msk.msra.mxu1 %vm1114_vm2, %v34338_v49  ;;  %26603 = vmatprep.mubr.msk.f32.mxu1 %vm27967_vm1, %v34119_v25  ;;  %v30655_v28 = vpop.eup %27652  ;;  %v34364_v49 = vld [vmem:[#allocation160_spill] sm:$0xff] }
 0x6ef   : > { %26606 = vmatprep.subr.mxu1 %v34119_v25  ;;  %v9037_v56 = vsel %vm1114_vm2, %v30655_v28, 0.0 }
 0x6f0   : > { %v30668_v58 = vpop.eup %27654 }
 0x6f1   : > { %26604 = vmatmul.mubr.msk.f32.vlgmr.msra.gmra.mrb[206].mxu1 %vm1114_vm2, %v34339_v5  ;;  %v9043_v8 = vsel %vm1114_vm2, %v30668_v58, 0.0  ;;  %v14052_v53 = vpop.permute.xlu0 %14051  ;;  %v34365_v5 = vld [vmem:[#allocation122_spill] sm:$0xff] }
 0x6f2   : > { %26607 = vmatpush3.xpose.msk.msra.mxu1 %vm1114_vm2, %v34340_v63  ;;  %26608 = vmatprep.mubr.msk.f32.mxu1 %vm27967_vm1, %v34119_v25  ;;  %v8915_v63 = vsub.f32 %v34365_v5, %v34364_v49  ;;  %v34370_v5 = vld [vmem:[#allocation70_spill] sm:$0xff] }
 0x6f3   : > { %26611 = vmatprep.subr.mxu1 %v34119_v25 }
 0x6f5   : > { %26609 = vmatmul.mubr.msk.f32.vlgmr.msra.gmra.mrb[208].mxu1 %vm1114_vm2, %v34341_v44 }
 0x6f6   : > { %26612 = vmatpush3.xpose.msk.msra.mxu1 %vm1114_vm2, %v34342_v19  ;;  %14283 = vrot.lane.b32.xlu1 %v34343_v32, %s27969_s7 }
 0x6f7   : > { %26613 = vmatprep.mubr.msk.f32.mxu1 %vm27967_vm1, %v34119_v25  ;;  %26616 = vmatprep.subr.mxu1 %v34119_v25 }
 0x6f9   : > { %26614 = vmatmul.mubr.msk.f32.vlgmr.msra.gmra.mrb[210].mxu1 %vm1114_vm2, %v34344_v26  ;;  %v14050_v26 = vpop.permute.xlu0 %14049 }
 0x6fa   : > { %9038 = vadd.xlane.f32.xlu0 %v9037_v56  ;;  %26617 = vmatpush3.xpose.msk.msra.mxu1 %vm1114_vm2, %v34345_v2  ;;  %v8969_v56 = vmul.f32 1.442695, %v8915_v63 }
 0x6fb   : > { %14363 = vrot.lane.b32.xlu1 %v34346_v13, %s27969_s7  ;;  %26618 = vmatprep.mubr.msk.f32.mxu1 %vm27967_vm1, %v34119_v25 }
 0x6fc   : > { %26621 = vmatprep.subr.mxu1 %v34119_v25 }
 0x6fd   : > { %26619 = vmatmul.mubr.msk.f32.vlgmr.msra.gmra.mrb[212].mxu1 %vm1114_vm2, %v34347_v12 }
 0x6fe   : > { %9044 = vadd.xlane.f32.xlu0 %v9043_v8  ;;  %26622 = vmatpush3.xpose.msk.msra.mxu1 %vm1114_vm2, %v34348_v24  ;;  %v14130_v24 = vpop.permute.xlu0 %14129 }
 0x6ff   : > { %9150 = vrot.lane.b32.xlu1 %v34349_v40, %s27968_s30  ;;  %26623 = vmatprep.mubr.msk.f32.mxu1 %vm27967_vm1, %v34119_v25 }
 0x700   : > { %26626 = vmatprep.subr.mxu1 %v34119_v25 }
 0x701   : > { %26624 = vmatmul.mubr.msk.f32.vlgmr.msra.gmra.mrb[214].mxu1 %vm1114_vm2, %v34350_v52 }
 0x702   : > { %26627 = vmatpush3.xpose.msk.msra.mxu1 %vm1114_vm2, %v34351_v11  ;;  %26628 = vmatprep.mubr.msk.f32.mxu1 %vm27967_vm1, %v34119_v25 }
 0x703   : > { %14441 = vrot.lane.b32.xlu1 %v34352_v34, %s27969_s7  ;;  %26631 = vmatprep.subr.mxu1 %v34119_v25 }
 0x704   : > { %v30789_v11 = vpop.xlane.xlu0 %9008 }
 0x705   : > { %26629 = vmatmul.mubr.msk.f32.vlgmr.msra.gmra.mrb[216].mxu1 %vm1114_vm2, %v34353_v16 }
 0x706   : > { %26632 = vmatpush3.xpose.msk.msra.mxu1 %vm1114_vm2, %v34354_v31  ;;  %26633 = vmatprep.mubr.msk.f32.mxu1 %vm27967_vm1, %v34119_v25 }
 0x707   : > { %26636 = vmatprep.subr.mxu1 %v34119_v25 }
 0x709   : > { %26634 = vmatmul.mubr.msk.f32.vlgmr.msra.gmra.mrb[218].mxu1 %vm1114_vm2, %v30416_v6  ;;  %v13660_v6 = vpop.permute.xlu1 %13659 }
 0x70a   : > { %26637 = vmatpush3.xpose.msk.msra.mxu1 %vm1114_vm2, %v30418_v22  ;;  %26638 = vmatprep.mubr.msk.f32.mxu1 %vm27967_vm1, %v34119_v25  ;;  %v34358_v22 = vld [vmem:[#allocation155_spill] sm:$0xff] }
 0x70b   : > { %26641 = vmatprep.subr.mxu1 %v34119_v25  ;;  %v8907_v42 = vsub.f32 %v34358_v22, %v34357_v29  ;;  %v34367_v29 = vld [vmem:[#allocation16_spill] sm:$0xff] }
 0x70d   : > { %26639 = vmatmul.mubr.msk.f32.vlgmr.msra.gmra.mrb[220].mxu1 %vm1114_vm2, %v34355_v59  ;;  %v8953_v61 = vmul.f32 1.442695, %v8907_v42  ;;  %v13740_v21 = vpop.permute.xlu1 %13739 }
 0x70e   : > { %26642 = vmatpush3.xpose.msk.msra.mxu1 %vm1114_vm2, %v34356_v50  ;;  %26643 = vmatprep.mubr.msk.f32.mxu1 %vm27967_vm1, %v34119_v25  ;;  %v14208_v50 = vpop.permute.xlu0 %14207 }
 0x70f   : > { %26646 = vmatprep.subr.mxu1 %v34119_v25  ;;  %27656 = vpow2.f32 %v8953_v61 }
 0x710   : > { %27658 = vpow2.f32 %v8969_v56 }
 0x711   : > { %26644 = vmatmul.mubr.msk.f32.vlgmr.msra.gmra.mrb[222].mxu1 %vm1114_vm2, %v34359_v15 }
 0x712   : > { %26647 = vmatpush3.xpose.msk.msra.mxu1 %vm1114_vm2, %v34360_v0  ;;  %26648 = vmatprep.mubr.msk.f32.mxu1 %vm27967_vm1, %v34119_v25  ;;  %v14206_v0 = vpop.permute.xlu0 %14205 }
 0x713   : > { %26651 = vmatprep.subr.mxu1 %v34119_v25 }
 0x714   : > { %14595 = vrot.lane.b32.xlu0 %v34361_v14, %s27969_s7 }
 0x715   : > { %26649 = vmatmul.mubr.msk.f32.vlgmr.msra.gmra.mrb[224].mxu1 %vm1114_vm2, %v13504_v10 }
 0x716   : > { %26652 = vmatpush3.xpose.msk.msra.mxu1 %vm1114_vm2, %v30566_v23  ;;  %26653 = vmatprep.mubr.msk.f32.mxu1 %vm27967_vm1, %v34119_v25  ;;  %v13738_v23 = vpop.permute.xlu1 %13737  ;;  %v14286_v49 = vpop.permute.xlu0 %14285 }
 0x717   : > { %26656 = vmatprep.subr.mxu1 %v34119_v25 }
 0x718   : > { %9766 = vrot.lane.b32.xlu0 %v34362_v18, %s27968_s30 }
 0x719   : > { %26654 = vmatmul.mubr.msk.f32.vlgmr.msra.gmra.mrb[226].mxu1 %vm1114_vm2, %v30568_v7  ;;  %v30756_v30 = vpop.eup %27656 }
 0x71a   : > { %26657 = vmatpush3.xpose.msk.msra.mxu1 %vm1114_vm2, %v13662_v35  ;;  %26658 = vmatprep.mubr.msk.f32.mxu1 %vm27967_vm1, %v34119_v25  ;;  %v13816_v7 = vpop.permute.xlu1 %13815  ;;  %v9031_v19 = vsel %vm1114_vm2, %v30756_v30, 0.0  ;;  %v34366_v35 = vld [vmem:[#allocation32_spill] sm:$0xff] }
 0x71b   : > { %26661 = vmatprep.subr.mxu1 %v34119_v25 }
 0x71c   : > { %14673 = vrot.lane.b32.xlu0 %v34363_v54, %s27969_s7 }
 0x71d   : > { %26659 = vmatmul.mubr.msk.f32.vlgmr.msra.gmra.mrb[228].mxu1 %vm1114_vm2, %v13660_v6 }
 0x71e   : > { %26662 = vmatpush3.xpose.msk.msra.mxu1 %vm1114_vm2, %v13740_v21  ;;  %26663 = vmatprep.mubr.msk.f32.mxu1 %vm27967_vm1, %v34119_v25  ;;  %v30762_v44 = vpop.xlane.xlu1 %8990 }
 0x71f   : > { %26666 = vmatprep.subr.mxu1 %v34119_v25 }
 0x721   : > { %26664 = vmatmul.mubr.msk.f32.vlgmr.msra.gmra.mrb[230].mxu1 %vm1114_vm2, %v13738_v23  ;;  %v34369_v23 = vld [vmem:[#allocation73_spill] sm:$0xff] }
 0x722   : > { %26667 = vmatpush3.xpose.msk.msra.mxu1 %vm1114_vm2, %v13818_v3  ;;  %26668 = vmatprep.mubr.msk.f32.mxu1 %vm27967_vm1, %v34119_v25  ;;  %v13972_v8 = vpop.permute.xlu1 %13971  ;;  %v30793_v3 = vpop.eup %27658 }
 0x723   : > { %26671 = vmatprep.subr.mxu1 %v34119_v25  ;;  %v9055_v6 = vsel %vm1114_vm2, %v30793_v3, 0.0 }
 0x725   : > { %26669 = vmatmul.mubr.msk.f32.vlgmr.msra.gmra.mrb[232].mxu1 %vm1114_vm2, %v13816_v7 }
 0x726   : > { %26672 = vmatpush3.xpose.msk.msra.mxu1 %vm1114_vm2, %v13896_v1  ;;  %26673 = vmatprep.mubr.msk.f32.mxu1 %vm27967_vm1, %v34119_v25 }
 0x727   : > { %9032 = vadd.xlane.f32.xlu1 %v9031_v19  ;;  %26676 = vmatprep.subr.mxu1 %v34119_v25 }
 0x729   : > { %26674 = vmatmul.mubr.msk.f32.vlgmr.msra.gmra.mrb[234].mxu1 %vm1114_vm2, %v13894_v55  ;;  %v34368_v55 = vld [vmem:[#allocation71_spill] sm:$0xff] }
 0x72a   : > { %26677 = vmatpush3.xpose.msk.msra.mxu1 %vm1114_vm2, %v13974_v20  ;;  %26678 = vmatprep.mubr.msk.f32.mxu1 %vm27967_vm1, %v34119_v25 }
 0x72b   : > { %v30774_v2 = vpop.f32.mrb[160].mxu1  ;;  %26681 = vmatprep.subr.mxu1 %v34119_v25 }
 0x72c   : > { %v26315_v12 = vpop.f32.mrb[161].mxu1 }
 0x72d   : > { %26679 = vmatmul.mubr.msk.f32.vlgmr.msra.gmra.mrb[236].mxu1 %vm1114_vm2, %v13972_v8  ;;  %v34371_v12 = vld [vmem:[#allocation79_spill] sm:$0xff] }
 0x72e   : > { %26682 = vmatpush3.xpose.msk.msra.mxu1 %vm1114_vm2, %v14052_v53  ;;  %26683 = vmatprep.mubr.msk.f32.mxu1 %vm27967_vm1, %v34119_v25 }
 0x72f   : > { %26686 = vmatprep.subr.mxu1 %v34119_v25  ;;  %v30782_v52 = vpop.f32.mrb[162].mxu1 }
 0x730   : > { %v26325_v10 = vpop.f32.mrb[163].mxu1 }
 0x731   : > { %26684 = vmatmul.mubr.msk.f32.vlgmr.msra.gmra.mrb[238].mxu1 %vm1114_vm2, %v14050_v26 }
 0x732   : > { %26687 = vmatpush3.xpose.msk.msra.mxu1 %vm1114_vm2, %v14130_v24  ;;  %26688 = vmatprep.mubr.msk.f32.mxu1 %vm27967_vm1, %v34119_v25 }
 0x733   : > { %26691 = vmatprep.subr.mxu1 %v34119_v25  ;;  %v30791_v16 = vpop.f32.mrb[164].mxu1 }
 0x734   : > { %v26335_v31 = vpop.f32.mrb[165].mxu1 }
 0x737   : > { %v30797_v59 = vpop.f32.mrb[166].mxu1 }
 0x738   : > { %9458 = vrot.lane.b32.xlu1 %v34366_v35, %s27968_s30  ;;  %v26345_v1 = vpop.f32.mrb[167].mxu1 }
 0x739   : > { %v34372_v1 = vld [vmem:[#allocation107_spill] sm:$0xff] }
 0x73b   : > { %9056 = vadd.xlane.f32.xlu0 %v9055_v6  ;;  %v30803_v22 = vpop.f32.mrb[168].mxu1 }
 0x73c   : > { %14517 = vrot.lane.b32.xlu1 %v34367_v29, %s27969_s7  ;;  %v26355_v42 = vpop.f32.mrb[169].mxu1 }
 0x73d   : > { %v30805_v15 = vpop.xlane.xlu1 %9002 }
 0x73f   : > { %v30809_v61 = vpop.f32.mrb[170].mxu1 }
 0x740   : > { %14597 = vrot.lane.b32.xlu1 %v34368_v55, %s27969_s7  ;;  %v26365_v21 = vpop.f32.mrb[171].mxu1  ;;  %v34379_v55 = vld [vmem:[#allocation172_spill] sm:$0xff] }
 0x741   : > { %v14128_v20 = vpop.permute.xlu1 %14127 }
 0x742   : > { %26689 = vmatmul.mubr.msk.f32.vlgmr.msra.gmra.mrb[240].mxu1 %vm1114_vm2, %v14128_v20  ;;  %v34374_v20 = vld [vmem:[#allocation153_spill] sm:$0xff] }
 0x743   : > { %26692 = vmatpush3.xpose.msk.msra.mxu1 %vm1114_vm2, %v14208_v50  ;;  %26693 = vmatprep.mubr.msk.f32.mxu1 %vm27967_vm1, %v34119_v25  ;;  %v30817_v7 = vpop.f32.mrb[172].mxu1  ;;  %v34373_v50 = vld [vmem:[#allocation115_spill] sm:$0xff] }
 0x744   : > { %9612 = vrot.lane.b32.xlu1 %v34369_v23, %s27968_s30  ;;  %26696 = vmatprep.subr.mxu1 %v34119_v25  ;;  %v26375_v53 = vpop.f32.mrb[173].mxu1  ;;  %v8913_v6 = vsub.f32 %v34373_v50, %v34372_v1  ;;  %v30851_v50 = vpop.xlane.xlu0 %9020 }
 0x745   : > { %v34375_v53 = vld [vmem:[#allocation126_spill] sm:$0xff] }
 0x746   : > { %26694 = vmatmul.mubr.msk.f32.vlgmr.msra.gmra.mrb[242].mxu1 %vm1114_vm2, %v14206_v0  ;;  %v8965_v21 = vmul.f32 1.442695, %v8913_v6 }
 0x747   : > { %26697 = vmatpush3.xpose.msk.msra.mxu1 %vm1114_vm2, %v14286_v49  ;;  %26698 = vmatprep.mubr.msk.f32.mxu1 %vm27967_vm1, %v34119_v25  ;;  %v30826_v63 = vpop.f32.mrb[174].mxu1  ;;  %v8919_v49 = vsub.f32 %v34375_v53, %v34374_v20 }
 0x748   : > { %14675 = vrot.lane.b32.xlu1 %v34370_v5, %s27969_s7  ;;  %26701 = vmatprep.subr.mxu1 %v34119_v25  ;;  %v26385_v19 = vpop.f32.mrb[175].mxu1  ;;  %27660 = vpow2.f32 %v8965_v21  ;;  %v30857_v20 = vpop.xlane.xlu0 %9026 }
 0x749   : > { %v8977_v54 = vmul.f32 1.442695, %v8919_v49 }
 0x74b   : > { %v30829_v56 = vpop.f32.mrb[176].mxu1  ;;  %27662 = vpow2.f32 %v8977_v54 }
 0x74c   : > { %v26395_v26 = vpop.f32.mrb[177].mxu1  ;;  %27664 = vrcp.f32 %v30762_v44  ;;  %v34378_v44 = vld [vmem:[#allocation77_spill] sm:$0xff] }
 0x74d   : > { %27666 = vrcp.f32 %v30746_v37 }
 0x74f   : > { %v30831_v8 = vpop.f32.mrb[178].mxu1 }
 0x750   : > { %v26405_v24 = vpop.f32.mrb[179].mxu1 }
 0x751   : > { %10074 = vrot.lane.b32.xlu0 %v34371_v12, %s27968_s30 }
 0x752   : > { %v30849_v1 = vpop.eup %27660 }
 0x753   : > { %v30835_v10 = vpop.f32.mrb[180].mxu1  ;;  %v9049_v6 = vsel %vm1114_vm2, %v30849_v1, 0.0 }
 0x754   : > { %v26415_v31 = vpop.f32.mrb[181].mxu1 }
 0x757   : > { %v30839_v42 = vpop.f32.mrb[182].mxu1 }
 0x758   : > { %v26425_v0 = vpop.f32.mrb[183].mxu1 }
 0x759   : > { %v30855_v0 = vpop.eup %27662 }
 0x75a   : > { %v9067_v21 = vsel %vm1114_vm2, %v30855_v0, 0.0 }
 0x75b   : > { %v30843_v19 = vpop.f32.mrb[184].mxu1 }
 0x75c   : > { %v26435_v26 = vpop.f32.mrb[185].mxu1 }
 0x75f   : > { %v30845_v14 = vpop.f32.mrb[186].mxu1 }
 0x760   : > { %34376 = vst [vmem:[#allocation114_spill] sm:$0xff] %v30845_v14  ;;  %v26445_v24 = vpop.f32.mrb[187].mxu1 }
 0x761   : > { %v27665_v24 = vpop.eup %27664 }
 0x762   : > { %v9117_v37 = vmul.f32 %v27665_v24, %v30491_v36  ;;  %v34382_v24 = vld [vmem:[#allocation102_spill] sm:$0xff] }
 0x763   : > { %v30847_v31 = vpop.f32.mrb[188].mxu1 }
 0x764   : > { %34377 = vst [vmem:[#allocation118_spill] sm:$0xff] %v30847_v31  ;;  %v26455_v5 = vpop.f32.mrb[189].mxu1 }
 0x765   : > { %v14362_v5 = vpop.permute.xlu0 %14361 }
 0x769   : > { %v9305_v49 = vpop.permute.xlu0 %9304 }
 0x76c   : > { %9050 = vadd.xlane.f32.xlu1 %v9049_v6 }
 0x770   : > { %9068 = vadd.xlane.f32.xlu0 %v9067_v21  ;;  %v27667_v21 = vpop.eup %27666 }
 0x772   : > { %v30862_v54 = vpop.xlane.xlu1 %9014 }
 0x776   : > { %v14284_v53 = vpop.permute.xlu1 %14283 }
 0x777   : > { %26699 = vmatmul.mubr.msk.f32.vlgmr.msra.gmra.mrb[244].mxu1 %vm1114_vm2, %v14284_v53  ;;  %v14440_v53 = vpop.permute.xlu0 %14439 }
 0x778   : > { %26703 = vmatprep.mubr.msk.f32.mxu1 %vm27967_vm1, %v34119_v25 }
 0x77a   : > { %v14364_v26 = vpop.permute.xlu1 %14363 }
 0x77b   : > { %26702 = vmatpush3.xpose.msk.msra.mxu1 %vm1114_vm2, %v14364_v26  ;;  %v14520_v36 = vpop.permute.xlu0 %14519 }
 0x77c   : > { %26706 = vmatprep.subr.mxu1 %v34119_v25 }
 0x77d   : > { %9920 = vrot.lane.b32.xlu1 %v34378_v44, %s27968_s30 }
 0x77e   : > { %26704 = vmatmul.mubr.msk.f32.vlgmr.msra.gmra.mrb[246].mxu1 %vm1114_vm2, %v14362_v5  ;;  %v9151_v6 = vpop.permute.xlu1 %9150  ;;  %v9119_v5 = vmul.f32 %v27667_v21, %v34379_v55  ;;  %v34381_v55 = vld [vmem:[#allocation110_spill] sm:$0xff]  ;;  %v34383_v21 = vld [vmem:[#allocation173_spill] sm:$0xff] }
 0x77f   : > { %26307 = vmatpush3.msra.mxu0 %v9151_v6  ;;  %26708 = vmatprep.mubr.msk.f32.mxu1 %vm27967_vm1, %v34119_v25  ;;  %v8917_v6 = vsub.f32 %v34382_v24, %v34381_v55 }
 0x780   : > { %26309 = vmatmul.mubr.msk.f32.vlgmr.msra.gmra.mrb[128].mxu0 %vm1114_vm2, %v9117_v37  ;;  %26316 = vmatprep.subr.mxu0 %v34119_v25 }
 0x781   : > { %26317 = vmatpush3.msra.mxu0 %v9305_v49  ;;  %26318 = vmatprep.mubr.msk.f32.mxu0 %vm27967_vm1, %v34119_v25  ;;  %v34380_v49 = vld [vmem:[#allocation83_spill] sm:$0xff]  ;;  %v8973_v37 = vmul.f32 1.442695, %v8917_v6 }
 0x782   : > { %v14442_v26 = vpop.permute.xlu1 %14441  ;;  %26326 = vmatprep.subr.mxu0 %v34119_v25 }
 0x783   : > { %26707 = vmatpush3.xpose.msk.msra.mxu1 %vm1114_vm2, %v14442_v26  ;;  %v34384_v26 = vld [vmem:[#allocation99_spill] sm:$0xff]  ;;  %27668 = vpow2.f32 %v8973_v37 }
 0x784   : > { %26319 = vmatmul.mubr.msk.f32.vlgmr.msra.gmra.mrb[130].mxu0 %vm1114_vm2, %v9119_v5  ;;  %26711 = vmatprep.subr.mxu1 %v34119_v25  ;;  %v8923_v5 = vsub.f32 %v34384_v26, %v34383_v21 }
 0x785   : > { %26328 = vmatprep.mubr.msk.f32.mxu0 %vm27967_vm1, %v34119_v25 }
 0x786   : > { %10382 = vrot.lane.b32.xlu0 %v34380_v49, %s27968_s30  ;;  %26709 = vmatmul.mubr.msk.f32.vlgmr.msra.gmra.mrb[248].mxu1 %vm1114_vm2, %v14440_v53  ;;  %v8985_v29 = vmul.f32 1.442695, %v8923_v5  ;;  %v34386_v5 = vld [vmem:[#allocation81_spill] sm:$0xff] }
 0x787   : > { %26712 = vmatpush3.xpose.msk.msra.mxu1 %vm1114_vm2, %v14520_v36  ;;  %26713 = vmatprep.mubr.msk.f32.mxu1 %vm27967_vm1, %v34119_v25 }
 0x788   : > { %26716 = vmatprep.subr.mxu1 %v34119_v25  ;;  %27670 = vpow2.f32 %v8985_v29 }
 0x789   : > { %27672 = vrcp.f32 %v30805_v15 }
 0x78a   : > { %27674 = vrcp.f32 %v30789_v11 }
 0x78b   : > { %27676 = vrcp.f32 %v30862_v54 }
 0x78d   : > { %v30898_v43 = vpop.eup %27668 }
 0x78e   : > { %v9061_v53 = vsel %vm1114_vm2, %v30898_v43, 0.0 }
 0x792   : > { %v30902_v36 = vpop.eup %27670 }
 0x793   : > { %v9079_v62 = vsel %vm1114_vm2, %v30902_v36, 0.0 }
 0x7a1   : > { %9062 = vadd.xlane.f32.xlu1 %v9061_v53  ;;  %v30917_v53 = vpop.xlane.xlu0 %9038 }
 0x7a4   : > { %v30906_v34 = vpop.f32.mrb[190].mxu1 }
 0x7a5   : > { %34385 = vst [vmem:[#allocation159_spill] sm:$0xff] %v30906_v34  ;;  %9080 = vadd.xlane.f32.xlu0 %v9079_v62  ;;  %v26465_v55 = vpop.f32.mrb[191].mxu1  ;;  %v30927_v13 = vpop.xlane.xlu0 %9044 }
 0x7a6   : > { %v27673_v55 = vpop.eup %27672 }
 0x7a7   : > { %v27675_v46 = vpop.eup %27674 }
 0x7a8   : > { %v30908_v24 = vpop.f32.mrb[192].mxu1  ;;  %v9123_v33 = vmul.f32 %v27675_v46, %v30485_v57  ;;  %v27677_v60 = vpop.eup %27676 }
 0x7a9   : > { %v26570_v6 = vpop.f32.mrb[193].mxu1 }
 0x7ac   : > { %v30911_v29 = vpop.f32.mrb[194].mxu1 }
 0x7ad   : > { %v26575_v37 = vpop.f32.mrb[195].mxu1 }
 0x7ae   : > { %v9121_v37 = vmul.f32 %v27673_v55, %v30554_v41  ;;  %v14596_v55 = vpop.permute.xlu0 %14595 }
 0x7b0   : > { %v30913_v21 = vpop.f32.mrb[196].mxu1 }
 0x7b1   : > { %v26580_v26 = vpop.f32.mrb[197].mxu1 }
 0x7b2   : > { %10228 = vrot.lane.b32.xlu1 %v34386_v5, %s27968_s30  ;;  %v9767_v39 = vpop.permute.xlu0 %9766 }
 0x7b4   : > { %v30919_v17 = vpop.xlane.xlu1 %9032  ;;  %v30921_v62 = vpop.f32.mrb[198].mxu1 }
 0x7b5   : > { %v26585_v32 = vpop.f32.mrb[199].mxu1 }
 0x7b8   : > { %v9459_v15 = vpop.permute.xlu1 %9458  ;;  %v30924_v6 = vpop.f32.mrb[200].mxu1 }
 0x7b9   : > { %26327 = vmatpush3.msra.mxu0 %v9459_v15  ;;  %v26590_v26 = vpop.f32.mrb[201].mxu1  ;;  %v34388_v15 = vld [vmem:[#allocation167_spill] sm:$0xff] }
 0x7ba   : > { %26329 = vmatmul.mubr.msk.f32.vlgmr.msra.gmra.mrb[132].mxu0 %vm1114_vm2, %v9121_v37  ;;  %26336 = vmatprep.subr.mxu0 %v34119_v25  ;;  %v34389_v37 = vld [vmem:[#allocation127_spill] sm:$0xff] }
 0x7bb   : > { %10844 = vrot.lane.b32.xlu0 %v34387_v48, %s27968_s30  ;;  %26338 = vmatprep.mubr.msk.f32.mxu0 %vm27967_vm1, %v34119_v25  ;;  %v8921_v26 = vsub.f32 %v34389_v37, %v34388_v15 }
 0x7bc   : > { %v14518_v32 = vpop.permute.xlu1 %14517  ;;  %v30936_v11 = vpop.f32.mrb[202].mxu1 }
 0x7bd   : > { %26714 = vmatmul.mubr.msk.f32.vlgmr.msra.gmra.mrb[250].mxu1 %vm1114_vm2, %v14518_v32  ;;  %v26595_v41 = vpop.f32.mrb[203].mxu1  ;;  %v8981_v47 = vmul.f32 1.442695, %v8921_v26 }
 0x7be   : > { %26718 = vmatprep.mubr.msk.f32.mxu1 %vm27967_vm1, %v34119_v25 }
 0x7bf   : > { %27678 = vpow2.f32 %v8981_v47 }
 0x7c0   : > { %v14598_v54 = vpop.permute.xlu1 %14597  ;;  %v12797_v38 = vpop.f32.mrb[204].mxu1  ;;  %27680 = vrcp.f32 %v30851_v50 }
 0x7c1   : > { %26717 = vmatpush3.xpose.msk.msra.mxu1 %vm1114_vm2, %v14598_v54  ;;  %v26600_v4 = vpop.f32.mrb[205].mxu1  ;;  %27682 = vrcp.f32 %v30857_v20 }
 0x7c2   : > { %26721 = vmatprep.subr.mxu1 %v34119_v25  ;;  %27684 = vrcp.f32 %v30919_v17 }
 0x7c3   : > { %27686 = vrcp.f32 %v30917_v53 }
 0x7c4   : > { %26719 = vmatmul.mubr.msk.f32.vlgmr.msra.gmra.mrb[252].mxu1 %vm1114_vm2, %v14596_v55  ;;  %v9613_v32 = vpop.permute.xlu1 %9612  ;;  %v30946_v41 = vpop.f32.mrb[206].mxu1  ;;  %v9125_v55 = vmul.f32 %v27677_v60, %v30610_v51  ;;  %27688 = vrcp.f32 %v30927_v13 }
 0x7c5   : > { %26337 = vmatpush3.msra.mxu0 %v9613_v32  ;;  %v26605_v15 = vpop.f32.mrb[207].mxu1  ;;  %26723 = vmatprep.mubr.msk.f32.mxu1 %vm27967_vm1, %v34119_v25 }
 0x7c6   : > { %26339 = vmatmul.mubr.msk.f32.vlgmr.msra.gmra.mrb[134].mxu0 %vm1114_vm2, %v9123_v33  ;;  %26346 = vmatprep.subr.mxu0 %v34119_v25  ;;  %v14674_v33 = vpop.permute.xlu0 %14673 }
 0x7c7   : > { %26347 = vmatpush3.msra.mxu0 %v9767_v39  ;;  %26348 = vmatprep.mubr.msk.f32.mxu0 %vm27967_vm1, %v34119_v25 }
 0x7c8   : > { %v14676_v4 = vpop.permute.xlu1 %14675  ;;  %26356 = vmatprep.subr.mxu0 %v34119_v25  ;;  %v12953_v57 = vpop.f32.mrb[208].mxu1 }
 0x7c9   : > { %26722 = vmatpush3.xpose.msk.msra.mxu1 %vm1114_vm2, %v14676_v4  ;;  %v26610_v46 = vpop.f32.mrb[209].mxu1  ;;  %v30967_v37 = vpop.eup %27678  ;;  %v30976_v4 = vsel %vm28910_vm3, %v30911_v29, -inf  ;;  %v30992_v29 = vsel %vm28910_vm3, %v30924_v6, -inf  ;;  %v31006_v6 = vsel %vm28910_vm3, %v12953_v57, -inf }
 0x7ca   : > { %26349 = vmatmul.mubr.msk.f32.vlgmr.msra.gmra.mrb[136].mxu0 %vm1114_vm2, %v9125_v55  ;;  %26731 = vmatprep.subr.mxu1 %v34119_v25  ;;  %v9073_v54 = vsel %vm1114_vm2, %v30967_v37, 0.0  ;;  %v14786_v46 = vsel %vm1114_vm2, %v30976_v4, -inf  ;;  %v27681_v34 = vpop.eup %27680 }
 0x7cb   : > { %26358 = vmatprep.mubr.msk.f32.mxu0 %vm27967_vm1, %v34119_v25  ;;  %v9127_v31 = vmul.f32 %v27681_v34, %v30558_v27  ;;  %v27683_v14 = vpop.eup %27682 }
 0x7cc   : > { %26724 = vmatmul.mubr.msk.f32.vlgmr.msra.gmra.mrb[254].mxu1 %vm1114_vm2, %v14674_v33  ;;  %v30963_v47 = vpop.f32.mrb[210].mxu1 }
 0x7cd   : > { %v26615_v39 = vpop.f32.mrb[211].mxu1  ;;  %26733 = vmatprep.mubr.msk.f32.mxu1 %vm27967_vm1, %v34119_v25 }
 0x7ce   : > { %v30983_v39 = vsel %vm28910_vm3, %v30913_v21, -inf  ;;  %v30998_v21 = vsel %vm28910_vm3, %v12797_v38, -inf  ;;  %v14807_v38 = vsel %vm1114_vm2, %v31006_v6, -inf }
 0x7d0   : > { %v13109_v60 = vpop.f32.mrb[212].mxu1 }
 0x7d1   : > { %v26620_v51 = vpop.f32.mrb[213].mxu1 }
 0x7d4   : > { %v30969_v26 = vpop.f32.mrb[214].mxu1 }
 0x7d5   : > { %v26625_v32 = vpop.f32.mrb[215].mxu1  ;;  %v31136_v53 = vsel %vm28910_vm3, %v30969_v26, -inf }
 0x7d6   : > { %9074 = vadd.xlane.f32.xlu1 %v9073_v54  ;;  %v14789_v32 = vsel %vm1114_vm2, %v30983_v39, -inf }
 0x7d8   : > { %v13265_v55 = vpop.f32.mrb[216].mxu1 }
 0x7d9   : > { %v26630_v33 = vpop.f32.mrb[217].mxu1 }
 0x7da   : > { %14787 = vmax.xlane.f32.xlu0 %v14786_v46  ;;  %v14795_v33 = vsel %vm1114_vm2, %v30992_v29, -inf }
 0x7dc   : > { %v30985_v51 = vpop.f32.mrb[218].mxu1 }
 0x7dd   : > { %v26635_v48 = vpop.f32.mrb[219].mxu1 }
 0x7de   : > { %14790 = vmax.xlane.f32.xlu0 %v14789_v32  ;;  %v14801_v48 = vsel %vm1114_vm2, %v30998_v21, -inf  ;;  %v34391_v32 = vld [vmem:[#allocation85_spill] sm:$0xff] }
 0x7e0   : > { %v13421_v54 = vpop.f32.mrb[220].mxu1 }
 0x7e1   : > { %v26640_v49 = vpop.f32.mrb[221].mxu1  ;;  %v31033_v18 = vsel %vm28910_vm3, %v13421_v54, -inf  ;;  %v34395_v54 = vld [vmem:[#allocation95_spill] sm:$0xff] }
 0x7e2   : > { %14796 = vmax.xlane.f32.xlu0 %v14795_v33  ;;  %v31014_v33 = vsel %vm28910_vm3, %v13109_v60, -inf  ;;  %v14825_v50 = vsel %vm1114_vm2, %v31033_v18, -inf }
 0x7e3   : > { %v14813_v57 = vsel %vm1114_vm2, %v31014_v33, -inf }
 0x7e4   : > { %v31000_v46 = vpop.f32.mrb[222].mxu1 }
 0x7e5   : > { %v26645_v5 = vpop.f32.mrb[223].mxu1 }
 0x7e6   : > { %14802 = vmax.xlane.f32.xlu0 %v14801_v48  ;;  %v34392_v5 = vld [vmem:[#allocation87_spill] sm:$0xff] }
 0x7e7   : > { %10536 = vrot.lane.b32.xlu1 %v34391_v32, %s27968_s30  ;;  %v31024_v32 = vsel %vm28910_vm3, %v13265_v55, -inf }
 0x7e8   : > { %v13577_v49 = vpop.f32.mrb[224].mxu1 }
 0x7e9   : > { %v26650_v12 = vpop.f32.mrb[225].mxu1 }
 0x7ea   : > { %14808 = vmax.xlane.f32.xlu0 %v14807_v38  ;;  %v34393_v12 = vld [vmem:[#allocation91_spill] sm:$0xff]  ;;  %v14819_v38 = vsel %vm1114_vm2, %v31024_v32, -inf }
 0x7eb   : > { %10690 = vrot.lane.b32.xlu1 %v34392_v5, %s27968_s30 }
 0x7ec   : > { %v31018_v44 = vpop.f32.mrb[226].mxu1 }
 0x7ed   : > { %v26655_v48 = vpop.f32.mrb[227].mxu1 }
 0x7ee   : > { %14814 = vmax.xlane.f32.xlu0 %v14813_v57  ;;  %v34394_v48 = vld [vmem:[#allocation93_spill] sm:$0xff] }
 0x7ef   : > { %10998 = vrot.lane.b32.xlu1 %v34393_v12, %s27968_s30  ;;  %v31044_v12 = vsel %vm28910_vm3, %v13577_v49, -inf  ;;  %v34396_v49 = vld [vmem:[#allocation97_spill] sm:$0xff] }
 0x7f0   : > { %v13733_v60 = vpop.f32.mrb[228].mxu1  ;;  %v14831_v20 = vsel %vm1114_vm2, %v31044_v12, -inf }
 0x7f1   : > { %v26660_v5 = vpop.f32.mrb[229].mxu1 }
 0x7f2   : > { %14820 = vmax.xlane.f32.xlu0 %v14819_v38  ;;  %v31048_v5 = vpop.xlane.xlu0 %9056 }
 0x7f3   : > { %11152 = vrot.lane.b32.xlu1 %v34394_v48, %s27968_s30 }
 0x7f4   : > { %v31038_v55 = vpop.f32.mrb[230].mxu1 }
 0x7f5   : > { %v26665_v57 = vpop.f32.mrb[231].mxu1 }
 0x7f6   : > { %14826 = vmax.xlane.f32.xlu0 %v14825_v50  ;;  %v31056_v57 = vsel %vm28910_vm3, %v13733_v60, -inf }
 0x7f7   : > { %11306 = vrot.lane.b32.xlu1 %v34395_v54, %s27968_s30  ;;  %v14837_v54 = vsel %vm1114_vm2, %v31056_v57, -inf }
 0x7f8   : > { %v13889_v38 = vpop.f32.mrb[232].mxu1 }
 0x7f9   : > { %v31052_v48 = vpop.xlane.xlu1 %9050  ;;  %v26670_v23 = vpop.f32.mrb[233].mxu1 }
 0x7fa   : > { %14832 = vmax.xlane.f32.xlu0 %v14831_v20  ;;  %v31067_v23 = vsel %vm28910_vm3, %v13889_v38, -inf  ;;  %v10075_v20 = vpop.permute.xlu0 %10074  ;;  %v9129_v38 = vmul.f32 %v27683_v14, %v30562_v9  ;;  %27690 = vrcp.f32 %v31052_v48 }
 0x7fb   : > { %11460 = vrot.lane.b32.xlu1 %v34396_v49, %s27968_s30  ;;  %v14843_v27 = vsel %vm1114_vm2, %v31067_v23, -inf  ;;  %27692 = vrcp.f32 %v31048_v5 }
 0x7fc   : > { %v31060_v50 = vpop.f32.mrb[234].mxu1 }
 0x7fd   : > { %v9921_v35 = vpop.permute.xlu1 %9920  ;;  %v26675_v60 = vpop.f32.mrb[235].mxu1 }
 0x7fe   : > { %26357 = vmatpush3.msra.mxu0 %v9921_v35  ;;  %14838 = vmax.xlane.f32.xlu0 %v14837_v54 }
 0x7ff   : > { %26359 = vmatmul.mubr.msk.f32.vlgmr.msra.gmra.mrb[138].mxu0 %vm1114_vm2, %v9127_v31  ;;  %26366 = vmatprep.subr.mxu0 %v34119_v25 }
 0x800   : > { %26367 = vmatpush3.msra.mxu0 %v10075_v20  ;;  %v14045_v49 = vpop.f32.mrb[236].mxu1  ;;  %26368 = vmatprep.mubr.msk.f32.mxu0 %vm27967_vm1, %v34119_v25 }
 0x801   : > { %v26680_v34 = vpop.f32.mrb[237].mxu1  ;;  %26376 = vmatprep.subr.mxu0 %v34119_v25  ;;  %v31079_v35 = vsel %vm28910_vm3, %v14045_v49, -inf }
 0x802   : > { %34397 = vst [vmem:[#allocation100_spill] sm:$0xff] %v31079_v35  ;;  %14844 = vmax.xlane.f32.xlu0 %v14843_v27  ;;  %v14849_v54 = vsel %vm1114_vm2, %v31079_v35, -inf }
 0x803   : > { %26369 = vmatmul.mubr.msk.f32.vlgmr.msra.gmra.mrb[140].mxu0 %vm1114_vm2, %v9129_v38  ;;  %v31095_v38 = vsel %vm28910_vm3, %v30908_v24, -inf }
 0x804   : > { %v14123_v31 = vpop.f32.mrb[238].mxu1  ;;  %26378 = vmatprep.mubr.msk.f32.mxu0 %vm27967_vm1, %v34119_v25 }
 0x805   : > { %v26685_v60 = vpop.f32.mrb[239].mxu1 }
 0x806   : > { %14850 = vmax.xlane.f32.xlu0 %v14849_v54  ;;  %v14783_v54 = vsel %vm1114_vm2, %v31095_v38, -inf  ;;  %v31102_v60 = vsel %vm28910_vm3, %v30921_v62, -inf  ;;  %v31117_v62 = vsel %vm28910_vm3, %v30946_v41, -inf  ;;  %v27685_v41 = vpop.eup %27684 }
 0x815   : > { %v14201_v20 = vpop.f32.mrb[240].mxu1 }
 0x816   : > { %v31088_v9 = vsel %vm28910_vm3, %v14201_v20, -inf  ;;  %v26690_v14 = vpop.f32.mrb[241].mxu1  ;;  %v14792_v20 = vsel %vm1114_vm2, %v31102_v60, -inf }
 0x817   : > { %34398 = vst [vmem:[#allocation112_spill] sm:$0xff] %v31088_v9  ;;  %v14855_v49 = vsel %vm1114_vm2, %v31088_v9, -inf  ;;  %v31109_v14 = vsel %vm28910_vm3, %v30936_v11, -inf  ;;  %v31125_v11 = vsel %vm28910_vm3, %v30963_v47, -inf  ;;  %v31144_v9 = vsel %vm28910_vm3, %v30985_v51, -inf }
 0x818   : > { %14856 = vmax.xlane.f32.xlu0 %v14855_v49  ;;  %v14798_v24 = vsel %vm1114_vm2, %v31109_v14, -inf  ;;  %v14804_v49 = vsel %vm1114_vm2, %v31117_v62, -inf  ;;  %v14810_v17 = vsel %vm1114_vm2, %v31125_v11, -inf  ;;  %v31157_v51 = vsel %vm28910_vm3, %v31000_v46, -inf }
 0x819   : > { %v14279_v27 = vpop.f32.mrb[242].mxu1  ;;  %v31174_v46 = vsel %vm28910_vm3, %v31038_v55, -inf }
 0x81a   : > { %v26695_v34 = vpop.f32.mrb[243].mxu1 }
 0x81b   : > { %v31129_v34 = vpop.xlane.xlu0 %9068 }
 0x81f   : > { %14784 = vmax.xlane.f32.xlu1 %v14783_v54  ;;  %v10383_v35 = vpop.permute.xlu0 %10382 }
 0x823   : > { %14793 = vmax.xlane.f32.xlu1 %v14792_v20  ;;  %v14816_v20 = vsel %vm1114_vm2, %v31136_v53, -inf }
 0x827   : > { %14799 = vmax.xlane.f32.xlu1 %v14798_v24  ;;  %v9131_v24 = vmul.f32 %v27685_v41, %v30756_v30  ;;  %v14822_v30 = vsel %vm1114_vm2, %v31144_v9, -inf  ;;  %v14840_v41 = vsel %vm1114_vm2, %v31174_v46, -inf }
 0x82b   : > { %14805 = vmax.xlane.f32.xlu1 %v14804_v49  ;;  %v27687_v49 = vpop.eup %27686 }
 0x82c   : > { %v9133_v26 = vmul.f32 %v27687_v49, %v30655_v28  ;;  %v31167_v28 = vsel %vm28910_vm3, %v31018_v44, -inf  ;;  %v31193_v49 = vsel %vm28910_vm3, %v14279_v27, -inf }
 0x82e   : > { %v31131_v54 = vpop.xlane.xlu1 %9062 }
 0x82f   : > { %14811 = vmax.xlane.f32.xlu1 %v14810_v17  ;;  %v14834_v17 = vsel %vm1114_vm2, %v31167_v28, -inf  ;;  %27694 = vrcp.f32 %v31131_v54 }
 0x830   : > { %27696 = vrcp.f32 %v31129_v34 }
 0x832   : > { %v10229_v47 = vpop.permute.xlu1 %10228 }
 0x833   : > { %26377 = vmatpush3.msra.mxu0 %v10229_v47  ;;  %14817 = vmax.xlane.f32.xlu1 %v14816_v20  ;;  %v31181_v20 = vsel %vm28910_vm3, %v31060_v50, -inf  ;;  %v31187_v47 = vsel %vm28910_vm3, %v14123_v31, -inf  ;;  %v14858_v31 = vsel %vm1114_vm2, %v31193_v49, -inf }
 0x834   : > { %26379 = vmatmul.mubr.msk.f32.vlgmr.msra.gmra.mrb[142].mxu0 %vm1114_vm2, %v9131_v24  ;;  %26386 = vmatprep.subr.mxu0 %v34119_v25  ;;  %v14846_v44 = vsel %vm1114_vm2, %v31181_v20, -inf  ;;  %v14852_v55 = vsel %vm1114_vm2, %v31187_v47, -inf }
 0x835   : > { %26387 = vmatpush3.msra.mxu0 %v10383_v35  ;;  %26388 = vmatprep.mubr.msk.f32.mxu0 %vm27967_vm1, %v34119_v25  ;;  %v14828_v35 = vsel %vm1114_vm2, %v31157_v51, -inf }
 0x836   : > { %26396 = vmatprep.subr.mxu0 %v34119_v25 }
 0x837   : > { %14823 = vmax.xlane.f32.xlu1 %v14822_v30 }
 0x838   : > { %26389 = vmatmul.mubr.msk.f32.vlgmr.msra.gmra.mrb[144].mxu0 %vm1114_vm2, %v9133_v26 }
 0x839   : > { %26398 = vmatprep.mubr.msk.f32.mxu0 %vm27967_vm1, %v34119_v25 }
 0x83b   : > { %14829 = vmax.xlane.f32.xlu1 %v14828_v35 }
 0x83f   : > { %14835 = vmax.xlane.f32.xlu1 %v14834_v17 }
 0x843   : > { %14841 = vmax.xlane.f32.xlu1 %v14840_v41 }
 0x847   : > { %14847 = vmax.xlane.f32.xlu1 %v14846_v44 }
 0x84a   : > { %v14357_v24 = vpop.f32.mrb[244].mxu1 }
 0x84b   : > { %14853 = vmax.xlane.f32.xlu1 %v14852_v55  ;;  %v31197_v50 = vsel %vm28910_vm3, %v14357_v24, -inf  ;;  %v26700_v30 = vpop.f32.mrb[245].mxu1 }
 0x84c   : > { %34399 = vst [vmem:[#allocation104_spill] sm:$0xff] %v31197_v50  ;;  %v14861_v26 = vsel %vm1114_vm2, %v31197_v50, -inf }
 0x84d   : > { %14862 = vmax.xlane.f32.xlu0 %v14861_v26 }
 0x84f   : > { %14859 = vmax.xlane.f32.xlu1 %v14858_v31 }
 0x851   : > { %v14435_v35 = vpop.f32.mrb[246].mxu1 }
 0x852   : > { %v31205_v17 = vsel %vm28910_vm3, %v14435_v35, -inf  ;;  %v26705_v27 = vpop.f32.mrb[247].mxu1 }
 0x853   : > { %34400 = vst [vmem:[#allocation166_spill] sm:$0xff] %v31205_v17  ;;  %v14864_v41 = vsel %vm1114_vm2, %v31205_v17, -inf  ;;  %v31209_v44 = vpop.f32.mrb[128].mxu0 }
 0x854   : > { %v26310_v55 = vpop.f32.mrb[129].mxu0  ;;  %14865 = vmax.xlane.f32.xlu1 %v14864_v41 }
 0x855   : > { %v27689_v55 = vpop.eup %27688 }
 0x856   : > { %v9135_v13 = vmul.f32 %v27689_v55, %v30668_v58  ;;  %v27691_v50 = vpop.eup %27690 }
 0x857   : > { %v31211_v24 = vpop.f32.mrb[130].mxu0  ;;  %v9137_v5 = vmul.f32 %v27691_v50, %v30849_v1 }
 0x858   : > { %v26320_v30 = vpop.f32.mrb[131].mxu0 }
 0x859   : > { %v14513_v26 = vpop.f32.mrb[248].mxu1  ;;  %v9081_v30 = vpop.xlane.xlu0 %9080 }
 0x85a   : > { %v31216_v31 = vsel %vm28910_vm3, %v14513_v26, -inf  ;;  %v26710_v35 = vpop.f32.mrb[249].mxu1  ;;  %v27693_v26 = vpop.eup %27692 }
 0x85b   : > { %v14867_v27 = vsel %vm1114_vm2, %v31216_v31, -inf  ;;  %v9139_v34 = vmul.f32 %v27693_v26, %v30793_v3 }
 0x85c   : > { %14868 = vmax.xlane.f32.xlu0 %v14867_v27 }
 0x85d   : > { %v10845_v54 = vpop.permute.xlu0 %10844 }
 0x863   : > { %v9075_v41 = vpop.xlane.xlu1 %9074 }
 0x864   : > { %27698 = vrcp.f32 %v9075_v41 }
 0x865   : > { %27700 = vrcp.f32 %v9081_v30 }
 0x867   : > { %v10537_v17 = vpop.permute.xlu1 %10536 }
 0x868   : > { %26397 = vmatpush3.msra.mxu0 %v10537_v17  ;;  %v27695_v17 = vpop.eup %27694 }
 0x869   : > { %26399 = vmatmul.mubr.msk.f32.vlgmr.msra.gmra.mrb[146].mxu0 %vm1114_vm2, %v9135_v13  ;;  %26406 = vmatprep.subr.mxu0 %v34119_v25  ;;  %v9141_v50 = vmul.f32 %v27695_v17, %v30898_v43  ;;  %v27697_v35 = vpop.eup %27696  ;;  %v1106_v13 = vld [vmem:[%s33749_s4 + $0x8] sm:$0xff] }
 0x86a   : > { %26408 = vmatprep.mubr.msk.f32.mxu0 %vm27967_vm1, %v34119_v25  ;;  %v9143_v27 = vmul.f32 %v27697_v35, %v30855_v0 }
 0x86b   : > { %v10691_v48 = vpop.permute.xlu1 %10690 }
 0x86c   : > { %26407 = vmatpush3.msra.mxu0 %v10691_v48 }
 0x86d   : > { %26409 = vmatmul.mubr.msk.f32.vlgmr.msra.gmra.mrb[148].mxu0 %vm1114_vm2, %v9137_v5  ;;  %26416 = vmatprep.subr.mxu0 %v34119_v25 }
 0x86e   : > { %26417 = vmatpush3.msra.mxu0 %v10845_v54  ;;  %26418 = vmatprep.mubr.msk.f32.mxu0 %vm27967_vm1, %v34119_v25  ;;  %v27699_v41 = vpop.eup %27698 }
 0x86f   : > { %v10999_v58 = vpop.permute.xlu1 %10998  ;;  %26426 = vmatprep.subr.mxu0 %v34119_v25  ;;  %v9145_v55 = vmul.f32 %v27699_v41, %v30967_v37  ;;  %v27701_v30 = vpop.eup %27700 }
 0x870   : > { %v9147_v0 = vmul.f32 %v27701_v30, %v30902_v36  ;;  %v14788_v37 = vpop.xlane.xlu0 %14787 }
 0x871   : > { %26419 = vmatmul.mubr.msk.f32.vlgmr.msra.gmra.mrb[150].mxu0 %vm1114_vm2, %v9139_v34  ;;  %v14880_v36 = vsub.f32 %v30976_v4, %v14788_v37 }
 0x872   : > { %26427 = vmatpush3.msra.mxu0 %v10999_v58  ;;  %26428 = vmatprep.mubr.msk.f32.mxu0 %vm27967_vm1, %v34119_v25 }
 0x873   : > { %v11153_v1 = vpop.permute.xlu1 %11152  ;;  %26436 = vmatprep.subr.mxu0 %v34119_v25 }
 0x875   : > { %26429 = vmatmul.mubr.msk.f32.vlgmr.msra.gmra.mrb[152].mxu0 %vm1114_vm2, %v9141_v50  ;;  %v14791_v50 = vpop.xlane.xlu0 %14790 }
 0x876   : > { %26437 = vmatpush3.msra.mxu0 %v11153_v1  ;;  %26438 = vmatprep.mubr.msk.f32.mxu0 %vm27967_vm1, %v34119_v25 }
 0x877   : > { %v11307_v3 = vpop.permute.xlu1 %11306  ;;  %26446 = vmatprep.subr.mxu0 %v34119_v25 }
 0x879   : > { %26439 = vmatmul.mubr.msk.f32.vlgmr.msra.gmra.mrb[154].mxu0 %vm1114_vm2, %v9143_v27 }
 0x87a   : > { %26447 = vmatpush3.msra.mxu0 %v11307_v3  ;;  %26448 = vmatprep.mubr.msk.f32.mxu0 %vm27967_vm1, %v34119_v25 }
 0x87b   : > { %v11461_v43 = vpop.permute.xlu1 %11460  ;;  %26456 = vmatprep.subr.mxu0 %v34119_v25 }
 0x87d   : > { %26449 = vmatmul.mubr.msk.f32.vlgmr.msra.gmra.mrb[156].mxu0 %vm1114_vm2, %v9145_v55 }
 0x87e   : > { %26457 = vmatpush3.msra.mxu0 %v11461_v43  ;;  %26458 = vmatprep.mubr.msk.f32.mxu0 %vm27967_vm1, %v34119_v25 }
 0x87f   : > { %26466 = vmatprep.subr.mxu0 %v1106_v13 }
 0x881   : > { %26459 = vmatmul.mubr.msk.f32.vlgmr.msra.gmra.mrb[158].mxu0 %vm1114_vm2, %v9147_v0 }
 0x882   : > { %26468 = vmatprep.mubr.msk.f32.mxu0 %vm1114_vm2, %v31209_v44  ;;  %26467 = vmatpush3.msra.mxu0 %v1106_v13 }
 0x885   : > { %26469 = vmatmul.mubr.msk.f32.vlgmr.msra.gmra.mrb[160].mxu0 %vm1114_vm2, %v30774_v2 }
 0x886   : > { %26471 = vmatprep.mubr.msk.f32.mxu0 %vm1114_vm2, %v31211_v24 }
 0x889   : > { %26472 = vmatmul.mubr.msk.f32.gmra.mrb[162].mxu0 %vm1114_vm2, %v30782_v52  ;;  %v14913_v52 = vmul.f32 1.442695, %v14880_v36 }
 0x88b   : > { %27702 = vpow2.f32 %v14913_v52 }
 0x88d   : > { %v9530_v48 = vpop.f32.mrb[132].mxu0 }
 0x88e   : > { %v26330_v5 = vpop.f32.mrb[133].mxu0  ;;  %26474 = vmatprep.mubr.msk.f32.mxu0 %vm1114_vm2, %v9530_v48 }
 0x88f   : > { %26475 = vmatmul.mubr.msk.f32.gmra.mrb[164].mxu0 %vm1114_vm2, %v30791_v16 }
 0x890   : > { %v14591_v44 = vpop.f32.mrb[250].mxu1 }
 0x891   : > { %v31273_v2 = vsel %vm28910_vm3, %v14591_v44, -inf  ;;  %v26715_v26 = vpop.f32.mrb[251].mxu1 }
 0x892   : > { %v14870_v24 = vsel %vm1114_vm2, %v31273_v2, -inf }
 0x893   : > { %14871 = vmax.xlane.f32.xlu1 %v14870_v24 }
 0x895   : > { %v31295_v55 = vpop.eup %27702 }
 0x896   : > { %v14978_v30 = vsel %vm1114_vm2, %v31295_v55, 0.0 }
 0x897   : > { %v14669_v54 = vpop.f32.mrb[252].mxu1 }
 0x898   : > { %v31279_v58 = vsel %vm28910_vm3, %v14669_v54, -inf  ;;  %v26720_v16 = vpop.f32.mrb[253].mxu1 }
 0x899   : > { %v14873_v4 = vsel %vm1114_vm2, %v31279_v58, -inf  ;;  %v9684_v34 = vpop.f32.mrb[134].mxu0 }
 0x89a   : > { %v26340_v17 = vpop.f32.mrb[135].mxu0  ;;  %26477 = vmatprep.mubr.msk.f32.mxu0 %vm1114_vm2, %v9684_v34  ;;  %14874 = vmax.xlane.f32.xlu0 %v14873_v4 }
 0x89b   : > { %26478 = vmatmul.mubr.msk.f32.gmra.mrb[166].mxu0 %vm1114_vm2, %v30797_v59  ;;  %v14797_v59 = vpop.xlane.xlu0 %14796 }
 0x89c   : > { %v14883_v5 = vsub.f32 %v30992_v29, %v14797_v59 }
 0x89d   : > { %v9838_v1 = vpop.f32.mrb[136].mxu0 }
 0x89e   : > { %v26350_v35 = vpop.f32.mrb[137].mxu0  ;;  %26480 = vmatprep.mubr.msk.f32.mxu0 %vm1114_vm2, %v9838_v1  ;;  %v14919_v52 = vmul.f32 1.442695, %v14883_v5 }
 0x89f   : > { %26481 = vmatmul.mubr.msk.f32.gmra.mrb[168].mxu0 %vm1114_vm2, %v30803_v22  ;;  %v14747_v3 = vpop.f32.mrb[254].mxu1  ;;  %v14803_v13 = vpop.xlane.xlu0 %14802  ;;  %v14881_v22 = vsub.f32 %v30983_v39, %v14791_v50 }
 0x8a0   : > { %v31291_v27 = vsel %vm28910_vm3, %v14747_v3, -inf  ;;  %v26725_v41 = vpop.f32.mrb[255].mxu1  ;;  %v14885_v54 = vsub.f32 %v30998_v21, %v14803_v13 }
 0x8a1   : > { %v14876_v43 = vsel %vm1114_vm2, %v31291_v27, -inf  ;;  %v14915_v48 = vmul.f32 1.442695, %v14881_v22 }
 0x8a2   : > { %14877 = vmax.xlane.f32.xlu1 %v14876_v43 }
 0x8a3   : > { %v14809_v44 = vpop.xlane.xlu0 %14808 }
 0x8a4   : > { %v14887_v29 = vsub.f32 %v31006_v6, %v14809_v44 }
 0x8a6   : > { %14979 = vadd.xlane.f32.xlu1 %v14978_v30  ;;  %v14927_v35 = vmul.f32 1.442695, %v14887_v29 }
 0x8a7   : > { %v14815_v34 = vpop.xlane.xlu0 %14814 }
 0x8a8   : > { %v14889_v21 = vsub.f32 %v31014_v33, %v14815_v34 }
 0x8ab   : > { %v14821_v41 = vpop.xlane.xlu0 %14820 }
 0x8ac   : > { %v14785_v0 = vpop.xlane.xlu1 %14784  ;;  %v14891_v13 = vsub.f32 %v31024_v32, %v14821_v41 }
 0x8ad   : > { %v14879_v37 = vsub.f32 %v31095_v38, %v14785_v0  ;;  %v14923_v38 = vmul.f32 1.442695, %v14885_v54 }
 0x8af   : > { %v14911_v36 = vmul.f32 1.442695, %v14879_v37 }
 0x8b0   : > { %v14794_v26 = vpop.xlane.xlu1 %14793 }
 0x8b1   : > { %27704 = vpow2.f32 %v14911_v36  ;;  %v14882_v24 = vsub.f32 %v31102_v60, %v14794_v26  ;;  %v14935_v36 = vmul.f32 1.442695, %v14891_v13 }
 0x8b2   : > { %27706 = vpow2.f32 %v14915_v48 }
 0x8b3   : > { %v14917_v16 = vmul.f32 1.442695, %v14882_v24 }
 0x8b4   : > { %v14800_v4 = vpop.xlane.xlu1 %14799 }
 0x8b5   : > { %27708 = vpow2.f32 %v14917_v16  ;;  %v14884_v39 = vsub.f32 %v31109_v14, %v14800_v4 }
 0x8b6   : > { %27710 = vpow2.f32 %v14919_v52 }
 0x8b7   : > { %v14921_v17 = vmul.f32 1.442695, %v14884_v39 }
 0x8b8   : > { %v14806_v1 = vpop.xlane.xlu1 %14805 }
 0x8b9   : > { %27712 = vpow2.f32 %v14921_v17  ;;  %v14886_v50 = vsub.f32 %v31117_v62, %v14806_v1  ;;  %v14931_v62 = vmul.f32 1.442695, %v14889_v21 }
 0x8ba   : > { %27714 = vpow2.f32 %v14923_v38 }
 0x8bb   : > { %v31307_v60 = vpop.eup %27704  ;;  %v14925_v3 = vmul.f32 1.442695, %v14886_v50 }
 0x8bc   : > { %v14812_v43 = vpop.xlane.xlu1 %14811  ;;  %v14975_v14 = vsel %vm1114_vm2, %v31307_v60, 0.0  ;;  %v31312_v59 = vpop.eup %27706 }
 0x8bd   : > { %27716 = vpow2.f32 %v14925_v3  ;;  %v14888_v6 = vsub.f32 %v31125_v11, %v14812_v43  ;;  %14976 = vadd.xlane.f32.xlu0 %v14975_v14  ;;  %v14981_v0 = vsel %vm1114_vm2, %v31312_v59, 0.0  ;;  %v1105_v14 = vld [vmem:[%s33749_s4] sm:$0xff] }
 0x8be   : > { %27718 = vpow2.f32 %v14927_v35  ;;  %26516 = vmatprep.subr.mxu0 %v1105_v14 }
 0x8bf   : > { %v31315_v30 = vpop.eup %27708  ;;  %v14929_v22 = vmul.f32 1.442695, %v14888_v6  ;;  %26517 = vmatpush3.msra.mxu0 %v1105_v14 }
 0x8c0   : > { %v14818_v33 = vpop.xlane.xlu1 %14817  ;;  %v14984_v37 = vsel %vm1114_vm2, %v31315_v30, 0.0  ;;  %v31322_v48 = vpop.eup %27710  ;;  %26726 = vmatprep.subr.mxu0 %v34119_v25 }
 0x8c1   : > { %27720 = vpow2.f32 %v14929_v22  ;;  %v14890_v11 = vsub.f32 %v31136_v53, %v14818_v33  ;;  %14982 = vadd.xlane.f32.xlu0 %v14981_v0  ;;  %14985 = vadd.xlane.f32.xlu1 %v14984_v37  ;;  %v14987_v44 = vsel %vm1114_vm2, %v31322_v48, 0.0 }
 0x8c2   : > { %27722 = vpow2.f32 %v14931_v62  ;;  %v14827_v62 = vpop.xlane.xlu0 %14826 }
 0x8c3   : > { %v31325_v5 = vpop.eup %27712  ;;  %v14933_v32 = vmul.f32 1.442695, %v14890_v11 }
 0x8c4   : > { %v14990_v26 = vsel %vm1114_vm2, %v31325_v5, 0.0  ;;  %v31331_v24 = vpop.eup %27714  ;;  %v14824_v6 = vpop.xlane.xlu1 %14823 }
 0x8c5   : > { %27724 = vpow2.f32 %v14933_v32  ;;  %14988 = vadd.xlane.f32.xlu0 %v14987_v44  ;;  %14991 = vadd.xlane.f32.xlu1 %v14990_v26  ;;  %v14993_v53 = vsel %vm1114_vm2, %v31331_v24, 0.0  ;;  %v14892_v13 = vsub.f32 %v31144_v9, %v14824_v6 }
 0x8c6   : > { %27726 = vpow2.f32 %v14935_v36 }
 0x8c7   : > { %v31333_v52 = vpop.eup %27716  ;;  %v14937_v33 = vmul.f32 1.442695, %v14892_v13 }
 0x8c8   : > { %v14996_v54 = vsel %vm1114_vm2, %v31333_v52, 0.0  ;;  %v31339_v16 = vpop.eup %27718  ;;  %v14830_v22 = vpop.xlane.xlu1 %14829 }
 0x8c9   : > { %14994 = vadd.xlane.f32.xlu0 %v14993_v53  ;;  %14997 = vadd.xlane.f32.xlu1 %v14996_v54  ;;  %v14999_v39 = vsel %vm1114_vm2, %v31339_v16, 0.0  ;;  %v14894_v0 = vsub.f32 %v31157_v51, %v14830_v22  ;;  %27728 = vpow2.f32 %v14937_v33 }
 0x8cb   : > { %v31341_v4 = vpop.eup %27720  ;;  %v14941_v11 = vmul.f32 1.442695, %v14894_v0 }
 0x8cc   : > { %v15002_v34 = vsel %vm1114_vm2, %v31341_v4, 0.0  ;;  %v31347_v38 = vpop.eup %27722 }
 0x8cd   : > { %15000 = vadd.xlane.f32.xlu0 %v14999_v39  ;;  %15003 = vadd.xlane.f32.xlu1 %v15002_v34  ;;  %v15005_v17 = vsel %vm1114_vm2, %v31347_v38, 0.0  ;;  %v34402_v34 = vld [vmem:[#allocation26_spill] sm:$0xff] }
 0x8cf   : > { %v31349_v29 = vpop.eup %27724 }
 0x8d0   : > { %v15008_v1 = vsel %vm1114_vm2, %v31349_v29, 0.0  ;;  %v31355_v50 = vpop.eup %27726 }
 0x8d1   : > { %15006 = vadd.xlane.f32.xlu0 %v15005_v17  ;;  %15009 = vadd.xlane.f32.xlu1 %v15008_v1  ;;  %v15011_v3 = vsel %vm1114_vm2, %v31355_v50, 0.0  ;;  %v14836_v17 = vpop.xlane.xlu1 %14835 }
 0x8d2   : > { %v9992_v35 = vpop.f32.mrb[138].mxu0 }
 0x8d3   : > { %v26360_v21 = vpop.f32.mrb[139].mxu0  ;;  %26483 = vmatprep.mubr.msk.f32.mxu0 %vm1114_vm2, %v9992_v35  ;;  %v31376_v36 = vpop.eup %27728 }
 0x8d4   : > { %26484 = vmatmul.mubr.msk.f32.gmra.mrb[170].mxu0 %vm1114_vm2, %v30809_v61  ;;  %v34401_v61 = vld [vmem:[#allocation19_spill] sm:$0xff]  ;;  %v15014_v44 = vsel %vm1114_vm2, %v31376_v36, 0.0  ;;  %v14896_v21 = vsub.f32 %v31167_v28, %v14836_v17 }
 0x8d5   : > { %15012 = vadd.xlane.f32.xlu0 %v15011_v3  ;;  %v31398_v1 = vpop.xlane.xlu1 %14841 }
 0x8d6   : > { %v10146_v41 = vpop.f32.mrb[140].mxu0 }
 0x8d7   : > { %v26370_v43 = vpop.f32.mrb[141].mxu0  ;;  %26486 = vmatprep.mubr.msk.f32.mxu0 %vm1114_vm2, %v10146_v41 }
 0x8d8   : > { %26487 = vmatmul.mubr.msk.f32.gmra.mrb[172].mxu0 %vm1114_vm2, %v30817_v7  ;;  %v14893_v7 = vsub.f32 %v31033_v18, %v14827_v62 }
 0x8d9   : > { %v31404_v43 = vpop.xlane.xlu1 %14847 }
 0x8da   : > { %v14939_v37 = vmul.f32 1.442695, %v14893_v7 }
 0x8dc   : > { %27730 = vpow2.f32 %v14939_v37 }
 0x8dd   : > { %27732 = vpow2.f32 %v14941_v11  ;;  %v31408_v6 = vpop.xlane.xlu1 %14853 }
 0x8e1   : > { %v31412_v13 = vpop.xlane.xlu1 %14859 }
 0x8e2   : > { %15211 = vrot.lane.b32.xlu1 %v34401_v61, %s27969_s7  ;;  %v34413_v61 = vld [vmem:[#allocation134_spill] sm:$0xff] }
 0x8e5   : > { %v31420_v7 = vpop.xlane.xlu1 %14865 }
 0x8e6   : > { %v31378_v32 = vpop.eup %27730 }
 0x8e7   : > { %v31382_v26 = vpop.eup %27732  ;;  %v15017_v53 = vsel %vm1114_vm2, %v31378_v32, 0.0 }
 0x8e8   : > { %v15020_v51 = vsel %vm1114_vm2, %v31382_v26, 0.0 }
 0x8eb   : > { %15135 = vrot.lane.b32.xlu0 %v34349_v40, %s27969_s7 }
 0x906   : > { %15015 = vadd.xlane.f32.xlu1 %v15014_v44 }
 0x907   : > { %v10300_v9 = vpop.f32.mrb[142].mxu0 }
 0x908   : > { %v26380_v18 = vpop.f32.mrb[143].mxu0  ;;  %26489 = vmatprep.mubr.msk.f32.mxu0 %vm1114_vm2, %v10300_v9 }
 0x909   : > { %26490 = vmatmul.mubr.msk.f32.gmra.mrb[174].mxu0 %vm1114_vm2, %v30826_v63  ;;  %v14833_v63 = vpop.xlane.xlu0 %14832 }
 0x90a   : > { %15021 = vadd.xlane.f32.xlu0 %v15020_v51  ;;  %15018 = vadd.xlane.f32.xlu1 %v15017_v53  ;;  %v14895_v35 = vsub.f32 %v31044_v12, %v14833_v63 }
 0x90b   : > { %v10454_v54 = vpop.f32.mrb[144].mxu0 }
 0x90c   : > { %v26390_v39 = vpop.f32.mrb[145].mxu0  ;;  %26492 = vmatprep.mubr.msk.f32.mxu0 %vm1114_vm2, %v10454_v54  ;;  %v14943_v41 = vmul.f32 1.442695, %v14895_v35 }
 0x90d   : > { %26493 = vmatmul.mubr.msk.f32.gmra.mrb[176].mxu0 %vm1114_vm2, %v30829_v56  ;;  %v31402_v3 = vpop.xlane.xlu0 %14838  ;;  %v14945_v56 = vmul.f32 1.442695, %v14896_v21 }
 0x90e   : > { %27734 = vpow2.f32 %v14943_v41 }
 0x90f   : > { %27736 = vpow2.f32 %v14945_v56 }
 0x911   : > { %v31406_v14 = vpop.xlane.xlu0 %14844 }
 0x915   : > { %v31410_v62 = vpop.xlane.xlu0 %14850 }
 0x918   : > { %v31414_v22 = vpop.eup %27734 }
 0x919   : > { %v31416_v12 = vpop.xlane.xlu0 %14856  ;;  %v31418_v28 = vpop.eup %27736  ;;  %v15023_v44 = vsel %vm1114_vm2, %v31414_v22, 0.0 }
 0x91a   : > { %v15026_v11 = vsel %vm1114_vm2, %v31418_v28, 0.0 }
 0x91b   : > { %15363 = vrot.lane.b32.xlu1 %v34402_v34, %s27969_s7 }
 0x91d   : > { %v31423_v37 = vpop.xlane.xlu0 %14862 }
 0x920   : > { %15287 = vrot.lane.b32.xlu0 %v28414_v45, %s27969_s7  ;;  %v31431_v9 = vpop.xlane.xlu1 %14871  ;;  %v34412_v45 = vld [vmem:[#allocation124_spill] sm:$0xff] }
 0x921   : > { %v31434_v53 = vpop.xlane.xlu0 %14868 }
 0x927   : > { %v31441_v17 = vpop.xlane.xlu0 %14874 }
 0x93c   : > { %v10608_v33 = vpop.f32.mrb[146].mxu0 }
 0x93d   : > { %v26400_v0 = vpop.f32.mrb[147].mxu0  ;;  %26495 = vmatprep.mubr.msk.f32.mxu0 %vm1114_vm2, %v10608_v33  ;;  %v34403_v33 = vld [vmem:[#allocation114_spill] sm:$0xff] }
 0x93e   : > { %26496 = vmatmul.mubr.msk.f32.gmra.mrb[178].mxu0 %vm1114_vm2, %v30831_v8  ;;  %v31438_v8 = vpop.xlane.xlu1 %14877 }
 0x93f   : > { %15027 = vadd.xlane.f32.xlu0 %v15026_v11  ;;  %15024 = vadd.xlane.f32.xlu1 %v15023_v44  ;;  %v34404_v44 = vld [vmem:[#allocation30_spill] sm:$0xff] }
 0x940   : > { %v10762_v18 = vpop.f32.mrb[148].mxu0 }
 0x941   : > { %v26410_v51 = vpop.f32.mrb[149].mxu0  ;;  %26498 = vmatprep.mubr.msk.f32.mxu0 %vm1114_vm2, %v10762_v18 }
 0x942   : > { %26499 = vmatmul.mubr.msk.f32.gmra.mrb[180].mxu0 %vm1114_vm2, %v30835_v10  ;;  %v14980_v21 = vpop.xlane.xlu1 %14979 }
 0x943   : > { %27738 = vrcp.f32 %v14980_v21 }
 0x944   : > { %v10916_v54 = vpop.f32.mrb[150].mxu0 }
 0x945   : > { %v26420_v39 = vpop.f32.mrb[151].mxu0  ;;  %26501 = vmatprep.mubr.msk.f32.mxu0 %vm1114_vm2, %v10916_v54 }
 0x946   : > { %26502 = vmatmul.mubr.msk.f32.gmra.mrb[182].mxu0 %vm1114_vm2, %v30839_v42 }
 0x948   : > { %v11070_v63 = vpop.f32.mrb[152].mxu0 }
 0x949   : > { %v26430_v35 = vpop.f32.mrb[153].mxu0  ;;  %26504 = vmatprep.mubr.msk.f32.mxu0 %vm1114_vm2, %v11070_v63 }
 0x94a   : > { %26505 = vmatmul.mubr.msk.f32.gmra.mrb[184].mxu0 %vm1114_vm2, %v30843_v19  ;;  %v31448_v10 = vpop.xlane.xlu0 %14976  ;;  %v34405_v19 = vld [vmem:[#allocation118_spill] sm:$0xff]  ;;  %v34406_v35 = vld [vmem:[#allocation32_spill] sm:$0xff] }
 0x94c   : > { %v11224_v41 = vpop.f32.mrb[154].mxu0 }
 0x94d   : > { %v26440_v56 = vpop.f32.mrb[155].mxu0  ;;  %26507 = vmatprep.mubr.msk.f32.mxu0 %vm1114_vm2, %v11224_v41  ;;  %v34407_v41 = vld [vmem:[#allocation159_spill] sm:$0xff] }
 0x94e   : > { %26508 = vmatmul.mubr.msk.f32.gmra.mrb[186].mxu0 %vm1114_vm2, %v34403_v33  ;;  %v31453_v0 = vpop.xlane.xlu0 %14982  ;;  %v31455_v42 = vpop.xlane.xlu1 %14985 }
 0x950   : > { %v11378_v11 = vpop.f32.mrb[156].mxu0  ;;  %15515 = vrot.lane.b32.xlu1 %v34404_v44, %s27969_s7 }
 0x951   : > { %v26450_v18 = vpop.f32.mrb[157].mxu0  ;;  %26510 = vmatprep.mubr.msk.f32.mxu0 %vm1114_vm2, %v11378_v11  ;;  %v34408_v11 = vld [vmem:[#allocation157_spill] sm:$0xff] }
 0x952   : > { %26511 = vmatmul.mubr.msk.f32.gmra.mrb[188].mxu0 %vm1114_vm2, %v34405_v19  ;;  %v31462_v51 = vpop.xlane.xlu0 %14988  ;;  %v31464_v54 = vpop.xlane.xlu1 %14991  ;;  %v34409_v18 = vld [vmem:[#allocation111_spill] sm:$0xff] }
 0x954   : > { %v11532_v39 = vpop.f32.mrb[158].mxu0 }
 0x955   : > { %v26460_v63 = vpop.f32.mrb[159].mxu0  ;;  %26513 = vmatprep.mubr.msk.f32.mxu0 %vm1114_vm2, %v11532_v39  ;;  %15439 = vrot.lane.b32.xlu0 %v34406_v35, %s27969_s7  ;;  %v34410_v39 = vld [vmem:[#allocation120_spill] sm:$0xff]  ;;  %v34411_v35 = vld [vmem:[#allocation117_spill] sm:$0xff] }
 0x956   : > { %26514 = vmatmul.mubr.msk.f32.gmra.mrb[190].mxu0 %vm1114_vm2, %v34407_v41  ;;  %v31471_v56 = vpop.xlane.xlu0 %14994  ;;  %v31473_v33 = vpop.xlane.xlu1 %14997  ;;  %v14897_v63 = vsub.f32 %v31056_v57, %v31402_v3  ;;  %v14898_v41 = vsub.f32 %v31174_v46, %v31398_v1  ;;  %v34414_v1 = vld [vmem:[#allocation123_spill] sm:$0xff] }
 0x957   : > { %26518 = vmatprep.mubr.msk.f32.mxu0 %vm1114_vm2, %v34408_v11  ;;  %v34417_v3 = vld [vmem:[#allocation147_spill] sm:$0xff] }
 0x958   : > { %v14947_v40 = vmul.f32 1.442695, %v14897_v63  ;;  %v14949_v34 = vmul.f32 1.442695, %v14898_v41  ;;  %v34420_v63 = vld [vmem:[#allocation130_spill] sm:$0xff] }
 0x95a   : > { %26519 = vmatmul.mubr.msk.f32.vlgmr.msra.gmra.mrb[160].mxu0 %vm1114_vm2, %v34409_v18  ;;  %v31479_v21 = vpop.xlane.xlu0 %15000  ;;  %v31481_v19 = vpop.xlane.xlu1 %15003  ;;  %27740 = vpow2.f32 %v14947_v40  ;;  %v34419_v40 = vld [vmem:[#allocation106_spill] sm:$0xff] }
 0x95b   : > { %26521 = vmatprep.mubr.msk.f32.mxu0 %vm1114_vm2, %v34410_v39  ;;  %v27739_v18 = vpop.eup %27738  ;;  %27742 = vpow2.f32 %v14949_v34 }
 0x95c   : > { %v15104_v39 = vmul.f32 %v27739_v18, %v31295_v55  ;;  %v34421_v18 = vld [vmem:[#allocation146_spill] sm:$0xff]  ;;  %27744 = vrcp.f32 %v31448_v10  ;;  %v14900_v10 = vsub.f32 %v31181_v20, %v31404_v43 }
 0x95d   : > { %27746 = vrcp.f32 %v31455_v42 }
 0x95e   : > { %26522 = vmatmul.mubr.msk.f32.gmra.mrb[162].mxu0 %vm1114_vm2, %v34411_v35  ;;  %v31491_v11 = vpop.xlane.xlu0 %15006  ;;  %v31493_v44 = vpop.xlane.xlu1 %15009  ;;  %v34418_v35 = vld [vmem:[#allocation129_spill] sm:$0xff]  ;;  %27748 = vrcp.f32 %v31453_v0  ;;  %v34441_v0 = vld [vmem:[#allocation98_spill] sm:$0xff] }
 0x95f   : > { %26524 = vmatprep.mubr.msk.f32.mxu0 %vm1114_vm2, %v34412_v45  ;;  %v34415_v45 = vld [vmem:[#allocation141_spill] sm:$0xff] }
 0x962   : > { %26525 = vmatmul.mubr.msk.f32.gmra.mrb[164].mxu0 %vm1114_vm2, %v34413_v61  ;;  %v31500_v57 = vpop.xlane.xlu0 %15012  ;;  %v15212_v46 = vpop.permute.xlu1 %15211  ;;  %v34416_v61 = vld [vmem:[#allocation128_spill] sm:$0xff] }
 0x963   : > { %26527 = vmatprep.mubr.msk.f32.mxu0 %vm1114_vm2, %v34414_v1  ;;  %26732 = vmatpush3.msra.mxu1 %v15212_v46 }
 0x964   : > { %26734 = vmatmul.mubr.msk.f32.vlgmr.msra.gmra.mrb[0].mxu1 %vm1114_vm2, %v15104_v39  ;;  %26741 = vmatprep.subr.mxu1 %v34119_v25  ;;  %v31519_v34 = vpop.eup %27740  ;;  %v34422_v39 = vld [vmem:[#allocation137_spill] sm:$0xff] }
 0x965   : > { %26743 = vmatprep.mubr.msk.f32.mxu1 %vm27967_vm1, %v34119_v25  ;;  %v31523_v41 = vpop.eup %27742  ;;  %v15029_v1 = vsel %vm1114_vm2, %v31519_v34, 0.0 }
 0x966   : > { %26528 = vmatmul.mubr.msk.f32.gmra.mrb[166].mxu0 %vm1114_vm2, %v34415_v45  ;;  %v15136_v55 = vpop.permute.xlu0 %15135  ;;  %v15032_v46 = vsel %vm1114_vm2, %v31523_v41, 0.0  ;;  %v34423_v45 = vld [vmem:[#allocation150_spill] sm:$0xff] }
 0x967   : > { %26530 = vmatprep.mubr.msk.f32.mxu0 %vm1114_vm2, %v34416_v61  ;;  %26727 = vmatpush3.msra.mxu0 %v15136_v55  ;;  %v34424_v55 = vld [vmem:[#allocation138_spill] sm:$0xff]  ;;  %v34425_v61 = vld [vmem:[#allocation152_spill] sm:$0xff] }
 0x968   : > { %26736 = vmatprep.subr.mxu0 %v34119_v25 }
 0x96a   : > { %26531 = vmatmul.mubr.msk.f32.gmra.mrb[168].mxu0 %vm1114_vm2, %v34417_v3  ;;  %v34426_v3 = vld [vmem:[#allocation140_spill] sm:$0xff] }
 0x96b   : > { %26533 = vmatprep.mubr.msk.f32.mxu0 %vm1114_vm2, %v34418_v35  ;;  %v34427_v35 = vld [vmem:[#allocation156_spill] sm:$0xff] }
 0x96e   : > { %26534 = vmatmul.mubr.msk.f32.gmra.mrb[170].mxu0 %vm1114_vm2, %v34419_v40  ;;  %v34428_v40 = vld [vmem:[#allocation144_spill] sm:$0xff] }
 0x96f   : > { %26536 = vmatprep.mubr.msk.f32.mxu0 %vm1114_vm2, %v34420_v63  ;;  %v34429_v63 = vld [vmem:[#allocation158_spill] sm:$0xff] }
 0x972   : > { %26537 = vmatmul.mubr.msk.f32.gmra.mrb[172].mxu0 %vm1114_vm2, %v34421_v18  ;;  %v34430_v18 = vld [vmem:[#allocation113_spill] sm:$0xff] }
 0x973   : > { %26539 = vmatprep.mubr.msk.f32.mxu0 %vm1114_vm2, %v34422_v39  ;;  %v34431_v39 = vld [vmem:[#allocation36_spill] sm:$0xff] }
 0x974   : > { %15033 = vadd.xlane.f32.xlu0 %v15032_v46  ;;  %15030 = vadd.xlane.f32.xlu1 %v15029_v1  ;;  %v34432_v46 = vld [vmem:[#allocation143_spill] sm:$0xff] }
 0x975   : > { %v34433_v1 = vld [vmem:[#allocation119_spill] sm:$0xff] }
 0x976   : > { %26540 = vmatmul.mubr.msk.f32.gmra.mrb[174].mxu0 %vm1114_vm2, %v34423_v45  ;;  %v34434_v45 = vld [vmem:[#allocation162_spill] sm:$0xff] }
 0x977   : > { %26542 = vmatprep.mubr.msk.f32.mxu0 %vm1114_vm2, %v34424_v55  ;;  %v34435_v55 = vld [vmem:[#allocation73_spill] sm:$0xff] }
 0x97a   : > { %26543 = vmatmul.mubr.msk.f32.gmra.mrb[176].mxu0 %vm1114_vm2, %v34425_v61  ;;  %v34436_v61 = vld [vmem:[#allocation125_spill] sm:$0xff] }
 0x97b   : > { %26545 = vmatprep.mubr.msk.f32.mxu0 %vm1114_vm2, %v34426_v3  ;;  %v34437_v3 = vld [vmem:[#allocation151_spill] sm:$0xff] }
 0x97e   : > { %26546 = vmatmul.mubr.msk.f32.gmra.mrb[178].mxu0 %vm1114_vm2, %v34427_v35  ;;  %v34438_v35 = vld [vmem:[#allocation131_spill] sm:$0xff] }
 0x97f   : > { %26548 = vmatprep.mubr.msk.f32.mxu0 %vm1114_vm2, %v34428_v40  ;;  %v14899_v40 = vsub.f32 %v31067_v23, %v31406_v14 }
 0x982   : > { %26549 = vmatmul.mubr.msk.f32.gmra.mrb[180].mxu0 %vm1114_vm2, %v34429_v63  ;;  %v34439_v63 = vld [vmem:[#allocation149_spill] sm:$0xff] }
 0x983   : > { %26551 = vmatprep.mubr.msk.f32.mxu0 %vm1114_vm2, %v34430_v18  ;;  %v34440_v18 = vld [vmem:[#allocation139_spill] sm:$0xff] }
 0x985   : > { %15667 = vrot.lane.b32.xlu1 %v34431_v39, %s27969_s7 }
 0x986   : > { %26552 = vmatmul.mubr.msk.f32.gmra.mrb[182].mxu0 %vm1114_vm2, %v34432_v46  ;;  %v27745_v46 = vpop.eup %27744 }
 0x987   : > { %26554 = vmatprep.mubr.msk.f32.mxu0 %vm1114_vm2, %v34433_v1  ;;  %v14951_v1 = vmul.f32 1.442695, %v14899_v40  ;;  %v27747_v14 = vpop.eup %27746  ;;  %v15103_v20 = vmul.f32 %v27745_v46, %v31307_v60  ;;  %v34443_v46 = vld [vmem:[#allocation75_spill] sm:$0xff] }
 0x988   : > { %v27749_v43 = vpop.eup %27748 }
 0x989   : > { %27750 = vpow2.f32 %v14951_v1  ;;  %v34444_v1 = vld [vmem:[#allocation100_spill] sm:$0xff] }
 0x98a   : > { %26555 = vmatmul.mubr.msk.f32.gmra.mrb[184].mxu0 %vm1114_vm2, %v34434_v45  ;;  %15591 = vrot.lane.b32.xlu0 %v34435_v55, %s27969_s7  ;;  %v14953_v45 = vmul.f32 1.442695, %v14900_v10 }
 0x98b   : > { %26557 = vmatprep.mubr.msk.f32.mxu0 %vm1114_vm2, %v34436_v61 }
 0x98c   : > { %27752 = vpow2.f32 %v14953_v45  ;;  %v14902_v45 = vsub.f32 %v31187_v47, %v31408_v6 }
 0x98d   : > { %27754 = vrcp.f32 %v31462_v51 }
 0x98e   : > { %26558 = vmatmul.mubr.msk.f32.gmra.mrb[186].mxu0 %vm1114_vm2, %v34437_v3  ;;  %v15106_v3 = vmul.f32 %v27747_v14, %v31315_v30  ;;  %27756 = vrcp.f32 %v31464_v54 }
 0x98f   : > { %26560 = vmatprep.mubr.msk.f32.mxu0 %vm1114_vm2, %v34438_v35 }
 0x992   : > { %26561 = vmatmul.mubr.msk.f32.gmra.mrb[188].mxu0 %vm1114_vm2, %v34439_v63  ;;  %v15105_v63 = vmul.f32 %v27749_v43, %v31312_v59  ;;  %v14957_v43 = vmul.f32 1.442695, %v14902_v45  ;;  %v14904_v45 = vsub.f32 %v31193_v49, %v31412_v13 }
 0x993   : > { %26563 = vmatprep.mubr.msk.f32.mxu0 %vm1114_vm2, %v34440_v18  ;;  %v31576_v42 = vpop.xlane.xlu1 %15015  ;;  %v31600_v60 = vpop.eup %27750  ;;  %v34442_v18 = vld [vmem:[#allocation74_spill] sm:$0xff] }
 0x994   : > { %v15035_v10 = vsel %vm1114_vm2, %v31600_v60, 0.0 }
 0x996   : > { %26564 = vmatmul.mubr.msk.f32.gmra.mrb[190].mxu0 %vm1114_vm2, %v34441_v0  ;;  %v31602_v30 = vpop.eup %27752  ;;  %v14901_v0 = vsub.f32 %v34444_v1, %v31410_v62  ;;  %v34445_v62 = vld [vmem:[#allocation76_spill] sm:$0xff] }
 0x997   : > { %v31580_v61 = vpop.xlane.xlu0 %15021  ;;  %v31582_v23 = vpop.xlane.xlu1 %15018  ;;  %26728 = vmatprep.mubr.msk.f32.mxu0 %vm27967_vm1, %v34119_v25  ;;  %v15038_v59 = vsel %vm1114_vm2, %v31602_v30, 0.0  ;;  %v34447_v1 = vld [vmem:[#allocation112_spill] sm:$0xff] }
 0x998   : > { %v14955_v14 = vmul.f32 1.442695, %v14901_v0  ;;  %v14903_v0 = vsub.f32 %v34447_v1, %v31416_v12  ;;  %v34448_v12 = vld [vmem:[#allocation78_spill] sm:$0xff] }
 0x99a   : > { %26729 = vmatmul.mubr.msk.f32.vlgmr.msra.gmra.mrb[192].mxu0 %vm1114_vm2, %v15103_v20  ;;  %v27755_v20 = vpop.eup %27754  ;;  %27758 = vpow2.f32 %v14955_v14  ;;  %v14959_v14 = vmul.f32 1.442695, %v14903_v0  ;;  %v34451_v0 = vld [vmem:[#allocation166_spill] sm:$0xff] }
 0x99b   : > { %v15288_v35 = vpop.permute.xlu0 %15287  ;;  %v15364_v40 = vpop.permute.xlu1 %15363  ;;  %26738 = vmatprep.mubr.msk.f32.mxu0 %vm27967_vm1, %v34119_v25  ;;  %27760 = vpow2.f32 %v14957_v43  ;;  %v14961_v43 = vmul.f32 1.442695, %v14904_v45  ;;  %v14906_v45 = vsub.f32 %v34451_v0, %v31420_v7  ;;  %v14907_v0 = vsub.f32 %v31216_v31, %v31434_v53 }
 0x99c   : > { %26737 = vmatpush3.msra.mxu0 %v15288_v35  ;;  %26742 = vmatpush3.msra.mxu1 %v15364_v40  ;;  %v27757_v40 = vpop.eup %27756  ;;  %27762 = vrcp.f32 %v31471_v56 }
 0x99d   : > { %26744 = vmatmul.mubr.msk.f32.vlgmr.msra.gmra.mrb[2].mxu1 %vm1114_vm2, %v15106_v3  ;;  %26746 = vmatprep.subr.mxu0 %v34119_v25  ;;  %v15108_v51 = vmul.f32 %v27757_v40, %v31325_v5  ;;  %27764 = vrcp.f32 %v31473_v33 }
 0x99e   : > { %26739 = vmatmul.mubr.msk.f32.vlgmr.msra.gmra.mrb[194].mxu0 %vm1114_vm2, %v15105_v63  ;;  %26751 = vmatprep.subr.mxu1 %v34119_v25  ;;  %27766 = vpow2.f32 %v14959_v14 }
 0x99f   : > { %26748 = vmatprep.mubr.msk.f32.mxu0 %vm27967_vm1, %v34119_v25  ;;  %26753 = vmatprep.mubr.msk.f32.mxu1 %vm27967_vm1, %v34119_v25  ;;  %27768 = vpow2.f32 %v14961_v43  ;;  %v14965_v43 = vmul.f32 1.442695, %v14906_v45  ;;  %v14908_v45 = vsub.f32 %v31273_v2, %v31431_v9 }
 0x9a0   : > { %27770 = vrcp.f32 %v31479_v21 }
 0x9a1   : > { %27772 = vrcp.f32 %v31481_v19 }
 0x9a4   : > { %v31632_v47 = vpop.eup %27758 }
 0x9a5   : > { %v31634_v5 = vpop.eup %27760  ;;  %v15041_v6 = vsel %vm1114_vm2, %v31632_v47, 0.0 }
 0x9a9   : > { %15039 = vadd.xlane.f32.xlu0 %v15038_v59  ;;  %15036 = vadd.xlane.f32.xlu1 %v15035_v10  ;;  %v15107_v59 = vmul.f32 %v27755_v20, %v31322_v48  ;;  %v15044_v48 = vsel %vm1114_vm2, %v31634_v5, 0.0  ;;  %v34446_v10 = vld [vmem:[#allocation77_spill] sm:$0xff]  ;;  %v27763_v20 = vpop.eup %27762 }
 0x9ba   : > { %15819 = vrot.lane.b32.xlu1 %v34442_v18, %s27969_s7 }
 0x9bf   : > { %15743 = vrot.lane.b32.xlu0 %v34443_v46, %s27969_s7 }
 0x9cc   : > { %v31618_v3 = vpop.xlane.xlu0 %15027  ;;  %v31620_v35 = vpop.xlane.xlu1 %15024 }
 0x9d0   : > { %v15440_v63 = vpop.permute.xlu0 %15439  ;;  %v15516_v54 = vpop.permute.xlu1 %15515 }
 0x9d1   : > { %26747 = vmatpush3.msra.mxu0 %v15440_v63  ;;  %26752 = vmatpush3.msra.mxu1 %v15516_v54  ;;  %v27765_v63 = vpop.eup %27764 }
 0x9d2   : > { %26749 = vmatmul.mubr.msk.f32.vlgmr.msra.gmra.mrb[196].mxu0 %vm1114_vm2, %v15107_v59  ;;  %26754 = vmatmul.mubr.msk.f32.vlgmr.msra.gmra.mrb[4].mxu1 %vm1114_vm2, %v15108_v51  ;;  %v15110_v56 = vmul.f32 %v27765_v63, %v31333_v52  ;;  %v15109_v59 = vmul.f32 %v27763_v20, %v31331_v24  ;;  %v31664_v49 = vpop.eup %27766 }
 0x9d3   : > { %26756 = vmatprep.subr.mxu0 %v34119_v25  ;;  %26761 = vmatprep.subr.mxu1 %v34119_v25  ;;  %v31666_v52 = vpop.eup %27768  ;;  %v15047_v13 = vsel %vm1114_vm2, %v31664_v49, 0.0 }
 0x9d4   : > { %26758 = vmatprep.mubr.msk.f32.mxu0 %vm27967_vm1, %v34119_v25  ;;  %26763 = vmatprep.mubr.msk.f32.mxu1 %vm27967_vm1, %v34119_v25  ;;  %v15050_v24 = vsel %vm1114_vm2, %v31666_v52, 0.0  ;;  %v27771_v20 = vpop.eup %27770 }
 0x9de   : > { %15045 = vadd.xlane.f32.xlu0 %v15044_v48  ;;  %15042 = vadd.xlane.f32.xlu1 %v15041_v6  ;;  %v34449_v48 = vld [vmem:[#allocation79_spill] sm:$0xff]  ;;  %v34450_v6 = vld [vmem:[#allocation104_spill] sm:$0xff] }
 0x9df   : > { %v14905_v1 = vsub.f32 %v34450_v6, %v31423_v37  ;;  %v34452_v6 = vld [vmem:[#allocation80_spill] sm:$0xff] }
 0x9e1   : > { %v14963_v14 = vmul.f32 1.442695, %v14905_v1  ;;  %v34453_v1 = vld [vmem:[#allocation81_spill] sm:$0xff] }
 0x9e3   : > { %27774 = vpow2.f32 %v14963_v14  ;;  %v14967_v14 = vmul.f32 1.442695, %v14907_v0 }
 0x9e4   : > { %27776 = vpow2.f32 %v14965_v43  ;;  %v14969_v43 = vmul.f32 1.442695, %v14908_v45  ;;  %v34454_v45 = vld [vmem:[#allocation82_spill] sm:$0xff] }
 0x9e5   : > { %27778 = vrcp.f32 %v31491_v11 }
 0x9e6   : > { %27780 = vrcp.f32 %v31493_v44 }
 0x9e7   : > { %27782 = vpow2.f32 %v14967_v14  ;;  %v34455_v14 = vld [vmem:[#allocation83_spill] sm:$0xff] }
 0x9e8   : > { %27784 = vpow2.f32 %v14969_v43  ;;  %v14910_v43 = vsub.f32 %v31291_v27, %v31438_v8 }
 0x9e9   : > { %27786 = vrcp.f32 %v31500_v57 }
 0x9ea   : > { %27788 = vrcp.f32 %v31576_v42 }
 0x9ef   : > { %15971 = vrot.lane.b32.xlu1 %v34445_v62, %s27969_s7 }
 0x9f4   : > { %15895 = vrot.lane.b32.xlu0 %v34446_v10, %s27969_s7 }
 0xa01   : > { %v31650_v40 = vpop.xlane.xlu0 %15033  ;;  %v31652_v51 = vpop.xlane.xlu1 %15030 }
 0xa05   : > { %v15592_v54 = vpop.permute.xlu0 %15591  ;;  %v15668_v33 = vpop.permute.xlu1 %15667 }
 0xa06   : > { %26757 = vmatpush3.msra.mxu0 %v15592_v54  ;;  %26762 = vmatpush3.msra.mxu1 %v15668_v33  ;;  %v27773_v54 = vpop.eup %27772 }
 0xa07   : > { %26759 = vmatmul.mubr.msk.f32.vlgmr.msra.gmra.mrb[198].mxu0 %vm1114_vm2, %v15109_v59  ;;  %26764 = vmatmul.mubr.msk.f32.vlgmr.msra.gmra.mrb[6].mxu1 %vm1114_vm2, %v15110_v56  ;;  %v15112_v21 = vmul.f32 %v27773_v54, %v31341_v4  ;;  %v31698_v4 = vpop.eup %27774 }
 0xa08   : > { %26766 = vmatprep.subr.mxu0 %v34119_v25  ;;  %26771 = vmatprep.subr.mxu1 %v34119_v25  ;;  %v31700_v7 = vpop.eup %27776 }
 0xa09   : > { %26768 = vmatprep.mubr.msk.f32.mxu0 %vm27967_vm1, %v34119_v25  ;;  %26773 = vmatprep.mubr.msk.f32.mxu1 %vm27967_vm1, %v34119_v25 }
 0xa13   : > { %15051 = vadd.xlane.f32.xlu0 %v15050_v24  ;;  %15048 = vadd.xlane.f32.xlu1 %v15047_v13  ;;  %v15111_v24 = vmul.f32 %v27771_v20, %v31339_v16  ;;  %v15056_v16 = vsel %vm1114_vm2, %v31700_v7, 0.0  ;;  %v15053_v13 = vsel %vm1114_vm2, %v31698_v4, 0.0  ;;  %v27779_v20 = vpop.eup %27778 }
 0xa14   : > { %v15113_v53 = vmul.f32 %v27779_v20, %v31347_v38  ;;  %v14909_v20 = vsub.f32 %v31279_v58, %v31441_v17 }
 0xa24   : > { %16123 = vrot.lane.b32.xlu1 %v34448_v12, %s27969_s7 }
 0xa29   : > { %16047 = vrot.lane.b32.xlu0 %v34449_v48, %s27969_s7 }
 0xa36   : > { %v31682_v63 = vpop.xlane.xlu0 %15039  ;;  %v31684_v56 = vpop.xlane.xlu1 %15036 }
 0xa37   : > { %v31686_v33 = vpop.f32.mrb[0].mxu1 }
 0xa38   : > { %v26735_v59 = vpop.f32.mrb[1].mxu1 }
 0xa3a   : > { %v15744_v19 = vpop.permute.xlu0 %15743  ;;  %v15820_v37 = vpop.permute.xlu1 %15819 }
 0xa3b   : > { %26767 = vmatpush3.msra.mxu0 %v15744_v19  ;;  %26772 = vmatpush3.msra.mxu1 %v15820_v37 }
 0xa3c   : > { %26769 = vmatmul.mubr.msk.f32.vlgmr.msra.gmra.mrb[200].mxu0 %vm1114_vm2, %v15111_v24  ;;  %26774 = vmatmul.mubr.msk.f32.vlgmr.msra.gmra.mrb[8].mxu1 %vm1114_vm2, %v15112_v21  ;;  %v27781_v21 = vpop.eup %27780 }
 0xa3d   : > { %26776 = vmatprep.subr.mxu0 %v34119_v25  ;;  %26781 = vmatprep.subr.mxu1 %v34119_v25  ;;  %v15114_v44 = vmul.f32 %v27781_v21, %v31349_v29  ;;  %v31736_v38 = vpop.eup %27782  ;;  %v14971_v21 = vmul.f32 1.442695, %v14909_v20  ;;  %v34456_v20 = vld [vmem:[#allocation84_spill] sm:$0xff] }
 0xa3e   : > { %26778 = vmatprep.mubr.msk.f32.mxu0 %vm27967_vm1, %v34119_v25  ;;  %26783 = vmatprep.mubr.msk.f32.mxu1 %vm27967_vm1, %v34119_v25  ;;  %v31738_v29 = vpop.eup %27784  ;;  %v15059_v0 = vsel %vm1114_vm2, %v31736_v38, 0.0 }
 0xa3f   : > { %27790 = vpow2.f32 %v14971_v21  ;;  %v34458_v21 = vld [vmem:[#allocation85_spill] sm:$0xff] }
 0xa48   : > { %15057 = vadd.xlane.f32.xlu0 %v15056_v16  ;;  %15054 = vadd.xlane.f32.xlu1 %v15053_v13  ;;  %v15062_v13 = vsel %vm1114_vm2, %v31738_v29, 0.0 }
 0xa59   : > { %16275 = vrot.lane.b32.xlu1 %v34452_v6, %s27969_s7 }
 0xa5e   : > { %16199 = vrot.lane.b32.xlu0 %v34453_v1, %s27969_s7 }
 0xa6b   : > { %v31716_v54 = vpop.xlane.xlu0 %15045  ;;  %v31718_v59 = vpop.xlane.xlu1 %15042 }
 0xa6d   : > { %v31720_v19 = vpop.f32.mrb[192].mxu0 }
 0xa6e   : > { %v26730_v11 = vpop.f32.mrb[193].mxu0 }
 0xa6f   : > { %v15896_v37 = vpop.permute.xlu0 %15895  ;;  %v15972_v31 = vpop.permute.xlu1 %15971 }
 0xa70   : > { %v31724_v2 = vpop.f32.mrb[2].mxu1  ;;  %26777 = vmatpush3.msra.mxu0 %v15896_v37  ;;  %26782 = vmatpush3.msra.mxu1 %v15972_v31  ;;  %v27787_v11 = vpop.eup %27786 }
 0xa71   : > { %v31726_v9 = vpop.f32.mrb[194].mxu0  ;;  %v26745_v24 = vpop.f32.mrb[3].mxu1  ;;  %26779 = vmatmul.mubr.msk.f32.vlgmr.msra.gmra.mrb[202].mxu0 %vm1114_vm2, %v15113_v53  ;;  %26784 = vmatmul.mubr.msk.f32.vlgmr.msra.gmra.mrb[10].mxu1 %vm1114_vm2, %v15114_v44  ;;  %v14973_v44 = vmul.f32 1.442695, %v14910_v43  ;;  %v34457_v43 = vld [vmem:[#allocation87_spill] sm:$0xff] }
 0xa72   : > { %v26740_v16 = vpop.f32.mrb[195].mxu0  ;;  %26786 = vmatprep.subr.mxu0 %v34119_v25  ;;  %26791 = vmatprep.subr.mxu1 %v34119_v25  ;;  %v27789_v53 = vpop.eup %27788 }
 0xa73   : > { %26788 = vmatprep.mubr.msk.f32.mxu0 %vm27967_vm1, %v34119_v25  ;;  %26793 = vmatprep.mubr.msk.f32.mxu1 %vm27967_vm1, %v34119_v25  ;;  %27792 = vpow2.f32 %v14973_v44  ;;  %v15116_v57 = vmul.f32 %v27789_v53, %v31376_v36  ;;  %v15115_v16 = vmul.f32 %v27787_v11, %v31355_v50  ;;  %v31772_v50 = vpop.eup %27790  ;;  %v34459_v11 = vld [vmem:[#allocation86_spill] sm:$0xff]  ;;  %v34460_v44 = vld [vmem:[#allocation89_spill] sm:$0xff]  ;;  %v34461_v53 = vld [vmem:[#allocation88_spill] sm:$0xff] }
 0xa74   : > { %27794 = vrcp.f32 %v31582_v23 }
 0xa75   : > { %27796 = vrcp.f32 %v31580_v61  ;;  %v34465_v61 = vld [vmem:[#allocation92_spill] sm:$0xff] }
 0xa76   : > { %27798 = vrcp.f32 %v31618_v3  ;;  %v34491_v3 = vld [vmem:[#allocation50_spill] sm:$0xff] }
 0xa77   : > { %27800 = vrcp.f32 %v31620_v35 }
 0xa78   : > { %27802 = vrcp.f32 %v31652_v51 }
 0xa79   : > { %27804 = vrcp.f32 %v31650_v40  ;;  %v34517_v40 = vld [vmem:[#allocation23_spill] sm:$0xff] }
 0xa7a   : > { %27806 = vrcp.f32 %v31684_v56  ;;  %v34518_v56 = vld [vmem:[#allocation63_spill] sm:$0xff] }
 0xa7b   : > { %27808 = vrcp.f32 %v31682_v63 }
 0xa7c   : > { %27810 = vrcp.f32 %v31718_v59 }
 0xa7d   : > { %15063 = vadd.xlane.f32.xlu0 %v15062_v13  ;;  %15060 = vadd.xlane.f32.xlu1 %v15059_v0  ;;  %v31774_v36 = vpop.eup %27792  ;;  %v15065_v13 = vsel %vm1114_vm2, %v31772_v50, 0.0  ;;  %27812 = vrcp.f32 %v31716_v54 }
 0xa7e   : > { %v15068_v0 = vsel %vm1114_vm2, %v31774_v36, 0.0 }
 0xa8e   : > { %16427 = vrot.lane.b32.xlu1 %v34454_v45, %s27969_s7 }
 0xa93   : > { %16351 = vrot.lane.b32.xlu0 %v34455_v14, %s27969_s7 }
 0xaa0   : > { %v31754_v37 = vpop.xlane.xlu0 %15051  ;;  %v31756_v31 = vpop.xlane.xlu1 %15048 }
 0xaa1   : > { %27814 = vrcp.f32 %v31756_v31 }
 0xaa2   : > { %27816 = vrcp.f32 %v31754_v37 }
 0xaa4   : > { %v16048_v24 = vpop.permute.xlu0 %16047  ;;  %v16124_v42 = vpop.permute.xlu1 %16123 }
 0xaa5   : > { %v31760_v58 = vpop.f32.mrb[196].mxu0  ;;  %v31762_v17 = vpop.f32.mrb[4].mxu1  ;;  %26787 = vmatpush3.msra.mxu0 %v16048_v24  ;;  %26792 = vmatpush3.msra.mxu1 %v16124_v42  ;;  %v34463_v24 = vld [vmem:[#allocation90_spill] sm:$0xff]  ;;  %v34464_v42 = vld [vmem:[#allocation93_spill] sm:$0xff] }
 0xaa6   : > { %v26750_v27 = vpop.f32.mrb[197].mxu0  ;;  %v26755_v8 = vpop.f32.mrb[5].mxu1  ;;  %26789 = vmatmul.mubr.msk.f32.vlgmr.msra.gmra.mrb[204].mxu0 %vm1114_vm2, %v15115_v16  ;;  %26794 = vmatmul.mubr.msk.f32.vlgmr.msra.gmra.mrb[12].mxu1 %vm1114_vm2, %v15116_v57  ;;  %v34462_v57 = vld [vmem:[#allocation91_spill] sm:$0xff] }
 0xaa7   : > { %26796 = vmatprep.subr.mxu0 %v34119_v25  ;;  %26801 = vmatprep.subr.mxu1 %v34119_v25  ;;  %v27795_v27 = vpop.eup %27794 }
 0xaa8   : > { %26798 = vmatprep.mubr.msk.f32.mxu0 %vm27967_vm1, %v34119_v25  ;;  %26803 = vmatprep.mubr.msk.f32.mxu1 %vm27967_vm1, %v34119_v25  ;;  %v27797_v8 = vpop.eup %27796 }
 0xab2   : > { %15066 = vadd.xlane.f32.xlu1 %v15065_v13  ;;  %15069 = vadd.xlane.f32.xlu0 %v15068_v0  ;;  %v34466_v13 = vld [vmem:[#allocation95_spill] sm:$0xff] }
 0xac3   : > { %16579 = vrot.lane.b32.xlu1 %v34456_v20, %s27969_s7 }
 0xac7   : > { %16655 = vrot.lane.b32.xlu1 %v34457_v43, %s27969_s7 }
 0xac8   : > { %16503 = vrot.lane.b32.xlu0 %v34458_v21, %s27969_s7 }
 0xacb   : > { %16731 = vrot.lane.b32.xlu1 %v34459_v11, %s27969_s7  ;;  %v34467_v11 = vld [vmem:[#allocation94_spill] sm:$0xff] }
 0xacc   : > { %16807 = vrot.lane.b32.xlu0 %v34460_v44, %s27969_s7  ;;  %v15117_v44 = vmul.f32 %v27795_v27, %v31378_v32  ;;  %v34469_v32 = vld [vmem:[#allocation96_spill] sm:$0xff] }
 0xacd   : > { %v34475_v27 = vld [vmem:[#allocation8_spill] sm:$0xff] }
 0xacf   : > { %16883 = vrot.lane.b32.xlu1 %v34461_v53, %s27969_s7 }
 0xad0   : > { %16959 = vrot.lane.b32.xlu0 %v34462_v57, %s27969_s7 }
 0xad3   : > { %17035 = vrot.lane.b32.xlu1 %v34463_v24, %s27969_s7  ;;  %v15118_v24 = vmul.f32 %v27797_v8, %v31382_v26  ;;  %v34470_v26 = vld [vmem:[#allocation21_spill] sm:$0xff] }
 0xad4   : > { %17111 = vrot.lane.b32.xlu0 %v34464_v42, %s27969_s7  ;;  %v34476_v8 = vld [vmem:[#allocation25_spill] sm:$0xff] }
 0xad5   : > { %v31800_v16 = vpop.xlane.xlu0 %15057  ;;  %v31802_v23 = vpop.xlane.xlu1 %15054 }
 0xad6   : > { %27818 = vrcp.f32 %v31802_v23 }
 0xad7   : > { %17187 = vrot.lane.b32.xlu1 %v34465_v61, %s27969_s7  ;;  %27820 = vrcp.f32 %v31800_v16  ;;  %v34526_v16 = vld [vmem:[#allocation69_spill] sm:$0xff] }
 0xad8   : > { %17263 = vrot.lane.b32.xlu0 %v34466_v13, %s27969_s7  ;;  %v34468_v13 = vld [vmem:[#allocation97_spill] sm:$0xff] }
 0xad9   : > { %v16200_v0 = vpop.permute.xlu0 %16199  ;;  %v16276_v57 = vpop.permute.xlu1 %16275 }
 0xada   : > { %v31810_v53 = vpop.f32.mrb[198].mxu0  ;;  %v31812_v42 = vpop.f32.mrb[6].mxu1  ;;  %26797 = vmatpush3.msra.mxu0 %v16200_v0  ;;  %26802 = vmatpush3.msra.mxu1 %v16276_v57  ;;  %v34473_v57 = vld [vmem:[#allocation2_spill] sm:$0xff]  ;;  %v34478_v0 = vld [vmem:[#allocation31_spill] sm:$0xff] }
 0xadb   : > { %v26760_v21 = vpop.f32.mrb[199].mxu0  ;;  %17339 = vrot.lane.b32.xlu1 %v34467_v11, %s27969_s7  ;;  %v26765_v61 = vpop.f32.mrb[7].mxu1  ;;  %26799 = vmatmul.mubr.msk.f32.vlgmr.msra.gmra.mrb[206].mxu0 %vm1114_vm2, %v15117_v44  ;;  %v34472_v44 = vld [vmem:[#allocation18_spill] sm:$0xff] }
 0xadc   : > { %26804 = vmatmul.mubr.msk.f32.vlgmr.msra.gmra.mrb[14].mxu1 %vm1114_vm2, %v15118_v24  ;;  %17415 = vrot.lane.b32.xlu0 %v34468_v13, %s27969_s7  ;;  %v34471_v21 = vld [vmem:[#allocation3_spill] sm:$0xff]  ;;  %v34477_v61 = vld [vmem:[#allocation6_spill] sm:$0xff] }
 0xadd   : > { %26806 = vmatprep.subr.mxu0 %v34119_v25  ;;  %26811 = vmatprep.subr.mxu1 %v34119_v25  ;;  %v34474_v24 = vld [vmem:[#allocation27_spill] sm:$0xff]  ;;  %v34494_v11 = vld [vmem:[#allocation46_spill] sm:$0xff] }
 0xade   : > { %26808 = vmatprep.mubr.msk.f32.mxu0 %vm27967_vm1, %v34119_v25  ;;  %26813 = vmatprep.mubr.msk.f32.mxu1 %vm27967_vm1, %v34119_v25 }
 0xadf   : > { %17491 = vrot.lane.b32.xlu1 %v34469_v32, %s27969_s7 }
 0xae0   : > { %17922 = vrot.lane.b32.xlu0 %v34470_v26, %s27970_s12  ;;  %v34479_v26 = vld [vmem:[#allocation14_spill] sm:$0xff] }
 0xae3   : > { %17920 = vrot.lane.b32.xlu1 %v34471_v21, %s27970_s12  ;;  %v34480_v21 = vld [vmem:[#allocation29_spill] sm:$0xff] }
 0xae4   : > { %18000 = vrot.lane.b32.xlu0 %v34472_v44, %s27970_s12  ;;  %v34481_v44 = vld [vmem:[#allocation12_spill] sm:$0xff] }
 0xae7   : > { %17998 = vrot.lane.b32.xlu1 %v34473_v57, %s27970_s12  ;;  %v34482_v57 = vld [vmem:[#allocation37_spill] sm:$0xff] }
 0xae8   : > { %18078 = vrot.lane.b32.xlu0 %v34474_v24, %s27970_s12  ;;  %v34483_v24 = vld [vmem:[#allocation24_spill] sm:$0xff] }
 0xaeb   : > { %18076 = vrot.lane.b32.xlu1 %v34475_v27, %s27970_s12  ;;  %v34484_v27 = vld [vmem:[#allocation35_spill] sm:$0xff] }
 0xaec   : > { %18156 = vrot.lane.b32.xlu0 %v34476_v8, %s27970_s12  ;;  %v34485_v8 = vld [vmem:[#allocation10_spill] sm:$0xff] }
 0xaef   : > { %18154 = vrot.lane.b32.xlu1 %v34477_v61, %s27970_s12  ;;  %v34486_v61 = vld [vmem:[#allocation40_spill] sm:$0xff] }
 0xaf0   : > { %18234 = vrot.lane.b32.xlu0 %v34478_v0, %s27970_s12  ;;  %v34487_v0 = vld [vmem:[#allocation38_spill] sm:$0xff] }
 0xaf3   : > { %18232 = vrot.lane.b32.xlu1 %v34479_v26, %s27970_s12  ;;  %v34488_v26 = vld [vmem:[#allocation39_spill] sm:$0xff] }
 0xaf4   : > { %18312 = vrot.lane.b32.xlu0 %v34480_v21, %s27970_s12  ;;  %v34489_v21 = vld [vmem:[#allocation34_spill] sm:$0xff] }
 0xaf7   : > { %18310 = vrot.lane.b32.xlu1 %v34481_v44, %s27970_s12  ;;  %v34490_v44 = vld [vmem:[#allocation42_spill] sm:$0xff] }
 0xaf8   : > { %18390 = vrot.lane.b32.xlu0 %v34482_v57, %s27970_s12 }
 0xafb   : > { %18388 = vrot.lane.b32.xlu1 %v34483_v24, %s27970_s12 }
 0xafc   : > { %18468 = vrot.lane.b32.xlu0 %v34484_v27, %s27970_s12  ;;  %v27799_v27 = vpop.eup %27798 }
 0xafd   : > { %v27801_v35 = vpop.eup %27800 }
 0xafe   : > { %v15119_v32 = vmul.f32 %v27801_v35, %v31414_v22  ;;  %v34496_v22 = vld [vmem:[#allocation45_spill] sm:$0xff]  ;;  %v34500_v35 = vld [vmem:[#allocation47_spill] sm:$0xff] }
 0xaff   : > { %18466 = vrot.lane.b32.xlu1 %v34485_v8, %s27970_s12  ;;  %v34492_v8 = vld [vmem:[#allocation41_spill] sm:$0xff] }
 0xb00   : > { %18546 = vrot.lane.b32.xlu0 %v34486_v61, %s27970_s12 }
 0xb03   : > { %18544 = vrot.lane.b32.xlu1 %v34487_v0, %s27970_s12 }
 0xb04   : > { %18624 = vrot.lane.b32.xlu0 %v34488_v26, %s27970_s12  ;;  %v15120_v26 = vmul.f32 %v27799_v27, %v31418_v28  ;;  %v34495_v28 = vld [vmem:[#allocation58_spill] sm:$0xff]  ;;  %v34499_v27 = vld [vmem:[#allocation68_spill] sm:$0xff] }
 0xb07   : > { %18622 = vrot.lane.b32.xlu1 %v34489_v21, %s27970_s12 }
 0xb08   : > { %18702 = vrot.lane.b32.xlu0 %v34490_v44, %s27970_s12  ;;  %v34493_v44 = vld [vmem:[#allocation44_spill] sm:$0xff] }
 0xb0a   : > { %v31872_v57 = vpop.xlane.xlu0 %15063  ;;  %v31874_v24 = vpop.xlane.xlu1 %15060 }
 0xb0b   : > { %18700 = vrot.lane.b32.xlu1 %v34491_v3, %s27970_s12  ;;  %27822 = vrcp.f32 %v31874_v24 }
 0xb0c   : > { %18780 = vrot.lane.b32.xlu0 %v34492_v8, %s27970_s12  ;;  %27824 = vrcp.f32 %v31872_v57  ;;  %v34528_v57 = vld [vmem:[#allocation62_spill] sm:$0xff] }
 0xb0e   : > { %v16352_v61 = vpop.permute.xlu0 %16351  ;;  %v16428_v0 = vpop.permute.xlu1 %16427 }
 0xb0f   : > { %v31881_v21 = vpop.f32.mrb[200].mxu0  ;;  %18778 = vrot.lane.b32.xlu1 %v34493_v44, %s27970_s12  ;;  %v31885_v13 = vpop.f32.mrb[8].mxu1  ;;  %26807 = vmatpush3.msra.mxu0 %v16352_v61  ;;  %v34501_v61 = vld [vmem:[#allocation64_spill] sm:$0xff]  ;;  %v34504_v44 = vld [vmem:[#allocation5_spill] sm:$0xff] }
 0xb10   : > { %26812 = vmatpush3.msra.mxu1 %v16428_v0  ;;  %v26770_v3 = vpop.f32.mrb[201].mxu0  ;;  %18858 = vrot.lane.b32.xlu0 %v34494_v11, %s27970_s12  ;;  %v26775_v8 = vpop.f32.mrb[9].mxu1  ;;  %v34497_v11 = vld [vmem:[#allocation15_spill] sm:$0xff]  ;;  %v34502_v0 = vld [vmem:[#allocation52_spill] sm:$0xff] }
 0xb11   : > { %26809 = vmatmul.mubr.msk.f32.vlgmr.msra.gmra.mrb[208].mxu0 %vm1114_vm2, %v15119_v32  ;;  %26814 = vmatmul.mubr.msk.f32.vlgmr.msra.gmra.mrb[16].mxu1 %vm1114_vm2, %v15120_v26  ;;  %v34498_v32 = vld [vmem:[#allocation48_spill] sm:$0xff]  ;;  %v34503_v26 = vld [vmem:[#allocation51_spill] sm:$0xff]  ;;  %v34506_v8 = vld [vmem:[#allocation54_spill] sm:$0xff] }
 0xb12   : > { %26816 = vmatprep.subr.mxu0 %v34119_v25  ;;  %26821 = vmatprep.subr.mxu1 %v34119_v25  ;;  %v34505_v3 = vld [vmem:[#allocation4_spill] sm:$0xff] }
 0xb13   : > { %18856 = vrot.lane.b32.xlu1 %v34495_v28, %s27970_s12  ;;  %26818 = vmatprep.mubr.msk.f32.mxu0 %vm27967_vm1, %v34119_v25  ;;  %v34507_v28 = vld [vmem:[#allocation53_spill] sm:$0xff] }
 0xb14   : > { %18936 = vrot.lane.b32.xlu0 %v34496_v22, %s27970_s12  ;;  %26823 = vmatprep.mubr.msk.f32.mxu1 %vm27967_vm1, %v34119_v25  ;;  %v34508_v22 = vld [vmem:[#allocation11_spill] sm:$0xff] }
 0xb17   : > { %18934 = vrot.lane.b32.xlu1 %v34497_v11, %s27970_s12  ;;  %v34509_v11 = vld [vmem:[#allocation7_spill] sm:$0xff] }
 0xb18   : > { %19014 = vrot.lane.b32.xlu0 %v34498_v32, %s27970_s12  ;;  %v34510_v32 = vld [vmem:[#allocation57_spill] sm:$0xff] }
 0xb1b   : > { %19012 = vrot.lane.b32.xlu1 %v34499_v27, %s27970_s12  ;;  %v34511_v27 = vld [vmem:[#allocation56_spill] sm:$0xff] }
 0xb1c   : > { %19092 = vrot.lane.b32.xlu0 %v34500_v35, %s27970_s12  ;;  %v34512_v35 = vld [vmem:[#allocation17_spill] sm:$0xff] }
 0xb1f   : > { %19090 = vrot.lane.b32.xlu1 %v34501_v61, %s27970_s12  ;;  %v34513_v61 = vld [vmem:[#allocation9_spill] sm:$0xff] }
 0xb20   : > { %19170 = vrot.lane.b32.xlu0 %v34502_v0, %s27970_s12  ;;  %v34514_v0 = vld [vmem:[#allocation60_spill] sm:$0xff] }
 0xb23   : > { %19248 = vrot.lane.b32.xlu1 %v34503_v26, %s27970_s12  ;;  %v34515_v26 = vld [vmem:[#allocation59_spill] sm:$0xff] }
 0xb24   : > { %19168 = vrot.lane.b32.xlu0 %v34504_v44, %s27970_s12  ;;  %v34516_v44 = vld [vmem:[#allocation33_spill] sm:$0xff] }
 0xb27   : > { %19246 = vrot.lane.b32.xlu1 %v34505_v3, %s27970_s12 }
 0xb28   : > { %19326 = vrot.lane.b32.xlu0 %v34506_v8, %s27970_s12  ;;  %v27803_v8 = vpop.eup %27802 }
 0xb29   : > { %v15121_v59 = vmul.f32 %v27803_v8, %v31519_v34  ;;  %v34522_v8 = vld [vmem:[#allocation66_spill] sm:$0xff] }
 0xb2b   : > { %19404 = vrot.lane.b32.xlu1 %v34507_v28, %s27970_s12  ;;  %v27805_v28 = vpop.eup %27804 }
 0xb2c   : > { %19324 = vrot.lane.b32.xlu0 %v34508_v22, %s27970_s12 }
 0xb2f   : > { %19402 = vrot.lane.b32.xlu1 %v34509_v11, %s27970_s12  ;;  %v34519_v11 = vld [vmem:[#allocation61_spill] sm:$0xff] }
 0xb30   : > { %19482 = vrot.lane.b32.xlu0 %v34510_v32, %s27970_s12  ;;  %v27807_v32 = vpop.eup %27806 }
 0xb33   : > { %19560 = vrot.lane.b32.xlu1 %v34511_v27, %s27970_s12  ;;  %v15122_v27 = vmul.f32 %v27805_v28, %v31523_v41  ;;  %v34521_v41 = vld [vmem:[#allocation13_spill] sm:$0xff] }
 0xb34   : > { %19480 = vrot.lane.b32.xlu0 %v34512_v35, %s27970_s12 }
 0xb37   : > { %19558 = vrot.lane.b32.xlu1 %v34513_v61, %s27970_s12  ;;  %v34520_v61 = vld [vmem:[#allocation43_spill] sm:$0xff] }
 0xb38   : > { %19638 = vrot.lane.b32.xlu0 %v34514_v0, %s27970_s12 }
 0xb3b   : > { %19716 = vrot.lane.b32.xlu1 %v34515_v26, %s27970_s12 }
 0xb3c   : > { %19636 = vrot.lane.b32.xlu0 %v34516_v44, %s27970_s12  ;;  %v15123_v44 = vmul.f32 %v27807_v32, %v31600_v60  ;;  %v34523_v60 = vld [vmem:[#allocation65_spill] sm:$0xff] }
 0xb3d   : > { %v34525_v32 = vld [vmem:[#allocation49_spill] sm:$0xff] }
 0xb3f   : > { %v31947_v51 = vpop.xlane.xlu0 %15069  ;;  %19714 = vrot.lane.b32.xlu1 %v34517_v40, %s27970_s12  ;;  %v31951_v3 = vpop.xlane.xlu1 %15066 }
 0xb40   : > { %19794 = vrot.lane.b32.xlu0 %v34518_v56, %s27970_s12  ;;  %v27809_v40 = vpop.eup %27808  ;;  %27826 = vrcp.f32 %v31951_v3 }
 0xb41   : > { %v27811_v56 = vpop.eup %27810  ;;  %v15124_v37 = vmul.f32 %v27809_v40, %v31602_v30  ;;  %27828 = vrcp.f32 %v31947_v51 }
 0xb42   : > { %v15125_v23 = vmul.f32 %v27811_v56, %v31632_v47 }
 0xb43   : > { %v16504_v22 = vpop.permute.xlu0 %16503  ;;  %19872 = vrot.lane.b32.xlu1 %v34519_v11, %s27970_s12  ;;  %v16580_v63 = vpop.permute.xlu1 %16579  ;;  %v34524_v11 = vld [vmem:[#allocation55_spill] sm:$0xff] }
 0xb44   : > { %v31961_v35 = vpop.f32.mrb[202].mxu0  ;;  %19792 = vrot.lane.b32.xlu0 %v34520_v61, %s27970_s12  ;;  %v31965_v0 = vpop.f32.mrb[10].mxu1  ;;  %26817 = vmatpush3.msra.mxu0 %v16504_v22 }
 0xb45   : > { %26822 = vmatpush3.msra.mxu1 %v16580_v63  ;;  %v26780_v54 = vpop.f32.mrb[203].mxu0  ;;  %v26785_v26 = vpop.f32.mrb[11].mxu1  ;;  %26819 = vmatmul.mubr.msk.f32.vlgmr.msra.gmra.mrb[210].mxu0 %vm1114_vm2, %v15121_v59 }
 0xb46   : > { %26824 = vmatmul.mubr.msk.f32.vlgmr.msra.gmra.mrb[18].mxu1 %vm1114_vm2, %v15122_v27  ;;  %26826 = vmatprep.subr.mxu0 %v34119_v25  ;;  %v27813_v63 = vpop.eup %27812 }
 0xb47   : > { %v16808_v34 = vpop.permute.xlu0 %16807  ;;  %19870 = vrot.lane.b32.xlu1 %v34521_v41, %s27970_s12  ;;  %v16656_v31 = vpop.permute.xlu1 %16655  ;;  %26828 = vmatprep.mubr.msk.f32.mxu0 %vm27967_vm1, %v34119_v25  ;;  %v15126_v27 = vmul.f32 %v27813_v63, %v31634_v5 }
 0xb48   : > { %19950 = vrot.lane.b32.xlu0 %v34522_v8, %s27970_s12  ;;  %26827 = vmatpush3.msra.mxu0 %v16656_v31  ;;  %v27815_v59 = vpop.eup %27814 }
 0xb49   : > { %26829 = vmatmul.mubr.msk.f32.vlgmr.msra.gmra.mrb[212].mxu0 %vm1114_vm2, %v15123_v44  ;;  %26836 = vmatprep.subr.mxu0 %v34119_v25  ;;  %v15127_v24 = vmul.f32 %v27815_v59, %v31664_v49  ;;  %v27817_v61 = vpop.eup %27816  ;;  %v34527_v49 = vld [vmem:[#allocation67_spill] sm:$0xff] }
 0xb4a   : > { %26837 = vmatpush3.msra.mxu0 %v16808_v34  ;;  %26831 = vmatprep.subr.mxu1 %v34119_v25  ;;  %v27819_v54 = vpop.eup %27818  ;;  %v15128_v34 = vmul.f32 %v27817_v61, %v31666_v52  ;;  %v34529_v52 = vld [vmem:[#allocation16_spill] sm:$0xff] }
 0xb4b   : > { %v16960_v28 = vpop.permute.xlu0 %16959  ;;  %20028 = vrot.lane.b32.xlu1 %v34523_v60, %s27970_s12  ;;  %v16732_v22 = vpop.permute.xlu1 %16731  ;;  %26833 = vmatprep.mubr.msk.f32.mxu1 %vm27967_vm1, %v34119_v25  ;;  %v15129_v3 = vmul.f32 %v27819_v54, %v31698_v4  ;;  %v34530_v4 = vld [vmem:[#allocation71_spill] sm:$0xff] }
 0xb4c   : > { %19948 = vrot.lane.b32.xlu0 %v34524_v11, %s27970_s12  ;;  %26832 = vmatpush3.msra.mxu1 %v16732_v22  ;;  %v27821_v41 = vpop.eup %27820 }
 0xb4d   : > { %26838 = vmatprep.mubr.msk.f32.mxu0 %vm27967_vm1, %v34119_v25  ;;  %26846 = vmatprep.subr.mxu0 %v34119_v25  ;;  %v27823_v40 = vpop.eup %27822  ;;  %v15130_v51 = vmul.f32 %v27821_v41, %v31700_v7  ;;  %v34531_v7 = vld [vmem:[#allocation70_spill] sm:$0xff] }
 0xb4e   : > { %26834 = vmatmul.mubr.msk.f32.vlgmr.msra.gmra.mrb[20].mxu1 %vm1114_vm2, %v15124_v37  ;;  %26839 = vmatmul.mubr.msk.f32.vlgmr.msra.gmra.mrb[214].mxu0 %vm1114_vm2, %v15125_v23  ;;  %v15131_v8 = vmul.f32 %v27823_v40, %v31736_v38  ;;  %v27825_v60 = vpop.eup %27824  ;;  %v34532_v38 = vld [vmem:[#allocation72_spill] sm:$0xff] }
 0xb4f   : > { %26847 = vmatpush3.msra.mxu0 %v16960_v28  ;;  %v17112_v30 = vpop.permute.xlu0 %17111  ;;  %20026 = vrot.lane.b32.xlu1 %v34525_v32, %s27970_s12  ;;  %v16884_v47 = vpop.permute.xlu1 %16883  ;;  %v15132_v37 = vmul.f32 %v27825_v60, %v31738_v29  ;;  %v1107_v29 = vld [vmem:[%s33749_s4 + $0x10] sm:$0xff] }
 0xb50   : > { %26841 = vmatprep.subr.mxu1 %v34119_v25  ;;  %20106 = vrot.lane.b32.xlu0 %v34526_v16, %s27970_s12  ;;  %v27827_v22 = vpop.eup %27826 }
 0xb51   : > { %26842 = vmatpush3.msra.mxu1 %v16884_v47  ;;  %26843 = vmatprep.mubr.msk.f32.mxu1 %vm27967_vm1, %v34119_v25  ;;  %v15133_v63 = vmul.f32 %v27827_v22, %v31772_v50  ;;  %v27829_v59 = vpop.eup %27828 }
 0xb52   : > { %26848 = vmatprep.mubr.msk.f32.mxu0 %vm27967_vm1, %v34119_v25  ;;  %26856 = vmatprep.subr.mxu0 %v34119_v25  ;;  %v15134_v47 = vmul.f32 %v27829_v59, %v31774_v36 }
 0xb53   : > { %26844 = vmatmul.mubr.msk.f32.vlgmr.msra.gmra.mrb[22].mxu1 %vm1114_vm2, %v15126_v27  ;;  %26849 = vmatmul.mubr.msk.f32.vlgmr.msra.gmra.mrb[216].mxu0 %vm1114_vm2, %v15127_v24  ;;  %v17264_v5 = vpop.permute.xlu0 %17263  ;;  %v17036_v26 = vpop.permute.xlu1 %17035 }
 0xb54   : > { %26857 = vmatpush3.msra.mxu0 %v17112_v30  ;;  %20184 = vrot.lane.b32.xlu1 %v34527_v49, %s27970_s12  ;;  %v34533_v30 = vld [vmem:[#allocation20_spill] sm:$0xff] }
 0xb55   : > { %26851 = vmatprep.subr.mxu1 %v34119_v25  ;;  %20104 = vrot.lane.b32.xlu0 %v34528_v57, %s27970_s12 }
 0xb56   : > { %26852 = vmatpush3.msra.mxu1 %v17036_v26  ;;  %26853 = vmatprep.mubr.msk.f32.mxu1 %vm27967_vm1, %v34119_v25 }
 0xb57   : > { %26858 = vmatprep.mubr.msk.f32.mxu0 %vm27967_vm1, %v34119_v25  ;;  %26866 = vmatprep.subr.mxu0 %v34119_v25  ;;  %v17416_v31 = vpop.permute.xlu0 %17415  ;;  %v17188_v44 = vpop.permute.xlu1 %17187 }
 0xb58   : > { %26854 = vmatmul.mubr.msk.f32.vlgmr.msra.gmra.mrb[24].mxu1 %vm1114_vm2, %v15128_v34  ;;  %26859 = vmatmul.mubr.msk.f32.vlgmr.msra.gmra.mrb[218].mxu0 %vm1114_vm2, %v15129_v3 }
 0xb59   : > { %26867 = vmatpush3.msra.mxu0 %v17264_v5  ;;  %20182 = vrot.lane.b32.xlu1 %v34529_v52, %s27970_s12 }
 0xb5a   : > { %26861 = vmatprep.subr.mxu1 %v34119_v25  ;;  %20262 = vrot.lane.b32.xlu0 %v34530_v4, %s27970_s12 }
 0xb5b   : > { %26862 = vmatpush3.msra.mxu1 %v17188_v44  ;;  %26863 = vmatprep.mubr.msk.f32.mxu1 %vm27967_vm1, %v34119_v25  ;;  %v17923_v56 = vpop.permute.xlu0 %17922  ;;  %v17340_v28 = vpop.permute.xlu1 %17339 }
 0xb5c   : > { %26868 = vmatprep.mubr.msk.f32.mxu0 %vm27967_vm1, %v34119_v25  ;;  %26876 = vmatprep.subr.mxu0 %v34119_v25 }
 0xb5d   : > { %26864 = vmatmul.mubr.msk.f32.vlgmr.msra.gmra.mrb[26].mxu1 %vm1114_vm2, %v15130_v51  ;;  %26869 = vmatmul.mubr.msk.f32.vlgmr.msra.gmra.mrb[220].mxu0 %vm1114_vm2, %v15131_v8 }
 0xb5e   : > { %26877 = vmatpush3.msra.mxu0 %v17416_v31  ;;  %20340 = vrot.lane.b32.xlu1 %v34531_v7, %s27970_s12 }
 0xb5f   : > { %26871 = vmatprep.subr.mxu1 %v34119_v25  ;;  %20260 = vrot.lane.b32.xlu0 %v34532_v38, %s27970_s12  ;;  %v18001_v11 = vpop.permute.xlu0 %18000  ;;  %v17492_v23 = vpop.permute.xlu1 %17491 }
 0xb60   : > { %26872 = vmatpush3.msra.mxu1 %v17340_v28  ;;  %26873 = vmatprep.mubr.msk.f32.mxu1 %vm27967_vm1, %v34119_v25 }
 0xb61   : > { %26878 = vmatprep.mubr.msk.f32.mxu0 %vm27967_vm1, %v34119_v25  ;;  %26874 = vmatmul.mubr.msk.f32.vlgmr.msra.gmra.mrb[28].mxu1 %vm1114_vm2, %v15132_v37 }
 0xb62   : > { %26879 = vmatmul.mubr.msk.f32.vlgmr.msra.gmra.mrb[222].mxu0 %vm1114_vm2, %v15133_v63  ;;  %20338 = vrot.lane.b32.xlu1 %v34533_v30, %s27970_s12 }
 0xb63   : > { %26888 = vmatprep.mubr.msk.f32.mxu0 %vm1114_vm2, %v31720_v19  ;;  %26881 = vmatprep.subr.mxu1 %v34119_v25  ;;  %v18079_v50 = vpop.permute.xlu0 %18078  ;;  %v17921_v32 = vpop.permute.xlu1 %17920 }
 0xb64   : > { %26886 = vmatprep.subr.mxu0 %v1107_v29  ;;  %26882 = vmatpush3.msra.mxu1 %v17492_v23 }
 0xb65   : > { %26883 = vmatprep.mubr.msk.f32.mxu1 %vm27967_vm1, %v34119_v25  ;;  %26887 = vmatpush3.msra.mxu0 %v1107_v29 }
 0xb66   : > { %26884 = vmatmul.mubr.msk.f32.vlgmr.msra.gmra.mrb[30].mxu1 %vm1114_vm2, %v15134_v47  ;;  %26889 = vmatmul.mubr.msk.f32.vlgmr.msra.gmra.mrb[160].mxu0 %vm1114_vm2, %v31686_v33 }
 0xb67   : > { %26891 = vmatprep.mubr.msk.f32.mxu0 %vm1114_vm2, %v31726_v9  ;;  %26936 = vmatprep.subr.mxu1 %v34119_v25  ;;  %v18157_v19 = vpop.permute.xlu0 %18156  ;;  %v17999_v16 = vpop.permute.xlu1 %17998 }
 0xb68   : > { %26938 = vmatprep.mubr.msk.f32.mxu1 %vm27967_vm1, %v34119_v25  ;;  %27016 = vmatprep.subr.mxu0 %v34119_v25 }
 0xb6a   : > { %26892 = vmatmul.mubr.msk.f32.gmra.mrb[162].mxu0 %vm1114_vm2, %v31724_v2 }
 0xb6b   : > { %26894 = vmatprep.mubr.msk.f32.mxu0 %vm1114_vm2, %v31760_v58  ;;  %26937 = vmatpush3.xpose.msk.msra.mxu1 %vm1114_vm2, %v17923_v56  ;;  %v18235_v33 = vpop.permute.xlu0 %18234  ;;  %v18077_v36 = vpop.permute.xlu1 %18076 }
 0xb6c   : > { %26941 = vmatprep.subr.mxu1 %v34119_v25 }
 0xb6e   : > { %26895 = vmatmul.mubr.msk.f32.gmra.mrb[164].mxu0 %vm1114_vm2, %v31762_v17  ;;  %26939 = vmatmul.mubr.msk.f32.vlgmr.msra.gmra.mrb[32].mxu1 %vm1114_vm2, %v17921_v32 }
 0xb6f   : > { %26897 = vmatprep.mubr.msk.f32.mxu0 %vm1114_vm2, %v31810_v53  ;;  %26942 = vmatpush3.xpose.msk.msra.mxu1 %vm1114_vm2, %v18001_v11  ;;  %v18313_v2 = vpop.permute.xlu0 %18312  ;;  %v18155_v9 = vpop.permute.xlu1 %18154 }
 0xb70   : > { %26943 = vmatprep.mubr.msk.f32.mxu1 %vm27967_vm1, %v34119_v25  ;;  %26946 = vmatprep.subr.mxu1 %v34119_v25 }
 0xb72   : > { %26898 = vmatmul.mubr.msk.f32.gmra.mrb[166].mxu0 %vm1114_vm2, %v31812_v42  ;;  %26944 = vmatmul.mubr.msk.f32.vlgmr.msra.gmra.mrb[34].mxu1 %vm1114_vm2, %v17999_v16 }
 0xb73   : > { %26900 = vmatprep.mubr.msk.f32.mxu0 %vm1114_vm2, %v31881_v21  ;;  %26947 = vmatpush3.xpose.msk.msra.mxu1 %vm1114_vm2, %v18079_v50  ;;  %v18391_v58 = vpop.permute.xlu0 %18390  ;;  %v18233_v17 = vpop.permute.xlu1 %18232 }
 0xb74   : > { %26948 = vmatprep.mubr.msk.f32.mxu1 %vm27967_vm1, %v34119_v25  ;;  %26951 = vmatprep.subr.mxu1 %v34119_v25 }
 0xb76   : > { %26901 = vmatmul.mubr.msk.f32.gmra.mrb[168].mxu0 %vm1114_vm2, %v31885_v13  ;;  %26949 = vmatmul.mubr.msk.f32.vlgmr.msra.gmra.mrb[36].mxu1 %vm1114_vm2, %v18077_v36 }
 0xb77   : > { %26903 = vmatprep.mubr.msk.f32.mxu0 %vm1114_vm2, %v31961_v35  ;;  %26952 = vmatpush3.xpose.msk.msra.mxu1 %vm1114_vm2, %v18157_v19  ;;  %v18469_v53 = vpop.permute.xlu0 %18468  ;;  %v18311_v42 = vpop.permute.xlu1 %18310 }
 0xb78   : > { %26953 = vmatprep.mubr.msk.f32.mxu1 %vm27967_vm1, %v34119_v25  ;;  %26956 = vmatprep.subr.mxu1 %v34119_v25 }
 0xb79   : > { %v16119_v21 = vpop.f32.mrb[204].mxu0  ;;  %v16195_v27 = vpop.f32.mrb[12].mxu1 }
 0xb7a   : > { %26904 = vmatmul.mubr.msk.f32.gmra.mrb[170].mxu0 %vm1114_vm2, %v31965_v0  ;;  %26954 = vmatmul.mubr.msk.f32.vlgmr.msra.gmra.mrb[38].mxu1 %vm1114_vm2, %v18155_v9  ;;  %v26790_v13 = vpop.f32.mrb[205].mxu0  ;;  %v26795_v24 = vpop.f32.mrb[13].mxu1 }
 0xb7b   : > { %26957 = vmatpush3.xpose.msk.msra.mxu1 %vm1114_vm2, %v18235_v33  ;;  %26958 = vmatprep.mubr.msk.f32.mxu1 %vm27967_vm1, %v34119_v25  ;;  %v18547_v35 = vpop.permute.xlu0 %18546  ;;  %v18389_v61 = vpop.permute.xlu1 %18388 }
 0xb7c   : > { %26906 = vmatprep.mubr.msk.f32.mxu0 %vm1114_vm2, %v16119_v21  ;;  %26961 = vmatprep.subr.mxu1 %v34119_v25 }
 0xb7e   : > { %26959 = vmatmul.mubr.msk.f32.vlgmr.msra.gmra.mrb[40].mxu1 %vm1114_vm2, %v18233_v17  ;;  %26907 = vmatmul.mubr.msk.f32.gmra.mrb[172].mxu0 %vm1114_vm2, %v16195_v27 }
 0xb7f   : > { %26962 = vmatpush3.xpose.msk.msra.mxu1 %vm1114_vm2, %v18313_v2  ;;  %26963 = vmatprep.mubr.msk.f32.mxu1 %vm27967_vm1, %v34119_v25  ;;  %v18625_v0 = vpop.permute.xlu0 %18624  ;;  %v18467_v54 = vpop.permute.xlu1 %18466 }
 0xb80   : > { %26966 = vmatprep.subr.mxu1 %v34119_v25 }
 0xb82   : > { %26964 = vmatmul.mubr.msk.f32.vlgmr.msra.gmra.mrb[42].mxu1 %vm1114_vm2, %v18311_v42 }
 0xb83   : > { %26967 = vmatpush3.xpose.msk.msra.mxu1 %vm1114_vm2, %v18391_v58  ;;  %26968 = vmatprep.mubr.msk.f32.mxu1 %vm27967_vm1, %v34119_v25  ;;  %v18703_v5 = vpop.permute.xlu0 %18702  ;;  %v18545_v26 = vpop.permute.xlu1 %18544 }
 0xb84   : > { %26971 = vmatprep.subr.mxu1 %v34119_v25 }
 0xb86   : > { %26969 = vmatmul.mubr.msk.f32.vlgmr.msra.gmra.mrb[44].mxu1 %vm1114_vm2, %v18389_v61 }
 0xb87   : > { %26972 = vmatpush3.xpose.msk.msra.mxu1 %vm1114_vm2, %v18469_v53  ;;  %26973 = vmatprep.mubr.msk.f32.mxu1 %vm27967_vm1, %v34119_v25  ;;  %v18781_v49 = vpop.permute.xlu0 %18780  ;;  %v18623_v57 = vpop.permute.xlu1 %18622 }
 0xb88   : > { %26976 = vmatprep.subr.mxu1 %v34119_v25 }
 0xb8a   : > { %26974 = vmatmul.mubr.msk.f32.vlgmr.msra.gmra.mrb[46].mxu1 %vm1114_vm2, %v18467_v54 }
 0xb8b   : > { %26977 = vmatpush3.xpose.msk.msra.mxu1 %vm1114_vm2, %v18547_v35  ;;  %26978 = vmatprep.mubr.msk.f32.mxu1 %vm27967_vm1, %v34119_v25  ;;  %v18859_v34 = vpop.permute.xlu0 %18858  ;;  %v18701_v3 = vpop.permute.xlu1 %18700 }
 0xb8c   : > { %26981 = vmatprep.subr.mxu1 %v34119_v25 }
 0xb8e   : > { %26979 = vmatmul.mubr.msk.f32.vlgmr.msra.gmra.mrb[48].mxu1 %vm1114_vm2, %v18545_v26 }
 0xb8f   : > { %26982 = vmatpush3.xpose.msk.msra.mxu1 %vm1114_vm2, %v18625_v0  ;;  %26983 = vmatprep.mubr.msk.f32.mxu1 %vm27967_vm1, %v34119_v25  ;;  %v18937_v41 = vpop.permute.xlu0 %18936  ;;  %v18779_v31 = vpop.permute.xlu1 %18778 }
 0xb90   : > { %26986 = vmatprep.subr.mxu1 %v34119_v25 }
 0xb92   : > { %26984 = vmatmul.mubr.msk.f32.vlgmr.msra.gmra.mrb[50].mxu1 %vm1114_vm2, %v18623_v57 }
 0xb93   : > { %26987 = vmatpush3.xpose.msk.msra.mxu1 %vm1114_vm2, %v18703_v5  ;;  %26988 = vmatprep.mubr.msk.f32.mxu1 %vm27967_vm1, %v34119_v25  ;;  %v19015_v44 = vpop.permute.xlu0 %19014  ;;  %v18857_v40 = vpop.permute.xlu1 %18856 }
 0xb94   : > { %26991 = vmatprep.subr.mxu1 %v34119_v25 }
 0xb96   : > { %26989 = vmatmul.mubr.msk.f32.vlgmr.msra.gmra.mrb[52].mxu1 %vm1114_vm2, %v18701_v3 }
 0xb97   : > { %26992 = vmatpush3.xpose.msk.msra.mxu1 %vm1114_vm2, %v18781_v49  ;;  %26993 = vmatprep.mubr.msk.f32.mxu1 %vm27967_vm1, %v34119_v25  ;;  %v19093_v52 = vpop.permute.xlu0 %19092  ;;  %v18935_v4 = vpop.permute.xlu1 %18934 }
 0xb98   : > { %26996 = vmatprep.subr.mxu1 %v34119_v25 }
 0xb9a   : > { %26994 = vmatmul.mubr.msk.f32.vlgmr.msra.gmra.mrb[54].mxu1 %vm1114_vm2, %v18779_v31 }
 0xb9b   : > { %26997 = vmatpush3.xpose.msk.msra.mxu1 %vm1114_vm2, %v18859_v34  ;;  %26998 = vmatprep.mubr.msk.f32.mxu1 %vm27967_vm1, %v34119_v25  ;;  %v19171_v51 = vpop.permute.xlu0 %19170  ;;  %v19013_v8 = vpop.permute.xlu1 %19012 }
 0xb9c   : > { %27001 = vmatprep.subr.mxu1 %v34119_v25  ;;  %27017 = vmatpush3.xpose.msk.msra.mxu0 %vm1114_vm2, %v19171_v51 }
 0xb9d   : > { %27026 = vmatprep.subr.mxu0 %v34119_v25 }
 0xb9e   : > { %26999 = vmatmul.mubr.msk.f32.vlgmr.msra.gmra.mrb[56].mxu1 %vm1114_vm2, %v18857_v40 }
 0xb9f   : > { %27002 = vmatpush3.xpose.msk.msra.mxu1 %vm1114_vm2, %v18937_v41  ;;  %27003 = vmatprep.mubr.msk.f32.mxu1 %vm27967_vm1, %v34119_v25  ;;  %v19091_v56 = vpop.permute.xlu1 %19090  ;;  %v19169_v42 = vpop.permute.xlu0 %19168 }
 0xba0   : > { %27006 = vmatprep.subr.mxu1 %v34119_v25 }
 0xba2   : > { %27004 = vmatmul.mubr.msk.f32.vlgmr.msra.gmra.mrb[58].mxu1 %vm1114_vm2, %v18935_v4 }
 0xba3   : > { %27007 = vmatpush3.xpose.msk.msra.mxu1 %vm1114_vm2, %v19015_v44  ;;  %27008 = vmatprep.mubr.msk.f32.mxu1 %vm27967_vm1, %v34119_v25  ;;  %v19249_v28 = vpop.permute.xlu1 %19248  ;;  %v19327_v21 = vpop.permute.xlu0 %19326 }
 0xba4   : > { %27011 = vmatprep.subr.mxu1 %v34119_v25 }
 0xba6   : > { %27009 = vmatmul.mubr.msk.f32.vlgmr.msra.gmra.mrb[60].mxu1 %vm1114_vm2, %v19013_v8 }
 0xba7   : > { %27012 = vmatpush3.xpose.msk.msra.mxu1 %vm1114_vm2, %v19093_v52  ;;  %27013 = vmatprep.mubr.msk.f32.mxu1 %vm27967_vm1, %v34119_v25  ;;  %v19247_v60 = vpop.permute.xlu1 %19246  ;;  %v19325_v27 = vpop.permute.xlu0 %19324 }
 0xba8   : > { %27021 = vmatprep.subr.mxu1 %v34119_v25 }
 0xbaa   : > { %27014 = vmatmul.mubr.msk.f32.vlgmr.msra.gmra.mrb[62].mxu1 %vm1114_vm2, %v19091_v56 }
 0xbab   : > { %27022 = vmatpush3.xpose.msk.msra.mxu1 %vm1114_vm2, %v19249_v28  ;;  %27023 = vmatprep.mubr.msk.f32.mxu1 %vm27967_vm1, %v34119_v25  ;;  %v19405_v22 = vpop.permute.xlu1 %19404  ;;  %v19483_v13 = vpop.permute.xlu0 %19482 }
 0xbac   : > { %27031 = vmatprep.subr.mxu1 %v34119_v25 }
 0xbae   : > { %27024 = vmatmul.mubr.msk.f32.vlgmr.msra.gmra.mrb[64].mxu1 %vm1114_vm2, %v19247_v60  ;;  %v16271_v7 = vpop.f32.mrb[206].mxu0 }
 0xbaf   : > { %27032 = vmatpush3.xpose.msk.msra.mxu1 %vm1114_vm2, %v19405_v22  ;;  %v16347_v37 = vpop.f32.mrb[14].mxu1  ;;  %27033 = vmatprep.mubr.msk.f32.mxu1 %vm27967_vm1, %v34119_v25  ;;  %v26800_v38 = vpop.f32.mrb[207].mxu0 }
 0xbb0   : > { %v19403_v11 = vpop.permute.xlu1 %19402  ;;  %26909 = vmatprep.mubr.msk.f32.mxu0 %vm1114_vm2, %v16271_v7  ;;  %27041 = vmatprep.subr.mxu1 %v34119_v25  ;;  %v26805_v23 = vpop.f32.mrb[15].mxu1 }
 0xbb1   : > { %26910 = vmatmul.mubr.msk.f32.gmra.mrb[174].mxu0 %vm1114_vm2, %v16347_v37  ;;  %v19481_v0 = vpop.permute.xlu0 %19480 }
 0xbb2   : > { %27034 = vmatmul.mubr.msk.f32.vlgmr.msra.gmra.mrb[66].mxu1 %vm1114_vm2, %v19403_v11 }
 0xbb3   : > { %27043 = vmatprep.mubr.msk.f32.mxu1 %vm27967_vm1, %v34119_v25 }
 0xbb4   : > { %v19561_v63 = vpop.permute.xlu1 %19560 }
 0xbb5   : > { %27042 = vmatpush3.xpose.msk.msra.mxu1 %vm1114_vm2, %v19561_v63  ;;  %v19639_v49 = vpop.permute.xlu0 %19638 }
 0xbb6   : > { %27051 = vmatprep.subr.mxu1 %v34119_v25 }
 0xbb8   : > { %v19559_v59 = vpop.permute.xlu1 %19558 }
 0xbb9   : > { %27044 = vmatmul.mubr.msk.f32.vlgmr.msra.gmra.mrb[68].mxu1 %vm1114_vm2, %v19559_v59  ;;  %v19637_v4 = vpop.permute.xlu0 %19636 }
 0xbba   : > { %27053 = vmatprep.mubr.msk.f32.mxu1 %vm27967_vm1, %v34119_v25 }
 0xbbc   : > { %v19717_v29 = vpop.permute.xlu1 %19716 }
 0xbbd   : > { %27052 = vmatpush3.xpose.msk.msra.mxu1 %vm1114_vm2, %v19717_v29  ;;  %v19795_v60 = vpop.permute.xlu0 %19794 }
 0xbbe   : > { %27061 = vmatprep.subr.mxu1 %v34119_v25 }
 0xbc0   : > { %v19715_v30 = vpop.permute.xlu1 %19714 }
 0xbc1   : > { %27054 = vmatmul.mubr.msk.f32.vlgmr.msra.gmra.mrb[70].mxu1 %vm1114_vm2, %v19715_v30  ;;  %v19793_v11 = vpop.permute.xlu0 %19792 }
 0xbc2   : > { %27063 = vmatprep.mubr.msk.f32.mxu1 %vm27967_vm1, %v34119_v25 }
 0xbc4   : > { %v19873_v50 = vpop.permute.xlu1 %19872 }
 0xbc5   : > { %27062 = vmatpush3.xpose.msk.msra.mxu1 %vm1114_vm2, %v19873_v50 }
 0xbc6   : > { %27071 = vmatprep.subr.mxu1 %v34119_v25 }
 0xbc8   : > { %v19871_v32 = vpop.permute.xlu1 %19870 }
 0xbc9   : > { %27064 = vmatmul.mubr.msk.f32.vlgmr.msra.gmra.mrb[72].mxu1 %vm1114_vm2, %v19871_v32  ;;  %v19951_v32 = vpop.permute.xlu0 %19950 }
 0xbca   : > { %27073 = vmatprep.mubr.msk.f32.mxu1 %vm27967_vm1, %v34119_v25 }
 0xbcc   : > { %v20029_v47 = vpop.permute.xlu1 %20028 }
 0xbcd   : > { %27072 = vmatpush3.xpose.msk.msra.mxu1 %vm1114_vm2, %v20029_v47  ;;  %v19949_v47 = vpop.permute.xlu0 %19948 }
 0xbce   : > { %27081 = vmatprep.subr.mxu1 %v34119_v25 }
 0xbd0   : > { %v20027_v19 = vpop.permute.xlu1 %20026 }
 0xbd1   : > { %27074 = vmatmul.mubr.msk.f32.vlgmr.msra.gmra.mrb[74].mxu1 %vm1114_vm2, %v20027_v19 }
 0xbd2   : > { %27083 = vmatprep.mubr.msk.f32.mxu1 %vm27967_vm1, %v34119_v25 }
 0xbd4   : > { %v20185_v16 = vpop.permute.xlu1 %20184 }
 0xbd5   : > { %27082 = vmatpush3.xpose.msk.msra.mxu1 %vm1114_vm2, %v20185_v16 }
 0xbd6   : > { %27091 = vmatprep.subr.mxu1 %v34119_v25 }
 0xbd8   : > { %v20183_v33 = vpop.permute.xlu1 %20182 }
 0xbd9   : > { %27084 = vmatmul.mubr.msk.f32.vlgmr.msra.gmra.mrb[76].mxu1 %vm1114_vm2, %v20183_v33 }
 0xbda   : > { %27093 = vmatprep.mubr.msk.f32.mxu1 %vm27967_vm1, %v34119_v25 }
 0xbdc   : > { %v20341_v36 = vpop.permute.xlu1 %20340 }
 0xbdd   : > { %27092 = vmatpush3.xpose.msk.msra.mxu1 %vm1114_vm2, %v20341_v36 }
 0xbde   : > { %27101 = vmatprep.subr.mxu1 %v34119_v25 }
 0xbe0   : > { %v20339_v2 = vpop.permute.xlu1 %20338 }
 0xbe1   : > { %27094 = vmatmul.mubr.msk.f32.vlgmr.msra.gmra.mrb[78].mxu1 %vm1114_vm2, %v20339_v2 }
 0xbe2   : > { %27103 = vmatprep.mubr.msk.f32.mxu1 %vm27967_vm1, %v34119_v25 }
 0xbe4   : > { %v16423_v9 = vpop.f32.mrb[208].mxu0  ;;  %v16499_v58 = vpop.f32.mrb[16].mxu1 }
 0xbe5   : > { %v26810_v17 = vpop.f32.mrb[209].mxu0  ;;  %v26815_v53 = vpop.f32.mrb[17].mxu1  ;;  %26912 = vmatprep.mubr.msk.f32.mxu0 %vm1114_vm2, %v16423_v9 }
 0xbe6   : > { %26913 = vmatmul.mubr.msk.f32.gmra.mrb[176].mxu0 %vm1114_vm2, %v16499_v58  ;;  %v20107_v17 = vpop.permute.xlu0 %20106 }
 0xc18   : > { %v16575_v24 = vpop.f32.mrb[210].mxu0 }
 0xc19   : > { %v16651_v35 = vpop.f32.mrb[18].mxu1  ;;  %v26820_v61 = vpop.f32.mrb[211].mxu0  ;;  %26915 = vmatprep.mubr.msk.f32.mxu0 %vm1114_vm2, %v16575_v24 }
 0xc1a   : > { %v26825_v54 = vpop.f32.mrb[19].mxu1  ;;  %26916 = vmatmul.mubr.msk.f32.gmra.mrb[178].mxu0 %vm1114_vm2, %v16651_v35  ;;  %v20105_v24 = vpop.permute.xlu0 %20104 }
 0xc1c   : > { %v16727_v5 = vpop.f32.mrb[212].mxu0 }
 0xc1d   : > { %v26830_v26 = vpop.f32.mrb[213].mxu0  ;;  %26918 = vmatprep.mubr.msk.f32.mxu0 %vm1114_vm2, %v16727_v5 }
 0xc21   : > { %v16803_v57 = vpop.f32.mrb[20].mxu1  ;;  %v16879_v34 = vpop.f32.mrb[214].mxu0 }
 0xc22   : > { %v26835_v3 = vpop.f32.mrb[21].mxu1  ;;  %v26840_v41 = vpop.f32.mrb[215].mxu0  ;;  %26919 = vmatmul.mubr.msk.f32.gmra.mrb[180].mxu0 %vm1114_vm2, %v16803_v57 }
 0xc23   : > { %26921 = vmatprep.mubr.msk.f32.mxu0 %vm1114_vm2, %v16879_v34  ;;  %v20263_v57 = vpop.permute.xlu0 %20262 }
 0xc26   : > { %v16955_v31 = vpop.f32.mrb[22].mxu1  ;;  %v17031_v44 = vpop.f32.mrb[216].mxu0 }
 0xc27   : > { %v26845_v40 = vpop.f32.mrb[23].mxu1  ;;  %v26850_v52 = vpop.f32.mrb[217].mxu0  ;;  %26922 = vmatmul.mubr.msk.f32.gmra.mrb[182].mxu0 %vm1114_vm2, %v16955_v31 }
 0xc28   : > { %26924 = vmatprep.mubr.msk.f32.mxu0 %vm1114_vm2, %v17031_v44  ;;  %v20261_v40 = vpop.permute.xlu0 %20260 }
 0xc2b   : > { %v17107_v51 = vpop.f32.mrb[24].mxu1  ;;  %v17183_v8 = vpop.f32.mrb[218].mxu0 }
 0xc2c   : > { %v26855_v56 = vpop.f32.mrb[25].mxu1  ;;  %v26860_v28 = vpop.f32.mrb[219].mxu0  ;;  %26925 = vmatmul.mubr.msk.f32.gmra.mrb[184].mxu0 %vm1114_vm2, %v17107_v51 }
 0xc2d   : > { %26927 = vmatprep.mubr.msk.f32.mxu0 %vm1114_vm2, %v17183_v8 }
 0xc30   : > { %v17259_v22 = vpop.f32.mrb[26].mxu1  ;;  %v17335_v7 = vpop.f32.mrb[220].mxu0 }
 0xc31   : > { %v26865_v37 = vpop.f32.mrb[27].mxu1  ;;  %v26870_v38 = vpop.f32.mrb[221].mxu0  ;;  %26928 = vmatmul.mubr.msk.f32.gmra.mrb[186].mxu0 %vm1114_vm2, %v17259_v22 }
 0xc32   : > { %26930 = vmatprep.mubr.msk.f32.mxu0 %vm1114_vm2, %v17335_v7 }
 0xc34   : > { %v17411_v23 = vpop.f32.mrb[28].mxu1 }
 0xc35   : > { %v17487_v63 = vpop.f32.mrb[222].mxu0  ;;  %v26875_v59 = vpop.f32.mrb[29].mxu1  ;;  %26931 = vmatmul.mubr.msk.f32.gmra.mrb[188].mxu0 %vm1114_vm2, %v17411_v23 }
 0xc36   : > { %v26880_v29 = vpop.f32.mrb[223].mxu0  ;;  %26933 = vmatprep.mubr.msk.f32.mxu0 %vm1114_vm2, %v17487_v63 }
 0xc39   : > { %v17563_v30 = vpop.f32.mrb[30].mxu1 }
 0xc3a   : > { %v26885_v50 = vpop.f32.mrb[31].mxu1  ;;  %26934 = vmatmul.mubr.msk.f32.gmra.mrb[190].mxu0 %vm1114_vm2, %v17563_v30 }
 0xc3b   : > { %27018 = vmatprep.mubr.msk.f32.mxu0 %vm27967_vm1, %v34119_v25 }
 0xc3e   : > { %27019 = vmatmul.mubr.msk.f32.vlgmr.msra.gmra.mrb[224].mxu0 %vm1114_vm2, %v19169_v42 }
 0xc3f   : > { %27027 = vmatpush3.xpose.msk.msra.mxu0 %vm1114_vm2, %v19327_v21  ;;  %27028 = vmatprep.mubr.msk.f32.mxu0 %vm27967_vm1, %v34119_v25 }
 0xc40   : > { %27036 = vmatprep.subr.mxu0 %v34119_v25 }
 0xc41   : > { %v17994_v19 = vpop.f32.mrb[32].mxu1 }
 0xc42   : > { %v32244_v16 = vsel %vm28910_vm3, %v17994_v19, -inf  ;;  %27029 = vmatmul.mubr.msk.f32.vlgmr.msra.gmra.mrb[226].mxu0 %vm1114_vm2, %v19325_v27  ;;  %v26940_v33 = vpop.f32.mrb[33].mxu1 }
 0xc43   : > { %v20448_v36 = vsel %vm1114_vm2, %v32244_v16, -inf  ;;  %27037 = vmatpush3.xpose.msk.msra.mxu0 %vm1114_vm2, %v19483_v13  ;;  %27038 = vmatprep.mubr.msk.f32.mxu0 %vm27967_vm1, %v34119_v25 }
 0xc44   : > { %27046 = vmatprep.subr.mxu0 %v34119_v25  ;;  %20449 = vmax.xlane.f32.xlu0 %v20448_v36 }
 0xc45   : > { %v18072_v2 = vpop.f32.mrb[34].mxu1 }
 0xc46   : > { %v32255_v9 = vsel %vm28910_vm3, %v18072_v2, -inf  ;;  %27039 = vmatmul.mubr.msk.f32.vlgmr.msra.gmra.mrb[228].mxu0 %vm1114_vm2, %v19481_v0  ;;  %v26945_v58 = vpop.f32.mrb[35].mxu1 }
 0xc47   : > { %v20451_v53 = vsel %vm1114_vm2, %v32255_v9, -inf  ;;  %27047 = vmatpush3.xpose.msk.msra.mxu0 %vm1114_vm2, %v19639_v49  ;;  %27048 = vmatprep.mubr.msk.f32.mxu0 %vm27967_vm1, %v34119_v25 }
 0xc48   : > { %27056 = vmatprep.subr.mxu0 %v34119_v25  ;;  %20452 = vmax.xlane.f32.xlu1 %v20451_v53 }
 0xc49   : > { %v18150_v42 = vpop.f32.mrb[36].mxu1 }
 0xc4a   : > { %v32266_v21 = vsel %vm28910_vm3, %v18150_v42, -inf  ;;  %27049 = vmatmul.mubr.msk.f32.vlgmr.msra.gmra.mrb[230].mxu0 %vm1114_vm2, %v19637_v4  ;;  %v26950_v27 = vpop.f32.mrb[37].mxu1 }
 0xc4b   : > { %v20454_v13 = vsel %vm1114_vm2, %v32266_v21, -inf  ;;  %27057 = vmatpush3.xpose.msk.msra.mxu0 %vm1114_vm2, %v19795_v60  ;;  %27058 = vmatprep.mubr.msk.f32.mxu0 %vm27967_vm1, %v34119_v25 }
 0xc4c   : > { %27066 = vmatprep.subr.mxu0 %v34119_v25  ;;  %20455 = vmax.xlane.f32.xlu0 %v20454_v13 }
 0xc4d   : > { %v18228_v35 = vpop.f32.mrb[38].mxu1 }
 0xc4e   : > { %v32277_v61 = vsel %vm28910_vm3, %v18228_v35, -inf  ;;  %27059 = vmatmul.mubr.msk.f32.vlgmr.msra.gmra.mrb[232].mxu0 %vm1114_vm2, %v19793_v11  ;;  %v26955_v0 = vpop.f32.mrb[39].mxu1 }
 0xc4f   : > { %v20457_v54 = vsel %vm1114_vm2, %v32277_v61, -inf  ;;  %27067 = vmatpush3.xpose.msk.msra.mxu0 %vm1114_vm2, %v19951_v32  ;;  %27068 = vmatprep.mubr.msk.f32.mxu0 %vm27967_vm1, %v34119_v25 }
 0xc50   : > { %27076 = vmatprep.subr.mxu0 %v34119_v25  ;;  %20458 = vmax.xlane.f32.xlu0 %v20457_v54 }
 0xc51   : > { %v18306_v5 = vpop.f32.mrb[40].mxu1 }
 0xc52   : > { %v32288_v26 = vsel %vm28910_vm3, %v18306_v5, -inf  ;;  %27069 = vmatmul.mubr.msk.f32.vlgmr.msra.gmra.mrb[234].mxu0 %vm1114_vm2, %v19949_v47  ;;  %v26960_v49 = vpop.f32.mrb[41].mxu1 }
 0xc53   : > { %v20460_v34 = vsel %vm1114_vm2, %v32288_v26, -inf  ;;  %27077 = vmatpush3.xpose.msk.msra.mxu0 %vm1114_vm2, %v20107_v17  ;;  %27078 = vmatprep.mubr.msk.f32.mxu0 %vm27967_vm1, %v34119_v25 }
 0xc54   : > { %27086 = vmatprep.subr.mxu0 %v34119_v25  ;;  %20461 = vmax.xlane.f32.xlu0 %v20460_v34 }
 0xc55   : > { %v18384_v3 = vpop.f32.mrb[42].mxu1 }
 0xc56   : > { %v32299_v41 = vsel %vm28910_vm3, %v18384_v3, -inf  ;;  %27079 = vmatmul.mubr.msk.f32.vlgmr.msra.gmra.mrb[236].mxu0 %vm1114_vm2, %v20105_v24  ;;  %v26965_v31 = vpop.f32.mrb[43].mxu1 }
 0xc57   : > { %v20463_v44 = vsel %vm1114_vm2, %v32299_v41, -inf  ;;  %27087 = vmatpush3.xpose.msk.msra.mxu0 %vm1114_vm2, %v20263_v57  ;;  %27088 = vmatprep.mubr.msk.f32.mxu0 %vm27967_vm1, %v34119_v25 }
 0xc58   : > { %20464 = vmax.xlane.f32.xlu1 %v20463_v44  ;;  %27096 = vmatprep.subr.mxu0 %v34119_v25 }
 0xc59   : > { %v18462_v52 = vpop.f32.mrb[44].mxu1 }
 0xc5a   : > { %v32310_v4 = vsel %vm28910_vm3, %v18462_v52, -inf  ;;  %27089 = vmatmul.mubr.msk.f32.vlgmr.msra.gmra.mrb[238].mxu0 %vm1114_vm2, %v20261_v40  ;;  %v26970_v51 = vpop.f32.mrb[45].mxu1 }
 0xc5b   : > { %v20466_v8 = vsel %vm1114_vm2, %v32310_v4, -inf  ;;  %27098 = vmatprep.mubr.msk.f32.mxu0 %vm27967_vm1, %v34119_v25 }
 0xc5c   : > { %20467 = vmax.xlane.f32.xlu0 %v20466_v8 }
 0xc5d   : > { %v18540_v56 = vpop.f32.mrb[46].mxu1 }
 0xc5e   : > { %v32319_v28 = vsel %vm28910_vm3, %v18540_v56, -inf  ;;  %v26975_v60 = vpop.f32.mrb[47].mxu1 }
 0xc5f   : > { %v20469_v22 = vsel %vm1114_vm2, %v32319_v28, -inf }
 0xc60   : > { %20470 = vmax.xlane.f32.xlu1 %v20469_v22 }
 0xc61   : > { %v18618_v7 = vpop.f32.mrb[48].mxu1 }
 0xc62   : > { %v32325_v37 = vsel %vm28910_vm3, %v18618_v7, -inf  ;;  %v26980_v38 = vpop.f32.mrb[49].mxu1 }
 0xc63   : > { %v20472_v11 = vsel %vm1114_vm2, %v32325_v37, -inf }
 0xc64   : > { %20473 = vmax.xlane.f32.xlu0 %v20472_v11 }
 0xc65   : > { %v18696_v23 = vpop.f32.mrb[50].mxu1 }
 0xc66   : > { %v32331_v63 = vsel %vm28910_vm3, %v18696_v23, -inf  ;;  %v26985_v59 = vpop.f32.mrb[51].mxu1 }
 0xc67   : > { %v20475_v29 = vsel %vm1114_vm2, %v32331_v63, -inf }
 0xc68   : > { %20476 = vmax.xlane.f32.xlu1 %v20475_v29 }
 0xc69   : > { %v18774_v30 = vpop.f32.mrb[52].mxu1 }
 0xc6a   : > { %v32337_v50 = vsel %vm28910_vm3, %v18774_v30, -inf  ;;  %v26990_v32 = vpop.f32.mrb[53].mxu1 }
 0xc6b   : > { %v20478_v47 = vsel %vm1114_vm2, %v32337_v50, -inf }
 0xc6c   : > { %20479 = vmax.xlane.f32.xlu0 %v20478_v47 }
 0xc6d   : > { %v18852_v19 = vpop.f32.mrb[54].mxu1 }
 0xc6e   : > { %v32343_v33 = vsel %vm28910_vm3, %v18852_v19, -inf  ;;  %v26995_v36 = vpop.f32.mrb[55].mxu1 }
 0xc6f   : > { %v20481_v2 = vsel %vm1114_vm2, %v32343_v33, -inf }
 0xc70   : > { %20482 = vmax.xlane.f32.xlu1 %v20481_v2 }
 0xc71   : > { %v18930_v58 = vpop.f32.mrb[56].mxu1 }
 0xc72   : > { %v32349_v17 = vsel %vm28910_vm3, %v18930_v58, -inf  ;;  %v27000_v53 = vpop.f32.mrb[57].mxu1 }
 0xc73   : > { %v20484_v42 = vsel %vm1114_vm2, %v32349_v17, -inf }
 0xc74   : > { %20485 = vmax.xlane.f32.xlu0 %v20484_v42 }
 0xc75   : > { %v19008_v27 = vpop.f32.mrb[58].mxu1 }
 0xc76   : > { %v32355_v13 = vsel %vm28910_vm3, %v19008_v27, -inf  ;;  %v27005_v24 = vpop.f32.mrb[59].mxu1 }
 0xc77   : > { %v20487_v35 = vsel %vm1114_vm2, %v32355_v13, -inf }
 0xc78   : > { %20488 = vmax.xlane.f32.xlu1 %v20487_v35 }
 0xc79   : > { %v19086_v0 = vpop.f32.mrb[60].mxu1 }
 0xc7a   : > { %v32361_v54 = vsel %vm28910_vm3, %v19086_v0, -inf  ;;  %v27010_v5 = vpop.f32.mrb[61].mxu1 }
 0xc7b   : > { %v20490_v49 = vsel %vm1114_vm2, %v32361_v54, -inf }
 0xc7c   : > { %20491 = vmax.xlane.f32.xlu0 %v20490_v49 }
 0xc7d   : > { %v19164_v57 = vpop.f32.mrb[62].mxu1 }
 0xc7e   : > { %v32367_v34 = vsel %vm28910_vm3, %v19164_v57, -inf  ;;  %v27015_v3 = vpop.f32.mrb[63].mxu1 }
 0xc7f   : > { %v20493_v31 = vsel %vm1114_vm2, %v32367_v34, -inf }
 0xc80   : > { %20494 = vmax.xlane.f32.xlu1 %v20493_v31 }
 0xc81   : > { %v19320_v44 = vpop.f32.mrb[64].mxu1 }
 0xc82   : > { %v32373_v40 = vsel %vm28910_vm3, %v19320_v44, -inf  ;;  %v27025_v52 = vpop.f32.mrb[65].mxu1 }
 0xc83   : > { %v20499_v51 = vsel %vm1114_vm2, %v32373_v40, -inf }
 0xc84   : > { %20500 = vmax.xlane.f32.xlu1 %v20499_v51 }
 0xc85   : > { %v19476_v8 = vpop.f32.mrb[66].mxu1 }
 0xc86   : > { %v32379_v56 = vsel %vm28910_vm3, %v19476_v8, -inf  ;;  %v27035_v60 = vpop.f32.mrb[67].mxu1 }
 0xc87   : > { %v20505_v22 = vsel %vm1114_vm2, %v32379_v56, -inf }
 0xc88   : > { %20506 = vmax.xlane.f32.xlu1 %v20505_v22 }
 0xc8c   : > { %v19632_v7 = vpop.f32.mrb[68].mxu1 }
 0xc8d   : > { %v32385_v38 = vsel %vm28910_vm3, %v19632_v7, -inf  ;;  %v27045_v11 = vpop.f32.mrb[69].mxu1 }
 0xc8e   : > { %v20511_v23 = vsel %vm1114_vm2, %v32385_v38, -inf }
 0xc8f   : > { %20512 = vmax.xlane.f32.xlu1 %v20511_v23 }
 0xc94   : > { %v19788_v59 = vpop.f32.mrb[70].mxu1 }
 0xc95   : > { %v32391_v29 = vsel %vm28910_vm3, %v19788_v59, -inf  ;;  %v27055_v30 = vpop.f32.mrb[71].mxu1 }
 0xc96   : > { %v20517_v32 = vsel %vm1114_vm2, %v32391_v29, -inf }
 0xc97   : > { %20518 = vmax.xlane.f32.xlu1 %v20517_v32 }
 0xc9c   : > { %v19944_v47 = vpop.f32.mrb[72].mxu1 }
 0xc9d   : > { %v32397_v19 = vsel %vm28910_vm3, %v19944_v47, -inf  ;;  %v27065_v36 = vpop.f32.mrb[73].mxu1 }
 0xc9e   : > { %v20523_v2 = vsel %vm1114_vm2, %v32397_v19, -inf }
 0xc9f   : > { %20524 = vmax.xlane.f32.xlu1 %v20523_v2 }
 0xca4   : > { %v20100_v58 = vpop.f32.mrb[74].mxu1 }
 0xca5   : > { %v32403_v53 = vsel %vm28910_vm3, %v20100_v58, -inf  ;;  %v27075_v42 = vpop.f32.mrb[75].mxu1 }
 0xca6   : > { %v20529_v27 = vsel %vm1114_vm2, %v32403_v53, -inf }
 0xca7   : > { %20530 = vmax.xlane.f32.xlu1 %v20529_v27 }
 0xcac   : > { %v20256_v24 = vpop.f32.mrb[76].mxu1 }
 0xcad   : > { %v32409_v35 = vsel %vm28910_vm3, %v20256_v24, -inf  ;;  %v27085_v0 = vpop.f32.mrb[77].mxu1 }
 0xcae   : > { %v20535_v5 = vsel %vm1114_vm2, %v32409_v35, -inf }
 0xcaf   : > { %20536 = vmax.xlane.f32.xlu1 %v20535_v5 }
 0xcb4   : > { %v20412_v49 = vpop.f32.mrb[78].mxu1 }
 0xcb5   : > { %v32415_v57 = vsel %vm28910_vm3, %v20412_v49, -inf  ;;  %v27095_v3 = vpop.f32.mrb[79].mxu1 }
 0xcb6   : > { %34534 = vst [vmem:[#allocation116_spill] sm:$0xff] %v32415_v57  ;;  %v20541_v31 = vsel %vm1114_vm2, %v32415_v57, -inf }
 0xcb7   : > { %20542 = vmax.xlane.f32.xlu1 %v20541_v31 }
 0xcd1   : > { %v32419_v44 = vpop.xlane.xlu0 %20449 }
 0xcd5   : > { %v20453_v52 = vpop.xlane.xlu1 %20452 }
 0xcd6   : > { %v20545_v51 = vsub.f32 %v32255_v9, %v20453_v52 }
 0xcd8   : > { %v20578_v8 = vmul.f32 1.442695, %v20545_v51 }
 0xcd9   : > { %v32422_v60 = vpop.xlane.xlu0 %20455 }
 0xcda   : > { %27830 = vpow2.f32 %v20578_v8 }
 0xcdd   : > { %v20459_v22 = vpop.xlane.xlu0 %20458 }
 0xcde   : > { %v20547_v7 = vsub.f32 %v32277_v61, %v20459_v22 }
 0xce0   : > { %v20582_v11 = vmul.f32 1.442695, %v20547_v7 }
 0xce2   : > { %27832 = vpow2.f32 %v20582_v11 }
 0xce4   : > { %v32425_v23 = vpop.eup %27830 }
 0xce5   : > { %v20465_v59 = vpop.xlane.xlu1 %20464  ;;  %v20643_v30 = vsel %vm1114_vm2, %v32425_v23, 0.0 }
 0xce6   : > { %v20549_v32 = vsub.f32 %v32299_v41, %v20465_v59  ;;  %20644 = vadd.xlane.f32.xlu1 %v20643_v30 }
 0xce8   : > { %v20586_v47 = vmul.f32 1.442695, %v20549_v32 }
 0xcea   : > { %27834 = vpow2.f32 %v20586_v47 }
 0xcec   : > { %v32430_v9 = vpop.eup %27832 }
 0xced   : > { %v20471_v36 = vpop.xlane.xlu1 %20470  ;;  %v20649_v2 = vsel %vm1114_vm2, %v32430_v9, 0.0 }
 0xcee   : > { %v20551_v61 = vsub.f32 %v32319_v28, %v20471_v36  ;;  %20650 = vadd.xlane.f32.xlu1 %v20649_v2 }
 0xcf0   : > { %v20590_v58 = vmul.f32 1.442695, %v20551_v61 }
 0xcf2   : > { %27836 = vpow2.f32 %v20590_v58 }
 0xcf4   : > { %v32435_v42 = vpop.eup %27834 }
 0xcf5   : > { %v20477_v27 = vpop.xlane.xlu1 %20476  ;;  %v20655_v41 = vsel %vm1114_vm2, %v32435_v42, 0.0 }
 0xcf6   : > { %v20553_v24 = vsub.f32 %v32331_v63, %v20477_v27  ;;  %20656 = vadd.xlane.f32.xlu1 %v20655_v41 }
 0xcf8   : > { %v20594_v0 = vmul.f32 1.442695, %v20553_v24 }
 0xcfa   : > { %27838 = vpow2.f32 %v20594_v0 }
 0xcfc   : > { %v32440_v5 = vpop.eup %27836 }
 0xcfd   : > { %v20483_v49 = vpop.xlane.xlu1 %20482  ;;  %v20661_v28 = vsel %vm1114_vm2, %v32440_v5, 0.0 }
 0xcfe   : > { %v20555_v3 = vsub.f32 %v32343_v33, %v20483_v49  ;;  %20662 = vadd.xlane.f32.xlu1 %v20661_v28  ;;  %v20544_v28 = vsub.f32 %v32244_v16, %v32419_v44 }
 0xd00   : > { %v20598_v31 = vmul.f32 1.442695, %v20555_v3  ;;  %v20462_v3 = vpop.xlane.xlu0 %20461 }
 0xd02   : > { %27840 = vpow2.f32 %v20598_v31 }
 0xd04   : > { %v32445_v52 = vpop.eup %27838 }
 0xd05   : > { %v20489_v51 = vpop.xlane.xlu1 %20488  ;;  %v20667_v63 = vsel %vm1114_vm2, %v32445_v52, 0.0 }
 0xd06   : > { %v20557_v8 = vsub.f32 %v32355_v13, %v20489_v51  ;;  %20668 = vadd.xlane.f32.xlu1 %v20667_v63 }
 0xd08   : > { %v20602_v22 = vmul.f32 1.442695, %v20557_v8 }
 0xd0a   : > { %27842 = vpow2.f32 %v20602_v22  ;;  %v20576_v22 = vmul.f32 1.442695, %v20544_v28 }
 0xd0c   : > { %v32450_v7 = vpop.eup %27840  ;;  %27844 = vpow2.f32 %v20576_v22 }
 0xd0d   : > { %v20673_v11 = vsel %vm1114_vm2, %v32450_v7, 0.0 }
 0xd0e   : > { %20674 = vadd.xlane.f32.xlu1 %v20673_v11  ;;  %v20546_v11 = vsub.f32 %v32266_v21, %v32422_v60 }
 0xd11   : > { %v19242_v33 = vpop.f32.mrb[224].mxu0 }
 0xd12   : > { %v32456_v59 = vsel %vm28910_vm3, %v19242_v33, -inf  ;;  %v27020_v30 = vpop.f32.mrb[225].mxu0  ;;  %v20468_v33 = vpop.xlane.xlu0 %20467 }
 0xd13   : > { %v20496_v32 = vsel %vm1114_vm2, %v32456_v59, -inf }
 0xd14   : > { %v32460_v47 = vpop.eup %27842  ;;  %20497 = vmax.xlane.f32.xlu0 %v20496_v32 }
 0xd15   : > { %34535 = vst [vmem:[#allocation161_spill] sm:$0xff] %v32460_v47  ;;  %v19398_v13 = vpop.f32.mrb[226].mxu0  ;;  %v20679_v36 = vsel %vm1114_vm2, %v32460_v47, 0.0 }
 0xd16   : > { %v32466_v2 = vsel %vm28910_vm3, %v19398_v13, -inf  ;;  %v27030_v61 = vpop.f32.mrb[227].mxu0  ;;  %20680 = vadd.xlane.f32.xlu1 %v20679_v36  ;;  %v20580_v13 = vmul.f32 1.442695, %v20546_v11  ;;  %v20548_v36 = vsub.f32 %v32288_v26, %v20462_v3 }
 0xd17   : > { %v20502_v58 = vsel %vm1114_vm2, %v32466_v2, -inf  ;;  %v20474_v61 = vpop.xlane.xlu0 %20473 }
 0xd18   : > { %20503 = vmax.xlane.f32.xlu0 %v20502_v58  ;;  %27846 = vpow2.f32 %v20580_v13  ;;  %v20552_v22 = vsub.f32 %v32325_v37, %v20474_v61 }
 0xd19   : > { %v19554_v27 = vpop.f32.mrb[228].mxu0 }
 0xd1a   : > { %v32472_v41 = vsel %vm28910_vm3, %v19554_v27, -inf  ;;  %v27040_v24 = vpop.f32.mrb[229].mxu0  ;;  %v34536_v27 = vld [vmem:[#allocation19_spill] sm:$0xff] }
 0xd1b   : > { %v20508_v0 = vsel %vm1114_vm2, %v32472_v41, -inf  ;;  %v20480_v28 = vpop.xlane.xlu0 %20479 }
 0xd1c   : > { %20509 = vmax.xlane.f32.xlu0 %v20508_v0  ;;  %v20584_v0 = vmul.f32 1.442695, %v20548_v36  ;;  %v20554_v13 = vsub.f32 %v32337_v50, %v20480_v28 }
 0xd1d   : > { %v19710_v49 = vpop.f32.mrb[230].mxu0 }
 0xd1e   : > { %v32480_v31 = vsel %vm28910_vm3, %v19710_v49, -inf  ;;  %v27050_v51 = vpop.f32.mrb[231].mxu0  ;;  %v20550_v49 = vsub.f32 %v32310_v4, %v20468_v33  ;;  %27848 = vpow2.f32 %v20584_v0 }
 0xd1f   : > { %v20514_v63 = vsel %vm1114_vm2, %v32480_v31, -inf  ;;  %v20486_v11 = vpop.xlane.xlu0 %20485 }
 0xd20   : > { %20515 = vmax.xlane.f32.xlu0 %v20514_v63 }
 0xd21   : > { %v19866_v8 = vpop.f32.mrb[232].mxu0 }
 0xd22   : > { %v32488_v30 = vsel %vm28910_vm3, %v19866_v8, -inf  ;;  %v27060_v16 = vpop.f32.mrb[233].mxu0  ;;  %v20588_v8 = vmul.f32 1.442695, %v20550_v49 }
 0xd23   : > { %v20520_v44 = vsel %vm1114_vm2, %v32488_v30, -inf  ;;  %v20492_v36 = vpop.xlane.xlu0 %20491 }
 0xd24   : > { %20521 = vmax.xlane.f32.xlu0 %v20520_v44  ;;  %v32515_v44 = vpop.eup %27844  ;;  %27850 = vpow2.f32 %v20588_v8  ;;  %v20558_v15 = vsub.f32 %v32361_v54, %v20492_v36 }
 0xd25   : > { %v20022_v32 = vpop.f32.mrb[234].mxu0  ;;  %v20640_v37 = vsel %vm1114_vm2, %v32515_v44, 0.0  ;;  %v32520_v61 = vpop.eup %27846 }
 0xd26   : > { %v32495_v58 = vsel %vm28910_vm3, %v20022_v32, -inf  ;;  %v27070_v21 = vpop.f32.mrb[235].mxu0  ;;  %v20592_v32 = vmul.f32 1.442695, %v20552_v22  ;;  %v20604_v50 = vmul.f32 1.442695, %v20558_v15 }
 0xd27   : > { %v20526_v60 = vsel %vm1114_vm2, %v32495_v58, -inf  ;;  %20876 = vrot.lane.b32.xlu1 %v34536_v27, %s27970_s12  ;;  %v20596_v21 = vmul.f32 1.442695, %v20554_v13  ;;  %v20646_v27 = vsel %vm1114_vm2, %v32520_v61, 0.0  ;;  %v20495_v13 = vpop.xlane.xlu1 %20494 }
 0xd28   : > { %20527 = vmax.xlane.f32.xlu0 %v20526_v60  ;;  %27852 = vpow2.f32 %v20592_v32  ;;  %v20556_v60 = vsub.f32 %v32349_v17, %v20486_v11  ;;  %v34542_v32 = vld [vmem:[#allocation22_spill] sm:$0xff]  ;;  %v20559_v36 = vsub.f32 %v32367_v34, %v20495_v13 }
 0xd29   : > { %v20178_v24 = vpop.f32.mrb[236].mxu0  ;;  %27854 = vpow2.f32 %v20596_v21 }
 0xd2a   : > { %v32504_v26 = vsel %vm28910_vm3, %v20178_v24, -inf  ;;  %v27080_v3 = vpop.f32.mrb[237].mxu0  ;;  %v32526_v24 = vpop.eup %27848  ;;  %v20600_v0 = vmul.f32 1.442695, %v20556_v60  ;;  %27856 = vpow2.f32 %v20604_v50  ;;  %v20606_v15 = vmul.f32 1.442695, %v20559_v36 }
 0xd2b   : > { %v20532_v51 = vsel %vm1114_vm2, %v32504_v26, -inf  ;;  %v20652_v49 = vsel %vm1114_vm2, %v32526_v24, 0.0 }
 0xd2c   : > { %20533 = vmax.xlane.f32.xlu0 %v20532_v51  ;;  %27858 = vpow2.f32 %v20600_v0 }
 0xd2d   : > { %v20334_v63 = vpop.f32.mrb[238].mxu0  ;;  %27860 = vpow2.f32 %v20606_v15 }
 0xd2e   : > { %v32511_v16 = vsel %vm28910_vm3, %v20334_v63, -inf  ;;  %v27090_v4 = vpop.f32.mrb[239].mxu0  ;;  %v32530_v28 = vpop.eup %27850 }
 0xd2f   : > { %34537 = vst [vmem:[#allocation132_spill] sm:$0xff] %v32511_v16  ;;  %v20538_v33 = vsel %vm1114_vm2, %v32511_v16, -inf  ;;  %v20658_v17 = vsel %vm1114_vm2, %v32530_v28, 0.0 }
 0xd30   : > { %20539 = vmax.xlane.f32.xlu0 %v20538_v33  ;;  %v34541_v33 = vld [vmem:[#allocation26_spill] sm:$0xff] }
 0xd32   : > { %v32534_v54 = vpop.eup %27852 }
 0xd33   : > { %v20664_v3 = vsel %vm1114_vm2, %v32534_v54, 0.0  ;;  %v32538_v51 = vpop.eup %27854 }
 0xd34   : > { %20641 = vadd.xlane.f32.xlu0 %v20640_v37  ;;  %34538 = vst [vmem:[#allocation133_spill] sm:$0xff] %v32538_v51  ;;  %v32540_v63 = vpop.eup %27856  ;;  %v20670_v8 = vsel %vm1114_vm2, %v32538_v51, 0.0  ;;  %v20501_v37 = vpop.xlane.xlu1 %20500 }
 0xd35   : > { %34539 = vst [vmem:[#allocation105_spill] sm:$0xff] %v32540_v63  ;;  %v20682_v11 = vsel %vm1114_vm2, %v32540_v63, 0.0  ;;  %v20561_v15 = vsub.f32 %v32373_v40, %v20501_v37 }
 0xd36   : > { %v32544_v22 = vpop.eup %27858 }
 0xd37   : > { %34540 = vst [vmem:[#allocation136_spill] sm:$0xff] %v32544_v22  ;;  %v20676_v4 = vsel %vm1114_vm2, %v32544_v22, 0.0  ;;  %v32561_v0 = vpop.eup %27860  ;;  %v20610_v20 = vmul.f32 1.442695, %v20561_v15 }
 0xd38   : > { %20647 = vadd.xlane.f32.xlu0 %v20646_v27  ;;  %v20507_v21 = vpop.xlane.xlu1 %20506  ;;  %34543 = vst [vmem:[#allocation163_spill] sm:$0xff] %v32561_v0 }
 0xd39   : > { %v20563_v16 = vsub.f32 %v32379_v56, %v20507_v21 }
 0xd3b   : > { %v20614_v45 = vmul.f32 1.442695, %v20563_v16 }
 0xd3c   : > { %20653 = vadd.xlane.f32.xlu0 %v20652_v49  ;;  %v32555_v60 = vpop.xlane.xlu1 %20512 }
 0xd3d   : > { %v20565_v21 = vsub.f32 %v32385_v38, %v32555_v60 }
 0xd40   : > { %20659 = vadd.xlane.f32.xlu0 %v20658_v17  ;;  %v32557_v27 = vpop.xlane.xlu1 %20518  ;;  %v20685_v17 = vsel %vm1114_vm2, %v32561_v0, 0.0 }
 0xd41   : > { %v20567_v60 = vsub.f32 %v32391_v29, %v32557_v27 }
 0xd44   : > { %20665 = vadd.xlane.f32.xlu0 %v20664_v3  ;;  %v32559_v50 = vpop.xlane.xlu1 %20524 }
 0xd48   : > { %20671 = vadd.xlane.f32.xlu0 %v20670_v8  ;;  %v32563_v49 = vpop.xlane.xlu1 %20530 }
 0xd4b   : > { %20683 = vadd.xlane.f32.xlu1 %v20682_v11 }
 0xd4c   : > { %20677 = vadd.xlane.f32.xlu0 %v20676_v4  ;;  %v32567_v3 = vpop.xlane.xlu1 %20536 }
 0xd50   : > { %v32569_v34 = vpop.xlane.xlu1 %20542 }
 0xd51   : > { %34544 = vst [vmem:[#allocation145_spill] sm:$0xff] %v32569_v34 }
 0xd5c   : > { %21028 = vrot.lane.b32.xlu1 %v34541_v33, %s27970_s12 }
 0xd62   : > { %20800 = vrot.lane.b32.xlu0 %v34542_v32, %s27970_s12  ;;  %v34545_v32 = vld [vmem:[#allocation28_spill] sm:$0xff] }
 0xd73   : > { %v20645_v8 = vpop.xlane.xlu1 %20644 }
 0xd74   : > { %27862 = vrcp.f32 %v20645_v8 }
 0xd7b   : > { %v20651_v11 = vpop.xlane.xlu1 %20650 }
 0xd7e   : > { %v27863_v43 = vpop.eup %27862 }
 0xd7f   : > { %v20769_v57 = vmul.f32 %v27863_v43, %v32425_v23 }
 0xd81   : > { %20686 = vadd.xlane.f32.xlu0 %v20685_v17 }
 0xd83   : > { %v32571_v4 = vpop.xlane.xlu1 %20656 }
 0xd8b   : > { %v32573_v33 = vpop.xlane.xlu1 %20662 }
 0xd93   : > { %v32577_v13 = vpop.xlane.xlu1 %20668 }
 0xd97   : > { %20952 = vrot.lane.b32.xlu0 %v34545_v32, %s27970_s12 }
 0xd9b   : > { %v32579_v36 = vpop.xlane.xlu1 %20674 }
 0xda1   : > { %v20498_v17 = vpop.xlane.xlu0 %20497 }
 0xda2   : > { %v20560_v63 = vsub.f32 %v32456_v59, %v20498_v17  ;;  %v34550_v17 = vld [vmem:[#allocation30_spill] sm:$0xff] }
 0xda3   : > { %v32583_v0 = vpop.xlane.xlu1 %20680 }
 0xda4   : > { %34546 = vst [vmem:[#allocation142_spill] sm:$0xff] %v32583_v0  ;;  %v20608_v22 = vmul.f32 1.442695, %v20560_v63 }
 0xda5   : > { %v20504_v47 = vpop.xlane.xlu0 %20503 }
 0xda6   : > { %27864 = vpow2.f32 %v20608_v22 }
 0xda7   : > { %v20877_v32 = vpop.permute.xlu1 %20876  ;;  %27866 = vpow2.f32 %v20610_v20 }
 0xda8   : > { %27102 = vmatpush3.msra.mxu1 %v20877_v32  ;;  %27868 = vrcp.f32 %v20651_v11 }
 0xda9   : > { %v20510_v8 = vpop.xlane.xlu0 %20509  ;;  %27104 = vmatmul.mubr.msk.f32.vlgmr.msra.gmra.mrb[80].mxu1 %vm1114_vm2, %v20769_v57  ;;  %27111 = vmatprep.subr.mxu1 %v34119_v25 }
 0xdaa   : > { %27113 = vmatprep.mubr.msk.f32.mxu1 %vm27967_vm1, %v34119_v25 }
 0xdad   : > { %v32590_v40 = vpop.xlane.xlu0 %20515 }
 0xdb0   : > { %v32592_v59 = vpop.eup %27864 }
 0xdb1   : > { %34547 = vst [vmem:[#allocation108_spill] sm:$0xff] %v32592_v59  ;;  %v32594_v63 = vpop.xlane.xlu0 %20521  ;;  %v20688_v43 = vsel %vm1114_vm2, %v32592_v59, 0.0  ;;  %v32598_v23 = vpop.eup %27866  ;;  %v34551_v59 = vld [vmem:[#allocation32_spill] sm:$0xff] }
 0xdb2   : > { %34548 = vst [vmem:[#allocation101_spill] sm:$0xff] %v32598_v23  ;;  %20689 = vadd.xlane.f32.xlu1 %v20688_v43  ;;  %v20691_v57 = vsel %vm1114_vm2, %v32598_v23, 0.0  ;;  %v20562_v23 = vsub.f32 %v32466_v2, %v20504_v47 }
 0xdb5   : > { %v32600_v20 = vpop.xlane.xlu0 %20527 }
 0xdb6   : > { %20692 = vadd.xlane.f32.xlu0 %v20691_v57 }
 0xdb9   : > { %v32604_v22 = vpop.xlane.xlu0 %20533 }
 0xdbd   : > { %v32606_v37 = vpop.xlane.xlu0 %20539 }
 0xdbe   : > { %34549 = vst [vmem:[#allocation164_spill] sm:$0xff] %v32606_v37  ;;  %v20612_v37 = vmul.f32 1.442695, %v20562_v23 }
 0xdc1   : > { %v20642_v15 = vpop.xlane.xlu0 %20641 }
 0xdc2   : > { %27870 = vrcp.f32 %v20642_v15 }
 0xdc3   : > { %21180 = vrot.lane.b32.xlu1 %v34550_v17, %s27970_s12  ;;  %v27869_v17 = vpop.eup %27868  ;;  %27872 = vpow2.f32 %v20612_v37  ;;  %v20618_v37 = vmul.f32 1.442695, %v20565_v21 }
 0xdc4   : > { %v20771_v11 = vmul.f32 %v27869_v17, %v32430_v9  ;;  %27874 = vpow2.f32 %v20614_v45 }
 0xdc5   : > { %v20648_v32 = vpop.xlane.xlu0 %20647 }
 0xdc6   : > { %27876 = vrcp.f32 %v20648_v32 }
 0xdc9   : > { %v20654_v34 = vpop.xlane.xlu0 %20653 }
 0xdcc   : > { %21104 = vrot.lane.b32.xlu0 %v34551_v59, %s27970_s12  ;;  %v27871_v59 = vpop.eup %27870 }
 0xdcd   : > { %v32612_v43 = vpop.xlane.xlu0 %20659  ;;  %v20768_v47 = vmul.f32 %v27871_v59, %v32515_v44  ;;  %v32634_v45 = vpop.eup %27872  ;;  %v20564_v44 = vsub.f32 %v32472_v41, %v20510_v8 }
 0xdce   : > { %v20694_v56 = vsel %vm1114_vm2, %v32634_v45, 0.0  ;;  %v32638_v9 = vpop.eup %27874 }
 0xdcf   : > { %v20697_v16 = vsel %vm1114_vm2, %v32638_v9, 0.0  ;;  %v20616_v23 = vmul.f32 1.442695, %v20564_v44 }
 0xdd0   : > { %v27877_v59 = vpop.eup %27876 }
 0xdd1   : > { %v32615_v57 = vpop.xlane.xlu0 %20665  ;;  %27878 = vpow2.f32 %v20616_v23 }
 0xdd2   : > { %27880 = vpow2.f32 %v20618_v37 }
 0xdd3   : > { %27882 = vrcp.f32 %v32571_v4 }
 0xdd4   : > { %27884 = vrcp.f32 %v20654_v34  ;;  %v20568_v34 = vsub.f32 %v32488_v30, %v32594_v63 }
 0xdd5   : > { %v32618_v14 = vpop.xlane.xlu0 %20671 }
 0xdd6   : > { %v20624_v44 = vmul.f32 1.442695, %v20568_v34 }
 0xdd8   : > { %v32620_v0 = vpop.xlane.xlu1 %20683 }
 0xdd9   : > { %v32622_v51 = vpop.xlane.xlu0 %20677 }
 0xddc   : > { %v21029_v15 = vpop.permute.xlu1 %21028 }
 0xddd   : > { %v20801_v2 = vpop.permute.xlu0 %20800  ;;  %27112 = vmatpush3.msra.mxu1 %v21029_v15 }
 0xdde   : > { %27097 = vmatpush3.msra.mxu0 %v20801_v2  ;;  %27114 = vmatmul.mubr.msk.f32.vlgmr.msra.gmra.mrb[82].mxu1 %vm1114_vm2, %v20771_v11  ;;  %v20770_v11 = vmul.f32 %v27877_v59, %v32520_v61  ;;  %v20566_v61 = vsub.f32 %v32480_v31, %v32590_v40  ;;  %v20622_v2 = vmul.f32 1.442695, %v20567_v60  ;;  %v20569_v40 = vsub.f32 %v32397_v19, %v32559_v50 }
 0xddf   : > { %27099 = vmatmul.mubr.msk.f32.vlgmr.msra.gmra.mrb[240].mxu0 %vm1114_vm2, %v20768_v47  ;;  %27106 = vmatprep.subr.mxu0 %v34119_v25 }
 0xde0   : > { %27108 = vmatprep.mubr.msk.f32.mxu0 %vm27967_vm1, %v34119_v25  ;;  %27121 = vmatprep.subr.mxu1 %v34119_v25  ;;  %v20620_v8 = vmul.f32 1.442695, %v20566_v61  ;;  %v20626_v37 = vmul.f32 1.442695, %v20569_v40 }
 0xde1   : > { %27123 = vmatprep.mubr.msk.f32.mxu1 %vm27967_vm1, %v34119_v25 }
 0xde2   : > { %27886 = vpow2.f32 %v20620_v8 }
 0xde3   : > { %27888 = vpow2.f32 %v20622_v2 }
 0xde4   : > { %27890 = vrcp.f32 %v32573_v33 }
 0xde5   : > { %27892 = vrcp.f32 %v32612_v43 }
 0xde6   : > { %27894 = vpow2.f32 %v20624_v44 }
 0xde7   : > { %20695 = vadd.xlane.f32.xlu1 %v20694_v56  ;;  %27896 = vpow2.f32 %v20626_v37 }
 0xde8   : > { %27898 = vrcp.f32 %v32577_v13 }
 0xde9   : > { %27900 = vrcp.f32 %v32615_v57 }
 0xdeb   : > { %20698 = vadd.xlane.f32.xlu0 %v20697_v16 }
 0xdf8   : > { %21332 = vrot.lane.b32.xlu1 %v34431_v39, %s27970_s12  ;;  %v32656_v39 = vpop.eup %27878 }
 0xdf9   : > { %v32660_v38 = vpop.eup %27880 }
 0xdfa   : > { %v20703_v41 = vsel %vm1114_vm2, %v32660_v38, 0.0  ;;  %v27883_v47 = vpop.eup %27882 }
 0xdfb   : > { %v20773_v56 = vmul.f32 %v27883_v47, %v32435_v42  ;;  %v27885_v16 = vpop.eup %27884 }
 0xdfc   : > { %v32687_v42 = vpop.eup %27886 }
 0xdfd   : > { %v20706_v31 = vsel %vm1114_vm2, %v32687_v42, 0.0  ;;  %v32691_v27 = vpop.eup %27888 }
 0xdfe   : > { %v27891_v23 = vpop.eup %27890 }
 0xe01   : > { %21256 = vrot.lane.b32.xlu0 %v34435_v55, %s27970_s12  ;;  %v20700_v55 = vsel %vm1114_vm2, %v32656_v39, 0.0 }
 0xe0e   : > { %v32649_v17 = vpop.xlane.xlu0 %20686 }
 0xe12   : > { %v20953_v15 = vpop.permute.xlu0 %20952 }
 0xe13   : > { %27107 = vmatpush3.msra.mxu0 %v20953_v15  ;;  %v20570_v15 = vsub.f32 %v32495_v58, %v32600_v20 }
 0xe14   : > { %27109 = vmatmul.mubr.msk.f32.vlgmr.msra.gmra.mrb[242].mxu0 %vm1114_vm2, %v20770_v11  ;;  %27116 = vmatprep.subr.mxu0 %v34119_v25 }
 0xe15   : > { %27118 = vmatprep.mubr.msk.f32.mxu0 %vm27967_vm1, %v34119_v25 }
 0xe1c   : > { %20701 = vadd.xlane.f32.xlu1 %v20700_v55  ;;  %v20571_v55 = vsub.f32 %v32403_v53, %v32563_v49 }
 0xe1e   : > { %v20630_v8 = vmul.f32 1.442695, %v20571_v55 }
 0xe20   : > { %20704 = vadd.xlane.f32.xlu0 %v20703_v41  ;;  %v20628_v41 = vmul.f32 1.442695, %v20570_v15 }
 0xe22   : > { %27902 = vpow2.f32 %v20628_v41 }
 0xe23   : > { %27904 = vpow2.f32 %v20630_v8 }
 0xe24   : > { %27906 = vrcp.f32 %v32579_v36 }
 0xe25   : > { %27908 = vrcp.f32 %v32618_v14  ;;  %v34552_v14 = vld [vmem:[#allocation133_spill] sm:$0xff] }
 0xe2d   : > { %21484 = vrot.lane.b32.xlu1 %v34442_v18, %s27970_s12 }
 0xe36   : > { %21408 = vrot.lane.b32.xlu0 %v34443_v46, %s27970_s12  ;;  %v20772_v46 = vmul.f32 %v27885_v16, %v32526_v24  ;;  %v20709_v24 = vsel %vm1114_vm2, %v32691_v27, 0.0  ;;  %v20572_v16 = vsub.f32 %v32504_v26, %v32604_v22 }
 0xe3f   : > { %v32673_v32 = vpop.xlane.xlu1 %20689 }
 0xe43   : > { %v32676_v18 = vpop.xlane.xlu0 %20692  ;;  %v21181_v4 = vpop.permute.xlu1 %21180 }
 0xe44   : > { %27122 = vmatpush3.msra.mxu1 %v21181_v4 }
 0xe45   : > { %27124 = vmatmul.mubr.msk.f32.vlgmr.msra.gmra.mrb[84].mxu1 %vm1114_vm2, %v20773_v56  ;;  %27131 = vmatprep.subr.mxu1 %v34119_v25 }
 0xe46   : > { %27133 = vmatprep.mubr.msk.f32.mxu1 %vm27967_vm1, %v34119_v25 }
 0xe47   : > { %v21105_v29 = vpop.permute.xlu0 %21104 }
 0xe48   : > { %27117 = vmatpush3.msra.mxu0 %v21105_v29  ;;  %v20632_v29 = vmul.f32 1.442695, %v20572_v16 }
 0xe49   : > { %27119 = vmatmul.mubr.msk.f32.vlgmr.msra.gmra.mrb[244].mxu0 %vm1114_vm2, %v20772_v46  ;;  %27126 = vmatprep.subr.mxu0 %v34119_v25  ;;  %v20573_v46 = vsub.f32 %v32409_v35, %v32567_v3 }
 0xe4a   : > { %27128 = vmatprep.mubr.msk.f32.mxu0 %vm27967_vm1, %v34119_v25  ;;  %27910 = vpow2.f32 %v20632_v29 }
 0xe4b   : > { %v20634_v34 = vmul.f32 1.442695, %v20573_v46 }
 0xe4d   : > { %27912 = vpow2.f32 %v20634_v34 }
 0xe51   : > { %20707 = vadd.xlane.f32.xlu1 %v20706_v31 }
 0xe55   : > { %20710 = vadd.xlane.f32.xlu0 %v20709_v24 }
 0xe62   : > { %21636 = vrot.lane.b32.xlu1 %v34445_v62, %s27970_s12  ;;  %v20775_v62 = vmul.f32 %v27891_v23, %v32440_v5 }
 0xe6b   : > { %21560 = vrot.lane.b32.xlu0 %v34446_v10, %s27970_s12  ;;  %v27893_v10 = vpop.eup %27892 }
 0xe6c   : > { %v20774_v19 = vmul.f32 %v27893_v10, %v32530_v28  ;;  %v32721_v63 = vpop.eup %27894  ;;  %v34555_v10 = vld [vmem:[#allocation83_spill] sm:$0xff] }
 0xe6d   : > { %v20712_v43 = vsel %vm1114_vm2, %v32721_v63, 0.0  ;;  %v32725_v11 = vpop.eup %27896 }
 0xe6e   : > { %v20715_v28 = vsel %vm1114_vm2, %v32725_v11, 0.0  ;;  %v27899_v60 = vpop.eup %27898 }
 0xe74   : > { %v32705_v21 = vpop.xlane.xlu1 %20695 }
 0xe78   : > { %v32708_v33 = vpop.xlane.xlu0 %20698  ;;  %v21333_v59 = vpop.permute.xlu1 %21332 }
 0xe79   : > { %27132 = vmatpush3.msra.mxu1 %v21333_v59  ;;  %v34554_v59 = vld [vmem:[#allocation142_spill] sm:$0xff] }
 0xe7a   : > { %27134 = vmatmul.mubr.msk.f32.vlgmr.msra.gmra.mrb[86].mxu1 %vm1114_vm2, %v20775_v62  ;;  %27141 = vmatprep.subr.mxu1 %v34119_v25  ;;  %v34553_v62 = vld [vmem:[#allocation82_spill] sm:$0xff]  ;;  %27914 = vrcp.f32 %v34554_v59  ;;  %v34570_v59 = vld [vmem:[#allocation92_spill] sm:$0xff] }
 0xe7b   : > { %27143 = vmatprep.mubr.msk.f32.mxu1 %vm27967_vm1, %v34119_v25  ;;  %27916 = vrcp.f32 %v32622_v51 }
 0xe7c   : > { %v21257_v30 = vpop.permute.xlu0 %21256  ;;  %v32715_v50 = vpop.f32.mrb[80].mxu1 }
 0xe7d   : > { %27127 = vmatpush3.msra.mxu0 %v21257_v30  ;;  %v27105_v5 = vpop.f32.mrb[81].mxu1  ;;  %v34557_v30 = vld [vmem:[#allocation132_spill] sm:$0xff] }
 0xe7e   : > { %27129 = vmatmul.mubr.msk.f32.vlgmr.msra.gmra.mrb[246].mxu0 %vm1114_vm2, %v20774_v19  ;;  %27136 = vmatprep.subr.mxu0 %v34119_v25  ;;  %v34556_v19 = vld [vmem:[#allocation164_spill] sm:$0xff] }
 0xe7f   : > { %27138 = vmatprep.mubr.msk.f32.mxu0 %vm27967_vm1, %v34119_v25  ;;  %v20574_v5 = vsub.f32 %v34557_v30, %v34556_v19  ;;  %v34572_v19 = vld [vmem:[#allocation163_spill] sm:$0xff] }
 0xe81   : > { %v20636_v55 = vmul.f32 1.442695, %v20574_v5 }
 0xe83   : > { %27918 = vpow2.f32 %v20636_v55 }
 0xe86   : > { %20713 = vadd.xlane.f32.xlu1 %v20712_v43  ;;  %v34558_v43 = vld [vmem:[#allocation145_spill] sm:$0xff] }
 0xe8a   : > { %20716 = vadd.xlane.f32.xlu0 %v20715_v28  ;;  %v34559_v28 = vld [vmem:[#allocation116_spill] sm:$0xff] }
 0xe8b   : > { %v20575_v15 = vsub.f32 %v34559_v28, %v34558_v43 }
 0xe8d   : > { %v20638_v8 = vmul.f32 1.442695, %v20575_v15  ;;  %v34573_v15 = vld [vmem:[#allocation94_spill] sm:$0xff] }
 0xe8f   : > { %27920 = vpow2.f32 %v20638_v8  ;;  %v34575_v8 = vld [vmem:[#allocation105_spill] sm:$0xff] }
 0xe90   : > { %27922 = vrcp.f32 %v32649_v17 }
 0xe91   : > { %27924 = vrcp.f32 %v32620_v0 }
 0xe92   : > { %27926 = vrcp.f32 %v32676_v18  ;;  %v34579_v18 = vld [vmem:[#allocation108_spill] sm:$0xff] }
 0xe93   : > { %27928 = vrcp.f32 %v32673_v32 }
 0xe94   : > { %27930 = vrcp.f32 %v32708_v33 }
 0xe97   : > { %21788 = vrot.lane.b32.xlu1 %v34448_v12, %s27970_s12  ;;  %v20777_v12 = vmul.f32 %v27899_v60, %v32445_v52 }
 0xea0   : > { %21712 = vrot.lane.b32.xlu0 %v34449_v48, %s27970_s12  ;;  %v27901_v48 = vpop.eup %27900  ;;  %27932 = vrcp.f32 %v32705_v21 }
 0xea1   : > { %v20776_v53 = vmul.f32 %v27901_v48, %v32534_v54  ;;  %v32757_v2 = vpop.eup %27902 }
 0xea2   : > { %v20718_v54 = vsel %vm1114_vm2, %v32757_v2, 0.0  ;;  %v32761_v56 = vpop.eup %27904 }
 0xea3   : > { %v20721_v4 = vsel %vm1114_vm2, %v32761_v56, 0.0  ;;  %v27907_v24 = vpop.eup %27906 }
 0xea9   : > { %v32739_v61 = vpop.xlane.xlu1 %20701 }
 0xeaa   : > { %27934 = vrcp.f32 %v32739_v61 }
 0xead   : > { %v32742_v13 = vpop.xlane.xlu0 %20704  ;;  %v21485_v47 = vpop.permute.xlu1 %21484 }
 0xeae   : > { %27142 = vmatpush3.msra.mxu1 %v21485_v47  ;;  %27936 = vrcp.f32 %v32742_v13 }
 0xeaf   : > { %27144 = vmatmul.mubr.msk.f32.vlgmr.msra.gmra.mrb[88].mxu1 %vm1114_vm2, %v20777_v12  ;;  %27151 = vmatprep.subr.mxu1 %v34119_v25  ;;  %v34560_v12 = vld [vmem:[#allocation161_spill] sm:$0xff] }
 0xeb0   : > { %27153 = vmatprep.mubr.msk.f32.mxu1 %vm27967_vm1, %v34119_v25 }
 0xeb1   : > { %v21409_v58 = vpop.permute.xlu0 %21408  ;;  %v32749_v49 = vpop.f32.mrb[82].mxu1 }
 0xeb2   : > { %v32751_v52 = vpop.f32.mrb[240].mxu0  ;;  %27137 = vmatpush3.msra.mxu0 %v21409_v58  ;;  %v27115_v20 = vpop.f32.mrb[83].mxu1 }
 0xeb3   : > { %v27100_v57 = vpop.f32.mrb[241].mxu0  ;;  %27139 = vmatmul.mubr.msk.f32.vlgmr.msra.gmra.mrb[248].mxu0 %vm1114_vm2, %v20776_v53  ;;  %27146 = vmatprep.subr.mxu0 %v34119_v25 }
 0xeb4   : > { %27148 = vmatprep.mubr.msk.f32.mxu0 %vm27967_vm1, %v34119_v25  ;;  %v34561_v57 = vld [vmem:[#allocation136_spill] sm:$0xff] }
 0xebb   : > { %20719 = vadd.xlane.f32.xlu1 %v20718_v54 }
 0xebf   : > { %20722 = vadd.xlane.f32.xlu0 %v20721_v4 }
 0xecc   : > { %21940 = vrot.lane.b32.xlu1 %v34452_v6, %s27970_s12  ;;  %v20779_v6 = vmul.f32 %v27907_v24, %v32450_v7 }
 0xed5   : > { %21864 = vrot.lane.b32.xlu0 %v34453_v1, %s27970_s12  ;;  %v27909_v1 = vpop.eup %27908 }
 0xed6   : > { %v20778_v35 = vmul.f32 %v27909_v1, %v34552_v14  ;;  %v32791_v22 = vpop.eup %27910  ;;  %v34563_v1 = vld [vmem:[#allocation87_spill] sm:$0xff]  ;;  %v34564_v14 = vld [vmem:[#allocation86_spill] sm:$0xff] }
 0xed7   : > { %v20724_v44 = vsel %vm1114_vm2, %v32791_v22, 0.0  ;;  %v32795_v23 = vpop.eup %27912 }
 0xed8   : > { %v20727_v37 = vsel %vm1114_vm2, %v32795_v23, 0.0  ;;  %v27915_v60 = vpop.eup %27914 }
 0xed9   : > { %v20781_v47 = vmul.f32 %v27915_v60, %v34560_v12  ;;  %v27917_v58 = vpop.eup %27916  ;;  %v34574_v60 = vld [vmem:[#allocation95_spill] sm:$0xff] }
 0xeda   : > { %v20780_v54 = vmul.f32 %v27917_v58, %v34561_v57  ;;  %v32827_v29 = vpop.eup %27918  ;;  %v34577_v57 = vld [vmem:[#allocation97_spill] sm:$0xff] }
 0xedb   : > { %v20730_v24 = vsel %vm1114_vm2, %v32827_v29, 0.0  ;;  %v32831_v34 = vpop.eup %27920 }
 0xedc   : > { %v27923_v17 = vpop.eup %27922 }
 0xedd   : > { %v20783_v0 = vmul.f32 %v27923_v17, %v34572_v19  ;;  %v27925_v43 = vpop.eup %27924 }
 0xede   : > { %v32775_v31 = vpop.xlane.xlu1 %20707  ;;  %v20782_v12 = vmul.f32 %v27925_v43, %v34575_v8 }
 0xedf   : > { %27938 = vrcp.f32 %v32775_v31 }
 0xee2   : > { %v32778_v36 = vpop.xlane.xlu0 %20710  ;;  %v21637_v40 = vpop.permute.xlu1 %21636 }
 0xee3   : > { %27152 = vmatpush3.msra.mxu1 %v21637_v40  ;;  %v34562_v40 = vld [vmem:[#allocation84_spill] sm:$0xff]  ;;  %27940 = vrcp.f32 %v32778_v36 }
 0xee4   : > { %27154 = vmatmul.mubr.msk.f32.vlgmr.msra.gmra.mrb[90].mxu1 %vm1114_vm2, %v20779_v6  ;;  %27161 = vmatprep.subr.mxu1 %v34119_v25  ;;  %v20733_v6 = vsel %vm1114_vm2, %v32831_v34, 0.0 }
 0xee5   : > { %27163 = vmatprep.mubr.msk.f32.mxu1 %vm27967_vm1, %v34119_v25 }
 0xee6   : > { %v21561_v26 = vpop.permute.xlu0 %21560 }
 0xee7   : > { %v32785_v3 = vpop.f32.mrb[242].mxu0  ;;  %27147 = vmatpush3.msra.mxu0 %v21561_v26  ;;  %v34566_v26 = vld [vmem:[#allocation88_spill] sm:$0xff] }
 0xee8   : > { %v27110_v7 = vpop.f32.mrb[243].mxu0  ;;  %27149 = vmatmul.mubr.msk.f32.vlgmr.msra.gmra.mrb[250].mxu0 %vm1114_vm2, %v20778_v35  ;;  %27156 = vmatprep.subr.mxu0 %v34119_v25  ;;  %v34565_v35 = vld [vmem:[#allocation85_spill] sm:$0xff] }
 0xee9   : > { %27158 = vmatprep.mubr.msk.f32.mxu0 %vm27967_vm1, %v34119_v25  ;;  %v34567_v7 = vld [vmem:[#allocation89_spill] sm:$0xff] }
 0xef0   : > { %20725 = vadd.xlane.f32.xlu1 %v20724_v44  ;;  %v34568_v44 = vld [vmem:[#allocation90_spill] sm:$0xff] }
 0xef4   : > { %20728 = vadd.xlane.f32.xlu0 %v20727_v37  ;;  %v34569_v37 = vld [vmem:[#allocation91_spill] sm:$0xff] }
 0xf01   : > { %22092 = vrot.lane.b32.xlu1 %v34553_v62, %s27970_s12 }
 0xf0a   : > { %22016 = vrot.lane.b32.xlu0 %v34555_v10, %s27970_s12  ;;  %v34571_v10 = vld [vmem:[#allocation93_spill] sm:$0xff] }
 0xf13   : > { %v32809_v41 = vpop.xlane.xlu1 %20713 }
 0xf14   : > { %27942 = vrcp.f32 %v32809_v41 }
 0xf17   : > { %v32812_v48 = vpop.xlane.xlu0 %20716  ;;  %v21789_v53 = vpop.permute.xlu1 %21788 }
 0xf18   : > { %v32814_v20 = vpop.f32.mrb[84].mxu1  ;;  %27162 = vmatpush3.msra.mxu1 %v21789_v53  ;;  %27944 = vrcp.f32 %v32812_v48 }
 0xf19   : > { %v27125_v51 = vpop.f32.mrb[85].mxu1  ;;  %27164 = vmatmul.mubr.msk.f32.vlgmr.msra.gmra.mrb[92].mxu1 %vm1114_vm2, %v20781_v47  ;;  %27171 = vmatprep.subr.mxu1 %v34119_v25 }
 0xf1a   : > { %27173 = vmatprep.mubr.msk.f32.mxu1 %vm27967_vm1, %v34119_v25  ;;  %v34576_v51 = vld [vmem:[#allocation96_spill] sm:$0xff] }
 0xf1b   : > { %v21713_v4 = vpop.permute.xlu0 %21712 }
 0xf1c   : > { %v32821_v16 = vpop.f32.mrb[244].mxu0  ;;  %27157 = vmatpush3.msra.mxu0 %v21713_v4  ;;  %v27927_v4 = vpop.eup %27926 }
 0xf1d   : > { %v27120_v46 = vpop.f32.mrb[245].mxu0  ;;  %27159 = vmatmul.mubr.msk.f32.vlgmr.msra.gmra.mrb[252].mxu0 %vm1114_vm2, %v20780_v54  ;;  %27166 = vmatprep.subr.mxu0 %v34119_v25 }
 0xf1e   : > { %27168 = vmatprep.mubr.msk.f32.mxu0 %vm27967_vm1, %v34119_v25  ;;  %v34578_v46 = vld [vmem:[#allocation101_spill] sm:$0xff] }
 0xf25   : > { %20731 = vadd.xlane.f32.xlu1 %v20730_v24  ;;  %v20785_v24 = vmul.f32 %v27927_v4, %v34578_v46 }
 0xf29   : > { %20734 = vadd.xlane.f32.xlu0 %v20733_v6 }
 0xf36   : > { %22244 = vrot.lane.b32.xlu1 %v34562_v40, %s27970_s12 }
 0xf3a   : > { %22320 = vrot.lane.b32.xlu1 %v34563_v1, %s27970_s12  ;;  %v27929_v1 = vpop.eup %27928 }
 0xf3b   : > { %v20784_v32 = vmul.f32 %v27929_v1, %v34579_v18  ;;  %v27931_v17 = vpop.eup %27930 }
 0xf3e   : > { %22396 = vrot.lane.b32.xlu1 %v34564_v14, %s27970_s12 }
 0xf3f   : > { %22168 = vrot.lane.b32.xlu0 %v34565_v35, %s27970_s12 }
 0xf42   : > { %22548 = vrot.lane.b32.xlu1 %v34566_v26, %s27970_s12 }
 0xf43   : > { %22472 = vrot.lane.b32.xlu0 %v34567_v7, %s27970_s12 }
 0xf46   : > { %22700 = vrot.lane.b32.xlu1 %v34568_v44, %s27970_s12 }
 0xf47   : > { %22624 = vrot.lane.b32.xlu0 %v34569_v37, %s27970_s12 }
 0xf48   : > { %v32853_v62 = vpop.xlane.xlu1 %20719 }
 0xf49   : > { %27946 = vrcp.f32 %v32853_v62 }
 0xf4a   : > { %22852 = vrot.lane.b32.xlu1 %v34570_v59, %s27970_s12  ;;  %v20787_v59 = vmul.f32 %v27931_v17, %v32638_v9 }
 0xf4b   : > { %22776 = vrot.lane.b32.xlu0 %v34571_v10, %s27970_s12 }
 0xf4c   : > { %v32860_v30 = vpop.xlane.xlu0 %20722  ;;  %v21941_v5 = vpop.permute.xlu1 %21940 }
 0xf4d   : > { %v32862_v28 = vpop.f32.mrb[86].mxu1  ;;  %27172 = vmatpush3.msra.mxu1 %v21941_v5  ;;  %27948 = vrcp.f32 %v32860_v30 }
 0xf4e   : > { %23004 = vrot.lane.b32.xlu1 %v34573_v15, %s27970_s12  ;;  %v27135_v55 = vpop.f32.mrb[87].mxu1  ;;  %27174 = vmatmul.mubr.msk.f32.vlgmr.msra.gmra.mrb[94].mxu1 %vm1114_vm2, %v20783_v0  ;;  %v27933_v0 = vpop.eup %27932 }
 0xf4f   : > { %22928 = vrot.lane.b32.xlu0 %v34574_v60, %s27970_s12  ;;  %27181 = vmatprep.subr.mxu1 %v34119_v25  ;;  %v27935_v33 = vpop.eup %27934  ;;  %v20786_v9 = vmul.f32 %v27933_v0, %v32634_v45 }
 0xf50   : > { %v21865_v47 = vpop.permute.xlu0 %21864  ;;  %27183 = vmatprep.mubr.msk.f32.mxu1 %vm27967_vm1, %v34119_v25  ;;  %v27937_v31 = vpop.eup %27936  ;;  %v20788_v48 = vmul.f32 %v27935_v33, %v32656_v39 }
 0xf51   : > { %v32873_v53 = vpop.f32.mrb[246].mxu0  ;;  %27167 = vmatpush3.msra.mxu0 %v21865_v47  ;;  %v27939_v45 = vpop.eup %27938  ;;  %v20789_v43 = vmul.f32 %v27937_v31, %v32660_v38 }
 0xf52   : > { %v27130_v58 = vpop.f32.mrb[247].mxu0  ;;  %23156 = vrot.lane.b32.xlu1 %v34576_v51, %s27970_s12  ;;  %27169 = vmatmul.mubr.msk.f32.vlgmr.msra.gmra.mrb[254].mxu0 %vm1114_vm2, %v20782_v12  ;;  %v27941_v62 = vpop.eup %27940  ;;  %v20790_v39 = vmul.f32 %v27939_v45, %v32687_v42 }
 0xf53   : > { %23080 = vrot.lane.b32.xlu0 %v34577_v57, %s27970_s12  ;;  %27176 = vmatprep.subr.mxu0 %v34119_v25  ;;  %v27943_v30 = vpop.eup %27942  ;;  %v20791_v38 = vmul.f32 %v27941_v62, %v32691_v27 }
 0xf54   : > { %27178 = vmatprep.mubr.msk.f32.mxu0 %vm27967_vm1, %v34119_v25  ;;  %v27945_v12 = vpop.eup %27944  ;;  %v20792_v27 = vmul.f32 %v27943_v30, %v32721_v63 }
 0xf55   : > { %v27947_v42 = vpop.eup %27946  ;;  %v20793_v47 = vmul.f32 %v27945_v12, %v32725_v11 }
 0xf56   : > { %v20794_v11 = vmul.f32 %v27947_v42, %v32757_v2 }
 0xf57   : > { %v27949_v57 = vpop.eup %27948 }
 0xf7d   : > { %v20726_v54 = vpop.xlane.xlu1 %20725 }
 0xf7e   : > { %27950 = vrcp.f32 %v20726_v54  ;;  %v20795_v54 = vmul.f32 %v27949_v57, %v32761_v56 }
 0xf81   : > { %v20729_v6 = vpop.xlane.xlu0 %20728  ;;  %v22093_v40 = vpop.permute.xlu1 %22092 }
 0xf82   : > { %v32886_v14 = vpop.f32.mrb[88].mxu1  ;;  %27182 = vmatpush3.msra.mxu1 %v22093_v40  ;;  %27952 = vrcp.f32 %v20729_v6 }
 0xf83   : > { %v27145_v35 = vpop.f32.mrb[89].mxu1  ;;  %27184 = vmatmul.mubr.msk.f32.vlgmr.msra.gmra.mrb[96].mxu1 %vm1114_vm2, %v20785_v24  ;;  %27191 = vmatprep.subr.mxu1 %v34119_v25 }
 0xf84   : > { %27193 = vmatprep.mubr.msk.f32.mxu1 %vm27967_vm1, %v34119_v25 }
 0xf85   : > { %v22017_v26 = vpop.permute.xlu0 %22016 }
 0xf86   : > { %v32893_v7 = vpop.f32.mrb[248].mxu0  ;;  %27177 = vmatpush3.msra.mxu0 %v22017_v26 }
 0xf87   : > { %v27140_v44 = vpop.f32.mrb[249].mxu0  ;;  %27179 = vmatmul.mubr.msk.f32.vlgmr.msra.gmra.mrb[0].mxu0 %vm1114_vm2, %v20784_v32  ;;  %27186 = vmatprep.subr.mxu0 %v34119_v25 }
 0xf88   : > { %27188 = vmatprep.mubr.msk.f32.mxu0 %vm27967_vm1, %v34119_v25  ;;  %v27951_v63 = vpop.eup %27950 }
 0xf89   : > { %v20796_v56 = vmul.f32 %v27951_v63, %v32791_v22  ;;  %v1108_v22 = vld [vmem:[%s33749_s4 + $0x18] sm:$0xff] }
 0xf8c   : > { %v27953_v24 = vpop.eup %27952 }
 0xf8d   : > { %v20797_v6 = vmul.f32 %v27953_v24, %v32795_v23 }
 0xfb2   : > { %v20732_v37 = vpop.xlane.xlu1 %20731 }
 0xfb3   : > { %27954 = vrcp.f32 %v20732_v37 }
 0xfb6   : > { %v20735_v10 = vpop.xlane.xlu0 %20734  ;;  %v22245_v19 = vpop.permute.xlu1 %22244 }
 0xfb7   : > { %v32906_v5 = vpop.f32.mrb[90].mxu1  ;;  %27192 = vmatpush3.msra.mxu1 %v22245_v19  ;;  %27956 = vrcp.f32 %v20735_v10 }
 0xfb8   : > { %v27155_v21 = vpop.f32.mrb[91].mxu1  ;;  %27194 = vmatmul.mubr.msk.f32.vlgmr.msra.gmra.mrb[98].mxu1 %vm1114_vm2, %v20787_v59  ;;  %27201 = vmatprep.subr.mxu1 %v34119_v25 }
 0xfb9   : > { %27203 = vmatprep.mubr.msk.f32.mxu1 %vm27967_vm1, %v34119_v25 }
 0xfba   : > { %v22169_v61 = vpop.permute.xlu0 %22168  ;;  %v22321_v13 = vpop.permute.xlu1 %22320 }
 0xfbb   : > { %v32915_v36 = vpop.f32.mrb[250].mxu0  ;;  %27187 = vmatpush3.msra.mxu0 %v22169_v61 }
 0xfbc   : > { %v27150_v41 = vpop.f32.mrb[251].mxu0  ;;  %27189 = vmatmul.mubr.msk.f32.vlgmr.msra.gmra.mrb[2].mxu0 %vm1114_vm2, %v20786_v9  ;;  %27196 = vmatprep.subr.mxu0 %v34119_v25 }
 0xfbd   : > { %27197 = vmatpush3.msra.mxu0 %v22321_v13  ;;  %27198 = vmatprep.mubr.msk.f32.mxu0 %vm27967_vm1, %v34119_v25  ;;  %v27955_v2 = vpop.eup %27954 }
 0xfbe   : > { %v22473_v15 = vpop.permute.xlu0 %22472  ;;  %v22397_v55 = vpop.permute.xlu1 %22396  ;;  %27206 = vmatprep.subr.mxu0 %v34119_v25  ;;  %v20798_v23 = vmul.f32 %v27955_v2, %v32827_v29 }
 0xfbf   : > { %27202 = vmatpush3.msra.mxu1 %v22397_v55 }
 0xfc0   : > { %27199 = vmatmul.mubr.msk.f32.vlgmr.msra.gmra.mrb[4].mxu0 %vm1114_vm2, %v20788_v48  ;;  %27204 = vmatmul.mubr.msk.f32.vlgmr.msra.gmra.mrb[100].mxu1 %vm1114_vm2, %v20789_v43 }
 0xfc1   : > { %27207 = vmatpush3.msra.mxu0 %v22473_v15  ;;  %27211 = vmatprep.subr.mxu1 %v34119_v25  ;;  %v27957_v35 = vpop.eup %27956 }
 0xfc2   : > { %v22625_v60 = vpop.permute.xlu0 %22624  ;;  %v22549_v8 = vpop.permute.xlu1 %22548  ;;  %27208 = vmatprep.mubr.msk.f32.mxu0 %vm27967_vm1, %v34119_v25  ;;  %27213 = vmatprep.mubr.msk.f32.mxu1 %vm27967_vm1, %v34119_v25  ;;  %v20799_v18 = vmul.f32 %v27957_v35, %v32831_v34 }
 0xfc3   : > { %27212 = vmatpush3.msra.mxu1 %v22549_v8  ;;  %27216 = vmatprep.subr.mxu0 %v34119_v25  ;;  %v33027_v8 = vld [vmem:[%s33750_s5] ss:$0 sm:$0xff] }
 0xfc4   : > { %27209 = vmatmul.mubr.msk.f32.vlgmr.msra.gmra.mrb[6].mxu0 %vm1114_vm2, %v20790_v39  ;;  %27214 = vmatmul.mubr.msk.f32.vlgmr.msra.gmra.mrb[102].mxu1 %vm1114_vm2, %v20791_v38 }
 0xfc5   : > { %27217 = vmatpush3.msra.mxu0 %v22625_v60  ;;  %27221 = vmatprep.subr.mxu1 %v34119_v25 }
 0xfc6   : > { %v22777_v58 = vpop.permute.xlu0 %22776  ;;  %v22701_v51 = vpop.permute.xlu1 %22700  ;;  %27218 = vmatprep.mubr.msk.f32.mxu0 %vm27967_vm1, %v34119_v25  ;;  %27223 = vmatprep.mubr.msk.f32.mxu1 %vm27967_vm1, %v34119_v25 }
 0xfc7   : > { %27222 = vmatpush3.msra.mxu1 %v22701_v51  ;;  %27226 = vmatprep.subr.mxu0 %v34119_v25 }
 0xfc8   : > { %27219 = vmatmul.mubr.msk.f32.vlgmr.msra.gmra.mrb[8].mxu0 %vm1114_vm2, %v20792_v27  ;;  %27224 = vmatmul.mubr.msk.f32.vlgmr.msra.gmra.mrb[104].mxu1 %vm1114_vm2, %v20793_v47 }
 0xfc9   : > { %27227 = vmatpush3.msra.mxu0 %v22777_v58  ;;  %27231 = vmatprep.subr.mxu1 %v34119_v25 }
 0xfca   : > { %v22929_v4 = vpop.permute.xlu0 %22928  ;;  %v22853_v46 = vpop.permute.xlu1 %22852  ;;  %27228 = vmatprep.mubr.msk.f32.mxu0 %vm27967_vm1, %v34119_v25  ;;  %27233 = vmatprep.mubr.msk.f32.mxu1 %vm27967_vm1, %v34119_v25 }
 0xfcb   : > { %27232 = vmatpush3.msra.mxu1 %v22853_v46  ;;  %27236 = vmatprep.subr.mxu0 %v34119_v25 }
 0xfcc   : > { %27229 = vmatmul.mubr.msk.f32.vlgmr.msra.gmra.mrb[10].mxu0 %vm1114_vm2, %v20794_v11  ;;  %27234 = vmatmul.mubr.msk.f32.vlgmr.msra.gmra.mrb[106].mxu1 %vm1114_vm2, %v20795_v54 }
 0xfcd   : > { %27237 = vmatpush3.msra.mxu0 %v22929_v4  ;;  %27241 = vmatprep.subr.mxu1 %v34119_v25 }
 0xfce   : > { %v23081_v40 = vpop.permute.xlu0 %23080  ;;  %v23005_v1 = vpop.permute.xlu1 %23004  ;;  %27238 = vmatprep.mubr.msk.f32.mxu0 %vm27967_vm1, %v34119_v25  ;;  %27243 = vmatprep.mubr.msk.f32.mxu1 %vm27967_vm1, %v34119_v25 }
 0xfcf   : > { %27242 = vmatpush3.msra.mxu1 %v23005_v1  ;;  %27246 = vmatprep.subr.mxu0 %v34119_v25 }
 0xfd0   : > { %27239 = vmatmul.mubr.msk.f32.vlgmr.msra.gmra.mrb[12].mxu0 %vm1114_vm2, %v20796_v56  ;;  %27244 = vmatmul.mubr.msk.f32.vlgmr.msra.gmra.mrb[108].mxu1 %vm1114_vm2, %v20797_v6 }
 0xfd1   : > { %27247 = vmatpush3.msra.mxu0 %v23081_v40  ;;  %27251 = vmatprep.subr.mxu1 %v34119_v25 }
 0xfd2   : > { %v23157_v32 = vpop.permute.xlu1 %23156  ;;  %27248 = vmatprep.mubr.msk.f32.mxu0 %vm27967_vm1, %v34119_v25  ;;  %27253 = vmatprep.mubr.msk.f32.mxu1 %vm27967_vm1, %v34119_v25 }
 0xfd3   : > { %27252 = vmatpush3.msra.mxu1 %v23157_v32  ;;  %27256 = vmatprep.subr.mxu0 %v1108_v22 }
 0xfd4   : > { %27249 = vmatmul.mubr.msk.f32.vlgmr.msra.gmra.mrb[14].mxu0 %vm1114_vm2, %v20798_v23  ;;  %27254 = vmatmul.mubr.msk.f32.vlgmr.msra.gmra.mrb[110].mxu1 %vm1114_vm2, %v20799_v18 }
 0xfd5   : > { %27258 = vmatprep.mubr.msk.f32.mxu0 %vm1114_vm2, %v32751_v52  ;;  %27257 = vmatpush3.msra.mxu0 %v1108_v22 }
 0xfd8   : > { %27259 = vmatmul.mubr.msk.f32.vlgmr.msra.gmra.mrb[160].mxu0 %vm1114_vm2, %v32715_v50 }
 0xfd9   : > { %27261 = vmatprep.mubr.msk.f32.mxu0 %vm1114_vm2, %v32785_v3 }
 0xfdc   : > { %27262 = vmatmul.mubr.msk.f32.gmra.mrb[162].mxu0 %vm1114_vm2, %v32749_v49 }
 0xfdd   : > { %27264 = vmatprep.mubr.msk.f32.mxu0 %vm1114_vm2, %v32821_v16 }
 0xfe0   : > { %27265 = vmatmul.mubr.msk.f32.gmra.mrb[164].mxu0 %vm1114_vm2, %v32814_v20 }
 0xfe1   : > { %27267 = vmatprep.mubr.msk.f32.mxu0 %vm1114_vm2, %v32873_v53 }
 0xfe4   : > { %27268 = vmatmul.mubr.msk.f32.gmra.mrb[166].mxu0 %vm1114_vm2, %v32862_v28 }
 0xfe5   : > { %27270 = vmatprep.mubr.msk.f32.mxu0 %vm1114_vm2, %v32893_v7 }
 0xfe8   : > { %27271 = vmatmul.mubr.msk.f32.gmra.mrb[168].mxu0 %vm1114_vm2, %v32886_v14 }
 0xfe9   : > { %27273 = vmatprep.mubr.msk.f32.mxu0 %vm1114_vm2, %v32915_v36 }
 0xfec   : > { %v21860_v25 = vpop.f32.mrb[92].mxu1  ;;  %27274 = vmatmul.mubr.msk.f32.gmra.mrb[170].mxu0 %vm1114_vm2, %v32906_v5 }
 0xfed   : > { %v27165_v50 = vpop.f32.mrb[93].mxu1 }
 0xff0   : > { %v21784_v49 = vpop.f32.mrb[252].mxu0 }
 0xff1   : > { %v27160_v52 = vpop.f32.mrb[253].mxu0  ;;  %27276 = vmatprep.mubr.msk.f32.mxu0 %vm1114_vm2, %v21784_v49 }
 0xff2   : > { %27277 = vmatmul.mubr.msk.f32.gmra.mrb[172].mxu0 %vm1114_vm2, %v21860_v25 }
0x1021   : > { %v22012_v3 = vpop.f32.mrb[94].mxu1 }
0x1022   : > { %v27175_v20 = vpop.f32.mrb[95].mxu1 }
0x1025   : > { %v21936_v16 = vpop.f32.mrb[254].mxu0 }
0x1026   : > { %v27170_v29 = vpop.f32.mrb[255].mxu0  ;;  %27279 = vmatprep.mubr.msk.f32.mxu0 %vm1114_vm2, %v21936_v16 }
0x1027   : > { %27280 = vmatmul.mubr.msk.f32.gmra.mrb[174].mxu0 %vm1114_vm2, %v22012_v3 }
0x1056   : > { %v22164_v34 = vpop.f32.mrb[96].mxu1 }
0x1057   : > { %v27185_v28 = vpop.f32.mrb[97].mxu1 }
0x105a   : > { %v22088_v53 = vpop.f32.mrb[0].mxu0 }
0x105b   : > { %v27180_v14 = vpop.f32.mrb[1].mxu0  ;;  %27282 = vmatprep.mubr.msk.f32.mxu0 %vm1114_vm2, %v22088_v53 }
0x105c   : > { %27283 = vmatmul.mubr.msk.f32.gmra.mrb[176].mxu0 %vm1114_vm2, %v22164_v34 }
0x108b   : > { %v22316_v26 = vpop.f32.mrb[98].mxu1 }
0x108c   : > { %v27195_v7 = vpop.f32.mrb[99].mxu1 }
0x108f   : > { %v22240_v44 = vpop.f32.mrb[2].mxu0 }
0x1090   : > { %v27190_v37 = vpop.f32.mrb[3].mxu0  ;;  %27285 = vmatprep.mubr.msk.f32.mxu0 %vm1114_vm2, %v22240_v44 }
0x1091   : > { %27286 = vmatmul.mubr.msk.f32.gmra.mrb[178].mxu0 %vm1114_vm2, %v22316_v26 }
0x1093   : > { %v22392_v17 = vpop.f32.mrb[4].mxu0  ;;  %v22468_v59 = vpop.f32.mrb[100].mxu1 }
0x1094   : > { %v27200_v10 = vpop.f32.mrb[5].mxu0  ;;  %v27205_v19 = vpop.f32.mrb[101].mxu1  ;;  %27288 = vmatprep.mubr.msk.f32.mxu0 %vm1114_vm2, %v22392_v17 }
0x1095   : > { %27289 = vmatmul.mubr.msk.f32.gmra.mrb[180].mxu0 %vm1114_vm2, %v22468_v59 }
0x1097   : > { %v22544_v0 = vpop.f32.mrb[6].mxu0  ;;  %v22620_v5 = vpop.f32.mrb[102].mxu1 }
0x1098   : > { %v27210_v21 = vpop.f32.mrb[7].mxu0  ;;  %v27215_v33 = vpop.f32.mrb[103].mxu1  ;;  %27291 = vmatprep.mubr.msk.f32.mxu0 %vm1114_vm2, %v22544_v0 }
0x1099   : > { %27292 = vmatmul.mubr.msk.f32.gmra.mrb[182].mxu0 %vm1114_vm2, %v22620_v5 }
0x109b   : > { %v22696_v9 = vpop.f32.mrb[8].mxu0  ;;  %v22772_v61 = vpop.f32.mrb[104].mxu1 }
0x109c   : > { %v27220_v13 = vpop.f32.mrb[9].mxu0  ;;  %v27225_v31 = vpop.f32.mrb[105].mxu1  ;;  %27294 = vmatprep.mubr.msk.f32.mxu0 %vm1114_vm2, %v22696_v9 }
0x109d   : > { %27295 = vmatmul.mubr.msk.f32.gmra.mrb[184].mxu0 %vm1114_vm2, %v22772_v61 }
0x109f   : > { %v22848_v36 = vpop.f32.mrb[10].mxu0  ;;  %v22924_v41 = vpop.f32.mrb[106].mxu1 }
0x10a0   : > { %v27230_v45 = vpop.f32.mrb[11].mxu0  ;;  %v27235_v48 = vpop.f32.mrb[107].mxu1  ;;  %27297 = vmatprep.mubr.msk.f32.mxu0 %vm1114_vm2, %v22848_v36 }
0x10a1   : > { %27298 = vmatmul.mubr.msk.f32.gmra.mrb[186].mxu0 %vm1114_vm2, %v22924_v41 }
0x10a3   : > { %v23000_v43 = vpop.f32.mrb[12].mxu0  ;;  %v23076_v15 = vpop.f32.mrb[108].mxu1 }
0x10a4   : > { %v27240_v55 = vpop.f32.mrb[13].mxu0  ;;  %v27245_v62 = vpop.f32.mrb[109].mxu1  ;;  %27300 = vmatprep.mubr.msk.f32.mxu0 %vm1114_vm2, %v23000_v43 }
0x10a5   : > { %27301 = vmatmul.mubr.msk.f32.gmra.mrb[188].mxu0 %vm1114_vm2, %v23076_v15 }
0x10a7   : > { %v23152_v30 = vpop.f32.mrb[14].mxu0  ;;  %v23228_v39 = vpop.f32.mrb[110].mxu1 }
0x10a8   : > { %v27250_v38 = vpop.f32.mrb[15].mxu0  ;;  %v27255_v60 = vpop.f32.mrb[111].mxu1  ;;  %27303 = vmatprep.mubr.msk.f32.mxu0 %vm1114_vm2, %v23152_v30 }
0x10a9   : > { %27304 = vmatmul.mubr.msk.f32.gmra.mrb[190].mxu0 %vm1114_vm2, %v23228_v39 }
0x10ab   : > { %v27260_v12 = vpop.f32.mrb[160].mxu0 }
0x10ac   : > { %v33030_v42 = vadd.f32 %v27260_v12, %v33027_v8  ;;  %v23394_v27 = vpop.f32.mrb[161].mxu0 }
0x10ad   : > { %v33033_v47 = vadd.f32 %v33027_v8, %v23394_v27 }
0x10ae   : > { %v23656_v58 = vrot.slane %v33030_v42, 7  ;;  %v23947_v51 = vrot.slane %v33030_v42, 3  ;;  %v24011_v57 = vrot.slane %v33030_v42, 4  ;;  %v24083_v63 = vrot.slane %v33030_v42, 5 }
0x10af   : > { %v23946_v11 = vrot.slane %v33033_v47, 4  ;;  %v27263_v54 = vpop.f32.mrb[162].mxu0  ;;  %v24010_v4 = vrot.slane %v33033_v47, 5  ;;  %v23727_v46 = vrot.slane %v33033_v47, 1  ;;  %v24082_v24 = vrot.slane %v33033_v47, 6 }
0x10b0   : > { %v23658_v2 = vsel %vm23657_vm4, %v23656_v58, %v33033_v47  ;;  %v33046_v56 = vadd.f32 %v27263_v54, %v33027_v8  ;;  %v23404_v6 = vpop.f32.mrb[163].mxu0  ;;  %v23800_v40 = vrot.slane %v33033_v47, 2  ;;  %v23801_v1 = vrot.slane %v33030_v42, 1 }
0x10b1   : > { %v23948_v35 = vsel %vm23657_vm4, %v23947_v51, %v23946_v11  ;;  %v33052_v22 = vadd.f32 %v33027_v8, %v23404_v6  ;;  %v24012_v23 = vsel %vm23657_vm4, %v24011_v57, %v24010_v4  ;;  %v23728_v18 = vsel %vm23657_vm4, %v33030_v42, %v23727_v46 }
0x10b2   : > { %v23662_v32 = vrot.slane %v33046_v56, 5  ;;  %v23951_v25 = vrot.slane %v33046_v56, 1  ;;  %v24015_v50 = vrot.slane %v33046_v56, 2  ;;  %v23731_v49 = vrot.slane %v33046_v56, 6 }
0x10b3   : > { %v23659_v52 = vrot.slane %v33052_v22, 6  ;;  %v23949_v3 = vrot.slane %v33052_v22, 2  ;;  %v27266_v20 = vpop.f32.mrb[164].mxu0  ;;  %v24013_v16 = vrot.slane %v33052_v22, 3  ;;  %v23729_v29 = vrot.slane %v33052_v22, 7 }
0x10b4   : > { %v33066_v34 = vadd.f32 %v27266_v20, %v33027_v8  ;;  %v23414_v28 = vpop.f32.mrb[165].mxu0  ;;  %v24084_v53 = vsel %vm23657_vm4, %v24083_v63, %v24082_v24  ;;  %v24085_v14 = vrot.slane %v33052_v22, 4  ;;  %v24087_v26 = vrot.slane %v33046_v56, 3 }
0x10b5   : > { %v33072_v7 = vsel %vm23660_vm5, %v23659_v52, %v23658_v2  ;;  %v33075_v44 = vadd.f32 %v33027_v8, %v23414_v28  ;;  %v23950_v37 = vsel %vm23660_vm5, %v23949_v3, %v23948_v35  ;;  %v24014_v17 = vsel %vm23660_vm5, %v24013_v16, %v24012_v23 }
0x10b6   : > { %v23668_v59 = vrot.slane %v33066_v34, 3  ;;  %v23954_v10 = vrot.slane %v33066_v34, 7  ;;  %v23952_v19 = vsel %vm23663_vm6, %v23951_v25, %v23950_v37  ;;  %v24016_v0 = vsel %vm23663_vm6, %v24015_v50, %v24014_v17 }
0x10b7   : > { %v23665_v5 = vrot.slane %v33075_v44, 4  ;;  %v33086_v21 = vsel %vm23666_vm7, %v33075_v44, %v23952_v19  ;;  %v27269_v33 = vpop.f32.mrb[166].mxu0  ;;  %v24017_v9 = vrot.slane %v33075_v44, 1  ;;  %v23730_v61 = vsel %vm23660_vm5, %v23729_v29, %v23728_v18 }
0x10b8   : > { %v33091_v13 = vadd.f32 %v27269_v33, %v33027_v8  ;;  %v23424_v31 = vpop.f32.mrb[167].mxu0  ;;  %v23732_v36 = vsel %vm23663_vm6, %v23731_v49, %v23730_v61  ;;  %v23733_v41 = vrot.slane %v33075_v44, 5  ;;  %v23735_v45 = vrot.slane %v33066_v34, 4 }
0x10b9   : > { %v33097_v48 = vadd.f32 %v33027_v8, %v23424_v31  ;;  %v24018_v43 = vsel %vm23666_vm7, %v24017_v9, %v24016_v0  ;;  %v24086_v15 = vsel %vm23660_vm5, %v24085_v14, %v24084_v53  ;;  %v24089_v55 = vrot.slane %v33075_v44, 2 }
0x10ba   : > { %v24019_v62 = vsel %vm23669_vm8, %v33066_v34, %v24018_v43  ;;  %v24022_v30 = vrot.slane %v33091_v13, 6  ;;  %v23734_v39 = vsel %vm23666_vm7, %v23733_v41, %v23732_v36  ;;  %v23739_v38 = vrot.slane %v33091_v13, 2 }
0x10bb   : > { %v23671_v60 = vrot.slane %v33097_v48, 2  ;;  %v23956_v12 = vrot.slane %v33097_v48, 6  ;;  %v27272_v27 = vpop.f32.mrb[168].mxu0  ;;  %v24020_v58 = vrot.slane %v33097_v48, 7  ;;  %v23736_v51 = vsel %vm23669_vm8, %v23735_v45, %v23734_v39 }
0x10bc   : > { %v33112_v57 = vadd.f32 %v27272_v27, %v33027_v8  ;;  %v23434_v63 = vpop.f32.mrb[169].mxu0  ;;  %v23737_v11 = vrot.slane %v33097_v48, 3  ;;  %v24088_v54 = vsel %vm23663_vm6, %v24087_v26, %v24086_v15  ;;  %v24091_v4 = vrot.slane %v33066_v34, 1 }
0x10bd   : > { %v33118_v46 = vadd.f32 %v33027_v8, %v23434_v63  ;;  %v24021_v24 = vsel %vm23672_vm9, %v24020_v58, %v24019_v62  ;;  %v24090_v2 = vsel %vm23666_vm7, %v24089_v55, %v24088_v54  ;;  %v24094_v6 = vrot.slane %v33091_v13, 7 }
0x10be   : > { %v23677_v35 = vrot.slane %v33112_v57, 7  ;;  %v23961_v23 = vrot.slane %v33112_v57, 3  ;;  %v24023_v18 = vsel %vm23675_vm10, %v24022_v30, %v24021_v24  ;;  %v23738_v25 = vsel %vm23672_vm9, %v23737_v11, %v23736_v51 }
0x10bf   : > { %v23960_v50 = vrot.slane %v33118_v46, 4  ;;  %24066 = vrot.lane.b32.xlu1 %v24023_v18, %s27971_s19  ;;  %v23740_v49 = vsel %vm23675_vm10, %v23739_v38, %v23738_v25  ;;  %v27275_v52 = vpop.f32.mrb[170].mxu0  ;;  %v24024_v3 = vrot.slane %v33118_v46, 5  ;;  %v24025_v20 = vrot.slane %v33112_v57, 4 }
0x10c0   : > { %v33134_v16 = vsel %vm23657_vm4, %v23677_v35, %v33118_v46  ;;  %23783 = vrot.lane.b32.xlu0 %v23740_v49, %s27971_s19  ;;  %v33138_v29 = vadd.f32 %v27275_v52, %v33027_v8  ;;  %v23444_v28 = vpop.f32.mrb[171].mxu0  ;;  %v23741_v53 = vrot.slane %v33118_v46, 1  ;;  %v24092_v14 = vsel %vm23669_vm8, %v24091_v4, %v24090_v2 }
0x10c1   : > { %v33143_v26 = vsel %vm23657_vm4, %v23961_v23, %v23960_v50  ;;  %v33146_v37 = vadd.f32 %v33027_v8, %v23444_v28  ;;  %v24026_v17 = vsel %vm23657_vm4, %v24025_v20, %v24024_v3  ;;  %v24093_v19 = vsel %vm23672_vm9, %v33097_v48, %v24092_v14 }
0x10c2   : > { %v23681_v0 = vrot.slane %v33138_v29, 5  ;;  %v23965_v33 = vrot.slane %v33138_v29, 1  ;;  %v24029_v9 = vrot.slane %v33138_v29, 2  ;;  %v23742_v61 = vsel %vm23657_vm4, %v33112_v57, %v23741_v53 }
0x10c3   : > { %v23679_v31 = vrot.slane %v33146_v37, 6  ;;  %v23963_v36 = vrot.slane %v33146_v37, 2  ;;  %v24027_v41 = vrot.slane %v33146_v37, 3  ;;  %v23743_v45 = vrot.slane %v33146_v37, 7 }
0x10c4   : > { %v23745_v43 = vrot.slane %v33138_v29, 6  ;;  %v33162_v15 = vsel %vm23675_vm10, %v24094_v6, %v24093_v19  ;;  %v23802_v55 = vsel %vm23657_vm4, %v23801_v1, %v23800_v40  ;;  %v23804_v62 = vrot.slane %v33046_v56, 7 }
0x10c5   : > { %v27278_v30 = vpop.f32.mrb[172].mxu0  ;;  %v24028_v39 = vsel %vm23660_vm5, %v24027_v41, %v24026_v17  ;;  %v23744_v38 = vsel %vm23660_vm5, %v23743_v45, %v23742_v61  ;;  %v23803_v27 = vsel %vm23660_vm5, %v33052_v22, %v23802_v55  ;;  %v23806_v58 = vrot.slane %v33075_v44, 6 }
0x10c6   : > { %v33176_v51 = vadd.f32 %v27278_v30, %v33027_v8  ;;  %v23454_v63 = vpop.f32.mrb[173].mxu0  ;;  %v24030_v11 = vsel %vm23663_vm6, %v24029_v9, %v24028_v39  ;;  %v23746_v40 = vsel %vm23663_vm6, %v23745_v43, %v23744_v38  ;;  %v23805_v1 = vsel %vm23663_vm6, %v23804_v62, %v23803_v27 }
0x10c7   : > { %v33182_v54 = vadd.f32 %v33027_v8, %v23454_v63  ;;  %v23807_v4 = vsel %vm23666_vm7, %v23806_v58, %v23805_v1  ;;  %v23808_v24 = vrot.slane %v33066_v34, 5  ;;  %v23810_v2 = vrot.slane %v33097_v48, 4 }
0x10c8   : > { %v23685_v6 = vrot.slane %v33176_v51, 3  ;;  %v23968_v35 = vrot.slane %v33176_v51, 7  ;;  %v23749_v23 = vrot.slane %v33176_v51, 4  ;;  %v23812_v18 = vrot.slane %v33091_v13, 3 }
0x10c9   : > { %v23683_v25 = vrot.slane %v33182_v54, 4  ;;  %v24031_v50 = vrot.slane %v33182_v54, 1  ;;  %v23747_v49 = vrot.slane %v33182_v54, 5  ;;  %v23809_v52 = vsel %vm23669_vm8, %v23808_v24, %v23807_v4 }
0x10ca   : > { %v23811_v3 = vsel %vm23672_vm9, %v23810_v2, %v23809_v52  ;;  %v24096_v20 = vrot.slane %v33118_v46, 6  ;;  %v24097_v28 = vrot.slane %v33112_v57, 5  ;;  %v24099_v53 = vrot.slane %v33146_v37, 4 }
0x10cb   : > { %v24032_v14 = vsel %vm23666_vm7, %v24031_v50, %v24030_v11  ;;  %v23748_v17 = vsel %vm23666_vm7, %v23747_v49, %v23746_v40  ;;  %v33202_v19 = vsel %vm23675_vm10, %v23812_v18, %v23811_v3  ;;  %v24101_v9 = vrot.slane %v33138_v29, 3 }
0x10cc   : > { %v33207_v61 = vsel %vm23669_vm8, %v33176_v51, %v24032_v14  ;;  %v33210_v41 = vsel %vm23669_vm8, %v23749_v23, %v23748_v17  ;;  %v24098_v45 = vsel %vm23657_vm4, %v24097_v28, %v24096_v20  ;;  %v24103_v43 = vrot.slane %v33182_v54, 2 }
0x10cd   : > { %v24100_v55 = vsel %vm23660_vm5, %v24099_v53, %v24098_v45  ;;  %v24105_v62 = vrot.slane %v33176_v51, 1  ;;  %v23814_v30 = vrot.slane %v33118_v46, 2  ;;  %v23815_v39 = vrot.slane %v33112_v57, 1 }
0x10ce   : > { %v24102_v38 = vsel %vm23663_vm6, %v24101_v9, %v24100_v55  ;;  %v23818_v27 = vrot.slane %v33138_v29, 7  ;;  %v23820_v58 = vrot.slane %v33182_v54, 6  ;;  %v23822_v63 = vrot.slane %v33176_v51, 5 }
0x10cf   : > { %v24104_v11 = vsel %vm23666_vm7, %v24103_v43, %v24102_v38  ;;  %v23816_v40 = vsel %vm23657_vm4, %v23815_v39, %v23814_v30  ;;  %v24154_v1 = vrot.slane %v33033_v47, 7  ;;  %v24155_v4 = vrot.slane %v33030_v42, 6 }
0x10d0   : > { %v33231_v24 = vsel %vm23669_vm8, %v24105_v62, %v24104_v11  ;;  %v23817_v2 = vsel %vm23660_vm5, %v33146_v37, %v23816_v40  ;;  %v24157_v23 = vrot.slane %v33052_v22, 5  ;;  %v24159_v18 = vrot.slane %v33046_v56, 4 }
0x10d1   : > { %v23819_v50 = vsel %vm23663_vm6, %v23818_v27, %v23817_v2  ;;  %v24156_v49 = vsel %vm23657_vm4, %v24155_v4, %v24154_v1  ;;  %v24161_v52 = vrot.slane %v33075_v44, 3  ;;  %v24163_v3 = vrot.slane %v33066_v34, 2 }
0x10d2   : > { %v23821_v20 = vsel %vm23666_vm7, %v23820_v58, %v23819_v50  ;;  %v24158_v28 = vsel %vm23660_vm5, %v24157_v23, %v24156_v49  ;;  %v24165_v53 = vrot.slane %v33097_v48, 1  ;;  %v23873_v14 = vrot.slane %v33033_v47, 3 }
0x10d3   : > { %v33247_v17 = vsel %vm23669_vm8, %v23822_v63, %v23821_v20  ;;  %v24160_v9 = vsel %vm23663_vm6, %v24159_v18, %v24158_v28  ;;  %v23874_v45 = vrot.slane %v33030_v42, 2  ;;  %v23876_v43 = vrot.slane %v33052_v22, 1 }
0x10d4   : > { %v24162_v55 = vsel %vm23666_vm7, %v24161_v52, %v24160_v9  ;;  %v23879_v62 = vrot.slane %v33075_v44, 7  ;;  %v23881_v30 = vrot.slane %v33066_v34, 6  ;;  %v23883_v47 = vrot.slane %v33097_v48, 5 }
0x10d5   : > { %v24164_v39 = vsel %vm23669_vm8, %v24163_v3, %v24162_v55  ;;  %v23875_v38 = vsel %vm23657_vm4, %v23874_v45, %v23873_v14  ;;  %v23885_v27 = vrot.slane %v33091_v13, 4  ;;  %v24168_v58 = vrot.slane %v33118_v46, 7 }
0x10d6   : > { %v24166_v42 = vsel %vm23672_vm9, %v24165_v53, %v24164_v39  ;;  %v23877_v22 = vsel %vm23660_vm5, %v23876_v43, %v23875_v38  ;;  %v24169_v63 = vrot.slane %v33112_v57, 6  ;;  %v24171_v11 = vrot.slane %v33146_v37, 5 }
0x10d7   : > { %v33269_v40 = vsel %vm23675_vm10, %v33091_v13, %v24166_v42  ;;  %v23878_v1 = vsel %vm23663_vm6, %v33046_v56, %v23877_v22  ;;  %v24173_v4 = vrot.slane %v33138_v29, 4  ;;  %v24175_v2 = vrot.slane %v33182_v54, 3 }
0x10d8   : > { %v23880_v23 = vsel %vm23666_vm7, %v23879_v62, %v23878_v1  ;;  %v24170_v18 = vsel %vm23657_vm4, %v24169_v63, %v24168_v58  ;;  %v24177_v50 = vrot.slane %v33176_v51, 2  ;;  %v23887_v49 = vrot.slane %v33118_v46, 3 }
0x10d9   : > { %v23882_v52 = vsel %vm23669_vm8, %v23881_v30, %v23880_v23  ;;  %v24172_v3 = vsel %vm23660_vm5, %v24171_v11, %v24170_v18  ;;  %v23888_v20 = vrot.slane %v33112_v57, 2  ;;  %v23890_v28 = vrot.slane %v33146_v37, 1 }
0x10da   : > { %v23884_v53 = vsel %vm23672_vm9, %v23883_v47, %v23882_v52  ;;  %v24174_v14 = vsel %vm23663_vm6, %v24173_v4, %v24172_v3  ;;  %v23893_v9 = vrot.slane %v33182_v54, 7  ;;  %v23895_v45 = vrot.slane %v33176_v51, 6 }
0x10db   : > { %v33288_v43 = vsel %vm23675_vm10, %v23885_v27, %v23884_v53  ;;  %v24176_v46 = vsel %vm23666_vm7, %v24175_v2, %v24174_v14  ;;  %v23889_v55 = vsel %vm23657_vm4, %v23888_v20, %v23887_v49  ;;  %v23664_v57 = vsel %vm23663_vm6, %v23662_v32, %v33072_v7 }
0x10dc   : > { %v24178_v62 = vsel %vm23669_vm8, %v24177_v50, %v24176_v46  ;;  %v23891_v30 = vsel %vm23660_vm5, %v23890_v28, %v23889_v55  ;;  %v23667_v47 = vsel %vm23666_vm7, %v23665_v5, %v23664_v57  ;;  %v23674_v39 = vrot.slane %v33091_v13, 1 }
0x10dd   : > { %v23892_v38 = vsel %vm23663_vm6, %v33138_v29, %v23891_v30  ;;  %v23670_v56 = vsel %vm23669_vm8, %v23668_v59, %v23667_v47  ;;  %v23680_v32 = vsel %vm23660_vm5, %v23679_v31, %v33134_v16  ;;  %v23955_v7 = vsel %vm23669_vm8, %v23954_v10, %v33086_v21 }
0x10de   : > { %v23894_v44 = vsel %vm23666_vm7, %v23893_v9, %v23892_v38  ;;  %v23673_v5 = vsel %vm23672_vm9, %v23671_v60, %v23670_v56  ;;  %v23682_v59 = vsel %vm23663_vm6, %v23681_v0, %v23680_v32  ;;  %v23957_v16 = vsel %vm23672_vm9, %v23956_v12, %v23955_v7 }
0x10df   : > { %v23896_v31 = vsel %vm23669_vm8, %v23895_v45, %v23894_v44  ;;  %v23676_v34 = vsel %vm23675_vm10, %v23674_v39, %v23673_v5  ;;  %v23684_v10 = vsel %vm23666_vm7, %v23683_v25, %v23682_v59  ;;  %v23958_v21 = vrot.slane %v33091_v13, 5 }
0x10e0   : > { %v23686_v60 = vsel %vm23669_vm8, %v23685_v6, %v23684_v10  ;;  %23723 = vst.msk [vmem:[%s33307_s25] sm:$0xff] %vm293_vm0, %v23676_v34  ;;  %v23964_v48 = vsel %vm23660_vm5, %v23963_v36, %v33143_v26 }
0x10e1   : > { %v23959_v12 = vsel %vm23675_vm10, %v23958_v21, %v23957_v16  ;;  %v23966_v0 = vsel %vm23663_vm6, %v23965_v33, %v23964_v48 }
0x10e2   : > { %v23967_v13 = vsel %vm23666_vm7, %v33182_v54, %v23966_v0  ;;  %24006 = vst.msk [vmem:[%s33307_s25 + $0x8] sm:$0xff] %vm293_vm0, %v23959_v12 }
0x10e3   : > { %v23969_v6 = vsel %vm23669_vm8, %v23968_v35, %v23967_v13 }
0x10fa   : > { %v27281_v25 = vpop.f32.mrb[174].mxu0 }
0x10fb   : > { %v23607_v37 = vadd.f32 %v27281_v25, %v33027_v8  ;;  %v23464_v27 = vpop.f32.mrb[175].mxu0 }
0x10fc   : > { %v23606_v26 = vadd.f32 %v33027_v8, %v23464_v27 }
0x10fd   : > { %v24036_v36 = vrot.slane %v23607_v37, 6  ;;  %v23753_v58 = vrot.slane %v23607_v37, 2  ;;  %v24108_v29 = vrot.slane %v23607_v37, 7  ;;  %v23826_v42 = vrot.slane %v23607_v37, 3 }
0x10fe   : > { %v24034_v33 = vrot.slane %v23606_v26, 7  ;;  %v23751_v22 = vrot.slane %v23606_v26, 3  ;;  %v24107_v54 = vsel %vm23672_vm9, %v23606_v26, %v33231_v24  ;;  %v23824_v63 = vrot.slane %v23606_v26, 4 }
0x10ff   : > { %v24109_v51 = vsel %vm23675_vm10, %v24108_v29, %v24107_v54  ;;  %v24179_v11 = vrot.slane %v23606_v26, 1  ;;  %v23897_v35 = vrot.slane %v23606_v26, 5  ;;  %v23899_v1 = vrot.slane %v23607_v37, 4 }
0x1100   : > { %v24035_v4 = vsel %vm23672_vm9, %v24034_v33, %v33207_v61  ;;  %v23752_v2 = vsel %vm23672_vm9, %v23751_v22, %v33210_v41  ;;  %v23825_v23 = vsel %vm23672_vm9, %v23824_v63, %v33247_v17  ;;  %v23687_v18 = vrot.slane %v23606_v26, 2 }
0x1101   : > { %v24037_v50 = vsel %vm23675_vm10, %v24036_v36, %v24035_v4  ;;  %v23754_v24 = vsel %vm23675_vm10, %v23753_v58, %v23752_v2  ;;  %v23827_v49 = vsel %vm23675_vm10, %v23826_v42, %v23825_v23  ;;  %v24180_v52 = vsel %vm23672_vm9, %v24179_v11, %v24178_v62 }
0x1102   : > { %24068 = vrot.lane.b32.xlu1 %v24037_v50, %s27971_s19  ;;  %23785 = vrot.lane.b32.xlu0 %v23754_v24, %s27971_s19  ;;  %v24181_v61 = vsel %vm23675_vm10, %v23607_v37, %v24180_v52  ;;  %v23898_v41 = vsel %vm23672_vm9, %v23897_v35, %v23896_v31  ;;  %v23688_v17 = vsel %vm23672_vm9, %v23687_v18, %v23686_v60  ;;  %v23689_v3 = vrot.slane %v23607_v37, 1 }
0x1103   : > { %v23900_v20 = vsel %vm23675_vm10, %v23899_v1, %v23898_v41  ;;  %v23970_v28 = vrot.slane %v23606_v26, 6  ;;  %v23972_v14 = vrot.slane %v23607_v37, 5 }
0x1104   : > { %v23690_v53 = vsel %vm23675_vm10, %v23689_v3, %v23688_v17 }
0x1105   : > { %23724 = vst.msk [vmem:[%s33307_s25 + $0x10] sm:$0xff] %vm293_vm0, %v23690_v53  ;;  %v23971_v9 = vsel %vm23672_vm9, %v23970_v28, %v23969_v6 }
0x1106   : > { %24138 = vrot.lane.b32.xlu1 %v33162_v15, %s27972_s26  ;;  %23856 = vrot.lane.b32.xlu0 %v33202_v19, %s27972_s26  ;;  %v23973_v45 = vsel %vm23675_vm10, %v23972_v14, %v23971_v9 }
0x1107   : > { %24007 = vst.msk [vmem:[%s33307_s25 + $0x18] sm:$0xff] %vm293_vm0, %v23973_v45 }
0x110a   : > { %24140 = vrot.lane.b32.xlu1 %v24109_v51, %s27972_s26  ;;  %23858 = vrot.lane.b32.xlu0 %v23827_v49, %s27972_s26 }
0x110e   : > { %24210 = vrot.lane.b32.xlu1 %v33269_v40, %s27973_s27  ;;  %23929 = vrot.lane.b32.xlu0 %v33288_v43, %s27973_s27 }
0x1112   : > { %24212 = vrot.lane.b32.xlu1 %v24181_v61, %s27973_s27  ;;  %23931 = vrot.lane.b32.xlu0 %v23900_v20, %s27973_s27 }
0x112f   : > { %v27284_v15 = vpop.f32.mrb[176].mxu0 }
0x1130   : > { %v23609_v19 = vadd.f32 %v27284_v15, %v33027_v8  ;;  %v23474_v46 = vpop.f32.mrb[177].mxu0 }
0x1131   : > { %v23608_v55 = vadd.f32 %v33027_v8, %v23474_v46 }
0x1132   : > { %v23691_v57 = vrot.slane %v23609_v19, 7  ;;  %v23975_v62 = vrot.slane %v23609_v19, 3  ;;  %v24111_v30 = vrot.slane %v23609_v19, 5  ;;  %v24039_v47 = vrot.slane %v23609_v19, 4 }
0x1133   : > { %v23974_v39 = vrot.slane %v23608_v55, 4  ;;  %v24110_v38 = vrot.slane %v23608_v55, 6  ;;  %v23755_v40 = vrot.slane %v23608_v55, 1  ;;  %v24038_v56 = vrot.slane %v23608_v55, 5 }
0x1134   : > { %v33399_v43 = vsel %vm23657_vm4, %v23691_v57, %v23608_v55  ;;  %v23828_v32 = vrot.slane %v23608_v55, 2  ;;  %v23829_v7 = vrot.slane %v23609_v19, 1  ;;  %v23901_v44 = vrot.slane %v23608_v55, 3 }
0x1135   : > { %v24112_v5 = vsel %vm23657_vm4, %v24111_v30, %v24110_v38  ;;  %v23756_v59 = vsel %vm23657_vm4, %v23609_v19, %v23755_v40  ;;  %v24040_v16 = vsel %vm23657_vm4, %v24039_v47, %v24038_v56  ;;  %v23902_v31 = vrot.slane %v23609_v19, 2 }
0x1136   : > { %v23830_v34 = vsel %vm23657_vm4, %v23829_v7, %v23828_v32  ;;  %v24182_v10 = vrot.slane %v23608_v55, 7  ;;  %v24183_v21 = vrot.slane %v23609_v19, 6  ;;  %v33406_v60 = vsel %vm23657_vm4, %v23975_v62, %v23974_v39 }
0x1137   : > { %v33409_v48 = vsel %vm23657_vm4, %v23902_v31, %v23901_v44 }
0x1138   : > { %v33412_v12 = vsel %vm23657_vm4, %v24183_v21, %v24182_v10 }
0x1164   : > { %v27287_v0 = vpop.f32.mrb[178].mxu0 }
0x1165   : > { %v33415_v13 = vadd.f32 %v27287_v0, %v33027_v8  ;;  %v23484_v6 = vpop.f32.mrb[179].mxu0 }
0x1166   : > { %v33418_v25 = vadd.f32 %v33027_v8, %v23484_v6 }
0x1167   : > { %v23695_v37 = vrot.slane %v33415_v13, 5  ;;  %v23979_v27 = vrot.slane %v33415_v13, 1  ;;  %v24115_v26 = vrot.slane %v33415_v13, 3  ;;  %v23759_v36 = vrot.slane %v33415_v13, 6 }
0x1168   : > { %v23693_v58 = vrot.slane %v33418_v25, 6  ;;  %v23977_v29 = vrot.slane %v33418_v25, 2  ;;  %v27290_v42 = vpop.f32.mrb[180].mxu0  ;;  %v24113_v33 = vrot.slane %v33418_v25, 4  ;;  %v23757_v22 = vrot.slane %v33418_v25, 7 }
0x1169   : > { %v33429_v54 = vadd.f32 %v27290_v42, %v33027_v8  ;;  %v23494_v63 = vpop.f32.mrb[181].mxu0  ;;  %v24041_v51 = vrot.slane %v33418_v25, 3  ;;  %v24043_v11 = vrot.slane %v33415_v13, 2  ;;  %v23831_v35 = vsel %vm23660_vm5, %v33418_v25, %v23830_v34 }
0x116a   : > { %v33436_v1 = vadd.f32 %v33027_v8, %v23494_v63  ;;  %v24114_v4 = vsel %vm23660_vm5, %v24113_v33, %v24112_v5  ;;  %v23758_v2 = vsel %vm23660_vm5, %v23757_v22, %v23756_v59  ;;  %v23832_v23 = vrot.slane %v33415_v13, 7 }
0x116b   : > { %v24116_v18 = vsel %vm23663_vm6, %v24115_v26, %v24114_v4  ;;  %v24119_v50 = vrot.slane %v33429_v54, 1  ;;  %v23760_v24 = vsel %vm23663_vm6, %v23759_v36, %v23758_v2  ;;  %v23763_v49 = vrot.slane %v33429_v54, 4 }
0x116c   : > { %v27293_v52 = vpop.f32.mrb[182].mxu0  ;;  %v24117_v61 = vrot.slane %v33436_v1, 2  ;;  %v23761_v41 = vrot.slane %v33436_v1, 5  ;;  %v24042_v17 = vsel %vm23660_vm5, %v24041_v51, %v24040_v16  ;;  %v24045_v3 = vrot.slane %v33436_v1, 1 }
0x116d   : > { %v33450_v20 = vadd.f32 %v27293_v52, %v33027_v8  ;;  %v23504_v28 = vpop.f32.mrb[183].mxu0  ;;  %v24044_v53 = vsel %vm23663_vm6, %v24043_v11, %v24042_v17  ;;  %v23833_v14 = vsel %vm23663_vm6, %v23832_v23, %v23831_v35  ;;  %v23834_v9 = vrot.slane %v33436_v1, 6 }
0x116e   : > { %v33456_v45 = vadd.f32 %v33027_v8, %v23504_v28  ;;  %v24118_v15 = vsel %vm23666_vm7, %v24117_v61, %v24116_v18  ;;  %v23762_v19 = vsel %vm23666_vm7, %v23761_v41, %v23760_v24  ;;  %v24046_v46 = vsel %vm23666_vm7, %v24045_v3, %v24044_v53 }
0x116f   : > { %v24120_v55 = vsel %vm23669_vm8, %v24119_v50, %v24118_v15  ;;  %v24122_v57 = vrot.slane %v33450_v20, 7  ;;  %v23764_v62 = vsel %vm23669_vm8, %v23763_v49, %v23762_v19  ;;  %v23767_v30 = vrot.slane %v33450_v20, 2 }
0x1170   : > { %v27296_v47 = vpop.f32.mrb[184].mxu0  ;;  %v24121_v39 = vsel %vm23672_vm9, %v33456_v45, %v24120_v55  ;;  %v23765_v38 = vrot.slane %v33456_v45, 3  ;;  %v24047_v40 = vsel %vm23669_vm8, %v33429_v54, %v24046_v46  ;;  %v24048_v56 = vrot.slane %v33456_v45, 7 }
0x1171   : > { %v33472_v32 = vadd.f32 %v27296_v47, %v33027_v8  ;;  %v23514_v7 = vpop.f32.mrb[185].mxu0  ;;  %v24123_v44 = vsel %vm23675_vm10, %v24122_v57, %v24121_v39  ;;  %v24050_v5 = vrot.slane %v33450_v20, 6  ;;  %v23835_v59 = vsel %vm23666_vm7, %v23834_v9, %v23833_v14 }
0x1172   : > { %v33478_v16 = vadd.f32 %v33027_v8, %v23514_v7  ;;  %24142 = vrot.lane.b32.xlu1 %v24123_v44, %s27972_s26  ;;  %v23766_v31 = vsel %vm23672_vm9, %v23765_v38, %v23764_v62  ;;  %v24049_v34 = vsel %vm23672_vm9, %v24048_v56, %v24047_v40  ;;  %v23836_v10 = vrot.slane %v33429_v54, 5 }
0x1173   : > { %v23705_v21 = vrot.slane %v33472_v32, 7  ;;  %v23989_v0 = vrot.slane %v33472_v32, 3  ;;  %v23768_v6 = vsel %vm23675_vm10, %v23767_v30, %v23766_v31  ;;  %v24051_v26 = vsel %vm23675_vm10, %v24050_v5, %v24049_v34 }
0x1174   : > { %v23988_v36 = vrot.slane %v33478_v16, 4  ;;  %23787 = vrot.lane.b32.xlu0 %v23768_v6, %s27971_s19  ;;  %v23837_v42 = vsel %vm23669_vm8, %v23836_v10, %v23835_v59  ;;  %v23838_v33 = vrot.slane %v33456_v45, 4  ;;  %v23840_v22 = vrot.slane %v33450_v20, 3  ;;  %v27299_v63 = vpop.f32.mrb[186].mxu0 }
0x1175   : > { %v23904_v51 = vrot.slane %v33418_v25, 1  ;;  %v23907_v11 = vrot.slane %v33436_v1, 7  ;;  %v23909_v35 = vrot.slane %v33429_v54, 6  ;;  %v23911_v4 = vrot.slane %v33456_v45, 5  ;;  %v23524_v23 = vpop.f32.mrb[187].mxu0 }
0x1176   : > { %v33498_v2 = vadd.f32 %v27299_v63, %v33027_v8  ;;  %24070 = vrot.lane.b32.xlu1 %v24051_v26, %s27971_s19  ;;  %v23839_v18 = vsel %vm23672_vm9, %v23838_v33, %v23837_v42  ;;  %v23913_v50 = vrot.slane %v33450_v20, 4  ;;  %v24124_v24 = vrot.slane %v33478_v16, 6 }
0x1177   : > { %v33505_v49 = vadd.f32 %v33027_v8, %v23524_v23  ;;  %v23841_v52 = vsel %vm23675_vm10, %v23840_v22, %v23839_v18  ;;  %v23905_v61 = vsel %vm23660_vm5, %v23904_v51, %v33409_v48  ;;  %v24125_v41 = vrot.slane %v33472_v32, 5 }
0x1178   : > { %23860 = vrot.lane.b32.xlu0 %v23841_v52, %s27972_s26  ;;  %v23906_v17 = vsel %vm23663_vm6, %v33415_v13, %v23905_v61  ;;  %v24129_v3 = vrot.slane %v33498_v2, 3  ;;  %v23769_v28 = vrot.slane %v33478_v16, 1  ;;  %v23773_v53 = vrot.slane %v33498_v2, 6  ;;  %v27302_v14 = vpop.f32.mrb[188].mxu0 }
0x1179   : > { %v23908_v9 = vsel %vm23666_vm7, %v23907_v11, %v23906_v17  ;;  %v24126_v15 = vsel %vm23657_vm4, %v24125_v41, %v24124_v24  ;;  %v24127_v48 = vrot.slane %v33505_v49, 4  ;;  %v23771_v19 = vrot.slane %v33505_v49, 7  ;;  %v23534_v55 = vpop.f32.mrb[189].mxu0 }
0x117a   : > { %v33522_v46 = vadd.f32 %v27302_v14, %v33027_v8  ;;  %v23910_v57 = vsel %vm23669_vm8, %v23909_v35, %v23908_v9  ;;  %v23770_v62 = vsel %vm23657_vm4, %v33472_v32, %v23769_v28  ;;  %v24052_v30 = vrot.slane %v33478_v16, 5 }
0x117b   : > { %v33529_v47 = vadd.f32 %v33027_v8, %v23534_v55  ;;  %v23912_v39 = vsel %vm23672_vm9, %v23911_v4, %v23910_v57  ;;  %v24128_v38 = vsel %vm23660_vm5, %v24127_v48, %v24126_v15  ;;  %v23772_v40 = vsel %vm23660_vm5, %v23771_v19, %v23770_v62 }
0x117c   : > { %v23914_v56 = vsel %vm23675_vm10, %v23913_v50, %v23912_v39  ;;  %v24130_v7 = vsel %vm23663_vm6, %v24129_v3, %v24128_v38  ;;  %v24133_v44 = vrot.slane %v33522_v46, 1  ;;  %v23774_v5 = vsel %vm23663_vm6, %v23773_v53, %v23772_v40  ;;  %v27305_v59 = vpop.f32.mrb[190].mxu0 }
0x117d   : > { %23933 = vrot.lane.b32.xlu0 %v23914_v56, %s27973_s27  ;;  %v24131_v31 = vrot.slane %v33529_v47, 2  ;;  %v23775_v34 = vrot.slane %v33529_v47, 5  ;;  %v23777_v10 = vrot.slane %v33522_v46, 4  ;;  %v24053_v6 = vrot.slane %v33472_v32, 4  ;;  %v23544_v42 = vpop.f32.mrb[191].mxu0 }
0x117e   : > { %v33544_v26 = vadd.f32 %v27305_v59, %v33027_v8  ;;  %v24055_v33 = vrot.slane %v33505_v49, 3  ;;  %v24057_v22 = vrot.slane %v33498_v2, 2  ;;  %v24059_v63 = vrot.slane %v33529_v47, 1 }
0x117f   : > { %v33550_v51 = vadd.f32 %v33027_v8, %v23544_v42  ;;  %v24132_v11 = vsel %vm23666_vm7, %v24131_v31, %v24130_v7  ;;  %v23776_v35 = vsel %vm23666_vm7, %v23775_v34, %v23774_v5  ;;  %v24054_v4 = vsel %vm23657_vm4, %v24053_v6, %v24052_v30 }
0x1180   : > { %v24134_v23 = vsel %vm23669_vm8, %v24133_v44, %v24132_v11  ;;  %v24136_v18 = vrot.slane %v33544_v26, 7  ;;  %v23778_v50 = vsel %vm23669_vm8, %v23777_v10, %v23776_v35  ;;  %v23781_v24 = vrot.slane %v33544_v26, 2 }
0x1181   : > { %v24135_v52 = vsel %vm23672_vm9, %v33550_v51, %v24134_v23  ;;  %v23779_v8 = vrot.slane %v33550_v51, 3  ;;  %v24056_v61 = vsel %vm23660_vm5, %v24055_v33, %v24054_v4  ;;  %v24062_v41 = vrot.slane %v33550_v51, 7 }
0x1182   : > { %v24137_v17 = vsel %vm23675_vm10, %v24136_v18, %v24135_v52  ;;  %v24058_v3 = vsel %vm23663_vm6, %v24057_v22, %v24056_v61  ;;  %v24064_v28 = vrot.slane %v33544_v26, 6  ;;  %v23842_v53 = vrot.slane %v33478_v16, 2 }
0x1183   : > { %24144 = vrot.lane.b32.xlu1 %v24137_v17, %s27972_s26  ;;  %v23780_v14 = vsel %vm23672_vm9, %v23779_v8, %v23778_v50  ;;  %v24060_v9 = vsel %vm23666_vm7, %v24059_v63, %v24058_v3  ;;  %v23843_v15 = vrot.slane %v33472_v32, 1  ;;  %v23846_v48 = vrot.slane %v33498_v2, 7 }
0x1184   : > { %v23782_v19 = vsel %vm23675_vm10, %v23781_v24, %v23780_v14  ;;  %v24061_v55 = vsel %vm23669_vm8, %v33522_v46, %v24060_v9  ;;  %v23848_v57 = vrot.slane %v33529_v47, 6  ;;  %v23850_v62 = vrot.slane %v33522_v46, 5 }
0x1185   : > { %23789 = vrot.lane.b32.xlu0 %v23782_v19, %s27971_s19  ;;  %v24063_v30 = vsel %vm23672_vm9, %v24062_v41, %v24061_v55  ;;  %v23844_v39 = vsel %vm23657_vm4, %v23843_v15, %v23842_v53  ;;  %v23852_v38 = vrot.slane %v33550_v51, 4  ;;  %v23854_v40 = vrot.slane %v33544_v26, 3 }
0x1186   : > { %v24065_v56 = vsel %vm23675_vm10, %v24064_v28, %v24063_v30  ;;  %v23845_v7 = vsel %vm23660_vm5, %v33505_v49, %v23844_v39  ;;  %v24185_v44 = vrot.slane %v33418_v25, 5  ;;  %v24187_v5 = vrot.slane %v33415_v13, 4 }
0x1187   : > { %24072 = vrot.lane.b32.xlu1 %v24065_v56, %s27971_s19  ;;  %v23847_v59 = vsel %vm23663_vm6, %v23846_v48, %v23845_v7  ;;  %v24189_v31 = vrot.slane %v33436_v1, 3  ;;  %v24191_v34 = vrot.slane %v33429_v54, 2  ;;  %v24193_v10 = vrot.slane %v33456_v45, 1 }
0x1188   : > { %v23849_v6 = vsel %vm23666_vm7, %v23848_v57, %v23847_v59  ;;  %v24186_v42 = vsel %vm23660_vm5, %v24185_v44, %v33412_v12  ;;  %v23915_v33 = vrot.slane %v33478_v16, 3  ;;  %v23916_v22 = vrot.slane %v33472_v32, 2 }
0x1189   : > { %v23851_v63 = vsel %vm23669_vm8, %v23850_v62, %v23849_v6  ;;  %v24188_v11 = vsel %vm23663_vm6, %v24187_v5, %v24186_v42  ;;  %v23918_v35 = vrot.slane %v33505_v49, 1  ;;  %v23921_v4 = vrot.slane %v33529_v47, 7 }
0x118a   : > { %v23853_v23 = vsel %vm23672_vm9, %v23852_v38, %v23851_v63  ;;  %v24190_v18 = vsel %vm23666_vm7, %v24189_v31, %v24188_v11  ;;  %v23917_v50 = vsel %vm23657_vm4, %v23916_v22, %v23915_v33  ;;  %v23923_v12 = vrot.slane %v33522_v46, 6 }
0x118b   : > { %v23855_v24 = vsel %vm23675_vm10, %v23854_v40, %v23853_v23  ;;  %v24192_v52 = vsel %vm23669_vm8, %v24191_v34, %v24190_v18  ;;  %v23919_v8 = vsel %vm23660_vm5, %v23918_v35, %v23917_v50  ;;  %v23925_v61 = vrot.slane %v33550_v51, 5 }
0x118c   : > { %23862 = vrot.lane.b32.xlu0 %v23855_v24, %s27972_s26  ;;  %v24194_v41 = vsel %vm23672_vm9, %v24193_v10, %v24192_v52  ;;  %v23920_v17 = vsel %vm23663_vm6, %v33498_v2, %v23919_v8  ;;  %v23927_v3 = vrot.slane %v33544_v26, 4  ;;  %v24196_v28 = vrot.slane %v33478_v16, 7 }
0x118d   : > { %v24195_v53 = vsel %vm23675_vm10, %v33450_v20, %v24194_v41  ;;  %v23922_v14 = vsel %vm23666_vm7, %v23921_v4, %v23920_v17  ;;  %v24197_v9 = vrot.slane %v33472_v32, 6  ;;  %v24199_v15 = vrot.slane %v33505_v49, 5 }
0x118e   : > { %24214 = vrot.lane.b32.xlu1 %v24195_v53, %s27973_s27  ;;  %v23924_v48 = vsel %vm23669_vm8, %v23923_v12, %v23922_v14  ;;  %v24201_v19 = vrot.slane %v33498_v2, 4  ;;  %v24203_v55 = vrot.slane %v33529_v47, 3  ;;  %v24205_v57 = vrot.slane %v33522_v46, 2 }
0x118f   : > { %v23926_v62 = vsel %vm23672_vm9, %v23925_v61, %v23924_v48  ;;  %v24198_v30 = vsel %vm23657_vm4, %v24197_v9, %v24196_v28  ;;  %v24207_v39 = vrot.slane %v33550_v51, 1  ;;  %v23694_v38 = vsel %vm23660_vm5, %v23693_v58, %v33399_v43  ;;  %v23784_v61 = vpop.permute.xlu0 %23783 }
0x1190   : > { %v23928_v40 = vsel %vm23675_vm10, %v23927_v3, %v23926_v62  ;;  %v24200_v56 = vsel %vm23660_vm5, %v24199_v15, %v24198_v30  ;;  %v23696_v7 = vsel %vm23663_vm6, %v23695_v37, %v23694_v38  ;;  %v23697_v44 = vrot.slane %v33436_v1, 4  ;;  %23796 = vst.msk [vmem:[%s33307_s25] sm:$0xff] %vm23795_vm11, %v23784_v61 }
0x1191   : > { %23935 = vrot.lane.b32.xlu0 %v23928_v40, %s27973_s27  ;;  %v24202_v5 = vsel %vm23663_vm6, %v24201_v19, %v24200_v56  ;;  %v23699_v59 = vrot.slane %v33429_v54, 3  ;;  %v23703_v31 = vrot.slane %v33450_v20, 1  ;;  %v23701_v43 = vrot.slane %v33456_v45, 2 }
0x1192   : > { %v24204_v58 = vsel %vm23666_vm7, %v24203_v55, %v24202_v5  ;;  %v23698_v34 = vsel %vm23666_vm7, %v23697_v44, %v23696_v7  ;;  %v23706_v37 = vsel %vm23657_vm4, %v23705_v21, %v33478_v16  ;;  %v23707_v10 = vrot.slane %v33505_v49, 6 }
0x1193   : > { %v24206_v6 = vsel %vm23669_vm8, %v24205_v57, %v24204_v58  ;;  %v23700_v42 = vsel %vm23669_vm8, %v23699_v59, %v23698_v34  ;;  %v23709_v33 = vrot.slane %v33498_v2, 5  ;;  %v23711_v22 = vrot.slane %v33529_v47, 4  ;;  %v23786_v16 = vpop.permute.xlu0 %23785 }
0x1194   : > { %v24208_v63 = vsel %vm23672_vm9, %v24207_v39, %v24206_v6  ;;  %v23702_v11 = vsel %vm23672_vm9, %v23701_v43, %v23700_v42  ;;  %v23708_v35 = vsel %vm23660_vm5, %v23707_v10, %v23706_v37  ;;  %v23713_v4 = vrot.slane %v33522_v46, 3  ;;  %23797 = vst.msk [vmem:[%s33307_s25 + $0x10] sm:$0xff] %vm23795_vm11, %v23786_v16 }
0x1195   : > { %v24209_v21 = vsel %vm23675_vm10, %v33544_v26, %v24208_v63  ;;  %v23704_v23 = vsel %vm23675_vm10, %v23703_v31, %v23702_v11  ;;  %v23710_v18 = vsel %vm23663_vm6, %v23709_v33, %v23708_v35  ;;  %v23715_v50 = vrot.slane %v33550_v51, 2 }
0x1196   : > { %24216 = vrot.lane.b32.xlu1 %v24209_v21, %s27973_s27  ;;  %v23712_v12 = vsel %vm23666_vm7, %v23711_v22, %v23710_v18  ;;  %v23717_v24 = vrot.slane %v33544_v26, 1  ;;  %23725 = vst.msk [vmem:[%s33307_s25 + $0x20] sm:$0xff] %vm293_vm0, %v23704_v23  ;;  %v23978_v52 = vsel %vm23660_vm5, %v23977_v29, %v33406_v60  ;;  %v23982_v8 = vrot.slane %v33429_v54, 7 }
0x1197   : > { %v23714_v41 = vsel %vm23669_vm8, %v23713_v4, %v23712_v12  ;;  %v23980_v17 = vsel %vm23663_vm6, %v23979_v27, %v23978_v52  ;;  %v23986_v3 = vrot.slane %v33450_v20, 5  ;;  %v23984_v28 = vrot.slane %v33456_v45, 6  ;;  %v23857_v48 = vpop.permute.xlu0 %23856 }
0x1198   : > { %v23716_v53 = vsel %vm23672_vm9, %v23715_v50, %v23714_v41  ;;  %v23981_v60 = vsel %vm23666_vm7, %v33436_v1, %v23980_v17  ;;  %v23990_v25 = vsel %vm23657_vm4, %v23989_v0, %v23988_v36  ;;  %v23991_v13 = vrot.slane %v33505_v49, 2  ;;  %v24067_v49 = vpop.permute.xlu1 %24066  ;;  %23869 = vst.msk [vmem:[%s33307_s25] sm:$0xff] %vm23868_vm12, %v23857_v48 }
0x1199   : > { %v23718_v27 = vsel %vm23675_vm10, %v23717_v24, %v23716_v53  ;;  %v23983_v29 = vsel %vm23669_vm8, %v23982_v8, %v23981_v60  ;;  %v23993_v54 = vrot.slane %v33498_v2, 1  ;;  %v23996_v20 = vrot.slane %v33522_v46, 7  ;;  %24078 = vst.msk [vmem:[%s33307_s25 + $0x8] sm:$0xff] %vm23795_vm11, %v24067_v49 }
0x119a   : > { %23726 = vst.msk [vmem:[%s33307_s25 + $0x30] sm:$0xff] %vm293_vm0, %v23718_v27  ;;  %v23985_v1 = vsel %vm23672_vm9, %v23984_v28, %v23983_v29  ;;  %v23992_v45 = vsel %vm23660_vm5, %v23991_v13, %v23990_v25  ;;  %v23998_v32 = vrot.slane %v33550_v51, 6  ;;  %v24000_v51 = vrot.slane %v33544_v26, 5 }
0x119b   : > { %v23987_v0 = vsel %vm23675_vm10, %v23986_v3, %v23985_v1  ;;  %v23994_v36 = vsel %vm23663_vm6, %v23993_v54, %v23992_v45  ;;  %v23859_v55 = vpop.permute.xlu0 %23858 }
0x119c   : > { %v23995_v2 = vsel %vm23666_vm7, %v33529_v47, %v23994_v36  ;;  %24008 = vst.msk [vmem:[%s33307_s25 + $0x28] sm:$0xff] %vm293_vm0, %v23987_v0  ;;  %v24069_v15 = vpop.permute.xlu1 %24068 }
0x119d   : > { %v23997_v46 = vsel %vm23669_vm8, %v23996_v20, %v23995_v2  ;;  %24079 = vst.msk [vmem:[%s33307_s25 + $0x18] sm:$0xff] %vm23795_vm11, %v24069_v15 }
0x119e   : > { %v23999_v14 = vsel %vm23672_vm9, %v23998_v32, %v23997_v46  ;;  %23870 = vst.msk [vmem:[%s33307_s25 + $0x10] sm:$0xff] %vm23868_vm12, %v23859_v55 }
0x119f   : > { %v24001_v9 = vsel %vm23675_vm10, %v24000_v51, %v23999_v14  ;;  %v23930_v57 = vpop.permute.xlu0 %23929 }
0x11a0   : > { %24009 = vst.msk [vmem:[%s33307_s25 + $0x38] sm:$0xff] %vm293_vm0, %v24001_v9  ;;  %v24139_v47 = vpop.permute.xlu1 %24138 }
0x11a1   : > { %24150 = vst.msk [vmem:[%s33307_s25 + $0x8] sm:$0xff] %vm23868_vm12, %v24139_v47 }
0x11a2   : > { %23942 = vst.msk [vmem:[%s33307_s25] sm:$0xff] %vm23941_vm13, %v23930_v57 }
0x11a3   : > { %v23932_v30 = vpop.permute.xlu0 %23931 }
0x11a4   : > { %v24141_v19 = vpop.permute.xlu1 %24140  ;;  %23943 = vst.msk [vmem:[%s33307_s25 + $0x10] sm:$0xff] %vm23941_vm13, %v23932_v30 }
0x11a5   : > { %24151 = vst.msk [vmem:[%s33307_s25 + $0x18] sm:$0xff] %vm23868_vm12, %v24141_v19 }
0x11a8   : > { %v24211_v26 = vpop.permute.xlu1 %24210 }
0x11a9   : > { %24222 = vst.msk [vmem:[%s33307_s25 + $0x8] sm:$0xff] %vm23941_vm13, %v24211_v26 }
0x11ac   : > { %v24213_v62 = vpop.permute.xlu1 %24212 }
0x11ad   : > { %24223 = vst.msk [vmem:[%s33307_s25 + $0x18] sm:$0xff] %vm23941_vm13, %v24213_v62 }
0x11e4   : > { %v24143_v39 = vpop.permute.xlu1 %24142 }
0x11e6   : > { %v23788_v38 = vpop.permute.xlu0 %23787 }
0x11e7   : > { %23798 = vst.msk [vmem:[%s33307_s25 + $0x20] sm:$0xff] %vm23795_vm11, %v23788_v38 }
0x11e8   : > { %v24071_v40 = vpop.permute.xlu1 %24070 }
0x11e9   : > { %24080 = vst.msk [vmem:[%s33307_s25 + $0x28] sm:$0xff] %vm23795_vm11, %v24071_v40 }
0x11ea   : > { %v23861_v56 = vpop.permute.xlu0 %23860  ;;  %24152 = vst.msk [vmem:[%s33307_s25 + $0x28] sm:$0xff] %vm23868_vm12, %v24143_v39 }
0x11eb   : > { %23871 = vst.msk [vmem:[%s33307_s25 + $0x20] sm:$0xff] %vm23868_vm12, %v23861_v56 }
0x11ef   : > { %v23934_v7 = vpop.permute.xlu0 %23933 }
0x11f0   : > { %23944 = vst.msk [vmem:[%s33307_s25 + $0x20] sm:$0xff] %vm23941_vm13, %v23934_v7 }
0x11f5   : > { %v24145_v44 = vpop.permute.xlu1 %24144 }
0x11f7   : > { %v23790_v5 = vpop.permute.xlu0 %23789 }
0x11f8   : > { %23799 = vst.msk [vmem:[%s33307_s25 + $0x30] sm:$0xff] %vm23795_vm11, %v23790_v5 }
0x11f9   : > { %v24073_v59 = vpop.permute.xlu1 %24072 }
0x11fa   : > { %24081 = vst.msk [vmem:[%s33307_s25 + $0x38] sm:$0xff] %vm23795_vm11, %v24073_v59 }
0x11fb   : > { %24153 = vst.msk [vmem:[%s33307_s25 + $0x38] sm:$0xff] %vm23868_vm12, %v24145_v44 }
0x11fe   : > { %v23863_v31 = vpop.permute.xlu0 %23862 }
0x11ff   : > { %23872 = vst.msk [vmem:[%s33307_s25 + $0x30] sm:$0xff] %vm23868_vm12, %v23863_v31 }
0x1200   : > { %v24215_v43 = vpop.permute.xlu1 %24214 }
0x1201   : > { %24224 = vst.msk [vmem:[%s33307_s25 + $0x28] sm:$0xff] %vm23941_vm13, %v24215_v43 }
0x1203   : > { %v23936_v58 = vpop.permute.xlu0 %23935 }
0x1204   : > { %23945 = vst.msk [vmem:[%s33307_s25 + $0x30] sm:$0xff] %vm23941_vm13, %v23936_v58 }
0x1208   : > { %v24217_v34 = vpop.permute.xlu1 %24216 }
0x1209   : > { %24225 = vst.msk [vmem:[%s33307_s25 + $0x38] sm:$0xff] %vm23941_vm13, %v24217_v34 }
0x120a PF: > { %s16_s21 = sadd.s32 1, %s27964_s21  }
0x120b   : > { %p13_p5 = scmp.ge.s32.totalorder %s16_s21, 4  }
0x120d   :  { %15 = sbr.rel (!%p13_p5) target bundleno = 1 (0x1), region = 74 }

</bundles_post_ra>
